<compile_context>
chip_gen: v5e
topology: v5e:2x2
jax: 0.10.0
libtpu: 0.0.40
codegen_flags: <defaults>
</compile_context>

<pallas_src>
import numpy as np
import jax
import jax.numpy as jnp
from jax import lax
from jax.experimental import pallas as pl
from jax.experimental.pallas import tpu as pltpu

# ----------------------------------------------------------------------------
# Static model configuration (matches nn.Linear(5376, 17): 384 * 2 * 7)
# ----------------------------------------------------------------------------
N_BATCH = 2
C_IN = 64
C_PAD_IN = 128                      # input channels zero-padded to a lane tile
H_IN = 16
W_SP = 7
NW = N_BATCH * W_SP                 # 14 real (n, w) rows
NW_PAD = 16                         # padded to a full sublane tile

LAYER_SPECS = [                     # (cin, cout, stride) for the 6 convs
    (64, 128, 2), (128, 128, 1),
    (128, 256, 2), (256, 256, 1),
    (256, 384, 2), (384, 384, 1),
]
C_LAST = 384
C_MAX = 384
H_LAST = 2
H_BUF = 10                          # max intermediate H (8) + leading/trailing halo
FC_IN = C_LAST * H_LAST * W_SP      # 5376
FC_OUT = 17
FC_COLS = W_SP * FC_OUT             # 119 (per-h weight slab width, grouped [w, o])


# ----------------------------------------------------------------------------
# The single fused kernel
# ----------------------------------------------------------------------------
def _fused_cnn_kernel(x_ref,
                      w1, s1, w2, s2, w3, s3, w4, s4, w5, s5, w6, s6,
                      vh_ref, mask_ref, bfc_ref,
                      o_ref,
                      act_a, act_b):
    """x_ref: (18, 16, 128) bf16 input with zero halo/pad rows.
    w*: (3*cin, cout) bf16 conv weight with BN scale folded in.
    s*: (1, cout) f32 folded BN shift.  vh_ref: (2, 384, 119) bf16 per-h FC
    weight slabs.  mask_ref: (16, 119) f32 block-diagonal selector.
    bfc_ref: (1, 17) f32 FC bias.  act_a/act_b: (10, 16, 384) bf16 ping/pong."""
    f32 = jnp.float32
    bf16 = jnp.bfloat16

    # Leading halo rows (input h = -1) must read as zero.
    act_a[0, :, :] = jnp.zeros((NW_PAD, C_MAX), bf16)
    act_b[0, :, :] = jnp.zeros((NW_PAD, C_MAX), bf16)

    def conv_layer(src, dst, w_ref, s_ref, cin, cout, stride, h_out, zero_tail):
        m = h_out * NW_PAD
        if stride == 1:
            # Rows kh .. kh+h_out-1 are contiguous (halo rows supply the pad).
            full = src[0:h_out + 2, :, 0:cin]
            taps = [full[kh:kh + h_out] for kh in range(3)]
        else:
            # Even/odd split of one contiguous read replaces a strided gather.
            whole = src[0:2 * h_out + 2, :, 0:cin]
            wr = whole.reshape(h_out + 1, 2 * NW_PAD, cin)
            ev = wr[:, 0:NW_PAD, :]          # buffer rows 0, 2, 4, ...
            od = wr[:, NW_PAD:2 * NW_PAD, :]  # buffer rows 1, 3, 5, ...
            taps = [ev[0:h_out], od[0:h_out], ev[1:h_out + 1]]
        # Stack rows into M and fuse the 3 taps into K: one MXU dot per layer.
        lhs = jnp.concatenate([t.reshape(m, cin) for t in taps], axis=1)
        acc = jnp.dot(lhs, w_ref[...], preferred_element_type=f32)
        y = jnp.maximum(acc + s_ref[...], 0.0).astype(bf16)   # folded BN + ReLU
        dst[1:1 + h_out, :, 0:cout] = y.reshape(h_out, NW_PAD, cout)
        if zero_tail:
            # Trailing halo row for the next stride-1 layer.
            dst[1 + h_out, :, 0:cout] = jnp.zeros((NW_PAD, cout), bf16)

    conv_layer(x_ref, act_a, w1, s1, 128, 128, 2, 8, True)    # Block1 conv1
    conv_layer(act_a, act_b, w2, s2, 128, 128, 1, 8, False)   # Block1 conv2
    conv_layer(act_b, act_a, w3, s3, 128, 256, 2, 4, True)    # Block2 conv1
    conv_layer(act_a, act_b, w4, s4, 256, 256, 1, 4, False)   # Block2 conv2
    conv_layer(act_b, act_a, w5, s5, 256, 384, 2, 2, True)    # Block3 conv1
    conv_layer(act_a, act_b, w6, s6, 384, 384, 1, 2, False)   # Block3 conv2

    # ---- Linear(5376, 17): per-h weight slabs + block-diagonal reduction ----
    a0 = act_b[1, :, :]                                        # (16, 384) h=0
    a1 = act_b[2, :, :]                                        # (16, 384) h=1
    p = (jnp.dot(a0, vh_ref[0], preferred_element_type=f32)
         + jnp.dot(a1, vh_ref[1], preferred_element_type=f32))  # (16, 119)
    pm = p * mask_ref[...]             # keep only the matching-w column block
    colred = pm[:, 0:FC_OUT]
    for w in range(1, W_SP):
        colred = colred + pm[:, w * FC_OUT:(w + 1) * FC_OUT]   # (16, 17)
    rows = lax.broadcasted_iota(jnp.int32, (NW_PAD, 1), 0)
    sel0 = (rows < W_SP).astype(f32)                           # sample 0 rows
    sel1 = jnp.logical_and(rows >= W_SP, rows < 2 * W_SP).astype(f32)
    r0 = jnp.sum(colred * sel0, axis=0, keepdims=True)
    r1 = jnp.sum(colred * sel1, axis=0, keepdims=True)
    logits = jnp.concatenate([r0, r1], axis=0) + bfc_ref[...]  # (2, 17)

    # ---- LayerNorm over ALL elements (fresh nn.LayerNorm: gamma=1, beta=0) --
    n_elem = float(N_BATCH * FC_OUT)
    mean = jnp.sum(jnp.sum(logits, axis=1, keepdims=True),
                   axis=0, keepdims=True) / n_elem
    d = logits - mean
    var = jnp.sum(jnp.sum(d * d, axis=1, keepdims=True),
                  axis=0, keepdims=True) / n_elem
    o_ref[...] = d * lax.rsqrt(var + 1e-5)


# ----------------------------------------------------------------------------
# Wrapper: one pallas_call, everything VMEM-resident (~3 MB total)
# ----------------------------------------------------------------------------
@jax.jit
def cnn_forward(x_nchw, conv_args, vh, mask, bfc):
    # NCHW -> (H, N*W, C), pad H with halo rows, NW 14->16, C 64->128, cast bf16.
    xk = jnp.transpose(x_nchw, (2, 0, 3, 1)).reshape(H_IN, NW, C_IN)
    xk = jnp.pad(xk, ((1, 1), (0, NW_PAD - NW), (0, C_PAD_IN - C_IN)))
    xk = xk.astype(jnp.bfloat16)
    args = [xk]
    for (wm, sh) in conv_args:
        args.append(wm)
        args.append(sh)
    args += [vh, mask, bfc]
    return pl.pallas_call(
        _fused_cnn_kernel,
        out_shape=jax.ShapeDtypeStruct((N_BATCH, FC_OUT), jnp.float32),
        in_specs=[pl.BlockSpec(memory_space=pltpu.MemorySpace.VMEM)] * len(args),
        out_specs=pl.BlockSpec(memory_space=pltpu.MemorySpace.VMEM),
        scratch_shapes=[
            pltpu.VMEM((H_BUF, NW_PAD, C_MAX), jnp.bfloat16),   # ping activations
            pltpu.VMEM((H_BUF, NW_PAD, C_MAX), jnp.bfloat16),   # pong activations
        ],
    )(*args)


# ----------------------------------------------------------------------------
# Parameter construction / one-time folding (outside the traced forward)
# ----------------------------------------------------------------------------
def make_raw_params(key):
    conv = []
    for (cin, cout, _stride) in LAYER_SPECS:
        key, kw, kb, kg, kbt = jax.random.split(key, 5)
        conv.append(dict(
            w=0.05 * jax.random.normal(kw, (cout, cin, 3, 1), jnp.float32),
            b=0.05 * jax.random.normal(kb, (cout,), jnp.float32),
            gamma=1.0 + 0.1 * jax.random.normal(kg, (cout,), jnp.float32),
            beta=0.1 * jax.random.normal(kbt, (cout,), jnp.float32),
        ))
    key, kfw, kfb = jax.random.split(key, 3)
    fc_w = 0.02 * jax.random.normal(kfw, (FC_OUT, FC_IN), jnp.float32)  # torch (out, in)
    fc_b = 0.02 * jax.random.normal(kfb, (FC_OUT,), jnp.float32)
    return conv, fc_w, fc_b


def fold_params(conv_raw, fc_w, fc_b):
    """Fold eval-mode BatchNorm into the conv weights/shift, build the per-h FC
    weight slabs (columns grouped by (w, out)) and the block-diagonal mask,
    cast matmul operands to bf16."""
    # TODO(synk): training-mode BatchNorm (per-batch statistics) not implemented;
    # eval-mode statistics (running_mean=0, running_var=1) are used.
    eps = 1e-5
    folded = []
    for p, (cin, cout, _stride) in zip(conv_raw, LAYER_SPECS):
        scale = p["gamma"] / jnp.sqrt(1.0 + eps)
        shift = scale * p["b"] + p["beta"]
        # (cout, cin, 3, 1) -> (3, cin, cout), BN scale folded into W
        wm = jnp.transpose(p["w"][:, :, :, 0], (2, 1, 0)) * scale[None, None, :]
        if cin < C_PAD_IN:                       # zero-pad input channels to 128
            wm = jnp.pad(wm, ((0, 0), (0, C_PAD_IN - cin), (0, 0)))
            cin_pad = C_PAD_IN
        else:
            cin_pad = cin
        wm = wm.reshape(3 * cin_pad, cout)       # row index = kh*cin_pad + c
        folded.append((wm.astype(jnp.bfloat16),
                       shift.reshape(1, cout).astype(jnp.float32)))

    # torch flatten index: c*(H*W) + h*W + w.  Per-h slab: vh[h][c, w*17 + o].
    vh = fc_w.reshape(FC_OUT, C_LAST, H_LAST, W_SP)          # [o, c, h, w]
    vh = jnp.transpose(vh, (2, 1, 3, 0)).reshape(H_LAST, C_LAST, FC_COLS)

    # Block-diagonal mask: row nw (= n*7 + w) keeps only column block w*17..+17.
    rows = np.arange(NW_PAD)
    cols = np.arange(FC_COLS)
    mask = ((cols[None, :] // FC_OUT) == (rows[:, None] % W_SP)) & \
           (rows[:, None] < NW)
    mask = jnp.asarray(mask, jnp.float32)

    return (folded, vh.astype(jnp.bfloat16), mask,
            fc_b.reshape(1, FC_OUT).astype(jnp.float32))


if __name__ == "__main__":
    key = jax.random.PRNGKey(0)
    key, kx = jax.random.split(key)
    # Input NCHW: (batch=2, C=64, H=16, W=7); after three stride-2 convs the
    # activation is (2, 384, 2, 7) -> flatten 5376, matching nn.Linear(5376, 17).
    x = jax.random.normal(kx, (N_BATCH, C_IN, H_IN, W_SP), jnp.float32)
    conv_raw, fc_w, fc_b = make_raw_params(key)
    conv_args, vh, mask, bfc = fold_params(conv_raw, fc_w, fc_b)

    out = cnn_forward(x, conv_args, vh, mask, bfc)
    out = jax.block_until_ready(out)
    assert out.shape == (N_BATCH, FC_OUT), out.shape
    assert bool(jnp.all(jnp.isfinite(out)))
    print("KERNEL_OK")
</pallas_src>

<mosaic_0001>
module attributes {stable_mosaic.version = 11 : i64} {
  func.func @_fused_cnn_kernel(%arg0: memref<18x16x128xbf16, #tpu.memory_space<vmem>>, %arg1: memref<384x128xbf16, #tpu.memory_space<vmem>>, %arg2: memref<1x128xf32, #tpu.memory_space<vmem>>, %arg3: memref<384x128xbf16, #tpu.memory_space<vmem>>, %arg4: memref<1x128xf32, #tpu.memory_space<vmem>>, %arg5: memref<384x256xbf16, #tpu.memory_space<vmem>>, %arg6: memref<1x256xf32, #tpu.memory_space<vmem>>, %arg7: memref<768x256xbf16, #tpu.memory_space<vmem>>, %arg8: memref<1x256xf32, #tpu.memory_space<vmem>>, %arg9: memref<768x384xbf16, #tpu.memory_space<vmem>>, %arg10: memref<1x384xf32, #tpu.memory_space<vmem>>, %arg11: memref<1152x384xbf16, #tpu.memory_space<vmem>>, %arg12: memref<1x384xf32, #tpu.memory_space<vmem>>, %arg13: memref<2x384x119xbf16, #tpu.memory_space<vmem>>, %arg14: memref<16x119xf32, #tpu.memory_space<vmem>>, %arg15: memref<1x17xf32, #tpu.memory_space<vmem>>, %arg16: memref<2x17xf32, #tpu.memory_space<vmem>>, %arg17: memref<10x16x384xbf16, #tpu.memory_space<vmem>>, %arg18: memref<10x16x384xbf16, #tpu.memory_space<vmem>>) attributes {dimension_semantics = [], scalar_prefetch = 0 : i64, scratch_operands = 2 : i64, tpu.core_type = #tpu.core_type<tc>} {
    %cst = arith.constant 0.000000e+00 : bf16
    %0 = vector.broadcast %cst : bf16 to vector<16x384xbf16>
    %c0 = arith.constant 0 : index
    %c0_0 = arith.constant 0 : index
    %c0_1 = arith.constant 0 : index
    %1 = vector.load %arg17[%c0, %c0_0, %c0_1] : memref<10x16x384xbf16, #tpu.memory_space<vmem>>, vector<1x16x384xbf16>
    %2 = vector.shape_cast %1 : vector<1x16x384xbf16> to vector<16x384xbf16>
    %3 = vector.shape_cast %0 : vector<16x384xbf16> to vector<1x16x384xbf16>
    tpu.vector_store %arg17[%c0, %c0_0, %c0_1], %3 {strides = array<i32>} : memref<10x16x384xbf16, #tpu.memory_space<vmem>>, vector<1x16x384xbf16>,
    %cst_2 = arith.constant 0.000000e+00 : bf16
    %4 = vector.broadcast %cst_2 : bf16 to vector<16x384xbf16>
    %c0_3 = arith.constant 0 : index
    %c0_4 = arith.constant 0 : index
    %c0_5 = arith.constant 0 : index
    %5 = vector.load %arg18[%c0_3, %c0_4, %c0_5] : memref<10x16x384xbf16, #tpu.memory_space<vmem>>, vector<1x16x384xbf16>
    %6 = vector.shape_cast %5 : vector<1x16x384xbf16> to vector<16x384xbf16>
    %7 = vector.shape_cast %4 : vector<16x384xbf16> to vector<1x16x384xbf16>
    tpu.vector_store %arg18[%c0_3, %c0_4, %c0_5], %7 {strides = array<i32>} : memref<10x16x384xbf16, #tpu.memory_space<vmem>>, vector<1x16x384xbf16>,
    %c0_6 = arith.constant 0 : index
    %c0_7 = arith.constant 0 : index
    %c0_8 = arith.constant 0 : index
    %8 = vector.load %arg0[%c0_6, %c0_7, %c0_8] : memref<18x16x128xbf16, #tpu.memory_space<vmem>>, vector<18x16x128xbf16>
    %9 = vector.shape_cast %8 : vector<18x16x128xbf16> to vector<9x32x128xbf16>
    %10 = vector.extract_strided_slice %9 {offsets = [0, 0, 0], sizes = [9, 16, 128], strides = [1, 1, 1]} : vector<9x32x128xbf16> to vector<9x16x128xbf16>
    %11 = vector.extract_strided_slice %9 {offsets = [0, 16, 0], sizes = [9, 16, 128], strides = [1, 1, 1]} : vector<9x32x128xbf16> to vector<9x16x128xbf16>
    %12 = vector.extract_strided_slice %10 {offsets = [0, 0, 0], sizes = [8, 16, 128], strides = [1, 1, 1]} : vector<9x16x128xbf16> to vector<8x16x128xbf16>
    %13 = vector.extract_strided_slice %11 {offsets = [0, 0, 0], sizes = [8, 16, 128], strides = [1, 1, 1]} : vector<9x16x128xbf16> to vector<8x16x128xbf16>
    %14 = vector.extract_strided_slice %10 {offsets = [1, 0, 0], sizes = [8, 16, 128], strides = [1, 1, 1]} : vector<9x16x128xbf16> to vector<8x16x128xbf16>
    %15 = vector.shape_cast %12 : vector<8x16x128xbf16> to vector<128x128xbf16>
    %16 = vector.shape_cast %13 : vector<8x16x128xbf16> to vector<128x128xbf16>
    %17 = vector.shape_cast %14 : vector<8x16x128xbf16> to vector<128x128xbf16>
    %18 = tpu.concatenate %15, %16, %17 in 1 : vector<128x128xbf16>, vector<128x128xbf16>, vector<128x128xbf16> -> vector<128x384xbf16>
    %c0_9 = arith.constant 0 : index
    %c0_10 = arith.constant 0 : index
    %19 = vector.load %arg1[%c0_9, %c0_10] : memref<384x128xbf16, #tpu.memory_space<vmem>>, vector<384x128xbf16>
    %cst_11 = arith.constant dense<0.000000e+00> : vector<128x128xf32>
    %20 = tpu.matmul %18, %19, %cst_11 {dimension_numbers = #tpu.dot_dimension_numbers<[1], [0], [0], [1], [0, 0, 1, 1], [], []>} : vector<128x384xbf16>, vector<384x128xbf16>, vector<128x128xf32> -> vector<128x128xf32>
    %c0_12 = arith.constant 0 : index
    %c0_13 = arith.constant 0 : index
    %21 = vector.load %arg2[%c0_12, %c0_13] : memref<1x128xf32, #tpu.memory_space<vmem>>, vector<1x128xf32>
    %22 = vector.broadcast %21 : vector<1x128xf32> to vector<128x128xf32>
    %23 = arith.addf %20, %22 : vector<128x128xf32>
    %cst_14 = arith.constant 0.000000e+00 : f32
    %24 = vector.broadcast %cst_14 : f32 to vector<128x128xf32>
    %25 = arith.maximumf %23, %24 : vector<128x128xf32>
    %26 = arith.truncf %25 : vector<128x128xf32> to vector<128x128xbf16>
    %27 = vector.shape_cast %26 : vector<128x128xbf16> to vector<8x16x128xbf16>
    %c1 = arith.constant 1 : index
    %c0_15 = arith.constant 0 : index
    %c0_16 = arith.constant 0 : index
    %28 = vector.load %arg17[%c1, %c0_15, %c0_16] : memref<10x16x384xbf16, #tpu.memory_space<vmem>>, vector<8x16x128xbf16>
    tpu.vector_store %arg17[%c1, %c0_15, %c0_16], %27 {strides = array<i32>} : memref<10x16x384xbf16, #tpu.memory_space<vmem>>, vector<8x16x128xbf16>,
    %cst_17 = arith.constant 0.000000e+00 : bf16
    %29 = vector.broadcast %cst_17 : bf16 to vector<16x128xbf16>
    %c9 = arith.constant 9 : index
    %c0_18 = arith.constant 0 : index
    %c0_19 = arith.constant 0 : index
    %30 = vector.load %arg17[%c9, %c0_18, %c0_19] : memref<10x16x384xbf16, #tpu.memory_space<vmem>>, vector<1x16x128xbf16>
    %31 = vector.shape_cast %30 : vector<1x16x128xbf16> to vector<16x128xbf16>
    %32 = vector.shape_cast %29 : vector<16x128xbf16> to vector<1x16x128xbf16>
    tpu.vector_store %arg17[%c9, %c0_18, %c0_19], %32 {strides = array<i32>} : memref<10x16x384xbf16, #tpu.memory_space<vmem>>, vector<1x16x128xbf16>,
    %c0_20 = arith.constant 0 : index
    %c0_21 = arith.constant 0 : index
    %c0_22 = arith.constant 0 : index
    %33 = vector.load %arg17[%c0_20, %c0_21, %c0_22] : memref<10x16x384xbf16, #tpu.memory_space<vmem>>, vector<10x16x128xbf16>
    %34 = vector.extract_strided_slice %33 {offsets = [0, 0, 0], sizes = [8, 16, 128], strides = [1, 1, 1]} : vector<10x16x128xbf16> to vector<8x16x128xbf16>
    %35 = vector.extract_strided_slice %33 {offsets = [1, 0, 0], sizes = [8, 16, 128], strides = [1, 1, 1]} : vector<10x16x128xbf16> to vector<8x16x128xbf16>
    %36 = vector.extract_strided_slice %33 {offsets = [2, 0, 0], sizes = [8, 16, 128], strides = [1, 1, 1]} : vector<10x16x128xbf16> to vector<8x16x128xbf16>
    %37 = vector.shape_cast %34 : vector<8x16x128xbf16> to vector<128x128xbf16>
    %38 = vector.shape_cast %35 : vector<8x16x128xbf16> to vector<128x128xbf16>
    %39 = vector.shape_cast %36 : vector<8x16x128xbf16> to vector<128x128xbf16>
    %40 = tpu.concatenate %37, %38, %39 in 1 : vector<128x128xbf16>, vector<128x128xbf16>, vector<128x128xbf16> -> vector<128x384xbf16>
    %c0_23 = arith.constant 0 : index
    %c0_24 = arith.constant 0 : index
    %41 = vector.load %arg3[%c0_23, %c0_24] : memref<384x128xbf16, #tpu.memory_space<vmem>>, vector<384x128xbf16>
    %cst_25 = arith.constant dense<0.000000e+00> : vector<128x128xf32>
    %42 = tpu.matmul %40, %41, %cst_25 {dimension_numbers = #tpu.dot_dimension_numbers<[1], [0], [0], [1], [0, 0, 1, 1], [], []>} : vector<128x384xbf16>, vector<384x128xbf16>, vector<128x128xf32> -> vector<128x128xf32>
    %c0_26 = arith.constant 0 : index
    %c0_27 = arith.constant 0 : index
    %43 = vector.load %arg4[%c0_26, %c0_27] : memref<1x128xf32, #tpu.memory_space<vmem>>, vector<1x128xf32>
    %44 = vector.broadcast %43 : vector<1x128xf32> to vector<128x128xf32>
    %45 = arith.addf %42, %44 : vector<128x128xf32>
    %cst_28 = arith.constant 0.000000e+00 : f32
    %46 = vector.broadcast %cst_28 : f32 to vector<128x128xf32>
    %47 = arith.maximumf %45, %46 : vector<128x128xf32>
    %48 = arith.truncf %47 : vector<128x128xf32> to vector<128x128xbf16>
    %49 = vector.shape_cast %48 : vector<128x128xbf16> to vector<8x16x128xbf16>
    %c1_29 = arith.constant 1 : index
    %c0_30 = arith.constant 0 : index
    %c0_31 = arith.constant 0 : index
    %50 = vector.load %arg18[%c1_29, %c0_30, %c0_31] : memref<10x16x384xbf16, #tpu.memory_space<vmem>>, vector<8x16x128xbf16>
    tpu.vector_store %arg18[%c1_29, %c0_30, %c0_31], %49 {strides = array<i32>} : memref<10x16x384xbf16, #tpu.memory_space<vmem>>, vector<8x16x128xbf16>,
    %c0_32 = arith.constant 0 : index
    %c0_33 = arith.constant 0 : index
    %c0_34 = arith.constant 0 : index
    %51 = vector.load %arg18[%c0_32, %c0_33, %c0_34] : memref<10x16x384xbf16, #tpu.memory_space<vmem>>, vector<10x16x128xbf16>
    %52 = vector.shape_cast %51 : vector<10x16x128xbf16> to vector<5x32x128xbf16>
    %53 = vector.extract_strided_slice %52 {offsets = [0, 0, 0], sizes = [5, 16, 128], strides = [1, 1, 1]} : vector<5x32x128xbf16> to vector<5x16x128xbf16>
    %54 = vector.extract_strided_slice %52 {offsets = [0, 16, 0], sizes = [5, 16, 128], strides = [1, 1, 1]} : vector<5x32x128xbf16> to vector<5x16x128xbf16>
    %55 = vector.extract_strided_slice %53 {offsets = [0, 0, 0], sizes = [4, 16, 128], strides = [1, 1, 1]} : vector<5x16x128xbf16> to vector<4x16x128xbf16>
    %56 = vector.extract_strided_slice %54 {offsets = [0, 0, 0], sizes = [4, 16, 128], strides = [1, 1, 1]} : vector<5x16x128xbf16> to vector<4x16x128xbf16>
    %57 = vector.extract_strided_slice %53 {offsets = [1, 0, 0], sizes = [4, 16, 128], strides = [1, 1, 1]} : vector<5x16x128xbf16> to vector<4x16x128xbf16>
    %58 = vector.shape_cast %55 : vector<4x16x128xbf16> to vector<64x128xbf16>
    %59 = vector.shape_cast %56 : vector<4x16x128xbf16> to vector<64x128xbf16>
    %60 = vector.shape_cast %57 : vector<4x16x128xbf16> to vector<64x128xbf16>
    %61 = tpu.concatenate %58, %59, %60 in 1 : vector<64x128xbf16>, vector<64x128xbf16>, vector<64x128xbf16> -> vector<64x384xbf16>
    %c0_35 = arith.constant 0 : index
    %c0_36 = arith.constant 0 : index
    %62 = vector.load %arg5[%c0_35, %c0_36] : memref<384x256xbf16, #tpu.memory_space<vmem>>, vector<384x256xbf16>
    %cst_37 = arith.constant dense<0.000000e+00> : vector<64x256xf32>
    %63 = tpu.matmul %61, %62, %cst_37 {dimension_numbers = #tpu.dot_dimension_numbers<[1], [0], [0], [1], [0, 0, 1, 1], [], []>} : vector<64x384xbf16>, vector<384x256xbf16>, vector<64x256xf32> -> vector<64x256xf32>
    %c0_38 = arith.constant 0 : index
    %c0_39 = arith.constant 0 : index
    %64 = vector.load %arg6[%c0_38, %c0_39] : memref<1x256xf32, #tpu.memory_space<vmem>>, vector<1x256xf32>
    %65 = vector.broadcast %64 : vector<1x256xf32> to vector<64x256xf32>
    %66 = arith.addf %63, %65 : vector<64x256xf32>
    %cst_40 = arith.constant 0.000000e+00 : f32
    %67 = vector.broadcast %cst_40 : f32 to vector<64x256xf32>
    %68 = arith.maximumf %66, %67 : vector<64x256xf32>
    %69 = arith.truncf %68 : vector<64x256xf32> to vector<64x256xbf16>
    %70 = vector.shape_cast %69 : vector<64x256xbf16> to vector<4x16x256xbf16>
    %c1_41 = arith.constant 1 : index
    %c0_42 = arith.constant 0 : index
    %c0_43 = arith.constant 0 : index
    %71 = vector.load %arg17[%c1_41, %c0_42, %c0_43] : memref<10x16x384xbf16, #tpu.memory_space<vmem>>, vector<4x16x256xbf16>
    tpu.vector_store %arg17[%c1_41, %c0_42, %c0_43], %70 {strides = array<i32>} : memref<10x16x384xbf16, #tpu.memory_space<vmem>>, vector<4x16x256xbf16>,
    %cst_44 = arith.constant 0.000000e+00 : bf16
    %72 = vector.broadcast %cst_44 : bf16 to vector<16x256xbf16>
    %c5 = arith.constant 5 : index
    %c0_45 = arith.constant 0 : index
    %c0_46 = arith.constant 0 : index
    %73 = vector.load %arg17[%c5, %c0_45, %c0_46] : memref<10x16x384xbf16, #tpu.memory_space<vmem>>, vector<1x16x256xbf16>
    %74 = vector.shape_cast %73 : vector<1x16x256xbf16> to vector<16x256xbf16>
    %75 = vector.shape_cast %72 : vector<16x256xbf16> to vector<1x16x256xbf16>
    tpu.vector_store %arg17[%c5, %c0_45, %c0_46], %75 {strides = array<i32>} : memref<10x16x384xbf16, #tpu.memory_space<vmem>>, vector<1x16x256xbf16>,
    %c0_47 = arith.constant 0 : index
    %c0_48 = arith.constant 0 : index
    %c0_49 = arith.constant 0 : index
    %76 = vector.load %arg17[%c0_47, %c0_48, %c0_49] : memref<10x16x384xbf16, #tpu.memory_space<vmem>>, vector<6x16x256xbf16>
    %77 = vector.extract_strided_slice %76 {offsets = [0, 0, 0], sizes = [4, 16, 256], strides = [1, 1, 1]} : vector<6x16x256xbf16> to vector<4x16x256xbf16>
    %78 = vector.extract_strided_slice %76 {offsets = [1, 0, 0], sizes = [4, 16, 256], strides = [1, 1, 1]} : vector<6x16x256xbf16> to vector<4x16x256xbf16>
    %79 = vector.extract_strided_slice %76 {offsets = [2, 0, 0], sizes = [4, 16, 256], strides = [1, 1, 1]} : vector<6x16x256xbf16> to vector<4x16x256xbf16>
    %80 = vector.shape_cast %77 : vector<4x16x256xbf16> to vector<64x256xbf16>
    %81 = vector.shape_cast %78 : vector<4x16x256xbf16> to vector<64x256xbf16>
    %82 = vector.shape_cast %79 : vector<4x16x256xbf16> to vector<64x256xbf16>
    %83 = tpu.concatenate %80, %81, %82 in 1 : vector<64x256xbf16>, vector<64x256xbf16>, vector<64x256xbf16> -> vector<64x768xbf16>
    %c0_50 = arith.constant 0 : index
    %c0_51 = arith.constant 0 : index
    %84 = vector.load %arg7[%c0_50, %c0_51] : memref<768x256xbf16, #tpu.memory_space<vmem>>, vector<768x256xbf16>
    %cst_52 = arith.constant dense<0.000000e+00> : vector<64x256xf32>
    %85 = tpu.matmul %83, %84, %cst_52 {dimension_numbers = #tpu.dot_dimension_numbers<[1], [0], [0], [1], [0, 0, 1, 1], [], []>} : vector<64x768xbf16>, vector<768x256xbf16>, vector<64x256xf32> -> vector<64x256xf32>
    %c0_53 = arith.constant 0 : index
    %c0_54 = arith.constant 0 : index
    %86 = vector.load %arg8[%c0_53, %c0_54] : memref<1x256xf32, #tpu.memory_space<vmem>>, vector<1x256xf32>
    %87 = vector.broadcast %86 : vector<1x256xf32> to vector<64x256xf32>
    %88 = arith.addf %85, %87 : vector<64x256xf32>
    %cst_55 = arith.constant 0.000000e+00 : f32
    %89 = vector.broadcast %cst_55 : f32 to vector<64x256xf32>
    %90 = arith.maximumf %88, %89 : vector<64x256xf32>
    %91 = arith.truncf %90 : vector<64x256xf32> to vector<64x256xbf16>
    %92 = vector.shape_cast %91 : vector<64x256xbf16> to vector<4x16x256xbf16>
    %c1_56 = arith.constant 1 : index
    %c0_57 = arith.constant 0 : index
    %c0_58 = arith.constant 0 : index
    %93 = vector.load %arg18[%c1_56, %c0_57, %c0_58] : memref<10x16x384xbf16, #tpu.memory_space<vmem>>, vector<4x16x256xbf16>
    tpu.vector_store %arg18[%c1_56, %c0_57, %c0_58], %92 {strides = array<i32>} : memref<10x16x384xbf16, #tpu.memory_space<vmem>>, vector<4x16x256xbf16>,
    %c0_59 = arith.constant 0 : index
    %c0_60 = arith.constant 0 : index
    %c0_61 = arith.constant 0 : index
    %94 = vector.load %arg18[%c0_59, %c0_60, %c0_61] : memref<10x16x384xbf16, #tpu.memory_space<vmem>>, vector<6x16x256xbf16>
    %95 = vector.shape_cast %94 : vector<6x16x256xbf16> to vector<3x32x256xbf16>
    %96 = vector.extract_strided_slice %95 {offsets = [0, 0, 0], sizes = [3, 16, 256], strides = [1, 1, 1]} : vector<3x32x256xbf16> to vector<3x16x256xbf16>
    %97 = vector.extract_strided_slice %95 {offsets = [0, 16, 0], sizes = [3, 16, 256], strides = [1, 1, 1]} : vector<3x32x256xbf16> to vector<3x16x256xbf16>
    %98 = vector.extract_strided_slice %96 {offsets = [0, 0, 0], sizes = [2, 16, 256], strides = [1, 1, 1]} : vector<3x16x256xbf16> to vector<2x16x256xbf16>
    %99 = vector.extract_strided_slice %97 {offsets = [0, 0, 0], sizes = [2, 16, 256], strides = [1, 1, 1]} : vector<3x16x256xbf16> to vector<2x16x256xbf16>
    %100 = vector.extract_strided_slice %96 {offsets = [1, 0, 0], sizes = [2, 16, 256], strides = [1, 1, 1]} : vector<3x16x256xbf16> to vector<2x16x256xbf16>
    %101 = vector.shape_cast %98 : vector<2x16x256xbf16> to vector<32x256xbf16>
    %102 = vector.shape_cast %99 : vector<2x16x256xbf16> to vector<32x256xbf16>
    %103 = vector.shape_cast %100 : vector<2x16x256xbf16> to vector<32x256xbf16>
    %104 = tpu.concatenate %101, %102, %103 in 1 : vector<32x256xbf16>, vector<32x256xbf16>, vector<32x256xbf16> -> vector<32x768xbf16>
    %c0_62 = arith.constant 0 : index
    %c0_63 = arith.constant 0 : index
    %105 = vector.load %arg9[%c0_62, %c0_63] : memref<768x384xbf16, #tpu.memory_space<vmem>>, vector<768x384xbf16>
    %cst_64 = arith.constant dense<0.000000e+00> : vector<32x384xf32>
    %106 = tpu.matmul %104, %105, %cst_64 {dimension_numbers = #tpu.dot_dimension_numbers<[1], [0], [0], [1], [0, 0, 1, 1], [], []>} : vector<32x768xbf16>, vector<768x384xbf16>, vector<32x384xf32> -> vector<32x384xf32>
    %c0_65 = arith.constant 0 : index
    %c0_66 = arith.constant 0 : index
    %107 = vector.load %arg10[%c0_65, %c0_66] : memref<1x384xf32, #tpu.memory_space<vmem>>, vector<1x384xf32>
    %108 = vector.broadcast %107 : vector<1x384xf32> to vector<32x384xf32>
    %109 = arith.addf %106, %108 : vector<32x384xf32>
    %cst_67 = arith.constant 0.000000e+00 : f32
    %110 = vector.broadcast %cst_67 : f32 to vector<32x384xf32>
    %111 = arith.maximumf %109, %110 : vector<32x384xf32>
    %112 = arith.truncf %111 : vector<32x384xf32> to vector<32x384xbf16>
    %113 = vector.shape_cast %112 : vector<32x384xbf16> to vector<2x16x384xbf16>
    %c1_68 = arith.constant 1 : index
    %c0_69 = arith.constant 0 : index
    %c0_70 = arith.constant 0 : index
    %114 = vector.load %arg17[%c1_68, %c0_69, %c0_70] : memref<10x16x384xbf16, #tpu.memory_space<vmem>>, vector<2x16x384xbf16>
    tpu.vector_store %arg17[%c1_68, %c0_69, %c0_70], %113 {strides = array<i32>} : memref<10x16x384xbf16, #tpu.memory_space<vmem>>, vector<2x16x384xbf16>,
    %cst_71 = arith.constant 0.000000e+00 : bf16
    %115 = vector.broadcast %cst_71 : bf16 to vector<16x384xbf16>
    %c3 = arith.constant 3 : index
    %c0_72 = arith.constant 0 : index
    %c0_73 = arith.constant 0 : index
    %116 = vector.load %arg17[%c3, %c0_72, %c0_73] : memref<10x16x384xbf16, #tpu.memory_space<vmem>>, vector<1x16x384xbf16>
    %117 = vector.shape_cast %116 : vector<1x16x384xbf16> to vector<16x384xbf16>
    %118 = vector.shape_cast %115 : vector<16x384xbf16> to vector<1x16x384xbf16>
    tpu.vector_store %arg17[%c3, %c0_72, %c0_73], %118 {strides = array<i32>} : memref<10x16x384xbf16, #tpu.memory_space<vmem>>, vector<1x16x384xbf16>,
    %c0_74 = arith.constant 0 : index
    %c0_75 = arith.constant 0 : index
    %c0_76 = arith.constant 0 : index
    %119 = vector.load %arg17[%c0_74, %c0_75, %c0_76] : memref<10x16x384xbf16, #tpu.memory_space<vmem>>, vector<4x16x384xbf16>
    %120 = vector.extract_strided_slice %119 {offsets = [0, 0, 0], sizes = [2, 16, 384], strides = [1, 1, 1]} : vector<4x16x384xbf16> to vector<2x16x384xbf16>
    %121 = vector.extract_strided_slice %119 {offsets = [1, 0, 0], sizes = [2, 16, 384], strides = [1, 1, 1]} : vector<4x16x384xbf16> to vector<2x16x384xbf16>
    %122 = vector.extract_strided_slice %119 {offsets = [2, 0, 0], sizes = [2, 16, 384], strides = [1, 1, 1]} : vector<4x16x384xbf16> to vector<2x16x384xbf16>
    %123 = vector.shape_cast %120 : vector<2x16x384xbf16> to vector<32x384xbf16>
    %124 = vector.shape_cast %121 : vector<2x16x384xbf16> to vector<32x384xbf16>
    %125 = vector.shape_cast %122 : vector<2x16x384xbf16> to vector<32x384xbf16>
    %126 = tpu.concatenate %123, %124, %125 in 1 : vector<32x384xbf16>, vector<32x384xbf16>, vector<32x384xbf16> -> vector<32x1152xbf16>
    %c0_77 = arith.constant 0 : index
    %c0_78 = arith.constant 0 : index
    %127 = vector.load %arg11[%c0_77, %c0_78] : memref<1152x384xbf16, #tpu.memory_space<vmem>>, vector<1152x384xbf16>
    %cst_79 = arith.constant dense<0.000000e+00> : vector<32x384xf32>
    %128 = tpu.matmul %126, %127, %cst_79 {dimension_numbers = #tpu.dot_dimension_numbers<[1], [0], [0], [1], [0, 0, 1, 1], [], []>} : vector<32x1152xbf16>, vector<1152x384xbf16>, vector<32x384xf32> -> vector<32x384xf32>
    %c0_80 = arith.constant 0 : index
    %c0_81 = arith.constant 0 : index
    %129 = vector.load %arg12[%c0_80, %c0_81] : memref<1x384xf32, #tpu.memory_space<vmem>>, vector<1x384xf32>
    %130 = vector.broadcast %129 : vector<1x384xf32> to vector<32x384xf32>
    %131 = arith.addf %128, %130 : vector<32x384xf32>
    %cst_82 = arith.constant 0.000000e+00 : f32
    %132 = vector.broadcast %cst_82 : f32 to vector<32x384xf32>
    %133 = arith.maximumf %131, %132 : vector<32x384xf32>
    %134 = arith.truncf %133 : vector<32x384xf32> to vector<32x384xbf16>
    %135 = vector.shape_cast %134 : vector<32x384xbf16> to vector<2x16x384xbf16>
    %c1_83 = arith.constant 1 : index
    %c0_84 = arith.constant 0 : index
    %c0_85 = arith.constant 0 : index
    %136 = vector.load %arg18[%c1_83, %c0_84, %c0_85] : memref<10x16x384xbf16, #tpu.memory_space<vmem>>, vector<2x16x384xbf16>
    tpu.vector_store %arg18[%c1_83, %c0_84, %c0_85], %135 {strides = array<i32>} : memref<10x16x384xbf16, #tpu.memory_space<vmem>>, vector<2x16x384xbf16>,
    %c1_86 = arith.constant 1 : index
    %c0_87 = arith.constant 0 : index
    %c0_88 = arith.constant 0 : index
    %137 = vector.load %arg18[%c1_86, %c0_87, %c0_88] : memref<10x16x384xbf16, #tpu.memory_space<vmem>>, vector<1x16x384xbf16>
    %138 = vector.shape_cast %137 : vector<1x16x384xbf16> to vector<16x384xbf16>
    %c2 = arith.constant 2 : index
    %c0_89 = arith.constant 0 : index
    %c0_90 = arith.constant 0 : index
    %139 = vector.load %arg18[%c2, %c0_89, %c0_90] : memref<10x16x384xbf16, #tpu.memory_space<vmem>>, vector<1x16x384xbf16>
    %140 = vector.shape_cast %139 : vector<1x16x384xbf16> to vector<16x384xbf16>
    %c0_91 = arith.constant 0 : index
    %c0_92 = arith.constant 0 : index
    %c0_93 = arith.constant 0 : index
    %141 = vector.load %arg13[%c0_91, %c0_92, %c0_93] : memref<2x384x119xbf16, #tpu.memory_space<vmem>>, vector<1x384x119xbf16>
    %142 = vector.shape_cast %141 : vector<1x384x119xbf16> to vector<384x119xbf16>
    %cst_94 = arith.constant dense<0.000000e+00> : vector<16x119xf32>
    %143 = tpu.matmul %138, %142, %cst_94 {dimension_numbers = #tpu.dot_dimension_numbers<[1], [0], [0], [1], [0, 0, 1, 1], [], []>} : vector<16x384xbf16>, vector<384x119xbf16>, vector<16x119xf32> -> vector<16x119xf32>
    %c1_95 = arith.constant 1 : index
    %c0_96 = arith.constant 0 : index
    %c0_97 = arith.constant 0 : index
    %144 = vector.load %arg13[%c1_95, %c0_96, %c0_97] : memref<2x384x119xbf16, #tpu.memory_space<vmem>>, vector<1x384x119xbf16>
    %145 = vector.shape_cast %144 : vector<1x384x119xbf16> to vector<384x119xbf16>
    %cst_98 = arith.constant dense<0.000000e+00> : vector<16x119xf32>
    %146 = tpu.matmul %140, %145, %cst_98 {dimension_numbers = #tpu.dot_dimension_numbers<[1], [0], [0], [1], [0, 0, 1, 1], [], []>} : vector<16x384xbf16>, vector<384x119xbf16>, vector<16x119xf32> -> vector<16x119xf32>
    %147 = arith.addf %143, %146 : vector<16x119xf32>
    %c0_99 = arith.constant 0 : index
    %c0_100 = arith.constant 0 : index
    %148 = vector.load %arg14[%c0_99, %c0_100] : memref<16x119xf32, #tpu.memory_space<vmem>>, vector<16x119xf32>
    %149 = arith.mulf %147, %148 : vector<16x119xf32>
    %150 = vector.extract_strided_slice %149 {offsets = [0, 0], sizes = [16, 17], strides = [1, 1]} : vector<16x119xf32> to vector<16x17xf32>
    %151 = vector.extract_strided_slice %149 {offsets = [0, 17], sizes = [16, 17], strides = [1, 1]} : vector<16x119xf32> to vector<16x17xf32>
    %152 = arith.addf %150, %151 : vector<16x17xf32>
    %153 = vector.extract_strided_slice %149 {offsets = [0, 34], sizes = [16, 17], strides = [1, 1]} : vector<16x119xf32> to vector<16x17xf32>
    %154 = arith.addf %152, %153 : vector<16x17xf32>
    %155 = vector.extract_strided_slice %149 {offsets = [0, 51], sizes = [16, 17], strides = [1, 1]} : vector<16x119xf32> to vector<16x17xf32>
    %156 = arith.addf %154, %155 : vector<16x17xf32>
    %157 = vector.extract_strided_slice %149 {offsets = [0, 68], sizes = [16, 17], strides = [1, 1]} : vector<16x119xf32> to vector<16x17xf32>
    %158 = arith.addf %156, %157 : vector<16x17xf32>
    %159 = vector.extract_strided_slice %149 {offsets = [0, 85], sizes = [16, 17], strides = [1, 1]} : vector<16x119xf32> to vector<16x17xf32>
    %160 = arith.addf %158, %159 : vector<16x17xf32>
    %161 = vector.extract_strided_slice %149 {offsets = [0, 102], sizes = [16, 17], strides = [1, 1]} : vector<16x119xf32> to vector<16x17xf32>
    %162 = arith.addf %160, %161 : vector<16x17xf32>
    %163 = tpu.iota {dimensions = array<i32: 0>} : vector<16x1xi32>
    %c7_i32 = arith.constant 7 : i32
    %164 = vector.broadcast %c7_i32 : i32 to vector<16x1xi32>
    %165 = arith.cmpi slt, %163, %164 : vector<16x1xi32>
    %166 = arith.extui %165 : vector<16x1xi1> to vector<16x1xi32>
    %167 = arith.sitofp %166 : vector<16x1xi32> to vector<16x1xf32>
    %c7_i32_101 = arith.constant 7 : i32
    %168 = vector.broadcast %c7_i32_101 : i32 to vector<16x1xi32>
    %169 = arith.cmpi sge, %163, %168 : vector<16x1xi32>
    %c14_i32 = arith.constant 14 : i32
    %170 = vector.broadcast %c14_i32 : i32 to vector<16x1xi32>
    %171 = arith.cmpi slt, %163, %170 : vector<16x1xi32>
    %172 = arith.andi %169, %171 : vector<16x1xi1>
    %173 = arith.extui %172 : vector<16x1xi1> to vector<16x1xi32>
    %174 = arith.sitofp %173 : vector<16x1xi32> to vector<16x1xf32>
    %175 = vector.broadcast %167 : vector<16x1xf32> to vector<16x17xf32>
    %176 = arith.mulf %162, %175 : vector<16x17xf32>
    %cst_102 = arith.constant dense<0.000000e+00> : vector<17xf32>
    %177 = vector.multi_reduction <add>, %176, %cst_102 [0] : vector<16x17xf32> to vector<17xf32>
    %178 = vector.shape_cast %177 : vector<17xf32> to vector<1x17xf32>
    %179 = vector.broadcast %174 : vector<16x1xf32> to vector<16x17xf32>
    %180 = arith.mulf %162, %179 : vector<16x17xf32>
    %cst_103 = arith.constant dense<0.000000e+00> : vector<17xf32>
    %181 = vector.multi_reduction <add>, %180, %cst_103 [0] : vector<16x17xf32> to vector<17xf32>
    %182 = vector.shape_cast %181 : vector<17xf32> to vector<1x17xf32>
    %183 = tpu.concatenate %178, %182 in 0 : vector<1x17xf32>, vector<1x17xf32> -> vector<2x17xf32>
    %c0_104 = arith.constant 0 : index
    %c0_105 = arith.constant 0 : index
    %184 = vector.load %arg15[%c0_104, %c0_105] : memref<1x17xf32, #tpu.memory_space<vmem>>, vector<1x17xf32>
    %185 = vector.broadcast %184 : vector<1x17xf32> to vector<2x17xf32>
    %186 = arith.addf %183, %185 : vector<2x17xf32>
    %cst_106 = arith.constant dense<0.000000e+00> : vector<2xf32>
    %187 = vector.multi_reduction <add>, %186, %cst_106 [1] : vector<2x17xf32> to vector<2xf32>
    %188 = vector.shape_cast %187 : vector<2xf32> to vector<2x1xf32>
    %cst_107 = arith.constant dense<0.000000e+00> : vector<1xf32>
    %189 = vector.multi_reduction <add>, %188, %cst_107 [0] : vector<2x1xf32> to vector<1xf32>
    %190 = vector.shape_cast %189 : vector<1xf32> to vector<1x1xf32>
    %cst_108 = arith.constant 3.400000e+01 : f32
    %191 = vector.broadcast %cst_108 : f32 to vector<1x1xf32>
    %192 = arith.divf %190, %191 : vector<1x1xf32>
    %193 = vector.broadcast %192 : vector<1x1xf32> to vector<2x17xf32>
    %194 = arith.subf %186, %193 : vector<2x17xf32>
    %195 = arith.mulf %194, %194 : vector<2x17xf32>
    %cst_109 = arith.constant dense<0.000000e+00> : vector<2xf32>
    %196 = vector.multi_reduction <add>, %195, %cst_109 [1] : vector<2x17xf32> to vector<2xf32>
    %197 = vector.shape_cast %196 : vector<2xf32> to vector<2x1xf32>
    %cst_110 = arith.constant dense<0.000000e+00> : vector<1xf32>
    %198 = vector.multi_reduction <add>, %197, %cst_110 [0] : vector<2x1xf32> to vector<1xf32>
    %199 = vector.shape_cast %198 : vector<1xf32> to vector<1x1xf32>
    %cst_111 = arith.constant 3.400000e+01 : f32
    %200 = vector.broadcast %cst_111 : f32 to vector<1x1xf32>
    %201 = arith.divf %199, %200 : vector<1x1xf32>
    %cst_112 = arith.constant 9.99999974E-6 : f32
    %202 = vector.broadcast %cst_112 : f32 to vector<1x1xf32>
    %203 = arith.addf %201, %202 : vector<1x1xf32>
    %204 = math.rsqrt %203 : vector<1x1xf32>
    %205 = vector.broadcast %204 : vector<1x1xf32> to vector<2x17xf32>
    %206 = arith.mulf %194, %205 : vector<2x17xf32>
    %c0_113 = arith.constant 0 : index
    %c0_114 = arith.constant 0 : index
    %207 = vector.load %arg16[%c0_113, %c0_114] : memref<2x17xf32, #tpu.memory_space<vmem>>, vector<2x17xf32>
    tpu.vector_store %arg16[%c0_113, %c0_114], %206 {strides = array<i32>} : memref<2x17xf32, #tpu.memory_space<vmem>>, vector<2x17xf32>,
    return
  }
}

</mosaic_0001>

<bundles_post_ra>
// kernel: cnn_forward.1
= control target key start
LH: loop header
LB: loop body
LE: loop exit
PB: predicated region body
PF: predicated region fallthrough
CT: control target
= control target key end

     0   :  { %s12531_s0 = inlined_call_operand.vmem [shape: bf16[18,16,128], index: 0, kind: input, shape index: {}]   ;;  %s12532_s1 = inlined_call_operand.hbm [shape: bf16[384,128], index: 1, kind: input, shape index: {}]   ;;  %s12533_s2 = inlined_call_operand.vmem [shape: f32[1,128], index: 2, kind: input, shape index: {}]   ;;  %s12534_s3 = inlined_call_operand.hbm [shape: bf16[384,128], index: 3, kind: input, shape index: {}]   ;;  %s12535_s4 = inlined_call_operand.vmem [shape: f32[1,128], index: 4, kind: input, shape index: {}]   ;;  %s12536_s5 = inlined_call_operand.hbm [shape: bf16[384,256], index: 5, kind: input, shape index: {}]   ;;  %s12537_s6 = inlined_call_operand.vmem [shape: f32[1,256], index: 6, kind: input, shape index: {}]   ;;  %s12538_s7 = inlined_call_operand.hbm [shape: bf16[768,256], index: 7, kind: input, shape index: {}]   ;;  %s12539_s8 = inlined_call_operand.vmem [shape: f32[1,256], index: 8, kind: input, shape index: {}]   ;;  %s12540_s9 = inlined_call_operand.vmem [shape: bf16[768,384], index: 9, kind: input, shape index: {}]   ;;  %s12541_s10 = inlined_call_operand.vmem [shape: f32[1,384], index: 10, kind: input, shape index: {}]   ;;  %s12542_s11 = inlined_call_operand.hbm [shape: bf16[1152,384], index: 11, kind: input, shape index: {}]   ;;  %s12543_s12 = inlined_call_operand.vmem [shape: f32[1,384], index: 12, kind: input, shape index: {}]   ;;  %s12544_s13 = inlined_call_operand.vmem [shape: bf16[2,384,119], index: 13, kind: input, shape index: {}]   ;;  %s12545_s14 = inlined_call_operand.vmem [shape: f32[16,119], index: 14, kind: input, shape index: {}]   ;;  %s12546_s15 = inlined_call_operand.vmem [shape: f32[1,17], index: 15, kind: input, shape index: {}]   ;;  %s12547_s16 = inlined_call_operand.hbm [shape: f32[2,17], index: 16, kind: output, shape index: {}]  }
   0x1   :  { %12549 = sst [smem:[#allocation18_spill]] %s12531_s0 }
   0x2   :  { %12550 = sst [smem:[#allocation19_spill]] %s12547_s16 }
   0x3   :  { %21 = vsyncpa [#allocation5], 0 }
   0x4   :  { %22 = vsyncpa [#allocation8], 0 }
   0x5   :  { %23 = vsyncpa [#allocation11], 0 }
   0x6   :  { %24 = vsyncpa [#allocation6], 0  ;;  %s46_s23 = sshll.u32 %s12534_s3, 4  ;;  %s10516_s24 = smov [#allocation7]   ;;  %s47_s23 = int_to_ptr.hbm [resolvable:$true] %s46_s23 }
   0x7   :  { %s48_s25 = sshll.u32 %s10516_s24, 4  ;;  %s10517_s26 = smov 64   ;;  %s49_s25 = int_to_ptr.vmem [resolvable:$true] %s48_s25 }
   0x8   :  { %s10518_s27 = smov 4   ;;  %s76_s30 = sshll.u32 %s12538_s7, 4  ;;  %s77_s30 = int_to_ptr.hbm [resolvable:$true] %s76_s30 }
   0x9   :  { %54 = dma.hbm_to_vmem [thread:$0]  %s47_s23, 3072, %s49_s25, [#allocation8], %s10517_s26, %s10517_s26, %s10518_s27  }
   0xa   :  { %s10519_s0 = smov [#allocation10]   ;;  %s31_s20 = sshll.u32 %s12532_s1, 4  ;;  %s32_s20 = int_to_ptr.hbm [resolvable:$true] %s31_s20 }
   0xb   :  { %s78_s17 = sshll.u32 %s10519_s0, 4  ;;  %s10520_s3 = smov 128   ;;  %s79_s17 = int_to_ptr.vmem [resolvable:$true] %s78_s17 }
   0xc   :  { %s10521_s21 = smov 8   ;;  %s61_s23 = sshll.u32 %s12536_s5, 4  ;;  %s62_s23 = int_to_ptr.hbm [resolvable:$true] %s61_s23 }
   0xd   :  { %84 = dma.hbm_to_vmem [thread:$0]  %s77_s30, 12288, %s79_s17, [#allocation11], %s10520_s3, %s10520_s3, %s10521_s21  }
   0xe   :  { %s10522_s25 = smov [#allocation4]   ;;  %s10523_s7 = smov [#allocation9]  }
   0xf   :  { %s33_s16 = sshll.u32 %s10522_s25, 4  ;;  %s63_s28 = sshll.u32 %s10523_s7, 4  ;;  %s34_s16 = int_to_ptr.vmem [resolvable:$true] %s33_s16  ;;  %s64_s28 = int_to_ptr.vmem [resolvable:$true] %s63_s28 }
  0x10   :  { %39 = dma.hbm_to_vmem [thread:$0]  %s32_s20, 3072, %s34_s16, [#allocation5], %s10517_s26, %s10517_s26, %s10518_s27  }
  0x11   :  { %s95_s1 = sshll.u32 %s12542_s11, 4  ;;  %s10524_s18 = smov [#allocation12]   ;;  %s96_s1 = int_to_ptr.hbm [resolvable:$true] %s95_s1 }
  0x12   :  { %69 = dma.hbm_to_vmem [thread:$0]  %s62_s23, 6144, %s64_s28, [#allocation8], %s10520_s3, %s10520_s3, %s10521_s21  }
  0x13   :  { %s97_s30 = sshll.u32 %s10524_s18, 4  ;;  %s10525_s17 = smov 192   ;;  %s98_s30 = int_to_ptr.vmem [resolvable:$true] %s97_s30 }
  0x14   :  { %s10526_s19 = smov 12  }
  0x15   :  { %103 = dma.hbm_to_vmem [thread:$0]  %s96_s1, 27648, %s98_s30, [#allocation11], %s10525_s17, %s10525_s17, %s10526_s19  }
  0x16   :  { %10508 = dma.done.wait [#allocation5], 3072  }
  0x17   :  { %10509 = vsyncadd [#allocation5], 4294964224 }
  0x18   :  { %10510 = dma.done.wait [#allocation8], 9216  }
  0x19   :  { %10511 = vsyncadd [#allocation8], 4294958080 }
  0x1a   :  { %10512 = dma.done.wait [#allocation11], 39936  }
  0x1b   :  { %10513 = vsyncadd [#allocation11], 4294927360  ;;  %v9682_v0 = vld [vmem:[#allocation4 + $0x38] sm:$0xff]  ;;  %v9681_v3 = vld [vmem:[#allocation4 + $0x30] sm:$0xff]  ;;  %s12551_s16 = sld [smem:[#allocation18_spill]]  ;;  %v10527_v57 = vmov 0  }
  0x1c   :  { %v9690_v1 = vld [vmem:[#allocation4 + $0x78] sm:$0xff]  ;;  %473 = vmatpush.bf16.msra.mxu0 %v9682_v0  ;;  %v9689_v4 = vld [vmem:[#allocation4 + $0x70] sm:$0xff]  ;;  %v9680_v6 = vld [vmem:[#allocation4 + $0x28] sm:$0xff]  ;;  %133 = vst [vmem:[#allocation2] sm:$0xff] %v10527_v57  ;;  %s10531_s30 = smov 43   ;;  %vm6810_vm3 = vcmask 138240  }
  0x1d   :  { %v9698_v2 = vld [vmem:[#allocation4 + $0xb8] sm:$0xff]  ;;  %522 = vmatpush.bf16.msra.mxu1 %v9690_v1  ;;  %v9697_v5 = vld [vmem:[#allocation4 + $0xb0] sm:$0xff]  ;;  %v9688_v7 = vld [vmem:[#allocation4 + $0x68] sm:$0xff]  ;;  %135 = vst [vmem:[#allocation2 + $0xc] sm:$0xff] %v10527_v57  ;;  %vm6831_vm4 = vcmask 1040384   ;;  %vm6838_vm5 = vcmask 132096  }
  0x1e   :  { %571 = vmatpush.bf16.msra.mxu2 %v9698_v2  ;;  %v9696_v8 = vld [vmem:[#allocation4 + $0xa8] sm:$0xff]  ;;  %v9679_v9 = vld [vmem:[#allocation4 + $0x20] sm:$0xff]  ;;  %v9678_v12 = vld [vmem:[#allocation4 + $0x18] sm:$0xff]  ;;  %134 = vst [vmem:[#allocation2 + $0x8] sm:$0xf] %v10527_v57  ;;  %vm6842_vm6 = vcmask 1041408  }
  0x1f   :  { %v9687_v10 = vld [vmem:[#allocation4 + $0x60] sm:$0xff]  ;;  %v9686_v13 = vld [vmem:[#allocation4 + $0x58] sm:$0xff]  ;;  %v9677_v15 = vld [vmem:[#allocation4 + $0x10] sm:$0xff]  ;;  %136 = vst [vmem:[#allocation2 + $0x14] sm:$0xf] %v10527_v57  ;;  %s12552_s11 = sld [smem:[#allocation19_spill]] }
  0x20   :  { %474 = vmatpush.bf16.msra.mxu0 %v9681_v3  ;;  %v9695_v11 = vld [vmem:[#allocation4 + $0xa0] sm:$0xff]  ;;  %v9694_v14 = vld [vmem:[#allocation4 + $0x98] sm:$0xff]  ;;  %v9685_v16 = vld [vmem:[#allocation4 + $0x50] sm:$0xff]  ;;  %137 = vst [vmem:[#allocation3] sm:$0xff] %v10527_v57 }
  0x21   :  { %523 = vmatpush.bf16.msra.mxu1 %v9689_v4  ;;  %v9693_v17 = vld [vmem:[#allocation4 + $0x90] sm:$0xff]  ;;  %v9676_v18 = vld [vmem:[#allocation4 + $0x8] sm:$0xff]  ;;  %v9675_v21 = vld [vmem:[#allocation4] sm:$0xff]  ;;  %139 = vst [vmem:[#allocation3 + $0xc] sm:$0xff] %v10527_v57 }
  0x22   :  { %572 = vmatpush.bf16.msra.mxu2 %v9697_v5  ;;  %v9684_v19 = vld [vmem:[#allocation4 + $0x48] sm:$0xff]  ;;  %v9683_v22 = vld [vmem:[#allocation4 + $0x40] sm:$0xff]  ;;  %v9660_v26 = vld [vmem:[%s12551_s16 + $0x10] sm:$0xff]  ;;  %670 = vst [vmem:[#allocation2 + $0xd8] sm:$0xf] %v10527_v57 }
  0x23   :  { %v9692_v20 = vld [vmem:[#allocation4 + $0x88] sm:$0xff]  ;;  %v9691_v23 = vld [vmem:[#allocation4 + $0x80] sm:$0xff]  ;;  %v9724_v27 = vld [vmem:[#allocation7 + $0x78] sm:$0xff]  ;;  %671 = vst [vmem:[#allocation2 + $0xe4] sm:$0xf] %v10527_v57 }
  0x24   :  { %475 = vmatpush.bf16.msra.mxu0 %v9680_v6  ;;  %v9658_v24 = vld [vmem:[%s12551_s16] sm:$0xff]  ;;  %v9659_v25 = vld [vmem:[%s12551_s16 + $0x8] sm:$0xff]  ;;  %v9732_v28 = vld [vmem:[#allocation7 + $0xb8] sm:$0xff]  ;;  %4153 = vst [vmem:[#allocation2 + $0x50] sm:$0xf] %v10527_v57 }
  0x25   :  { %524 = vmatpush.bf16.msra.mxu1 %v9688_v7  ;;  %v9661_v29 = vld [vmem:[%s12551_s16 + $0x18] sm:$0xff]  ;;  %v9662_v30 = vld [vmem:[%s12551_s16 + $0x20] sm:$0xff]  ;;  %v9723_v31 = vld [vmem:[#allocation7 + $0x70] sm:$0xff]  ;;  %4155 = vst [vmem:[#allocation2 + $0x5c] sm:$0xf] %v10527_v57  ;;  %s6891_s26 = sshll.u32 %s12552_s11, 4  ;;  %s6892_s26 = int_to_ptr.hbm [resolvable:$true] %s6891_s26 }
  0x26   :  { %573 = vmatpush.bf16.msra.mxu2 %v9696_v8  ;;  %v9731_v32 = vld [vmem:[#allocation7 + $0xb0] sm:$0xff]  ;;  %v9663_v33 = vld [vmem:[%s12551_s16 + $0x28] sm:$0xff]  ;;  %v9665_v37 = vld [vmem:[%s12551_s16 + $0x38] sm:$0xff] }
  0x27   :  { %v9664_v34 = vld [vmem:[%s12551_s16 + $0x30] sm:$0xff]  ;;  %v9722_v35 = vld [vmem:[#allocation7 + $0x68] sm:$0xff]  ;;  %v9666_v38 = vld [vmem:[%s12551_s16 + $0x40] sm:$0xff] }
  0x28   :  { %476 = vmatpush.bf16.msra.mxu0 %v9679_v9  ;;  %v9730_v36 = vld [vmem:[#allocation7 + $0xa8] sm:$0xff]  ;;  %v9721_v39 = vld [vmem:[#allocation7 + $0x60] sm:$0xff]  ;;  %v9668_v42 = vld [vmem:[%s12551_s16 + $0x50] sm:$0xff] }
  0x29   :  { %525 = vmatpush.bf16.msra.mxu1 %v9687_v10  ;;  %v9729_v40 = vld [vmem:[#allocation7 + $0xa0] sm:$0xff]  ;;  %v9667_v41 = vld [vmem:[%s12551_s16 + $0x48] sm:$0xff]  ;;  %v9720_v43 = vld [vmem:[#allocation7 + $0x58] sm:$0xff] }
  0x2a   :  { %574 = vmatpush.bf16.msra.mxu2 %v9695_v11  ;;  %v9728_v44 = vld [vmem:[#allocation7 + $0x98] sm:$0xff]  ;;  %v9670_v47 = vld [vmem:[%s12551_s16 + $0x60] sm:$0xff]  ;;  %v9715_v48 = vld [vmem:[#allocation7 + $0x30] sm:$0xff] }
  0x2b   :  { %v9716_v45 = vld [vmem:[#allocation7 + $0x38] sm:$0xff]  ;;  %v9719_v49 = vld [vmem:[#allocation7 + $0x50] sm:$0xff]  ;;  %v9714_v50 = vld [vmem:[#allocation7 + $0x28] sm:$0xff] }
  0x2c   :  { %477 = vmatpush.bf16.msra.mxu0 %v9678_v12  ;;  %948 = vmatpush.bf16.msra.mxu3 %v9716_v45  ;;  %v9669_v46 = vld [vmem:[%s12551_s16 + $0x58] sm:$0xff]  ;;  %v9727_v51 = vld [vmem:[#allocation7 + $0x90] sm:$0xff]  ;;  %v9713_v52 = vld [vmem:[#allocation7 + $0x20] sm:$0xff] }
  0x2d   :  { %526 = vmatpush.bf16.msra.mxu1 %v9686_v13  ;;  %v9671_v53 = vld [vmem:[%s12551_s16 + $0x68] sm:$0xff]  ;;  %v9712_v54 = vld [vmem:[#allocation7 + $0x18] sm:$0xff]  ;;  %v9672_v55 = vld [vmem:[%s12551_s16 + $0x70] sm:$0xff] }
  0x2e   :  { %575 = vmatpush.bf16.msra.mxu2 %v9694_v14  ;;  %v9711_v56 = vld [vmem:[#allocation7 + $0x10] sm:$0xff]  ;;  %v9710_v58 = vld [vmem:[#allocation7 + $0x8] sm:$0xff]  ;;  %v9709_v59 = vld [vmem:[#allocation7] sm:$0xff] }
  0x2f   :  { %v7069_v60 = vld [vmem:[#allocation2] sm:$0xf]  ;;  %v9718_v61 = vld [vmem:[#allocation7 + $0x48] sm:$0xff]  ;;  %v9673_v63 = vld [vmem:[%s12551_s16 + $0x78] sm:$0xff] }
  0x30   :  { %478 = vmatpush.bf16.msra.mxu0 %v9677_v15  ;;  %949 = vmatpush.bf16.msra.mxu3 %v9715_v48  ;;  %v9699_v62 = vld [vmem:[#allocation2 + $0x8] sm:$0xf0]  ;;  %v9674_v1 = vld [vmem:[%s12551_s16 + $0x80] sm:$0xff]  ;;  %s10528_s16 = smov 77  }
  0x31   :  { %527 = vmatpush.bf16.msra.mxu1 %v9685_v16  ;;  %v7070_v0 = vor.u32 %v9699_v62, %v7069_v60  ;;  %v9726_v2 = vld [vmem:[#allocation7 + $0x88] sm:$0xff]  ;;  %v9717_v3 = vld [vmem:[#allocation7 + $0x40] sm:$0xff] }
  0x32   :  { %576 = vmatpush.bf16.msra.mxu2 %v9693_v17  ;;  %v10701_v4 = vld [vmem:[%s12533_s2] ss:$0 sm:$0xff] }
  0x33   :  { %v9725_v9 = vld [vmem:[#allocation7 + $0x80] sm:$0xff] }
  0x34   :  { %479 = vmatpush.bf16.msra.mxu0 %v9676_v18  ;;  %950 = vmatpush.bf16.msra.mxu3 %v9714_v50 }
  0x35   :  { %528 = vmatpush.bf16.msra.mxu1 %v9684_v19 }
  0x36   :  { %577 = vmatpush.bf16.msra.mxu2 %v9692_v20 }
  0x38   :  { %480 = vmatpush.bf16.msra.mxu0 %v9675_v21  ;;  %951 = vmatpush.bf16.msra.mxu3 %v9713_v52 }
  0x39   :  { %529 = vmatpush.bf16.msra.mxu1 %v9683_v22 }
  0x3a   :  { %578 = vmatpush.bf16.msra.mxu2 %v9691_v23 }
  0x3b   :  { %481 = vmatmul.bf16.vlgmr.msra.gmra.mxu0 %v9658_v24 }
  0x3c   :  { %530 = vmatmul.bf16.vlgmr.msra.gmra.mxu1 %v9659_v25  ;;  %997 = vmatpush.bf16.msrb.mxu0 %v9724_v27 }
  0x3d   :  { %579 = vmatmul.bf16.vlgmr.msra.gmra.mxu2 %v9660_v26  ;;  %1046 = vmatpush.bf16.msrb.mxu1 %v9732_v28 }
  0x3e   :  { %952 = vmatpush.bf16.msra.mxu3 %v9712_v54 }
  0x40   :  { %998 = vmatpush.bf16.msrb.mxu0 %v9723_v31 }
  0x41   :  { %1047 = vmatpush.bf16.msrb.mxu1 %v9731_v32 }
  0x42   :  { %953 = vmatpush.bf16.msra.mxu3 %v9711_v56 }
  0x44   :  { %999 = vmatpush.bf16.msrb.mxu0 %v9722_v35 }
  0x45   :  { %1048 = vmatpush.bf16.msrb.mxu1 %v9730_v36 }
  0x46   :  { %954 = vmatpush.bf16.msra.mxu3 %v9710_v58 }
  0x48   :  { %1000 = vmatpush.bf16.msrb.mxu0 %v9721_v39 }
  0x49   :  { %1049 = vmatpush.bf16.msrb.mxu1 %v9729_v40 }
  0x4a   :  { %955 = vmatpush.bf16.msra.mxu3 %v9709_v59 }
  0x4b   :  { %486 = vmatmul.bf16.gmra.mxu0 %v9660_v26 }
  0x4c   :  { %535 = vmatmul.bf16.gmra.mxu1 %v9661_v29  ;;  %1001 = vmatpush.bf16.msrb.mxu0 %v9720_v43 }
  0x4d   :  { %584 = vmatmul.bf16.gmra.mxu2 %v9662_v30  ;;  %1050 = vmatpush.bf16.msrb.mxu1 %v9728_v44 }
  0x4e   :  { %956 = vmatmul.bf16.vlgmr.msra.gmra.mxu3 %v7070_v0 }
  0x50   :  { %1002 = vmatpush.bf16.msrb.mxu0 %v9719_v49 }
  0x51   :  { %1051 = vmatpush.bf16.msrb.mxu1 %v9727_v51 }
  0x54   :  { %1003 = vmatpush.bf16.msrb.mxu0 %v9718_v61 }
  0x55   :  { %1052 = vmatpush.bf16.msrb.mxu1 %v9726_v2 }
  0x58   :  { %1004 = vmatpush.bf16.msrb.mxu0 %v9717_v3 }
  0x59   :  { %1053 = vmatpush.bf16.msrb.mxu1 %v9725_v9 }
  0x5b   :  { %491 = vmatmul.bf16.gmra.mxu0 %v9662_v30 }
  0x5c   :  { %540 = vmatmul.bf16.gmra.mxu1 %v9663_v33 }
  0x5d   :  { %589 = vmatmul.bf16.gmra.mxu2 %v9664_v34 }
  0x6b   :  { %496 = vmatmul.bf16.gmra.mxu0 %v9664_v34 }
  0x6c   :  { %545 = vmatmul.bf16.gmra.mxu1 %v9665_v37 }
  0x6d   :  { %594 = vmatmul.bf16.gmra.mxu2 %v9666_v38 }
  0x7b   :  { %501 = vmatmul.bf16.gmra.mxu0 %v9666_v38 }
  0x7c   :  { %550 = vmatmul.bf16.gmra.mxu1 %v9667_v41 }
  0x7d   :  { %599 = vmatmul.bf16.gmra.mxu2 %v9668_v42 }
  0x8b   :  { %506 = vmatmul.bf16.gmra.mxu0 %v9668_v42 }
  0x8c   :  { %555 = vmatmul.bf16.gmra.mxu1 %v9669_v46 }
  0x8d   :  { %604 = vmatmul.bf16.gmra.mxu2 %v9670_v47 }
  0x9b   :  { %511 = vmatmul.bf16.gmra.mxu0 %v9670_v47 }
  0x9c   :  { %560 = vmatmul.bf16.gmra.mxu1 %v9671_v53 }
  0x9d   :  { %609 = vmatmul.bf16.gmra.mxu2 %v9672_v55 }
  0xab   :  { %516 = vmatmul.bf16.gmra.mxu0 %v9672_v55 }
  0xac   :  { %565 = vmatmul.bf16.gmra.mxu1 %v9673_v63 }
  0xad   :  { %614 = vmatmul.bf16.gmra.mxu2 %v9674_v1 }
  0xb8   :  { %v482_v5 = vpop.f32.mrf.mxu0 }
  0xb9   :  { %v531_v6 = vpop.f32.mrf.mxu1  ;;  %v483_v7 = vadd.f32 %v10701_v4, %v482_v5 }
  0xbb   :  { %v532_v8 = vadd.f32 %v531_v6, %v483_v7 }
  0xc0   :  { %v580_v10 = vpop.f32.mrf.mxu2  ;;  %v484_v12 = vpop.f32.mrf.mxu0 }
  0xc1   :  { %v581_v11 = vadd.f32 %v580_v10, %v532_v8  ;;  %v533_v13 = vpop.f32.mrf.mxu1  ;;  %v485_v15 = vadd.f32 %v10701_v4, %v484_v12 }
  0xc3   :  { %v620_v14 = vmax.f32 %v581_v11, 0.0  ;;  %v534_v17 = vadd.f32 %v533_v13, %v485_v15 }
  0xc5   :  { %v636_v16 = vpack.c.bf16 %v620_v14, %v620_v14 }
  0xc7   :  { %653 = vst [vmem:[#allocation2 + $0x18] sm:$0xf] %v636_v16 }
  0xc8   :  { %v582_v18 = vpop.f32.mrf.mxu2  ;;  %v487_v20 = vpop.f32.mrf.mxu0 }
  0xc9   :  { %v583_v19 = vadd.f32 %v582_v18, %v534_v17  ;;  %v536_v21 = vpop.f32.mrf.mxu1  ;;  %v488_v22 = vadd.f32 %v10701_v4, %v487_v20 }
  0xcb   :  { %v621_v23 = vmax.f32 %v583_v19, 0.0  ;;  %v537_v25 = vadd.f32 %v536_v21, %v488_v22 }
  0xcd   :  { %v637_v24 = vpack.c.bf16 %v621_v23, %v621_v23 }
  0xce   :  { %v7073_v33 = vld [vmem:[#allocation2 + $0x18] sm:$0xf] }
  0xcf   :  { %654 = vst [vmem:[#allocation2 + $0x24] sm:$0xf] %v637_v24 }
  0xd0   :  { %v585_v26 = vpop.f32.mrf.mxu2  ;;  %v489_v28 = vpop.f32.mrf.mxu0 }
  0xd1   :  { %v586_v27 = vadd.f32 %v585_v26, %v537_v25  ;;  %v538_v29 = vpop.f32.mrf.mxu1  ;;  %v490_v31 = vadd.f32 %v10701_v4, %v489_v28 }
  0xd3   :  { %v622_v30 = vmax.f32 %v586_v27, 0.0  ;;  %v539_v35 = vadd.f32 %v538_v29, %v490_v31 }
  0xd5   :  { %v638_v32 = vpack.c.bf16 %v622_v30, %v622_v30 }
  0xd6   :  { %v9700_v34 = vld [vmem:[#allocation2 + $0x20] sm:$0xf0] }
  0xd7   :  { %655 = vst [vmem:[#allocation2 + $0x30] sm:$0xf] %v638_v32  ;;  %v7074_v36 = vor.u32 %v9700_v34, %v7073_v33 }
  0xd8   :  { %v587_v37 = vpop.f32.mrf.mxu2  ;;  %v492_v39 = vpop.f32.mrf.mxu0 }
  0xd9   :  { %v588_v38 = vadd.f32 %v587_v37, %v539_v35  ;;  %961 = vmatmul.bf16.gmra.mxu3 %v7074_v36  ;;  %1005 = vmatmul.bf16.vlgmr.msrb.gmra.mxu0 %v7074_v36  ;;  %v541_v40 = vpop.f32.mrf.mxu1  ;;  %v493_v41 = vadd.f32 %v10701_v4, %v492_v39 }
  0xdb   :  { %v623_v42 = vmax.f32 %v588_v38, 0.0  ;;  %v542_v44 = vadd.f32 %v541_v40, %v493_v41  ;;  %v7361_v41 = vld [vmem:[#allocation9 + $0xf0] sm:$0xf] }
  0xdd   :  { %v639_v43 = vpack.c.bf16 %v623_v42, %v623_v42  ;;  %v9773_v42 = vld [vmem:[#allocation9 + $0xf4] sm:$0xf0] }
  0xde   :  { %v7077_v52 = vld [vmem:[#allocation2 + $0x30] sm:$0xf] }
  0xdf   :  { %656 = vst [vmem:[#allocation2 + $0x3c] sm:$0xf] %v639_v43 }
  0xe0   :  { %v590_v45 = vpop.f32.mrf.mxu2  ;;  %v494_v47 = vpop.f32.mrf.mxu0 }
  0xe1   :  { %v591_v46 = vadd.f32 %v590_v45, %v542_v44  ;;  %v543_v48 = vpop.f32.mrf.mxu1  ;;  %v495_v50 = vadd.f32 %v10701_v4, %v494_v47  ;;  %v7362_v44 = vor.u32 %v9773_v42, %v7361_v41 }
  0xe3   :  { %v624_v49 = vmax.f32 %v591_v46, 0.0  ;;  %v544_v54 = vadd.f32 %v543_v48, %v495_v50  ;;  %1539 = vmatpush.bf16.msrb.mxu3 %v7362_v44 }
  0xe5   :  { %v640_v51 = vpack.c.bf16 %v624_v49, %v624_v49 }
  0xe6   :  { %v9701_v53 = vld [vmem:[#allocation2 + $0x38] sm:$0xf0] }
  0xe7   :  { %657 = vst [vmem:[#allocation2 + $0x48] sm:$0xf] %v640_v51  ;;  %v7078_v55 = vor.u32 %v9701_v53, %v7077_v52 }
  0xe8   :  { %v592_v56 = vpop.f32.mrf.mxu2  ;;  %v497_v59 = vpop.f32.mrf.mxu0 }
  0xe9   :  { %v593_v58 = vadd.f32 %v592_v56, %v544_v54  ;;  %966 = vmatmul.bf16.gmra.mxu3 %v7078_v55  ;;  %1010 = vmatmul.bf16.gmra.mxu0 %v7078_v55  ;;  %v546_v60 = vpop.f32.mrf.mxu1  ;;  %v498_v61 = vadd.f32 %v10701_v4, %v497_v59  ;;  %v7297_v54 = vld [vmem:[#allocation9 + $0x70] sm:$0xf] }
  0xea   :  { %1054 = vmatmul.bf16.vlgmr.msrb.gmra.mxu1 %v7078_v55  ;;  %v9757_v55 = vld [vmem:[#allocation9 + $0x74] sm:$0xf0] }
  0xeb   :  { %v625_v62 = vmax.f32 %v593_v58, 0.0  ;;  %v547_v0 = vadd.f32 %v546_v60, %v498_v61  ;;  %v7298_v58 = vor.u32 %v9757_v55, %v7297_v54  ;;  %v9751_v54 = vld [vmem:[#allocation9 + $0x44] sm:$0xf0] }
  0xed   :  { %v641_v63 = vpack.c.bf16 %v625_v62, %v625_v62  ;;  %1510 = vmatpush.bf16.msrb.mxu2 %v7298_v58  ;;  %v7355_v58 = vld [vmem:[#allocation9 + $0xe8] sm:$0xf0] }
  0xee   :  { %v7081_v9 = vld [vmem:[#allocation2 + $0x48] sm:$0xf] }
  0xef   :  { %658 = vst [vmem:[#allocation2 + $0x54] sm:$0xf] %v641_v63 }
  0xf0   :  { %v595_v1 = vpop.f32.mrf.mxu2  ;;  %v499_v3 = vpop.f32.mrf.mxu0 }
  0xf1   :  { %v596_v2 = vadd.f32 %v595_v1, %v547_v0  ;;  %v548_v5 = vpop.f32.mrf.mxu1  ;;  %v500_v7 = vadd.f32 %v10701_v4, %v499_v3  ;;  %v9771_v3 = vld [vmem:[#allocation9 + $0xe4] sm:$0xf0] }
  0xf3   :  { %v626_v6 = vmax.f32 %v596_v2, 0.0  ;;  %v549_v11 = vadd.f32 %v548_v5, %v500_v7  ;;  %v7353_v2 = vld [vmem:[#allocation9 + $0xe0] sm:$0xf] }
  0xf4   :  { %v7289_v7 = vld [vmem:[#allocation9 + $0x60] sm:$0xf] }
  0xf5   :  { %v642_v8 = vpack.c.bf16 %v626_v6, %v626_v6  ;;  %v7354_v6 = vor.u32 %v9771_v3, %v7353_v2  ;;  %v10721_v2 = vpop.f32.mrf.mxu3  ;;  %v9766_v3 = vld [vmem:[#allocation9 + $0xc4] sm:$0xf] }
  0xf6   :  { %v9702_v10 = vld [vmem:[#allocation2 + $0x50] sm:$0xf0] }
  0xf7   :  { %659 = vst [vmem:[#allocation2 + $0x60] sm:$0xf] %v642_v8  ;;  %v7082_v12 = vor.u32 %v9702_v10, %v7081_v9  ;;  %1540 = vmatpush.bf16.msrb.mxu3 %v7354_v6 }
  0xf8   :  { %v597_v13 = vpop.f32.mrf.mxu2  ;;  %v502_v15 = vpop.f32.mrf.mxu0 }
  0xf9   :  { %v598_v14 = vadd.f32 %v597_v13, %v549_v11  ;;  %971 = vmatmul.bf16.gmra.mxu3 %v7082_v12  ;;  %1015 = vmatmul.bf16.gmra.mxu0 %v7082_v12  ;;  %v551_v16 = vpop.f32.mrf.mxu1  ;;  %v503_v17 = vadd.f32 %v10701_v4, %v502_v15 }
  0xfa   :  { %1059 = vmatmul.bf16.gmra.mxu1 %v7082_v12 }
  0xfb   :  { %v627_v18 = vmax.f32 %v598_v14, 0.0  ;;  %v552_v20 = vadd.f32 %v551_v16, %v503_v17 }
  0xfd   :  { %v643_v19 = vpack.c.bf16 %v627_v18, %v627_v18 }
  0xfe   :  { %v7085_v28 = vld [vmem:[#allocation2 + $0x60] sm:$0xf] }
  0xff   :  { %660 = vst [vmem:[#allocation2 + $0x6c] sm:$0xf] %v643_v19 }
 0x100   :  { %v600_v21 = vpop.f32.mrf.mxu2  ;;  %v504_v23 = vpop.f32.mrf.mxu0 }
 0x101   :  { %v601_v22 = vadd.f32 %v600_v21, %v552_v20  ;;  %v553_v24 = vpop.f32.mrf.mxu1  ;;  %v505_v26 = vadd.f32 %v10701_v4, %v504_v23  ;;  %v7345_v23 = vld [vmem:[#allocation9 + $0xd0] sm:$0xf] }
 0x103   :  { %v628_v25 = vmax.f32 %v601_v22, 0.0  ;;  %v554_v30 = vadd.f32 %v553_v24, %v505_v26  ;;  %v9769_v24 = vld [vmem:[#allocation9 + $0xd4] sm:$0xf0] }
 0x104   :  { %v7346_v26 = vor.u32 %v9769_v24, %v7345_v23  ;;  %v10723_v23 = vpop.f32.mrf.mxu3  ;;  %v7321_v24 = vld [vmem:[#allocation9 + $0xa0] sm:$0xf] }
 0x105   :  { %v644_v27 = vpack.c.bf16 %v628_v25, %v628_v25 }
 0x106   :  { %v9703_v29 = vld [vmem:[#allocation2 + $0x68] sm:$0xf0]  ;;  %1541 = vmatpush.bf16.msrb.mxu3 %v7346_v26  ;;  %v9762_v26 = vld [vmem:[#allocation9 + $0xa4] sm:$0xf] }
 0x107   :  { %661 = vst [vmem:[#allocation2 + $0x78] sm:$0xf] %v644_v27  ;;  %v7086_v31 = vor.u32 %v9703_v29, %v7085_v28  ;;  %v7281_v27 = vld [vmem:[#allocation9 + $0x50] sm:$0xf]  ;;  %v9753_v28 = vld [vmem:[#allocation9 + $0x54] sm:$0xf0] }
 0x108   :  { %v602_v32 = vpop.f32.mrf.mxu2  ;;  %v507_v34 = vpop.f32.mrf.mxu0 }
 0x109   :  { %v603_v33 = vadd.f32 %v602_v32, %v554_v30  ;;  %976 = vmatmul.bf16.gmra.mxu3 %v7086_v31  ;;  %1020 = vmatmul.bf16.gmra.mxu0 %v7086_v31  ;;  %v556_v35 = vpop.f32.mrf.mxu1  ;;  %v508_v36 = vadd.f32 %v10701_v4, %v507_v34  ;;  %v7282_v30 = vor.u32 %v9753_v28, %v7281_v27  ;;  %v7323_v28 = vld [vmem:[#allocation9 + $0xa8] sm:$0xf0] }
 0x10a   :  { %1064 = vmatmul.bf16.gmra.mxu1 %v7086_v31 }
 0x10b   :  { %v629_v37 = vmax.f32 %v603_v33, 0.0  ;;  %v557_v39 = vadd.f32 %v556_v35, %v508_v36 }
 0x10d   :  { %v645_v38 = vpack.c.bf16 %v629_v37, %v629_v37 }
 0x10e   :  { %v7089_v40 = vld [vmem:[#allocation2 + $0x78] sm:$0xf] }
 0x10f   :  { %662 = vst [vmem:[#allocation2 + $0x84] sm:$0xf] %v645_v38 }
 0x110   :  { %v605_v43 = vpop.f32.mrf.mxu2  ;;  %1717 = vst [vmem:[#allocation2 + $0x78] sm:$0xff] %v10527_v57  ;;  %v509_v46 = vpop.f32.mrf.mxu0 }
 0x111   :  { %v606_v45 = vadd.f32 %v605_v43, %v557_v39  ;;  %v558_v47 = vpop.f32.mrf.mxu1  ;;  %v510_v49 = vadd.f32 %v10701_v4, %v509_v46 }
 0x113   :  { %v630_v48 = vmax.f32 %v606_v45, 0.0  ;;  %v559_v52 = vadd.f32 %v558_v47, %v510_v49  ;;  %v7363_v49 = vld [vmem:[#allocation9 + $0xf8] sm:$0xf0] }
 0x115   :  { %v646_v50 = vpack.c.bf16 %v630_v48, %v630_v48  ;;  %v9772_v48 = vld [vmem:[#allocation9 + $0xf4] sm:$0xf] }
 0x116   :  { %v9704_v51 = vld [vmem:[#allocation2 + $0x80] sm:$0xf0] }
 0x117   :  { %663 = vst [vmem:[#allocation2 + $0x90] sm:$0xf] %v646_v50  ;;  %v7090_v53 = vor.u32 %v9704_v51, %v7089_v40  ;;  %v7337_v50 = vld [vmem:[#allocation9 + $0xc0] sm:$0xf]  ;;  %v9767_v51 = vld [vmem:[#allocation9 + $0xc4] sm:$0xf0] }
 0x118   :  { %v607_v56 = vpop.f32.mrf.mxu2  ;;  %1718 = vst [vmem:[#allocation2 + $0x84] sm:$0xff] %v10527_v57  ;;  %v512_v60 = vpop.f32.mrf.mxu0  ;;  %v9755_v57 = vld [vmem:[#allocation9 + $0x64] sm:$0xf0] }
 0x119   :  { %v608_v59 = vadd.f32 %v607_v56, %v559_v52  ;;  %981 = vmatmul.bf16.gmra.mxu3 %v7090_v53  ;;  %1025 = vmatmul.bf16.gmra.mxu0 %v7090_v53  ;;  %v561_v61 = vpop.f32.mrf.mxu1  ;;  %v513_v62 = vadd.f32 %v10701_v4, %v512_v60  ;;  %v7290_v10 = vor.u32 %v9755_v57, %v7289_v7  ;;  %v9770_v56 = vld [vmem:[#allocation9 + $0xe4] sm:$0xf]  ;;  %v7265_v7 = vld [vmem:[#allocation9 + $0x30] sm:$0xf]  ;;  %v9749_v57 = vld [vmem:[#allocation9 + $0x34] sm:$0xf0] }
 0x11a   :  { %1069 = vmatmul.bf16.gmra.mxu1 %v7090_v53  ;;  %v7338_v52 = vor.u32 %v9767_v51, %v7337_v50  ;;  %v7273_v53 = vld [vmem:[#allocation9 + $0x40] sm:$0xf]  ;;  %v9759_v51 = vld [vmem:[#allocation9 + $0x84] sm:$0xf0] }
 0x11b   :  { %v631_v63 = vmax.f32 %v608_v59, 0.0  ;;  %v562_v1 = vadd.f32 %v561_v61, %v513_v62  ;;  %1511 = vmatpush.bf16.msrb.mxu2 %v7290_v10  ;;  %v7274_v55 = vor.u32 %v9751_v54, %v7273_v53  ;;  %v7358_v59 = vor.u32 %v9770_v56, %v7355_v58  ;;  %v9768_v62 = vld [vmem:[#allocation9 + $0xd4] sm:$0xf]  ;;  %v9765_v10 = vld [vmem:[#allocation9 + $0xb4] sm:$0xf0] }
 0x11c   :  { %1542 = vmatpush.bf16.msrb.mxu3 %v7338_v52  ;;  %v7305_v50 = vld [vmem:[#allocation9 + $0x80] sm:$0xf]  ;;  %v7307_v53 = vld [vmem:[#allocation9 + $0x88] sm:$0xf0]  ;;  %v9782_v54 = vld [vmem:[#allocation9 + $0x144] sm:$0xf] }
 0x11d   :  { %v647_v0 = vpack.c.bf16 %v631_v63, %v631_v63  ;;  %v7347_v63 = vld [vmem:[#allocation9 + $0xd8] sm:$0xf0]  ;;  %v7306_v52 = vor.u32 %v9759_v51, %v7305_v50 }
 0x11e   :  { %v7093_v15 = vld [vmem:[#allocation2 + $0x90] sm:$0xf] }
 0x11f   :  { %664 = vst [vmem:[#allocation2 + $0x9c] sm:$0xf] %v647_v0  ;;  %1512 = vmatpush.bf16.msrb.mxu2 %v7282_v30  ;;  %v7419_v30 = vld [vmem:[#allocation9 + $0x168] sm:$0xf0] }
 0x120   :  { %v610_v5 = vpop.f32.mrf.mxu2  ;;  %v514_v9 = vpop.f32.mrf.mxu0 }
 0x121   :  { %v611_v8 = vadd.f32 %v610_v5, %v562_v1  ;;  %v563_v11 = vpop.f32.mrf.mxu1  ;;  %v515_v13 = vadd.f32 %v10701_v4, %v514_v9  ;;  %v7350_v1 = vor.u32 %v9768_v62, %v7347_v63  ;;  %v7339_v5 = vld [vmem:[#allocation9 + $0xc8] sm:$0xf0]  ;;  %v7329_v9 = vld [vmem:[#allocation9 + $0xb0] sm:$0xf]  ;;  %v10730_v63 = vld [vmem:[%s12535_s4] ss:$0 sm:$0xff] }
 0x122   :  { %v7342_v6 = vor.u32 %v9766_v3, %v7339_v5  ;;  %v7395_v3 = vld [vmem:[#allocation9 + $0x138] sm:$0xf0]  ;;  %s10529_s4 = smov 94  }
 0x123   :  { %v632_v12 = vmax.f32 %v611_v8, 0.0  ;;  %v564_v17 = vadd.f32 %v563_v11, %v515_v13  ;;  %1513 = vmatpush.bf16.msrb.mxu2 %v7274_v55  ;;  %v7266_v8 = vor.u32 %v9749_v57, %v7265_v7  ;;  %v9764_v11 = vld [vmem:[#allocation9 + $0xb4] sm:$0xf]  ;;  %v7331_v13 = vld [vmem:[#allocation9 + $0xb8] sm:$0xf0] }
 0x124   :  { %v7403_v55 = vld [vmem:[#allocation9 + $0x148] sm:$0xf0]  ;;  %v9778_v7 = vld [vmem:[#allocation9 + $0x124] sm:$0xf] }
 0x125   :  { %v648_v14 = vpack.c.bf16 %v632_v12, %v632_v12  ;;  %v7330_v12 = vor.u32 %v9765_v10, %v7329_v9  ;;  %v7387_v57 = vld [vmem:[#allocation9 + $0x128] sm:$0xf0] }
 0x126   :  { %v9705_v16 = vld [vmem:[#allocation2 + $0x98] sm:$0xf0] }
 0x127   :  { %665 = vst [vmem:[#allocation2 + $0xa8] sm:$0xf] %v648_v14  ;;  %v7094_v18 = vor.u32 %v9705_v16, %v7093_v15  ;;  %1514 = vmatpush.bf16.msrb.mxu2 %v7266_v8  ;;  %v9788_v14 = vld [vmem:[#allocation9 + $0x174] sm:$0xf]  ;;  %v7427_v15 = vld [vmem:[#allocation9 + $0x178] sm:$0xf0]  ;;  %v7334_v16 = vor.u32 %v9764_v11, %v7331_v13  ;;  %1543 = vmatpush.bf16.msrb.mxu3 %v7330_v12 }
 0x128   :  { %v612_v19 = vpop.f32.mrf.mxu2  ;;  %v517_v21 = vpop.f32.mrf.mxu0  ;;  %v7390_v8 = vor.u32 %v9778_v7, %v7387_v57  ;;  %v9776_v12 = vld [vmem:[#allocation9 + $0x114] sm:$0xf]  ;;  %v7379_v13 = vld [vmem:[#allocation9 + $0x118] sm:$0xf0] }
 0x129   :  { %v613_v20 = vadd.f32 %v612_v19, %v564_v17  ;;  %986 = vmatmul.bf16.gmra.mxu3 %v7094_v18  ;;  %1030 = vmatmul.bf16.gmra.mxu0 %v7094_v18  ;;  %v518_v22 = vadd.f32 %v10701_v4, %v517_v21  ;;  %v566_v29 = vpop.f32.mrf.mxu1  ;;  %v7430_v17 = vor.u32 %v9788_v14, %v7427_v15  ;;  %v9747_v19 = vld [vmem:[#allocation9 + $0x24] sm:$0xf0]  ;;  %v9708_v21 = vld [vmem:[#allocation2 + $0xe0] sm:$0xf0] }
 0x12a   :  { %1074 = vmatmul.bf16.gmra.mxu1 %v7094_v18  ;;  %v7257_v18 = vld [vmem:[#allocation9 + $0x20] sm:$0xf]  ;;  %v7382_v15 = vor.u32 %v9776_v12, %v7379_v13  ;;  %v7425_v13 = vld [vmem:[#allocation9 + $0x170] sm:$0xf] }
 0x12b   :  { %v633_v25 = vmax.f32 %v613_v20, 0.0  ;;  %v567_v32 = vadd.f32 %v566_v29, %v518_v22  ;;  %v7105_v20 = vld [vmem:[#allocation2 + $0xd8] sm:$0xf]  ;;  %v7258_v22 = vor.u32 %v9747_v19, %v7257_v18  ;;  %1655 = vmatpush.bf16.msra.mxu1 %v7430_v17  ;;  %v9786_v29 = vld [vmem:[#allocation9 + $0x164] sm:$0xf]  ;;  %v960_v17 = vadd.f32 %v10730_v63, %v10723_v23 }
 0x12c   :  { %v9774_v19 = vld [vmem:[#allocation9 + $0x104] sm:$0xf] }
 0x12d   :  { %v649_v31 = vpack.c.bf16 %v633_v25, %v633_v25  ;;  %v9763_v25 = vld [vmem:[#allocation9 + $0xa4] sm:$0xf0]  ;;  %1515 = vmatpush.bf16.msrb.mxu2 %v7258_v22 }
 0x12e   :  { %v7097_v40 = vld [vmem:[#allocation2 + $0xa8] sm:$0xf]  ;;  %v7322_v27 = vor.u32 %v9763_v25, %v7321_v24 }
 0x12f   :  { %666 = vst [vmem:[#allocation2 + $0xb4] sm:$0xf] %v649_v31  ;;  %v7326_v31 = vor.u32 %v9762_v26, %v7323_v28 }
 0x130   :  { %v615_v33 = vpop.f32.mrf.mxu2  ;;  %v519_v35 = vpop.f32.mrf.mxu0  ;;  %1544 = vmatpush.bf16.msrb.mxu3 %v7322_v27 }
 0x131   :  { %v616_v34 = vadd.f32 %v615_v33, %v567_v32  ;;  %v520_v37 = vadd.f32 %v10701_v4, %v519_v35  ;;  %v568_v39 = vpop.f32.mrf.mxu1  ;;  %v7366_v4 = vor.u32 %v9772_v48, %v7363_v49  ;;  %v7422_v32 = vor.u32 %v9786_v29, %v7419_v30  ;;  %v7249_v33 = vld [vmem:[#allocation9 + $0x10] sm:$0xf]  ;;  %v9743_v48 = vld [vmem:[#allocation9 + $0x4] sm:$0xf0] }
 0x133   :  { %v634_v36 = vmax.f32 %v616_v34, 0.0  ;;  %v569_v42 = vadd.f32 %v568_v39, %v520_v37  ;;  %1626 = vmatpush.bf16.msra.mxu0 %v7366_v4  ;;  %v9745_v34 = vld [vmem:[#allocation9 + $0x14] sm:$0xf0]  ;;  %v7106_v37 = vor.u32 %v9708_v21, %v7105_v20  ;;  %1656 = vmatpush.bf16.msra.mxu1 %v7422_v32  ;;  %v9758_v4 = vld [vmem:[#allocation9 + $0x84] sm:$0xf] }
 0x134   :  { %v7250_v35 = vor.u32 %v9745_v34, %v7249_v33  ;;  %v9761_v39 = vld [vmem:[#allocation9 + $0x94] sm:$0xf0]  ;;  %v7310_v58 = vor.u32 %v9758_v4, %v7307_v53  ;;  %v7371_v20 = vld [vmem:[#allocation9 + $0x108] sm:$0xf0] }
 0x135   :  { %v650_v38 = vpack.c.bf16 %v634_v36, %v634_v36 }
 0x136   :  { %v9706_v41 = vld [vmem:[#allocation2 + $0xb0] sm:$0xf0]  ;;  %1516 = vmatpush.bf16.msrb.mxu2 %v7250_v35 }
 0x137   :  { %667 = vst [vmem:[#allocation2 + $0xc0] sm:$0xf] %v650_v38  ;;  %v7098_v43 = vor.u32 %v9706_v41, %v7097_v40  ;;  %1627 = vmatpush.bf16.msra.mxu0 %v7358_v59  ;;  %v7313_v38 = vld [vmem:[#allocation9 + $0x90] sm:$0xf]  ;;  %v9760_v40 = vld [vmem:[#allocation9 + $0x94] sm:$0xf]  ;;  %v7406_v59 = vor.u32 %v9782_v54, %v7403_v55 }
 0x138   :  { %v617_v44 = vpop.f32.mrf.mxu2  ;;  %v7314_v41 = vor.u32 %v9761_v39, %v7313_v38 }
 0x139   :  { %v618_v45 = vadd.f32 %v617_v44, %v569_v42  ;;  %991 = vmatmul.bf16.gmra.mxu3 %v7098_v43  ;;  %1035 = vmatmul.bf16.gmra.mxu0 %v7098_v43  ;;  %v7315_v42 = vld [vmem:[#allocation9 + $0x98] sm:$0xf0] }
 0x13a   :  { %1079 = vmatmul.bf16.gmra.mxu1 %v7098_v43  ;;  %v9784_v43 = vld [vmem:[#allocation9 + $0x154] sm:$0xf]  ;;  %v7411_v44 = vld [vmem:[#allocation9 + $0x158] sm:$0xf0]  ;;  %1545 = vmatpush.bf16.msrb.mxu3 %v7314_v41 }
 0x13b   :  { %v635_v46 = vmax.f32 %v618_v45, 0.0  ;;  %1628 = vmatpush.bf16.msra.mxu0 %v7350_v1  ;;  %v7318_v45 = vor.u32 %v9760_v40, %v7315_v42  ;;  %v9780_v1 = vld [vmem:[#allocation9 + $0x134] sm:$0xf] }
 0x13c   :  { %v7398_v5 = vor.u32 %v9780_v1, %v7395_v3 }
 0x13d   :  { %v651_v47 = vpack.c.bf16 %v635_v46, %v635_v46  ;;  %v7414_v46 = vor.u32 %v9784_v43, %v7411_v44 }
 0x13e   :  { %v7101_v60 = vld [vmem:[#allocation2 + $0xc0] sm:$0xf]  ;;  %1546 = vmatpush.bf16.msrb.mxu3 %v7306_v52 }
 0x13f   :  { %668 = vst [vmem:[#allocation2 + $0xcc] sm:$0xf] %v651_v47  ;;  %1629 = vmatpush.bf16.msra.mxu0 %v7342_v6  ;;  %v7241_v47 = vld [vmem:[#allocation9] sm:$0xf]  ;;  %1657 = vmatpush.bf16.msra.mxu1 %v7414_v46  ;;  %v958_v6 = vadd.f32 %v10730_v63, %v10721_v2  ;;  %v7374_v2 = vor.u32 %v9774_v19, %v7371_v20 }
 0x140   :  { %v7242_v49 = vor.u32 %v9743_v48, %v7241_v47 }
 0x142   :  { %1517 = vmatpush.bf16.msrb.mxu2 %v7242_v49 }
 0x143   :  { %1630 = vmatpush.bf16.msra.mxu0 %v7334_v16  ;;  %1658 = vmatpush.bf16.msra.mxu1 %v7406_v59 }
 0x146   :  { %v9707_v61 = vld [vmem:[#allocation2 + $0xc8] sm:$0xf0] }
 0x147   :  { %v7102_v0 = vor.u32 %v9707_v61, %v7101_v60  ;;  %1631 = vmatpush.bf16.msra.mxu0 %v7326_v31  ;;  %v7205_v60 = vld [vmem:[#allocation3] sm:$0xf]  ;;  %v9733_v61 = vld [vmem:[#allocation3 + $0x8] sm:$0xf0]  ;;  %1659 = vmatpush.bf16.msra.mxu1 %v7398_v5 }
 0x148   :  { %v10725_v62 = vor.u32 %v9733_v61, %v7205_v60 }
 0x149   :  { %1040 = vmatmul.bf16.gmra.mxu0 %v7102_v0 }
 0x14a   :  { %1084 = vmatmul.bf16.gmra.mxu1 %v7102_v0  ;;  %1518 = vmatmul.bf16.vlgmr.msrb.gmra.mxu2 %v10725_v62 }
 0x14b   :  { %1632 = vmatpush.bf16.msra.mxu0 %v7318_v45  ;;  %1660 = vmatpush.bf16.msra.mxu1 %v7390_v8 }
 0x14f   :  { %1633 = vmatpush.bf16.msra.mxu0 %v7310_v58  ;;  %1661 = vmatpush.bf16.msra.mxu1 %v7382_v15 }
 0x153   :  { %1662 = vmatpush.bf16.msra.mxu1 %v7374_v2 }
 0x156   :  { %v1006_v36 = vpop.f32.mrf.mxu0 }
 0x157   :  { %v1007_v10 = vadd.f32 %v1006_v36, %v958_v6 }
 0x15a   :  { %1089 = vmatmul.bf16.gmra.mxu1 %v7106_v37 }
 0x15c   :  { %v962_v56 = vpop.f32.mrf.mxu3 }
 0x15d   :  { %v963_v29 = vadd.f32 %v10730_v63, %v962_v56 }
 0x15e   :  { %v1008_v0 = vpop.f32.mrf.mxu0 }
 0x15f   :  { %v1009_v24 = vadd.f32 %v1008_v0, %v960_v17 }
 0x164   :  { %v964_v9 = vpop.f32.mrf.mxu3 }
 0x165   :  { %v965_v36 = vadd.f32 %v10730_v63, %v964_v9  ;;  %v9756_v9 = vld [vmem:[#allocation9 + $0x74] sm:$0xf] }
 0x166   :  { %v1011_v11 = vpop.f32.mrf.mxu0 }
 0x167   :  { %v1055_v14 = vpop.f32.mrf.mxu1  ;;  %v1012_v32 = vadd.f32 %v1011_v11, %v963_v29 }
 0x168   :  { %v1056_v16 = vadd.f32 %v1055_v14, %v1007_v10  ;;  %v7299_v10 = vld [vmem:[#allocation9 + $0x78] sm:$0xf0]  ;;  %v9789_v14 = vld [vmem:[#allocation9 + $0x174] sm:$0xf0] }
 0x169   :  { %v7302_v12 = vor.u32 %v9756_v9, %v7299_v10 }
 0x16a   :  { %v1095_v18 = vmax.f32 %v1056_v16, 0.0  ;;  %v7426_v16 = vor.u32 %v9789_v14, %v7425_v13  ;;  %v9748_v14 = vld [vmem:[#allocation9 + $0x34] sm:$0xf] }
 0x16b   :  { %1597 = vmatpush.bf16.msra.mxu3 %v7302_v12 }
 0x16c   :  { %v1111_v21 = vpack.c.bf16 %v1095_v18, %v1095_v18  ;;  %v967_v22 = vpop.f32.mrf.mxu3  ;;  %1568 = vmatpush.bf16.msra.mxu2 %v7426_v16 }
 0x16d   :  { %v968_v47 = vadd.f32 %v10730_v63, %v967_v22 }
 0x16e   :  { %1128 = vst [vmem:[#allocation3 + $0x18] sm:$0xf] %v1111_v21  ;;  %v1013_v25 = vpop.f32.mrf.mxu0 }
 0x16f   :  { %v1057_v26 = vpop.f32.mrf.mxu1  ;;  %v1014_v40 = vadd.f32 %v1013_v25, %v965_v36  ;;  %v9754_v25 = vld [vmem:[#allocation9 + $0x64] sm:$0xf] }
 0x170   :  { %v1058_v27 = vadd.f32 %v1057_v26, %v1009_v24  ;;  %v7291_v26 = vld [vmem:[#allocation9 + $0x68] sm:$0xf0] }
 0x171   :  { %v7294_v29 = vor.u32 %v9754_v25, %v7291_v26 }
 0x172   :  { %v1096_v28 = vmax.f32 %v1058_v27, 0.0 }
 0x173   :  { %1598 = vmatpush.bf16.msra.mxu3 %v7294_v29 }
 0x174   :  { %v1112_v30 = vpack.c.bf16 %v1096_v28, %v1096_v28  ;;  %v969_v31 = vpop.f32.mrf.mxu3 }
 0x175   :  { %v7221_v38 = vld [vmem:[#allocation3 + $0x18] sm:$0xf]  ;;  %v970_v54 = vadd.f32 %v10730_v63, %v969_v31 }
 0x176   :  { %1129 = vst [vmem:[#allocation3 + $0x24] sm:$0xf] %v1112_v30  ;;  %v1016_v23 = vpop.f32.mrf.mxu0  ;;  %v7417_v30 = vld [vmem:[#allocation9 + $0x160] sm:$0xf]  ;;  %v9787_v31 = vld [vmem:[#allocation9 + $0x164] sm:$0xf0] }
 0x177   :  { %v1060_v33 = vpop.f32.mrf.mxu1  ;;  %v1017_v49 = vadd.f32 %v1016_v23, %v968_v47  ;;  %v7418_v23 = vor.u32 %v9787_v31, %v7417_v30 }
 0x178   :  { %v1061_v34 = vadd.f32 %v1060_v33, %v1012_v32 }
 0x179   :  { %1569 = vmatpush.bf16.msra.mxu2 %v7418_v23 }
 0x17a   :  { %v1097_v35 = vmax.f32 %v1061_v34, 0.0 }
 0x17c   :  { %v1113_v37 = vpack.c.bf16 %v1097_v35, %v1097_v35  ;;  %v972_v43 = vpop.f32.mrf.mxu3 }
 0x17d   :  { %v9734_v39 = vld [vmem:[#allocation3 + $0x20] sm:$0xf0]  ;;  %v973_v6 = vadd.f32 %v10730_v63, %v972_v43  ;;  %v9785_v43 = vld [vmem:[#allocation9 + $0x154] sm:$0xf0] }
 0x17e   :  { %1130 = vst [vmem:[#allocation3 + $0x30] sm:$0xf] %v1113_v37  ;;  %v1018_v41 = vpop.f32.mrf.mxu0  ;;  %v7222_v42 = vor.u32 %v9734_v39, %v7221_v38  ;;  %v9752_v37 = vld [vmem:[#allocation9 + $0x54] sm:$0xf]  ;;  %v7283_v38 = vld [vmem:[#allocation9 + $0x58] sm:$0xf0] }
 0x17f   :  { %v1062_v44 = vpop.f32.mrf.mxu1  ;;  %v1019_v59 = vadd.f32 %v1018_v41, %v970_v54  ;;  %v7286_v41 = vor.u32 %v9752_v37, %v7283_v38 }
 0x180   :  { %v1063_v45 = vadd.f32 %v1062_v44, %v1014_v40  ;;  %1547 = vmatmul.bf16.vlgmr.msrb.gmra.mxu3 %v7222_v42  ;;  %1634 = vmatmul.bf16.vlgmr.msra.gmra.mxu0 %v7222_v42  ;;  %v7409_v42 = vld [vmem:[#allocation9 + $0x150] sm:$0xf] }
 0x181   :  { %1599 = vmatpush.bf16.msra.mxu3 %v7286_v41 }
 0x182   :  { %v1098_v46 = vmax.f32 %v1063_v45, 0.0  ;;  %v7410_v45 = vor.u32 %v9785_v43, %v7409_v42  ;;  %v9744_v43 = vld [vmem:[#allocation9 + $0x14] sm:$0xf] }
 0x184   :  { %v1114_v48 = vpack.c.bf16 %v1098_v46, %v1098_v46  ;;  %v974_v52 = vpop.f32.mrf.mxu3  ;;  %1570 = vmatpush.bf16.msra.mxu2 %v7410_v45 }
 0x185   :  { %v7209_v56 = vld [vmem:[#allocation3 + $0x30] sm:$0xf]  ;;  %v975_v18 = vadd.f32 %v10730_v63, %v974_v52 }
 0x186   :  { %1131 = vst [vmem:[#allocation3 + $0x3c] sm:$0xf] %v1114_v48  ;;  %v1021_v50 = vpop.f32.mrf.mxu0  ;;  %v7401_v48 = vld [vmem:[#allocation9 + $0x140] sm:$0xf] }
 0x187   :  { %v1065_v51 = vpop.f32.mrf.mxu1  ;;  %v1022_v57 = vadd.f32 %v1021_v50, %v973_v6 }
 0x188   :  { %v1066_v4 = vadd.f32 %v1065_v51, %v1017_v49  ;;  %v9783_v49 = vld [vmem:[#allocation9 + $0x144] sm:$0xf0] }
 0x189   :  { %v7402_v50 = vor.u32 %v9783_v49, %v7401_v48  ;;  %v9742_v48 = vld [vmem:[#allocation9 + $0x4] sm:$0xf]  ;;  %v7243_v49 = vld [vmem:[#allocation9 + $0x8] sm:$0xf0] }
 0x18a   :  { %v1099_v53 = vmax.f32 %v1066_v4, 0.0 }
 0x18b   :  { %1571 = vmatpush.bf16.msra.mxu2 %v7402_v50 }
 0x18c   :  { %v1115_v55 = vpack.c.bf16 %v1099_v53, %v1099_v53  ;;  %v977_v5 = vpop.f32.mrf.mxu3 }
 0x18d   :  { %v9735_v58 = vld [vmem:[#allocation3 + $0x38] sm:$0xf0]  ;;  %v978_v34 = vadd.f32 %v10730_v63, %v977_v5 }
 0x18e   :  { %1132 = vst [vmem:[#allocation3 + $0x48] sm:$0xf] %v1115_v55  ;;  %v1023_v60 = vpop.f32.mrf.mxu0  ;;  %v10741_v61 = vor.u32 %v9735_v58, %v7209_v56  ;;  %v9750_v56 = vld [vmem:[#allocation9 + $0x44] sm:$0xf]  ;;  %v7275_v58 = vld [vmem:[#allocation9 + $0x48] sm:$0xf0] }
 0x18f   :  { %v1067_v0 = vpop.f32.mrf.mxu1  ;;  %v1024_v22 = vadd.f32 %v1023_v60, %v975_v18  ;;  %v7278_v60 = vor.u32 %v9750_v56, %v7275_v58  ;;  %v7377_v18 = vld [vmem:[#allocation9 + $0x110] sm:$0xf] }
 0x190   :  { %v1068_v1 = vadd.f32 %v1067_v0, %v1019_v59  ;;  %1523 = vmatmul.bf16.gmra.mxu2 %v10741_v61  ;;  %1663 = vmatmul.bf16.vlgmr.msra.gmra.mxu1 %v10741_v61  ;;  %v7393_v0 = vld [vmem:[#allocation9 + $0x130] sm:$0xf] }
 0x191   :  { %1600 = vmatpush.bf16.msra.mxu3 %v7278_v60 }
 0x192   :  { %v1100_v3 = vmax.f32 %v1068_v1, 0.0  ;;  %v9781_v1 = vld [vmem:[#allocation9 + $0x134] sm:$0xf0] }
 0x193   :  { %v7394_v5 = vor.u32 %v9781_v1, %v7393_v0 }
 0x194   :  { %v1116_v7 = vpack.c.bf16 %v1100_v3, %v1100_v3  ;;  %v979_v20 = vpop.f32.mrf.mxu3 }
 0x195   :  { %v7225_v2 = vld [vmem:[#allocation3 + $0x48] sm:$0xf]  ;;  %v980_v51 = vadd.f32 %v10730_v63, %v979_v20  ;;  %1572 = vmatpush.bf16.msra.mxu2 %v7394_v5 }
 0x196   :  { %1133 = vst [vmem:[#allocation3 + $0x54] sm:$0xf] %v1116_v7  ;;  %v1026_v8 = vpop.f32.mrf.mxu0 }
 0x197   :  { %v1070_v11 = vpop.f32.mrf.mxu1  ;;  %v1027_v36 = vadd.f32 %v1026_v8, %v978_v34  ;;  %v9779_v8 = vld [vmem:[#allocation9 + $0x124] sm:$0xf0]  ;;  %v7259_v34 = vld [vmem:[#allocation9 + $0x28] sm:$0xf0] }
 0x198   :  { %v1071_v15 = vadd.f32 %v1070_v11, %v1022_v57  ;;  %v7385_v57 = vld [vmem:[#allocation9 + $0x120] sm:$0xf] }
 0x199   :  { %v7386_v10 = vor.u32 %v9779_v8, %v7385_v57 }
 0x19a   :  { %v1101_v17 = vmax.f32 %v1071_v15, 0.0  ;;  %v7267_v15 = vld [vmem:[#allocation9 + $0x38] sm:$0xf0] }
 0x19b   :  { %1573 = vmatpush.bf16.msra.mxu2 %v7386_v10 }
 0x19c   :  { %v1117_v19 = vpack.c.bf16 %v1101_v17, %v1101_v17  ;;  %v982_v39 = vpop.f32.mrf.mxu3  ;;  %v7270_v17 = vor.u32 %v9748_v14, %v7267_v15 }
 0x19d   :  { %v9736_v21 = vld [vmem:[#allocation3 + $0x50] sm:$0xf0]  ;;  %v983_v11 = vadd.f32 %v10730_v63, %v982_v39 }
 0x19e   :  { %1134 = vst [vmem:[#allocation3 + $0x60] sm:$0xf] %v1117_v19  ;;  %v7226_v24 = vor.u32 %v9736_v21, %v7225_v2  ;;  %v1028_v27 = vpop.f32.mrf.mxu0  ;;  %v9777_v19 = vld [vmem:[#allocation9 + $0x114] sm:$0xf0]  ;;  %1601 = vmatpush.bf16.msra.mxu3 %v7270_v17 }
 0x19f   :  { %v1072_v28 = vpop.f32.mrf.mxu1  ;;  %v1029_v54 = vadd.f32 %v1028_v27, %v980_v51  ;;  %v7378_v2 = vor.u32 %v9777_v19, %v7377_v18  ;;  %v7246_v51 = vor.u32 %v9742_v48, %v7243_v49  ;;  %v7657_v48 = vld [vmem:[#allocation10 + $0x160] sm:$0xf]  ;;  %v9847_v49 = vld [vmem:[#allocation10 + $0x164] sm:$0xf0] }
 0x1a0   :  { %v1073_v32 = vadd.f32 %v1072_v28, %v1024_v22  ;;  %1552 = vmatmul.bf16.gmra.mxu3 %v7226_v24  ;;  %1639 = vmatmul.bf16.gmra.mxu0 %v7226_v24  ;;  %v7369_v22 = vld [vmem:[#allocation9 + $0x100] sm:$0xf]  ;;  %v9775_v24 = vld [vmem:[#allocation9 + $0x104] sm:$0xf0] }
 0x1a1   :  { %1574 = vmatpush.bf16.msra.mxu2 %v7378_v2  ;;  %v7370_v26 = vor.u32 %v9775_v24, %v7369_v22 }
 0x1a2   :  { %v1102_v33 = vmax.f32 %v1073_v32, 0.0 }
 0x1a4   :  { %v1118_v35 = vpack.c.bf16 %v1102_v33, %v1102_v33  ;;  %v984_v6 = vpop.f32.mrf.mxu3  ;;  %v9746_v33 = vld [vmem:[#allocation9 + $0x24] sm:$0xf] }
 0x1a5   :  { %v7213_v52 = vld [vmem:[#allocation3 + $0x60] sm:$0xf]  ;;  %v985_v27 = vadd.f32 %v10730_v63, %v984_v6  ;;  %1575 = vmatpush.bf16.msra.mxu2 %v7370_v26 }
 0x1a6   :  { %1135 = vst [vmem:[#allocation3 + $0x6c] sm:$0xf] %v1118_v35  ;;  %v1031_v46 = vpop.f32.mrf.mxu0  ;;  %v7537_v26 = vld [vmem:[#allocation10 + $0x70] sm:$0xf] }
 0x1a7   :  { %v1075_v40 = vpop.f32.mrf.mxu1  ;;  %v1032_v13 = vadd.f32 %v1031_v46, %v983_v11 }
 0x1a8   :  { %v1076_v44 = vadd.f32 %v1075_v40, %v1027_v36  ;;  %v7262_v36 = vor.u32 %v9746_v33, %v7259_v34  ;;  %v7593_v33 = vld [vmem:[#allocation10 + $0xe0] sm:$0xf] }
 0x1aa   :  { %v1103_v47 = vmax.f32 %v1076_v44, 0.0  ;;  %1602 = vmatpush.bf16.msra.mxu3 %v7262_v36  ;;  %v7251_v44 = vld [vmem:[#allocation9 + $0x18] sm:$0xf0]  ;;  %v9849_v36 = vld [vmem:[#allocation10 + $0x174] sm:$0xf0] }
 0x1ac   :  { %v1119_v4 = vpack.c.bf16 %v1103_v47, %v1103_v47  ;;  %v987_v25 = vpop.f32.mrf.mxu3  ;;  %v7254_v47 = vor.u32 %v9744_v43, %v7251_v44  ;;  %v7521_v43 = vld [vmem:[#allocation10 + $0x50] sm:$0xf]  ;;  %v9813_v44 = vld [vmem:[#allocation10 + $0x54] sm:$0xf0] }
 0x1ad   :  { %v9737_v53 = vld [vmem:[#allocation3 + $0x68] sm:$0xf0]  ;;  %v988_v39 = vadd.f32 %v10730_v63, %v987_v25 }
 0x1ae   :  { %1136 = vst [vmem:[#allocation3 + $0x78] sm:$0xf] %v1119_v4  ;;  %v10749_v55 = vor.u32 %v9737_v53, %v7213_v52  ;;  %v1033_v9 = vpop.f32.mrf.mxu0  ;;  %1603 = vmatpush.bf16.msra.mxu3 %v7254_v47  ;;  %v9829_v47 = vld [vmem:[#allocation10 + $0xd4] sm:$0xf0] }
 0x1af   :  { %v1077_v59 = vpop.f32.mrf.mxu1  ;;  %v1034_v32 = vadd.f32 %v1033_v9, %v985_v27  ;;  %v9817_v27 = vld [vmem:[#allocation10 + $0x74] sm:$0xf0] }
 0x1b0   :  { %v1078_v3 = vadd.f32 %v1077_v59, %v1029_v54  ;;  %1528 = vmatmul.bf16.gmra.mxu2 %v10749_v55  ;;  %1668 = vmatmul.bf16.gmra.mxu1 %v10749_v55 }
 0x1b2   :  { %v1104_v7 = vmax.f32 %v1078_v3, 0.0  ;;  %1604 = vmatpush.bf16.msra.mxu3 %v7246_v51 }
 0x1b4   :  { %v1120_v12 = vpack.c.bf16 %v1104_v7, %v1104_v7  ;;  %v989_v41 = vpop.f32.mrf.mxu3 }
 0x1b5   :  { %v7229_v30 = vld [vmem:[#allocation3 + $0x78] sm:$0xf]  ;;  %v990_v52 = vadd.f32 %v10730_v63, %v989_v41  ;;  %v9865_v41 = vld [vmem:[#allocation10 + $0x1f4] sm:$0xf0] }
 0x1b6   :  { %1137 = vst [vmem:[#allocation3 + $0x84] sm:$0xf] %v1120_v12  ;;  %v1036_v29 = vpop.f32.mrf.mxu0 }
 0x1b7   :  { %v1080_v16 = vpop.f32.mrf.mxu1  ;;  %v1037_v42 = vadd.f32 %v1036_v29, %v988_v39  ;;  %v7538_v29 = vor.u32 %v9817_v27, %v7537_v26  ;;  %v7497_v26 = vld [vmem:[#allocation10 + $0x20] sm:$0xf]  ;;  %v9807_v27 = vld [vmem:[#allocation10 + $0x24] sm:$0xf0] }
 0x1b8   :  { %v1081_v20 = vadd.f32 %v1080_v16, %v1032_v13 }
 0x1b9   :  { %2373 = vmatpush.bf16.msrb.mxu2 %v7538_v29  ;;  %v7498_v29 = vor.u32 %v9807_v27, %v7497_v26  ;;  %v9851_v27 = vld [vmem:[#allocation10 + $0x184] sm:$0xf0] }
 0x1ba   :  { %v1105_v21 = vmax.f32 %v1081_v20, 0.0 }
 0x1bc   :  { %v1121_v28 = vpack.c.bf16 %v1105_v21, %v1105_v21  ;;  %v992_v60 = vpop.f32.mrf.mxu3 }
 0x1bd   :  { %v9738_v31 = vld [vmem:[#allocation3 + $0x80] sm:$0xf0]  ;;  %v993_v6 = vadd.f32 %v10730_v63, %v992_v60  ;;  %v7577_v60 = vld [vmem:[#allocation10 + $0xc0] sm:$0xf] }
 0x1be   :  { %1138 = vst [vmem:[#allocation3 + $0x90] sm:$0xf] %v1121_v28  ;;  %v7230_v23 = vor.u32 %v9738_v31, %v7229_v30  ;;  %v1038_v45 = vpop.f32.mrf.mxu0  ;;  %v7601_v28 = vld [vmem:[#allocation10 + $0xf0] sm:$0xf]  ;;  %v9833_v30 = vld [vmem:[#allocation10 + $0xf4] sm:$0xf0] }
 0x1bf   :  { %v1082_v35 = vpop.f32.mrf.mxu1  ;;  %v1039_v58 = vadd.f32 %v1038_v45, %v990_v52  ;;  %v7585_v45 = vld [vmem:[#allocation10 + $0xd0] sm:$0xf]  ;;  %v7721_v52 = vld [vmem:[#allocation10 + $0x1e0] sm:$0xf] }
 0x1c0   :  { %v1083_v37 = vadd.f32 %v1082_v35, %v1034_v32  ;;  %1557 = vmatmul.bf16.gmra.mxu3 %v7230_v23  ;;  %1644 = vmatmul.bf16.gmra.mxu0 %v7230_v23  ;;  %v7602_v32 = vor.u32 %v9833_v30, %v7601_v28  ;;  %v7529_v23 = vld [vmem:[#allocation10 + $0x60] sm:$0xf]  ;;  %v7665_v35 = vld [vmem:[#allocation10 + $0x170] sm:$0xf]  ;;  %v7586_v51 = vor.u32 %v9829_v47, %v7585_v45  ;;  %v9823_v30 = vld [vmem:[#allocation10 + $0xa4] sm:$0xf0] }
 0x1c1   :  { %v7666_v39 = vor.u32 %v9849_v36, %v7665_v35  ;;  %v7561_v28 = vld [vmem:[#allocation10 + $0xa0] sm:$0xf] }
 0x1c2   :  { %v1106_v38 = vmax.f32 %v1083_v37, 0.0  ;;  %2402 = vmatpush.bf16.msrb.mxu3 %v7602_v32  ;;  %v7633_v32 = vld [vmem:[#allocation10 + $0x130] sm:$0xf]  ;;  %v7481_v45 = vld [vmem:[#allocation10] sm:$0xf] }
 0x1c3   :  { %2431 = vmatpush.bf16.msrb.mxu0 %v7666_v39  ;;  %v7489_v39 = vld [vmem:[#allocation10 + $0x10] sm:$0xf] }
 0x1c4   :  { %v1122_v40 = vpack.c.bf16 %v1106_v38, %v1106_v38  ;;  %v994_v10 = vpop.f32.mrf.mxu3 }
 0x1c5   :  { %v7217_v54 = vld [vmem:[#allocation3 + $0x90] sm:$0xf]  ;;  %v995_v13 = vadd.f32 %v10730_v63, %v994_v10 }
 0x1c6   :  { %1139 = vst [vmem:[#allocation3 + $0x9c] sm:$0xf] %v1122_v40  ;;  %v1041_v3 = vpop.f32.mrf.mxu0  ;;  %v7729_v40 = vld [vmem:[#allocation10 + $0x1f0] sm:$0xf] }
 0x1c7   :  { %v1085_v46 = vpop.f32.mrf.mxu1  ;;  %v1042_v57 = vadd.f32 %v1041_v3, %v993_v6  ;;  %v9827_v3 = vld [vmem:[#allocation10 + $0xc4] sm:$0xf0]  ;;  %v9845_v6 = vld [vmem:[#allocation10 + $0x154] sm:$0xf0] }
 0x1c8   :  { %v1086_v50 = vadd.f32 %v1085_v46, %v1037_v42  ;;  %v7730_v42 = vor.u32 %v9865_v41, %v7729_v40  ;;  %v7522_v46 = vor.u32 %v9813_v44, %v7521_v43  ;;  %v9805_v40 = vld [vmem:[#allocation10 + $0x14] sm:$0xf0] }
 0x1c9   :  { %v7490_v41 = vor.u32 %v9805_v40, %v7489_v39  ;;  %v9821_v43 = vld [vmem:[#allocation10 + $0x94] sm:$0xf0] }
 0x1ca   :  { %v1107_v4 = vmax.f32 %v1086_v50, 0.0  ;;  %2460 = vmatpush.bf16.msrb.mxu1 %v7730_v42  ;;  %v7553_v42 = vld [vmem:[#allocation10 + $0x90] sm:$0xf] }
 0x1cb   :  { %v7554_v44 = vor.u32 %v9821_v43, %v7553_v42 }
 0x1cc   :  { %v1123_v53 = vpack.c.bf16 %v1107_v4, %v1107_v4  ;;  %v7658_v4 = vor.u32 %v9847_v49, %v7657_v48 }
 0x1cd   :  { %v9739_v56 = vld [vmem:[#allocation3 + $0x98] sm:$0xf0]  ;;  %v10764_v63 = vpop.f32.mrf.mxu2 }
 0x1ce   :  { %1140 = vst [vmem:[#allocation3 + $0xa8] sm:$0xf] %v1123_v53  ;;  %v7218_v59 = vor.u32 %v9739_v56, %v7217_v54  ;;  %v1043_v12 = vpop.f32.mrf.mxu0  ;;  %v9863_v53 = vld [vmem:[#allocation10 + $0x1e4] sm:$0xf0]  ;;  %2432 = vmatpush.bf16.msrb.mxu0 %v7658_v4 }
 0x1cf   :  { %v1087_v0 = vpop.f32.mrf.mxu1  ;;  %v1044_v17 = vadd.f32 %v1043_v12, %v995_v13  ;;  %v7722_v54 = vor.u32 %v9863_v53, %v7721_v52  ;;  %v7505_v12 = vld [vmem:[#allocation10 + $0x30] sm:$0xf]  ;;  %v9809_v13 = vld [vmem:[#allocation10 + $0x34] sm:$0xf0]  ;;  %v9819_v4 = vld [vmem:[#allocation10 + $0x84] sm:$0xf0] }
 0x1d0   :  { %v1088_v1 = vadd.f32 %v1087_v0, %v1039_v58  ;;  %1533 = vmatmul.bf16.gmra.mxu2 %v7218_v59  ;;  %1673 = vmatmul.bf16.gmra.mxu1 %v7218_v59  ;;  %v7513_v58 = vld [vmem:[#allocation10 + $0x40] sm:$0xf] }
 0x1d1   :  { %2461 = vmatpush.bf16.msrb.mxu1 %v7722_v54  ;;  %v7433_v53 = vld [vmem:[#allocation2] sm:$0xf]  ;;  %v9791_v54 = vld [vmem:[#allocation2 + $0x8] sm:$0xf0] }
 0x1d2   :  { %v1108_v5 = vmax.f32 %v1088_v1, 0.0 }
 0x1d4   :  { %v1124_v7 = vpack.c.bf16 %v1108_v5, %v1108_v5  ;;  %v7649_v5 = vld [vmem:[#allocation10 + $0x150] sm:$0xf] }
 0x1d5   :  { %v7233_v15 = vld [vmem:[#allocation3 + $0xa8] sm:$0xf]  ;;  %v10766_v31 = vpop.f32.mrf.mxu2 }
 0x1d6   :  { %1141 = vst [vmem:[#allocation3 + $0xb4] sm:$0xf] %v1124_v7  ;;  %v7578_v7 = vor.u32 %v9827_v3, %v7577_v60  ;;  %v9839_v60 = vld [vmem:[#allocation10 + $0x124] sm:$0xf0] }
 0x1d7   :  { %v1090_v8 = vpop.f32.mrf.mxu1 }
 0x1d8   :  { %v1091_v9 = vadd.f32 %v1090_v8, %v1042_v57  ;;  %v7650_v57 = vor.u32 %v9845_v6, %v7649_v5  ;;  %v7713_v8 = vld [vmem:[#allocation10 + $0x1d0] sm:$0xf]  ;;  %v9855_v5 = vld [vmem:[#allocation10 + $0x1a4] sm:$0xf0]  ;;  %v9790_v6 = vld [vmem:[#allocation2 + $0x4] sm:$0xf] }
 0x1da   :  { %v1109_v11 = vmax.f32 %v1091_v9, 0.0  ;;  %v9861_v9 = vld [vmem:[#allocation10 + $0x1d4] sm:$0xf0]  ;;  %2433 = vmatpush.bf16.msrb.mxu0 %v7650_v57 }
 0x1dc   :  { %v1125_v14 = vpack.c.bf16 %v1109_v11, %v1109_v11  ;;  %v7714_v11 = vor.u32 %v9861_v9, %v7713_v8 }
 0x1dd   :  { %v9740_v16 = vld [vmem:[#allocation3 + $0xb0] sm:$0xf0] }
 0x1de   :  { %1142 = vst [vmem:[#allocation3 + $0xc0] sm:$0xf] %v1125_v14  ;;  %v7234_v18 = vor.u32 %v9740_v16, %v7233_v15  ;;  %2462 = vmatpush.bf16.msrb.mxu1 %v7714_v11  ;;  %v7569_v14 = vld [vmem:[#allocation10 + $0xb0] sm:$0xf]  ;;  %v7506_v15 = vor.u32 %v9809_v13, %v7505_v12  ;;  %v9825_v16 = vld [vmem:[#allocation10 + $0xb4] sm:$0xf0] }
 0x1df   :  { %v1092_v19 = vpop.f32.mrf.mxu1  ;;  %v7617_v12 = vld [vmem:[#allocation10 + $0x110] sm:$0xf]  ;;  %v9837_v13 = vld [vmem:[#allocation10 + $0x114] sm:$0xf0] }
 0x1e0   :  { %v1093_v20 = vadd.f32 %v1092_v19, %v1044_v17  ;;  %1562 = vmatmul.bf16.gmra.mxu3 %v7234_v18  ;;  %1576 = vmatmul.bf16.vlgmr.msra.gmra.mxu2 %v10741_v61  ;;  %v7641_v17 = vld [vmem:[#allocation10 + $0x140] sm:$0xf]  ;;  %v7570_v19 = vor.u32 %v9825_v16, %v7569_v14  ;;  %v7618_v14 = vor.u32 %v9837_v13, %v7617_v12  ;;  %v9853_v16 = vld [vmem:[#allocation10 + $0x194] sm:$0xf0] }
 0x1e1   :  { %1649 = vmatmul.bf16.gmra.mxu0 %v7234_v18  ;;  %v9843_v18 = vld [vmem:[#allocation10 + $0x144] sm:$0xf0] }
 0x1e2   :  { %v1110_v2 = vmax.f32 %v1093_v20, 0.0  ;;  %v7642_v20 = vor.u32 %v9843_v18, %v7641_v17  ;;  %v1264_v18 = vld [vmem:[%s12537_s6] sm:$0x3] }
 0x1e3   :  { %v10809_v39 = vperm.slane %v1264_v18, 1 }
 0x1e4   :  { %v1126_v21 = vpack.c.bf16 %v1110_v2, %v1110_v2  ;;  %v7705_v2 = vld [vmem:[#allocation10 + $0x1c0] sm:$0xf]  ;;  %2434 = vmatpush.bf16.msrb.mxu0 %v7642_v20 }
 0x1e5   :  { %v7237_v22 = vld [vmem:[#allocation3 + $0xc0] sm:$0xf]  ;;  %v7609_v20 = vld [vmem:[#allocation10 + $0x100] sm:$0xf] }
 0x1e6   :  { %1143 = vst [vmem:[#allocation3 + $0xcc] sm:$0xf] %v1126_v21  ;;  %v9859_v21 = vld [vmem:[#allocation10 + $0x1c4] sm:$0xf0] }
 0x1ed   :  { %v9741_v24 = vld [vmem:[#allocation3 + $0xc8] sm:$0xf0] }
 0x1ee   :  { %v7238_v25 = vor.u32 %v9741_v24, %v7237_v22  ;;  %v7706_v24 = vor.u32 %v9859_v21, %v7705_v2  ;;  %v9835_v2 = vld [vmem:[#allocation10 + $0x104] sm:$0xf0]  ;;  %v7673_v21 = vld [vmem:[#allocation10 + $0x180] sm:$0xf] }
 0x1ef   :  { %v7610_v26 = vor.u32 %v9835_v2, %v7609_v20  ;;  %v9877_v20 = vld [vmem:[#allocation10 + $0x254] sm:$0xf0] }
 0x1f0   :  { %1581 = vmatmul.bf16.gmra.mxu2 %v10749_v55  ;;  %1605 = vmatmul.bf16.vlgmr.msra.gmra.mxu3 %v10725_v62 }
 0x1f1   :  { %1678 = vmatmul.bf16.gmra.mxu1 %v7238_v25 }
 0x1f2   :  { %2463 = vmatpush.bf16.msrb.mxu1 %v7706_v24  ;;  %v10805_v24 = vperm.slane %v1264_v18, 0  ;;  %v7777_v18 = vld [vmem:[#allocation10 + $0x250] sm:$0xf] }
 0x200   :  { %1586 = vmatmul.bf16.gmra.mxu2 %v7218_v59  ;;  %1610 = vmatmul.bf16.gmra.mxu3 %v10741_v61  ;;  %v9815_v61 = vld [vmem:[#allocation10 + $0x64] sm:$0xf0] }
 0x201   :  { %v7530_v34 = vor.u32 %v9815_v61, %v7529_v23  ;;  %v9841_v23 = vld [vmem:[#allocation10 + $0x134] sm:$0xf0]  ;;  %v7562_v61 = vor.u32 %v9823_v30, %v7561_v28  ;;  %v1635_v28 = vpop.f32.mrf.mxu0  ;;  %v7793_v30 = vld [vmem:[#allocation10 + $0x270] sm:$0xf] }
 0x203   :  { %v10768_v62 = vpop.f32.mrf.mxu3  ;;  %2374 = vmatpush.bf16.msrb.mxu2 %v7530_v34  ;;  %v7697_v34 = vld [vmem:[#allocation10 + $0x1b0] sm:$0xf] }
 0x207   :  { %2375 = vmatpush.bf16.msrb.mxu2 %v7522_v46  ;;  %v9803_v46 = vld [vmem:[#allocation10 + $0x4] sm:$0xf0] }
 0x208   :  { %v7482_v47 = vor.u32 %v9803_v46, %v7481_v45  ;;  %v7785_v46 = vld [vmem:[#allocation10 + $0x260] sm:$0xf] }
 0x20b   :  { %v10772_v50 = vpop.f32.mrf.mxu3 }
 0x210   :  { %1591 = vmatmul.bf16.gmra.mxu2 %v7238_v25  ;;  %1615 = vmatmul.bf16.gmra.mxu3 %v10749_v55  ;;  %v9831_v55 = vld [vmem:[#allocation10 + $0xe4] sm:$0xf0] }
 0x211   :  { %v7594_v38 = vor.u32 %v9831_v55, %v7593_v33  ;;  %v7634_v33 = vor.u32 %v9841_v23, %v7633_v32  ;;  %v9857_v55 = vld [vmem:[#allocation10 + $0x1b4] sm:$0xf0]  ;;  %v1664_v23 = vpop.f32.mrf.mxu1 }
 0x212   :  { %v7698_v36 = vor.u32 %v9857_v55, %v7697_v34  ;;  %v9881_v32 = vld [vmem:[#allocation10 + $0x274] sm:$0xf0]  ;;  %v7857_v34 = vld [vmem:[#allocation10 + $0x2f0] sm:$0xf] }
 0x213   :  { %v10770_v37 = vpop.f32.mrf.mxu2  ;;  %2403 = vmatpush.bf16.msrb.mxu3 %v7594_v38  ;;  %2435 = vmatpush.bf16.msrb.mxu0 %v7634_v33  ;;  %v7794_v33 = vor.u32 %v9881_v32, %v7793_v30  ;;  %v9897_v55 = vld [vmem:[#allocation10 + $0x2f4] sm:$0xf0]  ;;  %v7531_v32 = vld [vmem:[#allocation10 + $0x68] sm:$0xf0] }
 0x214   :  { %2464 = vmatpush.bf16.msrb.mxu1 %v7698_v36  ;;  %v1520_v36 = vadd.f32 %v10764_v63, %v10805_v24  ;;  %v7858_v40 = vor.u32 %v9897_v55, %v7857_v34  ;;  %v1522_v63 = vadd.f32 %v10766_v31, %v10805_v24 }
 0x216   :  { %v1549_v42 = vadd.f32 %v10768_v62, %v1520_v36 }
 0x217   :  { %2404 = vmatpush.bf16.msrb.mxu3 %v7586_v51  ;;  %v7545_v51 = vld [vmem:[#allocation10 + $0x80] sm:$0xf] }
 0x218   :  { %v7546_v52 = vor.u32 %v9819_v4, %v7545_v51  ;;  %v1637_v51 = vpop.f32.mrf.mxu0 }
 0x219   :  { %v1666_v62 = vpop.f32.mrf.mxu1 }
 0x21b   :  { %v10774_v56 = vpop.f32.mrf.mxu2  ;;  %2405 = vmatpush.bf16.msrb.mxu3 %v7578_v7  ;;  %v7435_v7 = vld [vmem:[#allocation2 + $0xc] sm:$0xf0] }
 0x21c   :  { %v10795_v8 = vor.u32 %v9790_v6, %v7435_v7 }
 0x21f   :  { %2406 = vmatpush.bf16.msrb.mxu3 %v7570_v19 }
 0x220   :  { %1620 = vmatmul.bf16.gmra.mxu3 %v7218_v59  ;;  %v9811_v59 = vld [vmem:[#allocation10 + $0x44] sm:$0xf0]  ;;  %v1640_v2 = vpop.f32.mrf.mxu0 }
 0x221   :  { %v7514_v1 = vor.u32 %v9811_v59, %v7513_v58  ;;  %v10792_v58 = vor.u32 %v9791_v54, %v7433_v53  ;;  %v7625_v59 = vld [vmem:[#allocation10 + $0x120] sm:$0xf]  ;;  %v9895_v53 = vld [vmem:[#allocation10 + $0x2e4] sm:$0xf0]  ;;  %v9816_v54 = vld [vmem:[#allocation10 + $0x74] sm:$0xf] }
 0x222   :  { %v7626_v3 = vor.u32 %v9839_v60, %v7625_v59 }
 0x223   :  { %v10776_v0 = vpop.f32.mrf.mxu3  ;;  %2376 = vmatpush.bf16.msrb.mxu2 %v7514_v1  ;;  %2407 = vmatpush.bf16.msrb.mxu3 %v7562_v61  ;;  %v7689_v1 = vld [vmem:[#allocation10 + $0x1a0] sm:$0xf] }
 0x224   :  { %v7690_v57 = vor.u32 %v9855_v5, %v7689_v1  ;;  %2436 = vmatpush.bf16.msrb.mxu0 %v7626_v3  ;;  %v7539_v1 = vld [vmem:[#allocation10 + $0x78] sm:$0xf0]  ;;  %v9832_v3 = vld [vmem:[#allocation10 + $0xf4] sm:$0xf] }
 0x225   :  { %v7603_v5 = vld [vmem:[#allocation10 + $0xf8] sm:$0xf0]  ;;  %v7542_v7 = vor.u32 %v9816_v54, %v7539_v1  ;;  %v9812_v54 = vld [vmem:[#allocation10 + $0x54] sm:$0xf] }
 0x226   :  { %2465 = vmatpush.bf16.msrb.mxu1 %v7690_v57  ;;  %v7606_v57 = vor.u32 %v9832_v3, %v7603_v5  ;;  %v9828_v1 = vld [vmem:[#allocation10 + $0xd4] sm:$0xf]  ;;  %v7587_v3 = vld [vmem:[#allocation10 + $0xd8] sm:$0xf0] }
 0x227   :  { %2377 = vmatpush.bf16.msrb.mxu2 %v7506_v15  ;;  %2408 = vmatpush.bf16.msrb.mxu3 %v7554_v44  ;;  %v7681_v15 = vld [vmem:[#allocation10 + $0x190] sm:$0xf] }
 0x228   :  { %v7682_v17 = vor.u32 %v9853_v16, %v7681_v15  ;;  %2437 = vmatpush.bf16.msrb.mxu0 %v7618_v14  ;;  %v1551_v14 = vadd.f32 %v10772_v50, %v1522_v63  ;;  %v1642_v5 = vpop.f32.mrf.mxu0 }
 0x22a   :  { %2466 = vmatpush.bf16.msrb.mxu1 %v7682_v17 }
 0x22b   :  { %v10780_v22 = vpop.f32.mrf.mxu3  ;;  %2378 = vmatpush.bf16.msrb.mxu2 %v7498_v29  ;;  %2409 = vmatpush.bf16.msrb.mxu3 %v7546_v52  ;;  %v7674_v29 = vor.u32 %v9851_v27, %v7673_v21  ;;  %v7849_v52 = vld [vmem:[#allocation10 + $0x2e0] sm:$0xf]  ;;  %v7778_v21 = vor.u32 %v9877_v20, %v7777_v18  ;;  %v9893_v27 = vld [vmem:[#allocation10 + $0x2d4] sm:$0xf0] }
 0x22c   :  { %2438 = vmatpush.bf16.msrb.mxu0 %v7610_v26  ;;  %v7850_v60 = vor.u32 %v9895_v53, %v7849_v52  ;;  %v7841_v26 = vld [vmem:[#allocation10 + $0x2d0] sm:$0xf]  ;;  %v7833_v53 = vld [vmem:[#allocation10 + $0x2c0] sm:$0xf] }
 0x22d   :  { %v7842_v30 = vor.u32 %v9893_v27, %v7841_v26  ;;  %v1669_v34 = vpop.f32.mrf.mxu1  ;;  %v7761_v27 = vld [vmem:[#allocation10 + $0x230] sm:$0xf] }
 0x22e   :  { %2467 = vmatpush.bf16.msrb.mxu1 %v7674_v29 }
 0x22f   :  { %2379 = vmatpush.bf16.msrb.mxu2 %v7490_v41  ;;  %2518 = vmatpush.bf16.msra.mxu3 %v7858_v40 }
 0x230   :  { %2410 = vmatmul.bf16.vlgmr.msrb.gmra.mxu3 %v10795_v8  ;;  %2547 = vmatpush.bf16.msra.mxu0 %v7542_v7 }
 0x232   :  { %2576 = vmatpush.bf16.msra.mxu1 %v7606_v57 }
 0x233   :  { %v10778_v10 = vpop.f32.mrf.mxu2  ;;  %2380 = vmatpush.bf16.msrb.mxu2 %v7482_v47  ;;  %v9879_v47 = vld [vmem:[#allocation10 + $0x264] sm:$0xf0]  ;;  %2519 = vmatpush.bf16.msra.mxu3 %v7850_v60  ;;  %v7523_v60 = vld [vmem:[#allocation10 + $0x58] sm:$0xf0] }
 0x234   :  { %v7786_v4 = vor.u32 %v9879_v47, %v7785_v46 }
 0x236   :  { %2381 = vmatmul.bf16.vlgmr.msrb.gmra.mxu2 %v10792_v58 }
 0x237   :  { %2489 = vmatpush.bf16.msra.mxu2 %v7794_v33  ;;  %v7595_v33 = vld [vmem:[#allocation10 + $0xe8] sm:$0xf0]  ;;  %2520 = vmatpush.bf16.msra.mxu3 %v7842_v30  ;;  %v7825_v30 = vld [vmem:[#allocation10 + $0x2b0] sm:$0xf] }
 0x23b   :  { %v10782_v25 = vpop.f32.mrf.mxu2  ;;  %2490 = vmatpush.bf16.msra.mxu2 %v7786_v4  ;;  %v9875_v4 = vld [vmem:[#allocation10 + $0x244] sm:$0xf0] }
 0x23f   :  { %2491 = vmatpush.bf16.msra.mxu2 %v7778_v21 }
 0x243   :  { %v10784_v35 = vpop.f32.mrf.mxu3 }
 0x24b   :  { %v10788_v48 = vpop.f32.mrf.mxu3 }
 0x253   :  { %v10786_v38 = vpop.f32.mrf.mxu2 }
 0x25b   :  { %v10790_v49 = vpop.f32.mrf.mxu2 }
 0x263   :  { %v10798_v9 = vpop.f32.mrf.mxu3  ;;  %v1577_v11 = vpop.f32.mrf.mxu2 }
 0x264   :  { %v1578_v44 = vadd.f32 %v1577_v11, %v1549_v42 }
 0x266   :  { %v1684_v11 = vmax.f32 %v1578_v44, 0.0 }
 0x26b   :  { %v10803_v19 = vpop.f32.mrf.mxu3  ;;  %v1579_v61 = vpop.f32.mrf.mxu2 }
 0x26c   :  { %v1580_v16 = vadd.f32 %v1579_v61, %v1551_v14  ;;  %v1525_v61 = vadd.f32 %v10770_v37, %v10805_v24  ;;  %v9891_v37 = vld [vmem:[#allocation10 + $0x2c4] sm:$0xf0] }
 0x26e   :  { %v1686_v36 = vmax.f32 %v1580_v16, 0.0 }
 0x273   :  { %v1606_v41 = vpop.f32.mrf.mxu3  ;;  %v1582_v6 = vpop.f32.mrf.mxu2 }
 0x274   :  { %v1607_v43 = vadd.f32 %v1606_v41, %v10809_v39 }
 0x276   :  { %v1636_v45 = vadd.f32 %v1635_v28, %v1607_v43  ;;  %v9814_v28 = vld [vmem:[#allocation10 + $0x64] sm:$0xf]  ;;  %v1554_v43 = vadd.f32 %v10776_v0, %v1525_v61  ;;  %v7526_v0 = vor.u32 %v9812_v54, %v7523_v60  ;;  %v1645_v61 = vpop.f32.mrf.mxu0  ;;  %v9887_v54 = vld [vmem:[#allocation10 + $0x2a4] sm:$0xf0]  ;;  %v9808_v60 = vld [vmem:[#allocation10 + $0x34] sm:$0xf] }
 0x277   :  { %v7534_v50 = vor.u32 %v9814_v28, %v7531_v32  ;;  %v9873_v28 = vld [vmem:[#allocation10 + $0x234] sm:$0xf0]  ;;  %v9810_v32 = vld [vmem:[#allocation10 + $0x44] sm:$0xf] }
 0x278   :  { %v1665_v59 = vadd.f32 %v1664_v23, %v1636_v45  ;;  %v9830_v23 = vld [vmem:[#allocation10 + $0xe4] sm:$0xf]  ;;  %v1583_v46 = vadd.f32 %v1582_v6, %v1554_v43  ;;  %v1527_v6 = vadd.f32 %v10774_v56, %v10805_v24 }
 0x279   :  { %v7598_v55 = vor.u32 %v9830_v23, %v7595_v33  ;;  %2548 = vmatpush.bf16.msra.mxu0 %v7534_v50  ;;  %v9826_v50 = vld [vmem:[#allocation10 + $0xc4] sm:$0xf] }
 0x27a   :  { %v1685_v12 = vmax.f32 %v1665_v59, 0.0  ;;  %v7834_v59 = vor.u32 %v9891_v37, %v7833_v53  ;;  %v1688_v7 = vmax.f32 %v1583_v46, 0.0  ;;  %v7753_v46 = vld [vmem:[#allocation10 + $0x220] sm:$0xf] }
 0x27b   :  { %v1608_v13 = vpop.f32.mrf.mxu3  ;;  %v1584_v41 = vpop.f32.mrf.mxu2  ;;  %2577 = vmatpush.bf16.msra.mxu1 %v7598_v55  ;;  %v7579_v55 = vld [vmem:[#allocation10 + $0xc8] sm:$0xf0] }
 0x27c   :  { %v1700_v15 = vpack.c.bf16 %v1685_v12, %v1684_v11  ;;  %v1609_v31 = vadd.f32 %v1608_v13, %v10809_v39  ;;  %2521 = vmatpush.bf16.msra.mxu3 %v7834_v59  ;;  %v1671_v11 = vpop.f32.mrf.mxu1  ;;  %v1556_v13 = vadd.f32 %v10780_v22, %v1527_v6  ;;  %v9889_v22 = vld [vmem:[#allocation10 + $0x2b4] sm:$0xf0]  ;;  %v7745_v6 = vld [vmem:[#allocation10 + $0x210] sm:$0xf] }
 0x27d   :  { %2549 = vmatpush.bf16.msra.mxu0 %v7526_v0  ;;  %v7826_v33 = vor.u32 %v9889_v22, %v7825_v30  ;;  %v9824_v0 = vld [vmem:[#allocation10 + $0xb4] sm:$0xf] }
 0x27e   :  { %1708 = vst [vmem:[#allocation2 + $0x18] sm:$0xff] %v1700_v15  ;;  %v1638_v17 = vadd.f32 %v1637_v51, %v1609_v31  ;;  %v7769_v51 = vld [vmem:[#allocation10 + $0x240] sm:$0xf] }
 0x27f   :  { %v7770_v52 = vor.u32 %v9875_v4, %v7769_v51  ;;  %v7817_v51 = vld [vmem:[#allocation10 + $0x2a0] sm:$0xf] }
 0x280   :  { %v1667_v29 = vadd.f32 %v1666_v62, %v1638_v17  ;;  %v7590_v62 = vor.u32 %v9828_v1, %v7587_v3  ;;  %2522 = vmatpush.bf16.msra.mxu3 %v7826_v33  ;;  %v7507_v1 = vld [vmem:[#allocation10 + $0x38] sm:$0xf0] }
 0x281   :  { %2492 = vmatpush.bf16.msra.mxu2 %v7770_v52 }
 0x282   :  { %v1687_v40 = vmax.f32 %v1667_v29, 0.0  ;;  %2578 = vmatpush.bf16.msra.mxu1 %v7590_v62  ;;  %v7762_v29 = vor.u32 %v9873_v28, %v7761_v27  ;;  %v7571_v62 = vld [vmem:[#allocation10 + $0xb8] sm:$0xf0]  ;;  %v7737_v27 = vld [vmem:[#allocation10 + $0x200] sm:$0xf]  ;;  %v1647_v28 = vpop.f32.mrf.mxu0 }
 0x283   :  { %v1611_v42 = vpop.f32.mrf.mxu3  ;;  %v1587_v16 = vpop.f32.mrf.mxu2 }
 0x284   :  { %v1701_v44 = vpack.c.bf16 %v1687_v40, %v1686_v36  ;;  %v1612_v45 = vadd.f32 %v1611_v42, %v10809_v39  ;;  %v7582_v40 = vor.u32 %v9826_v50, %v7579_v55 }
 0x285   :  { %v7441_v31 = vld [vmem:[#allocation2 + $0x18] sm:$0xf]  ;;  %v9792_v18 = vld [vmem:[#allocation2 + $0x1c] sm:$0xf]  ;;  %2493 = vmatpush.bf16.msra.mxu2 %v7762_v29 }
 0x286   :  { %1709 = vst [vmem:[#allocation2 + $0x24] sm:$0xff] %v1701_v44  ;;  %v1641_v47 = vadd.f32 %v1640_v2, %v1612_v45  ;;  %v1585_v2 = vadd.f32 %v1584_v41, %v1556_v13  ;;  %v1530_v41 = vadd.f32 %v10778_v10, %v10805_v24  ;;  %v1674_v44 = vpop.f32.mrf.mxu1  ;;  %2579 = vmatpush.bf16.msra.mxu1 %v7582_v40 }
 0x287   :  { %v1532_v13 = vadd.f32 %v10782_v25, %v10805_v24  ;;  %v9867_v25 = vld [vmem:[#allocation10 + $0x204] sm:$0xf0] }
 0x288   :  { %v1670_v63 = vadd.f32 %v1669_v34, %v1641_v47  ;;  %v7515_v34 = vld [vmem:[#allocation10 + $0x48] sm:$0xf0]  ;;  %v1690_v42 = vmax.f32 %v1585_v2, 0.0  ;;  %v9871_v47 = vld [vmem:[#allocation10 + $0x224] sm:$0xf0]  ;;  %v1559_v4 = vadd.f32 %v10784_v35, %v1530_v41  ;;  %v7574_v35 = vor.u32 %v9824_v0, %v7571_v62 }
 0x289   :  { %v7518_v36 = vor.u32 %v9810_v32, %v7515_v34  ;;  %v7754_v37 = vor.u32 %v9871_v47, %v7753_v46  ;;  %v1561_v29 = vadd.f32 %v10788_v48, %v1532_v13  ;;  %v7801_v32 = vld [vmem:[#allocation10 + $0x280] sm:$0xf]  ;;  %v7738_v55 = vor.u32 %v9867_v25, %v7737_v27  ;;  %v7667_v0 = vld [vmem:[#allocation10 + $0x178] sm:$0xf0]  ;;  %v7483_v62 = vld [vmem:[#allocation10 + $0x8] sm:$0xf0] }
 0x28a   :  { %v1689_v57 = vmax.f32 %v1670_v63, 0.0  ;;  %v7818_v63 = vor.u32 %v9887_v54, %v7817_v51  ;;  %v1588_v10 = vadd.f32 %v1587_v16, %v1559_v4  ;;  %v7499_v16 = vld [vmem:[#allocation10 + $0x28] sm:$0xf0]  ;;  %2580 = vmatpush.bf16.msra.mxu1 %v7574_v35  ;;  %v1535_v47 = vadd.f32 %v10786_v38, %v10805_v24  ;;  %v9804_v4 = vld [vmem:[#allocation10 + $0x14] sm:$0xf]  ;;  %v10362_v27 = vld [vmem:[#allocation2] sm:$0xff] }
 0x28b   :  { %v1613_v12 = vpop.f32.mrf.mxu3  ;;  %2550 = vmatpush.bf16.msra.mxu0 %v7518_v36  ;;  %2494 = vmatpush.bf16.msra.mxu2 %v7754_v37  ;;  %v1589_v3 = vpop.f32.mrf.mxu2  ;;  %v9802_v38 = vld [vmem:[#allocation10 + $0x4] sm:$0xf] }
 0x28c   :  { %v1702_v14 = vpack.c.bf16 %v1689_v57, %v1688_v7  ;;  %v1614_v15 = vadd.f32 %v1613_v12, %v10809_v39  ;;  %2523 = vmatpush.bf16.msra.mxu3 %v7818_v63  ;;  %v9869_v57 = vld [vmem:[#allocation10 + $0x214] sm:$0xf0]  ;;  %v1590_v36 = vadd.f32 %v1589_v3, %v1561_v29  ;;  %v9818_v13 = vld [vmem:[#allocation10 + $0x84] sm:$0xf] }
 0x28d   :  { %v9793_v17 = vld [vmem:[#allocation2 + $0x20] sm:$0xf0]  ;;  %v7443_v20 = vld [vmem:[#allocation2 + $0x24] sm:$0xf0]  ;;  %v9885_v12 = vld [vmem:[#allocation10 + $0x294] sm:$0xf0] }
 0x28e   :  { %1710 = vst [vmem:[#allocation2 + $0x30] sm:$0xff] %v1702_v14  ;;  %v1643_v56 = vadd.f32 %v1642_v5, %v1614_v15  ;;  %v10825_v21 = vor.u32 %v9793_v17, %v7441_v31  ;;  %v10827_v26 = vor.u32 %v9792_v18, %v7443_v20  ;;  %v7510_v5 = vor.u32 %v9808_v60, %v7507_v1  ;;  %v9806_v31 = vld [vmem:[#allocation10 + $0x24] sm:$0xf]  ;;  %v1650_v60 = vpop.f32.mrf.mxu0 }
 0x28f   :  { %v7746_v14 = vor.u32 %v9869_v57, %v7745_v6  ;;  %v9822_v17 = vld [vmem:[#allocation10 + $0xa4] sm:$0xf]  ;;  %v1692_v18 = vmax.f32 %v1588_v10, 0.0  ;;  %v7502_v2 = vor.u32 %v9806_v31, %v7499_v16  ;;  %v1694_v37 = vmax.f32 %v1590_v36, 0.0  ;;  %v7555_v10 = vld [vmem:[#allocation10 + $0x98] sm:$0xf0] }
 0x290   :  { %v1672_v23 = vadd.f32 %v1671_v11, %v1643_v56  ;;  %2386 = vmatmul.bf16.gmra.mxu2 %v10825_v21  ;;  %2415 = vmatmul.bf16.gmra.mxu3 %v10827_v26  ;;  %v7809_v11 = vld [vmem:[#allocation10 + $0x290] sm:$0xf]  ;;  %v7563_v56 = vld [vmem:[#allocation10 + $0xa8] sm:$0xf0]  ;;  %v1564_v1 = vadd.f32 %v10798_v9, %v1535_v47  ;;  %v7486_v57 = vor.u32 %v9802_v38, %v7483_v62 }
 0x291   :  { %2439 = vmatmul.bf16.vlgmr.msrb.gmra.mxu0 %v10825_v21  ;;  %2468 = vmatmul.bf16.vlgmr.msrb.gmra.mxu1 %v10827_v26  ;;  %v7810_v15 = vor.u32 %v9885_v12, %v7809_v11  ;;  %v7566_v22 = vor.u32 %v9822_v17, %v7563_v56  ;;  %v9864_v11 = vld [vmem:[#allocation10 + $0x1f4] sm:$0xf]  ;;  %v7731_v12 = vld [vmem:[#allocation10 + $0x1f8] sm:$0xf0]  ;;  %v7547_v9 = vld [vmem:[#allocation10 + $0x88] sm:$0xf0] }
 0x292   :  { %v1691_v43 = vmax.f32 %v1672_v23, 0.0  ;;  %2551 = vmatpush.bf16.msra.mxu0 %v7510_v5  ;;  %2495 = vmatpush.bf16.msra.mxu2 %v7746_v14  ;;  %v9883_v23 = vld [vmem:[#allocation10 + $0x284] sm:$0xf0]  ;;  %v7734_v16 = vor.u32 %v9864_v11, %v7731_v12  ;;  %v7659_v56 = vld [vmem:[#allocation10 + $0x168] sm:$0xf0] }
 0x293   :  { %v1616_v45 = vpop.f32.mrf.mxu3  ;;  %2524 = vmatpush.bf16.msra.mxu3 %v7810_v15  ;;  %2581 = vmatpush.bf16.msra.mxu1 %v7566_v22  ;;  %v1592_v51 = vpop.f32.mrf.mxu2  ;;  %v7787_v38 = vld [vmem:[#allocation10 + $0x268] sm:$0xf0] }
 0x294   :  { %v1703_v52 = vpack.c.bf16 %v1691_v43, %v1690_v42  ;;  %v1617_v53 = vadd.f32 %v1616_v45, %v10809_v39  ;;  %v7802_v43 = vor.u32 %v9883_v23, %v7801_v32  ;;  %v1593_v17 = vadd.f32 %v1592_v51, %v1564_v1  ;;  %v9860_v1 = vld [vmem:[#allocation10 + $0x1d4] sm:$0xf]  ;;  %v7643_v11 = vld [vmem:[#allocation10 + $0x148] sm:$0xf0] }
 0x295   :  { %v7449_v50 = vld [vmem:[#allocation2 + $0x30] sm:$0xf]  ;;  %v9794_v41 = vld [vmem:[#allocation2 + $0x34] sm:$0xf] }
 0x296   :  { %1711 = vst [vmem:[#allocation2 + $0x3c] sm:$0xff] %v1703_v52  ;;  %v1646_v59 = vadd.f32 %v1645_v61, %v1617_v53  ;;  %v1676_v61 = vpop.f32.mrf.mxu1  ;;  %2552 = vmatpush.bf16.msra.mxu0 %v7502_v2  ;;  %2496 = vmatpush.bf16.msra.mxu2 %v7738_v55  ;;  %v7491_v52 = vld [vmem:[#allocation10 + $0x18] sm:$0xf0]  ;;  %v9820_v53 = vld [vmem:[#allocation10 + $0x94] sm:$0xf]  ;;  %v1696_v22 = vmax.f32 %v1593_v17, 0.0  ;;  %v1652_v55 = vpop.f32.mrf.mxu0 }
 0x297   :  { %2525 = vmatpush.bf16.msra.mxu3 %v7802_v43  ;;  %v7494_v63 = vor.u32 %v9804_v4, %v7491_v52  ;;  %v7558_v5 = vor.u32 %v9820_v53, %v7555_v10  ;;  %v9846_v2 = vld [vmem:[#allocation10 + $0x164] sm:$0xf]  ;;  %v7795_v4 = vld [vmem:[#allocation10 + $0x278] sm:$0xf0]  ;;  %v9896_v52 = vld [vmem:[#allocation10 + $0x2f4] sm:$0xf] }
 0x298   :  { %v1675_v7 = vadd.f32 %v1674_v44, %v1646_v59  ;;  %v9848_v59 = vld [vmem:[#allocation10 + $0x174] sm:$0xf]  ;;  %v9858_v17 = vld [vmem:[#allocation10 + $0x1c4] sm:$0xf] }
 0x299   :  { %v7670_v35 = vor.u32 %v9848_v59, %v7667_v0  ;;  %2582 = vmatpush.bf16.msra.mxu1 %v7558_v5  ;;  %v9878_v5 = vld [vmem:[#allocation10 + $0x264] sm:$0xf] }
 0x29a   :  { %v1693_v20 = vmax.f32 %v1675_v7, 0.0  ;;  %2553 = vmatpush.bf16.msra.mxu0 %v7494_v63  ;;  %v7651_v63 = vld [vmem:[#allocation10 + $0x158] sm:$0xf0]  ;;  %v7790_v62 = vor.u32 %v9878_v5, %v7787_v38  ;;  %v9886_v5 = vld [vmem:[#allocation10 + $0x2a4] sm:$0xf] }
 0x29b   :  { %v1618_v30 = vpop.f32.mrf.mxu3  ;;  %2605 = vmatpush.bf16.msrb.mxu2 %v7670_v35  ;;  %2634 = vmatpush.bf16.msrb.mxu3 %v7734_v16  ;;  %v1594_v32 = vpop.f32.mrf.mxu2  ;;  %v9834_v38 = vld [vmem:[#allocation10 + $0x104] sm:$0xf] }
 0x29c   :  { %v1704_v33 = vpack.c.bf16 %v1693_v20, %v1692_v18  ;;  %v1619_v34 = vadd.f32 %v1618_v30, %v10809_v39  ;;  %v7550_v20 = vor.u32 %v9818_v13, %v7547_v9  ;;  %v1537_v30 = vadd.f32 %v10790_v49, %v10805_v24 }
 0x29d   :  { %v9795_v40 = vld [vmem:[#allocation2 + $0x38] sm:$0xf0]  ;;  %v7451_v42 = vld [vmem:[#allocation2 + $0x3c] sm:$0xf0] }
 0x29e   :  { %1712 = vst [vmem:[#allocation2 + $0x48] sm:$0xff] %v1704_v33  ;;  %v1648_v48 = vadd.f32 %v1647_v28, %v1619_v34  ;;  %v10841_v44 = vor.u32 %v9795_v40, %v7449_v50  ;;  %v10843_v45 = vor.u32 %v9794_v41, %v7451_v42  ;;  %v1679_v14 = vpop.f32.mrf.mxu1  ;;  %v7662_v28 = vor.u32 %v9846_v2, %v7659_v56  ;;  %v7779_v56 = vld [vmem:[#allocation10 + $0x258] sm:$0xf0] }
 0x29f   :  { %2554 = vmatpush.bf16.msra.mxu0 %v7486_v57  ;;  %2583 = vmatpush.bf16.msra.mxu1 %v7550_v20  ;;  %v1566_v33 = vadd.f32 %v10803_v19, %v1537_v30  ;;  %v9862_v19 = vld [vmem:[#allocation10 + $0x1e4] sm:$0xf]  ;;  %v9876_v20 = vld [vmem:[#allocation10 + $0x254] sm:$0xf] }
 0x2a0   :  { %v1677_v46 = vadd.f32 %v1676_v61, %v1648_v48  ;;  %2391 = vmatmul.bf16.gmra.mxu2 %v10841_v44  ;;  %2420 = vmatmul.bf16.gmra.mxu3 %v10843_v45  ;;  %v9880_v48 = vld [vmem:[#allocation10 + $0x274] sm:$0xf]  ;;  %v9842_v57 = vld [vmem:[#allocation10 + $0x144] sm:$0xf] }
 0x2a1   :  { %2444 = vmatmul.bf16.gmra.mxu0 %v10841_v44  ;;  %2473 = vmatmul.bf16.gmra.mxu1 %v10843_v45  ;;  %v1595_v40 = vadd.f32 %v1594_v32, %v1566_v33  ;;  %v7798_v53 = vor.u32 %v9880_v48, %v7795_v4  ;;  %v7646_v12 = vor.u32 %v9842_v57, %v7643_v11  ;;  %v9856_v32 = vld [vmem:[#allocation10 + $0x1b4] sm:$0xf]  ;;  %v7699_v33 = vld [vmem:[#allocation10 + $0x1b8] sm:$0xf0]  ;;  %v7691_v48 = vld [vmem:[#allocation10 + $0x1a8] sm:$0xf0] }
 0x2a2   :  { %v1695_v54 = vmax.f32 %v1677_v46, 0.0  ;;  %2606 = vmatpush.bf16.msrb.mxu2 %v7662_v28  ;;  %v7843_v28 = vld [vmem:[#allocation10 + $0x2d8] sm:$0xf0]  ;;  %v9888_v4 = vld [vmem:[#allocation10 + $0x2b4] sm:$0xf] }
 0x2a3   :  { %v1621_v3 = vpop.f32.mrf.mxu3  ;;  %v1698_v46 = vmax.f32 %v1595_v40, 0.0  ;;  %2663 = vmatpush.bf16.msrb.mxu0 %v7798_v53  ;;  %v7835_v40 = vld [vmem:[#allocation10 + $0x2c8] sm:$0xf0] }
 0x2a4   :  { %v1705_v6 = vpack.c.bf16 %v1695_v54, %v1694_v37  ;;  %v1622_v7 = vadd.f32 %v1621_v3, %v10809_v39  ;;  %v7859_v37 = vld [vmem:[#allocation10 + $0x2f8] sm:$0xf0]  ;;  %v9844_v54 = vld [vmem:[#allocation10 + $0x154] sm:$0xf] }
 0x2a5   :  { %v7457_v15 = vld [vmem:[#allocation2 + $0x48] sm:$0xf]  ;;  %v9796_v31 = vld [vmem:[#allocation2 + $0x4c] sm:$0xf]  ;;  %v7862_v59 = vor.u32 %v9896_v52, %v7859_v37  ;;  %v7715_v3 = vld [vmem:[#allocation10 + $0x1d8] sm:$0xf0] }
 0x2a6   :  { %1713 = vst [vmem:[#allocation2 + $0x54] sm:$0xff] %v1705_v6  ;;  %v1651_v18 = vadd.f32 %v1650_v60, %v1622_v7  ;;  %v1681_v49 = vpop.f32.mrf.mxu1  ;;  %v7654_v60 = vor.u32 %v9844_v54, %v7651_v63  ;;  %v7718_v0 = vor.u32 %v9860_v1, %v7715_v3  ;;  %v9894_v6 = vld [vmem:[#allocation10 + $0x2e4] sm:$0xf]  ;;  %v7851_v7 = vld [vmem:[#allocation10 + $0x2e8] sm:$0xf0] }
 0x2a7   :  { %4152 = vst [vmem:[#allocation2 + $0x48] sm:$0xff] %v10362_v27  ;;  %2692 = vmatpush.bf16.msrb.mxu1 %v7862_v59  ;;  %v7854_v35 = vor.u32 %v9894_v6, %v7851_v7  ;;  %2664 = vmatpush.bf16.msrb.mxu0 %v7790_v62  ;;  %v7827_v52 = vld [vmem:[#allocation10 + $0x2b8] sm:$0xf0]  ;;  %v9836_v54 = vld [vmem:[#allocation10 + $0x114] sm:$0xf] }
 0x2a8   :  { %v1680_v29 = vadd.f32 %v1679_v14, %v1651_v18  ;;  %2607 = vmatpush.bf16.msrb.mxu2 %v7654_v60  ;;  %v7707_v18 = vld [vmem:[#allocation10 + $0x1c8] sm:$0xf0]  ;;  %v7830_v37 = vor.u32 %v9888_v4, %v7827_v52  ;;  %v7619_v63 = vld [vmem:[#allocation10 + $0x118] sm:$0xf0]  ;;  %v9870_v1 = vld [vmem:[#allocation10 + $0x224] sm:$0xf] }
 0x2a9   :  { %v7710_v2 = vor.u32 %v9858_v17, %v7707_v18  ;;  %v7622_v59 = vor.u32 %v9836_v54, %v7619_v63  ;;  %v7683_v60 = vld [vmem:[#allocation10 + $0x198] sm:$0xf0]  ;;  %v7755_v3 = vld [vmem:[#allocation10 + $0x228] sm:$0xf0]  ;;  %v9850_v7 = vld [vmem:[#allocation10 + $0x184] sm:$0xf] }
 0x2aa   :  { %v1697_v25 = vmax.f32 %v1680_v29, 0.0  ;;  %v7782_v29 = vor.u32 %v9876_v20, %v7779_v56  ;;  %v7611_v6 = vld [vmem:[#allocation10 + $0x108] sm:$0xf0]  ;;  %v9884_v17 = vld [vmem:[#allocation10 + $0x294] sm:$0xf] }
 0x2ab   :  { %v1623_v23 = vpop.f32.mrf.mxu3  ;;  %2693 = vmatpush.bf16.msrb.mxu1 %v7854_v35  ;;  %v7675_v35 = vld [vmem:[#allocation10 + $0x188] sm:$0xf0]  ;;  %v7614_v57 = vor.u32 %v9834_v38, %v7611_v6  ;;  %v7811_v18 = vld [vmem:[#allocation10 + $0x298] sm:$0xf0]  ;;  %v9866_v56 = vld [vmem:[#allocation10 + $0x204] sm:$0xf] }
 0x2ac   :  { %v1706_v34 = vpack.c.bf16 %v1697_v25, %v1696_v22  ;;  %v1624_v50 = vadd.f32 %v1623_v23, %v10809_v39  ;;  %v7723_v39 = vld [vmem:[#allocation10 + $0x1e8] sm:$0xf0]  ;;  %2608 = vmatpush.bf16.msrb.mxu2 %v7646_v12  ;;  %v9840_v22 = vld [vmem:[#allocation10 + $0x134] sm:$0xf]  ;;  %v7635_v25 = vld [vmem:[#allocation10 + $0x138] sm:$0xf0]  ;;  %2665 = vmatpush.bf16.msrb.mxu0 %v7782_v29  ;;  %v7678_v11 = vor.u32 %v9850_v7, %v7675_v35 }
 0x2ad   :  { %v9797_v61 = vld [vmem:[#allocation2 + $0x50] sm:$0xf0]  ;;  %v7459_v36 = vld [vmem:[#allocation2 + $0x54] sm:$0xf0]  ;;  %v7726_v51 = vor.u32 %v9862_v19, %v7723_v39  ;;  %v7638_v23 = vor.u32 %v9840_v22, %v7635_v25  ;;  %v9854_v39 = vld [vmem:[#allocation10 + $0x1a4] sm:$0xf] }
 0x2ae   :  { %1714 = vst [vmem:[#allocation2 + $0x60] sm:$0xff] %v1706_v34  ;;  %v1653_v41 = vadd.f32 %v1652_v55, %v1624_v50  ;;  %v10857_v42 = vor.u32 %v9797_v61, %v7457_v15  ;;  %v10859_v43 = vor.u32 %v9796_v31, %v7459_v36  ;;  %v9874_v34 = vld [vmem:[#allocation10 + $0x244] sm:$0xf]  ;;  %v7771_v50 = vld [vmem:[#allocation10 + $0x248] sm:$0xf0]  ;;  %v7702_v55 = vor.u32 %v9856_v32, %v7699_v33 }
 0x2af   :  { %4154 = vst [vmem:[#allocation2 + $0x54] sm:$0xff] %v10362_v27  ;;  %2635 = vmatpush.bf16.msrb.mxu3 %v7726_v51  ;;  %v9892_v27 = vld [vmem:[#allocation10 + $0x2d4] sm:$0xf]  ;;  %v7774_v61 = vor.u32 %v9874_v34, %v7771_v50  ;;  %v9890_v36 = vld [vmem:[#allocation10 + $0x2c4] sm:$0xf] }
 0x2b0   :  { %v1682_v24 = vadd.f32 %v1681_v49, %v1653_v41  ;;  %2396 = vmatmul.bf16.gmra.mxu2 %v10857_v42  ;;  %2425 = vmatmul.bf16.gmra.mxu3 %v10859_v43  ;;  %v7846_v30 = vor.u32 %v9892_v27, %v7843_v28  ;;  %v9838_v41 = vld [vmem:[#allocation10 + $0x124] sm:$0xf]  ;;  %v7838_v49 = vor.u32 %v9890_v36, %v7835_v40  ;;  %v7763_v51 = vld [vmem:[#allocation10 + $0x238] sm:$0xf0]  ;;  %v9868_v12 = vld [vmem:[#allocation10 + $0x214] sm:$0xf] }
 0x2b1   :  { %2449 = vmatmul.bf16.gmra.mxu0 %v10857_v42  ;;  %2478 = vmatmul.bf16.gmra.mxu1 %v10859_v43  ;;  %v7739_v27 = vld [vmem:[#allocation10 + $0x208] sm:$0xf0]  ;;  %v9882_v28 = vld [vmem:[#allocation10 + $0x284] sm:$0xf]  ;;  %v7473_v33 = vld [vmem:[#allocation2 + $0x78] sm:$0xf] }
 0x2b2   :  { %v1699_v47 = vmax.f32 %v1682_v24, 0.0  ;;  %2694 = vmatpush.bf16.msrb.mxu1 %v7846_v30  ;;  %2609 = vmatpush.bf16.msrb.mxu2 %v7638_v23  ;;  %v7627_v24 = vld [vmem:[#allocation10 + $0x128] sm:$0xf0]  ;;  %v7742_v30 = vor.u32 %v9866_v56, %v7739_v27  ;;  %v9801_v34 = vld [vmem:[#allocation2 + $0x80] sm:$0xf0] }
 0x2b3   :  { %2636 = vmatpush.bf16.msrb.mxu3 %v7718_v0  ;;  %v7630_v19 = vor.u32 %v9838_v41, %v7627_v24  ;;  %2666 = vmatpush.bf16.msrb.mxu0 %v7774_v61  ;;  %v7819_v0 = vld [vmem:[#allocation10 + $0x2a8] sm:$0xf0]  ;;  %v2411_v25 = vpop.f32.mrf.mxu3  ;;  %v9800_v50 = vld [vmem:[#allocation2 + $0x7c] sm:$0xf]  ;;  %v10890_v61 = vor.u32 %v9801_v34, %v7473_v33  ;;  %v7989_v27 = vld [vmem:[%s12540_s9 + $0xa8] sm:$0xf] }
 0x2b4   :  { %v1707_v10 = vpack.c.bf16 %v1699_v47, %v1698_v46  ;;  %v9872_v46 = vld [vmem:[#allocation10 + $0x234] sm:$0xf]  ;;  %v7694_v47 = vor.u32 %v9854_v39, %v7691_v48  ;;  %v7822_v62 = vor.u32 %v9886_v5, %v7819_v0  ;;  %v7803_v22 = vld [vmem:[#allocation10 + $0x288] sm:$0xf0] }
 0x2b5   :  { %v7465_v13 = vld [vmem:[#allocation2 + $0x60] sm:$0xf]  ;;  %v9798_v15 = vld [vmem:[#allocation2 + $0x64] sm:$0xf]  ;;  %v7766_v53 = vor.u32 %v9872_v46, %v7763_v51  ;;  %v7806_v32 = vor.u32 %v9882_v28, %v7803_v22  ;;  %v9930_v28 = vld [vmem:[%s12540_s9 + $0xb0] sm:$0xf0] }
 0x2b6   :  { %1715 = vst [vmem:[#allocation2 + $0x6c] sm:$0xff] %v1707_v10  ;;  %2695 = vmatpush.bf16.msrb.mxu1 %v7838_v49  ;;  %2610 = vmatpush.bf16.msrb.mxu2 %v7630_v19  ;;  %v9852_v10 = vld [vmem:[#allocation10 + $0x194] sm:$0xf] }
 0x2b7   :  { %2637 = vmatpush.bf16.msrb.mxu3 %v7710_v2  ;;  %2667 = vmatpush.bf16.msrb.mxu0 %v7766_v53  ;;  %v7814_v2 = vor.u32 %v9884_v17, %v7811_v18  ;;  %v9954_v22 = vld [vmem:[%s12540_s9 + $0x170] sm:$0xf0] }
 0x2b9   :  { %v2382_v20 = vpop.f32.mrf.mxu2 }
 0x2ba   :  { %2696 = vmatpush.bf16.msrb.mxu1 %v7830_v37  ;;  %2611 = vmatpush.bf16.msrb.mxu2 %v7622_v59 }
 0x2bb   :  { %2638 = vmatpush.bf16.msrb.mxu3 %v7702_v55  ;;  %v7475_v55 = vld [vmem:[#allocation2 + $0x84] sm:$0xf0]  ;;  %v10902_v40 = vpop.f32.mrf.mxu3 }
 0x2bc   :  { %v10892_v36 = vor.u32 %v9800_v50, %v7475_v55  ;;  %v7977_v50 = vld [vmem:[%s12540_s9 + $0x90] sm:$0xf]  ;;  %v9927_v55 = vld [vmem:[%s12540_s9 + $0x98] sm:$0xf0] }
 0x2bd   :  { %v9799_v14 = vld [vmem:[#allocation2 + $0x68] sm:$0xf0]  ;;  %v7467_v31 = vld [vmem:[#allocation2 + $0x6c] sm:$0xf0] }
 0x2be   :  { %v10865_v16 = vor.u32 %v9799_v14, %v7465_v13  ;;  %v10867_v9 = vor.u32 %v9798_v15, %v7467_v31  ;;  %2697 = vmatpush.bf16.msrb.mxu1 %v7822_v62  ;;  %2612 = vmatpush.bf16.msrb.mxu2 %v7614_v57  ;;  %v7747_v13 = vld [vmem:[#allocation10 + $0x218] sm:$0xf0]  ;;  %v10884_v14 = vld [vmem:[%s12539_s8] sm:$0x3]  ;;  %s10532_s8 = smov 60  }
 0x2bf   :  { %2639 = vmatpush.bf16.msrb.mxu3 %v7694_v47  ;;  %v7750_v15 = vor.u32 %v9868_v12, %v7747_v13  ;;  %v10887_v31 = vperm.slane %v10884_v14, 0 }
 0x2c0   :  { %2497 = vmatmul.bf16.vlgmr.msra.gmra.mxu2 %v10841_v44  ;;  %2526 = vmatmul.bf16.vlgmr.msra.gmra.mxu3 %v10843_v45 }
 0x2c1   :  { %2454 = vmatmul.bf16.gmra.mxu0 %v10865_v16  ;;  %2483 = vmatmul.bf16.gmra.mxu1 %v10867_v9  ;;  %v2383_v29 = vadd.f32 %v2382_v20, %v10887_v31  ;;  %v10904_v41 = vpop.f32.mrf.mxu2 }
 0x2c2   :  { %2698 = vmatpush.bf16.msrb.mxu1 %v7814_v2 }
 0x2c3   :  { %v2412_v23 = vadd.f32 %v2411_v25, %v2383_v29  ;;  %v8085_v29 = vld [vmem:[%s12540_s9 + $0x168] sm:$0xf] }
 0x2c6   :  { %2699 = vmatpush.bf16.msrb.mxu1 %v7806_v32 }
 0x2d0   :  { %2502 = vmatmul.bf16.gmra.mxu2 %v10857_v42  ;;  %2531 = vmatmul.bf16.gmra.mxu3 %v10859_v43 }
 0x2d1   :  { %2555 = vmatmul.bf16.vlgmr.msra.gmra.mxu0 %v10792_v58  ;;  %2584 = vmatmul.bf16.vlgmr.msra.gmra.mxu1 %v10795_v8  ;;  %v7686_v58 = vor.u32 %v9852_v10, %v7683_v60  ;;  %v7758_v8 = vor.u32 %v9870_v1, %v7755_v3 }
 0x2d3   :  { %2640 = vmatpush.bf16.msrb.mxu3 %v7686_v58  ;;  %2668 = vmatpush.bf16.msrb.mxu0 %v7758_v8 }
 0x2d7   :  { %2641 = vmatpush.bf16.msrb.mxu3 %v7678_v11  ;;  %2669 = vmatpush.bf16.msrb.mxu0 %v7750_v15 }
 0x2db   :  { %2670 = vmatpush.bf16.msrb.mxu0 %v7742_v30  ;;  %v7990_v30 = vor.u32 %v9930_v28, %v7989_v27  ;;  %v7941_v28 = vld [vmem:[%s12540_s9 + $0x48] sm:$0xf] }
 0x2dd   :  { %3781 = vmatpush.bf16.msra.mxu2 %v7990_v30 }
 0x2e0   :  { %2507 = vmatmul.bf16.gmra.mxu2 %v10865_v16  ;;  %2536 = vmatmul.bf16.gmra.mxu3 %v10867_v9 }
 0x2e1   :  { %2560 = vmatmul.bf16.gmra.mxu0 %v10825_v21  ;;  %2589 = vmatmul.bf16.gmra.mxu1 %v10827_v26 }
 0x2f0   :  { %2512 = vmatmul.bf16.gmra.mxu2 %v10890_v61  ;;  %2541 = vmatmul.bf16.gmra.mxu3 %v10892_v36 }
 0x2f1   :  { %2565 = vmatmul.bf16.gmra.mxu0 %v10841_v44  ;;  %2594 = vmatmul.bf16.gmra.mxu1 %v10843_v45 }
 0x300   :  { %2613 = vmatmul.bf16.vlgmr.msrb.gmra.mxu2 %v10825_v21  ;;  %2642 = vmatmul.bf16.vlgmr.msrb.gmra.mxu3 %v10827_v26 }
 0x301   :  { %2570 = vmatmul.bf16.gmra.mxu0 %v10857_v42  ;;  %2599 = vmatmul.bf16.gmra.mxu1 %v10859_v43 }
 0x30e   :  { %v2440_v49 = vpop.f32.mrf.mxu0  ;;  %v2469_v24 = vpop.f32.mrf.mxu1 }
 0x30f   :  { %v2441_v19 = vadd.f32 %v2440_v49, %v2412_v23  ;;  %v8086_v23 = vor.u32 %v9954_v22, %v8085_v29  ;;  %v9951_v49 = vld [vmem:[%s12540_s9 + $0x158] sm:$0xf0]  ;;  %v9918_v29 = vld [vmem:[%s12540_s9 + $0x50] sm:$0xf0] }
 0x310   :  { %2618 = vmatmul.bf16.gmra.mxu2 %v10841_v44  ;;  %2647 = vmatmul.bf16.gmra.mxu3 %v10843_v45  ;;  %v7942_v30 = vor.u32 %v9918_v29, %v7941_v28  ;;  %v9942_v22 = vld [vmem:[%s12540_s9 + $0x110] sm:$0xf0]  ;;  %v9936_v28 = vld [vmem:[%s12540_s9 + $0xe0] sm:$0xf0] }
 0x311   :  { %v2470_v39 = vadd.f32 %v2469_v24, %v2441_v19  ;;  %2671 = vmatmul.bf16.vlgmr.msrb.gmra.mxu0 %v10841_v44  ;;  %2700 = vmatmul.bf16.vlgmr.msrb.gmra.mxu1 %v10843_v45 }
 0x312   :  { %3800 = vmatpush.bf16.msra.mxu3 %v8086_v23 }
 0x313   :  { %v2387_v21 = vpop.f32.mrf.mxu2  ;;  %v2416_v26 = vpop.f32.mrf.mxu3 }
 0x314   :  { %v2388_v48 = vadd.f32 %v2387_v21, %v10887_v31 }
 0x316   :  { %v2417_v46 = vadd.f32 %v2416_v26, %v2388_v48  ;;  %v10911_v47 = vpop.f32.mrf.mxu0  ;;  %v10913_v51 = vpop.f32.mrf.mxu1 }
 0x31b   :  { %v10915_v4 = vpop.f32.mrf.mxu2  ;;  %v10917_v52 = vpop.f32.mrf.mxu3 }
 0x31e   :  { %v2445_v53 = vpop.f32.mrf.mxu0  ;;  %v2474_v37 = vpop.f32.mrf.mxu1 }
 0x31f   :  { %v2446_v54 = vadd.f32 %v2445_v53, %v2417_v46  ;;  %v7965_v53 = vld [vmem:[%s12540_s9 + $0x78] sm:$0xf] }
 0x320   :  { %2623 = vmatmul.bf16.gmra.mxu2 %v10857_v42  ;;  %2652 = vmatmul.bf16.gmra.mxu3 %v10859_v43 }
 0x321   :  { %v2475_v44 = vadd.f32 %v2474_v37, %v2446_v54  ;;  %2676 = vmatmul.bf16.gmra.mxu0 %v10857_v42  ;;  %2705 = vmatmul.bf16.gmra.mxu1 %v10859_v43  ;;  %v9924_v37 = vld [vmem:[%s12540_s9 + $0x80] sm:$0xf0]  ;;  %v8061_v54 = vld [vmem:[%s12540_s9 + $0x138] sm:$0xf] }
 0x323   :  { %v2392_v45 = vpop.f32.mrf.mxu2  ;;  %v2421_v63 = vpop.f32.mrf.mxu3 }
 0x324   :  { %v2393_v10 = vadd.f32 %v2392_v45, %v10887_v31  ;;  %v9948_v45 = vld [vmem:[%s12540_s9 + $0x140] sm:$0xf0] }
 0x326   :  { %v2422_v59 = vadd.f32 %v2421_v63, %v2393_v10  ;;  %v10924_v60 = vpop.f32.mrf.mxu0  ;;  %v10926_v1 = vpop.f32.mrf.mxu1 }
 0x32b   :  { %v10928_v3 = vpop.f32.mrf.mxu2  ;;  %v10930_v58 = vpop.f32.mrf.mxu3 }
 0x32e   :  { %v2450_v8 = vpop.f32.mrf.mxu0  ;;  %v2479_v5 = vpop.f32.mrf.mxu1 }
 0x32f   :  { %v2451_v0 = vadd.f32 %v2450_v8, %v2422_v59  ;;  %v8062_v59 = vor.u32 %v9948_v45, %v8061_v54  ;;  %v9939_v54 = vld [vmem:[%s12540_s9 + $0xf8] sm:$0xf0] }
 0x330   :  { %2628 = vmatmul.bf16.gmra.mxu2 %v10865_v16  ;;  %2657 = vmatmul.bf16.gmra.mxu3 %v10867_v9 }
 0x331   :  { %v10934_v42 = vadd.f32 %v2479_v5, %v2451_v0  ;;  %2681 = vmatmul.bf16.gmra.mxu0 %v10865_v16  ;;  %2710 = vmatmul.bf16.gmra.mxu1 %v10867_v9  ;;  %v7953_v0 = vld [vmem:[%s12540_s9 + $0x60] sm:$0xf] }
 0x333   :  { %v2397_v43 = vpop.f32.mrf.mxu2  ;;  %v2426_v38 = vpop.f32.mrf.mxu3 }
 0x334   :  { %v2398_v62 = vadd.f32 %v2397_v43, %v10887_v31  ;;  %v9921_v43 = vld [vmem:[%s12540_s9 + $0x68] sm:$0xf0] }
 0x336   :  { %v2427_v6 = vadd.f32 %v2426_v38, %v2398_v62  ;;  %v10939_v7 = vpop.f32.mrf.mxu0  ;;  %v10941_v35 = vpop.f32.mrf.mxu1  ;;  %v8049_v38 = vld [vmem:[%s12540_s9 + $0x120] sm:$0xf]  ;;  %v7954_v62 = vor.u32 %v9921_v43, %v7953_v0  ;;  %v10026_v43 = vld [vmem:[%s12540_s9 + $0x3b0] sm:$0xf0] }
 0x33b   :  { %v10943_v57 = vpop.f32.mrf.mxu2  ;;  %v10945_v11 = vpop.f32.mrf.mxu3 }
 0x33e   :  { %v2455_v12 = vpop.f32.mrf.mxu0  ;;  %v2484_v13 = vpop.f32.mrf.mxu1 }
 0x33f   :  { %v2456_v15 = vadd.f32 %v2455_v12, %v2427_v6  ;;  %v9945_v6 = vld [vmem:[%s12540_s9 + $0x128] sm:$0xf0] }
 0x341   :  { %v10947_v17 = vadd.f32 %v2484_v13, %v2456_v15  ;;  %2686 = vmatmul.bf16.gmra.mxu0 %v10890_v61  ;;  %2715 = vmatmul.bf16.gmra.mxu1 %v10892_v36  ;;  %v8073_v61 = vld [vmem:[%s12540_s9 + $0x150] sm:$0xf]  ;;  %v7978_v36 = vor.u32 %v9927_v55, %v7977_v50  ;;  %v8050_v15 = vor.u32 %v9945_v6, %v8049_v38  ;;  %v8469_v38 = vld [vmem:[%s12540_s9 + $0x468] sm:$0xf]  ;;  %v10050_v6 = vld [vmem:[%s12540_s9 + $0x470] sm:$0xf0] }
 0x343   :  { %v2498_v16 = vpop.f32.mrf.mxu2  ;;  %v2527_v9 = vpop.f32.mrf.mxu3  ;;  %3782 = vmatpush.bf16.msra.mxu2 %v7978_v36 }
 0x344   :  { %v2499_v18 = vadd.f32 %v2498_v16, %v2470_v39  ;;  %v8074_v39 = vor.u32 %v9951_v49, %v8073_v61 }
 0x346   :  { %v10951_v20 = vadd.f32 %v2527_v9, %v2499_v18  ;;  %v10953_v2 = vpop.f32.mrf.mxu0  ;;  %v10955_v56 = vpop.f32.mrf.mxu1  ;;  %3801 = vmatpush.bf16.msra.mxu3 %v8074_v39  ;;  %v9915_v39 = vld [vmem:[%s12540_s9 + $0x38] sm:$0xf0] }
 0x34a   :  { %3802 = vmatpush.bf16.msra.mxu3 %v8062_v59 }
 0x34b   :  { %v10969_v25 = vpop.f32.mrf.mxu2  ;;  %v10971_v32 = vpop.f32.mrf.mxu3 }
 0x34e   :  { %v10973_v33 = vpop.f32.mrf.mxu0  ;;  %v10975_v34 = vpop.f32.mrf.mxu1  ;;  %3803 = vmatpush.bf16.msra.mxu3 %v8050_v15  ;;  %v9912_v15 = vld [vmem:[%s12540_s9 + $0x20] sm:$0xf0] }
 0x353   :  { %v2503_v24 = vpop.f32.mrf.mxu2  ;;  %v2532_v19 = vpop.f32.mrf.mxu3 }
 0x354   :  { %v2504_v21 = vadd.f32 %v2503_v24, %v2475_v44  ;;  %v7966_v44 = vor.u32 %v9924_v37, %v7965_v53  ;;  %v8025_v37 = vld [vmem:[%s12540_s9 + $0xf0] sm:$0xf] }
 0x355   :  { %v8026_v0 = vor.u32 %v9939_v54, %v8025_v37 }
 0x356   :  { %v10989_v26 = vadd.f32 %v2532_v19, %v2504_v21  ;;  %v10991_v48 = vpop.f32.mrf.mxu0  ;;  %v10993_v46 = vpop.f32.mrf.mxu1  ;;  %3783 = vmatpush.bf16.msra.mxu2 %v7966_v44  ;;  %v7929_v19 = vld [vmem:[%s12540_s9 + $0x30] sm:$0xf] }
 0x357   :  { %v7930_v53 = vor.u32 %v9915_v39, %v7929_v19  ;;  %v10047_v39 = vld [vmem:[%s12540_s9 + $0x458] sm:$0xf0] }
 0x35a   :  { %3784 = vmatpush.bf16.msra.mxu2 %v7954_v62 }
 0x35b   :  { %v11007_v63 = vpop.f32.mrf.mxu2  ;;  %v11009_v10 = vpop.f32.mrf.mxu3 }
 0x35e   :  { %v11011_v8 = vpop.f32.mrf.mxu0  ;;  %v11013_v5 = vpop.f32.mrf.mxu1  ;;  %3785 = vmatpush.bf16.msra.mxu2 %v7942_v30 }
 0x362   :  { %3786 = vmatpush.bf16.msra.mxu2 %v7930_v53  ;;  %v9909_v53 = vld [vmem:[%s12540_s9 + $0x8] sm:$0xf0] }
 0x363   :  { %v2508_v12 = vpop.f32.mrf.mxu2  ;;  %v2537_v13 = vpop.f32.mrf.mxu3 }
 0x364   :  { %v2509_v16 = vadd.f32 %v2508_v12, %v10934_v42  ;;  %v8037_v42 = vld [vmem:[%s12540_s9 + $0x108] sm:$0xf]  ;;  %v7917_v12 = vld [vmem:[%s12540_s9 + $0x18] sm:$0xf] }
 0x365   :  { %v8038_v55 = vor.u32 %v9942_v22, %v8037_v42  ;;  %v7918_v29 = vor.u32 %v9912_v15, %v7917_v12  ;;  %v7865_v12 = vld [vmem:[#allocation3] sm:$0xf] }
 0x366   :  { %v11028_v9 = vadd.f32 %v2537_v13, %v2509_v16  ;;  %v11030_v18 = vpop.f32.mrf.mxu0  ;;  %v11032_v27 = vpop.f32.mrf.mxu1  ;;  %v8470_v13 = vor.u32 %v10050_v6, %v8469_v38  ;;  %v8013_v16 = vld [vmem:[%s12540_s9 + $0xd8] sm:$0xf] }
 0x367   :  { %3804 = vmatpush.bf16.msra.mxu3 %v8038_v55  ;;  %v8014_v42 = vor.u32 %v9936_v28, %v8013_v16  ;;  %v8361_v55 = vld [vmem:[%s12540_s9 + $0x390] sm:$0xf]  ;;  %3787 = vmatpush.bf16.msra.mxu2 %v7918_v29  ;;  %v8349_v16 = vld [vmem:[%s12540_s9 + $0x378] sm:$0xf] }
 0x368   :  { %3876 = vmatpush.bf16.msra.mxu1 %v8470_v13  ;;  %v9899_v13 = vld [vmem:[#allocation3 + $0x8] sm:$0xf0]  ;;  %v8445_v28 = vld [vmem:[%s12540_s9 + $0x438] sm:$0xf] }
 0x369   :  { %v11132_v15 = vor.u32 %v9899_v13, %v7865_v12  ;;  %v2385_v12 = vadd.f32 %v10904_v41, %v10887_v31  ;;  %v8277_v41 = vld [vmem:[%s12540_s9 + $0x2e8] sm:$0xf] }
 0x36b   :  { %v11046_v23 = vpop.f32.mrf.mxu2  ;;  %v11048_v50 = vpop.f32.mrf.mxu3  ;;  %3805 = vmatpush.bf16.msra.mxu3 %v8026_v0  ;;  %v8001_v0 = vld [vmem:[%s12540_s9 + $0xc0] sm:$0xf] }
 0x36e   :  { %v11050_v61 = vpop.f32.mrf.mxu0  ;;  %v11052_v36 = vpop.f32.mrf.mxu1 }
 0x36f   :  { %3806 = vmatpush.bf16.msra.mxu3 %v8014_v42  ;;  %v10044_v42 = vld [vmem:[%s12540_s9 + $0x440] sm:$0xf0] }
 0x373   :  { %v2513_v49 = vpop.f32.mrf.mxu2  ;;  %v2542_v24 = vpop.f32.mrf.mxu3 }
 0x374   :  { %v2514_v21 = vadd.f32 %v2513_v49, %v10947_v17  ;;  %v8373_v17 = vld [vmem:[%s12540_s9 + $0x3a8] sm:$0xf]  ;;  %v10023_v49 = vld [vmem:[%s12540_s9 + $0x398] sm:$0xf0] }
 0x375   :  { %v8374_v62 = vor.u32 %v10026_v43, %v8373_v17  ;;  %v8362_v19 = vor.u32 %v10023_v49, %v8361_v55  ;;  %v9933_v17 = vld [vmem:[%s12540_s9 + $0xc8] sm:$0xf0]  ;;  %v11126_v43 = vperm.slane %v10884_v14, 1  ;;  %v10020_v14 = vld [vmem:[%s12540_s9 + $0x380] sm:$0xf0]  ;;  %v8446_v49 = vor.u32 %v10044_v42, %v8445_v28 }
 0x376   :  { %v11067_v44 = vadd.f32 %v2542_v24, %v2514_v21  ;;  %v11069_v45 = vpop.f32.mrf.mxu0  ;;  %v11071_v59 = vpop.f32.mrf.mxu1  ;;  %v8457_v24 = vld [vmem:[%s12540_s9 + $0x450] sm:$0xf]  ;;  %v7905_v21 = vld [vmem:[%s12540_s9] sm:$0xf]  ;;  %v8002_v6 = vor.u32 %v9933_v17, %v8001_v0  ;;  %v8350_v29 = vor.u32 %v10020_v14, %v8349_v16  ;;  %v9898_v55 = vld [vmem:[#allocation3 + $0x4] sm:$0xf] }
 0x377   :  { %3857 = vmatpush.bf16.msra.mxu0 %v8374_v62  ;;  %v8458_v37 = vor.u32 %v10047_v39, %v8457_v24  ;;  %v7906_v54 = vor.u32 %v9909_v53, %v7905_v21  ;;  %v7867_v24 = vld [vmem:[#allocation3 + $0xc] sm:$0xf0]  ;;  %v2557_v39 = vadd.f32 %v10973_v33, %v11126_v43  ;;  %v10041_v17 = vld [vmem:[%s12540_s9 + $0x428] sm:$0xf0]  ;;  %v8181_v28 = vld [vmem:[%s12540_s9 + $0x228] sm:$0xf] }
 0x378   :  { %3807 = vmatpush.bf16.msra.mxu3 %v8002_v6  ;;  %v8433_v0 = vld [vmem:[%s12540_s9 + $0x420] sm:$0xf] }
 0x379   :  { %3877 = vmatpush.bf16.msra.mxu1 %v8458_v37  ;;  %3788 = vmatpush.bf16.msra.mxu2 %v7906_v54  ;;  %v8337_v37 = vld [vmem:[%s12540_s9 + $0x360] sm:$0xf]  ;;  %v10017_v54 = vld [vmem:[%s12540_s9 + $0x368] sm:$0xf0]  ;;  %v8434_v6 = vor.u32 %v10041_v17, %v8433_v0  ;;  %v2586_v14 = vadd.f32 %v10975_v34, %v2557_v39  ;;  %v8325_v34 = vld [vmem:[%s12540_s9 + $0x348] sm:$0xf] }
 0x37a   :  { %v8338_v33 = vor.u32 %v10017_v54, %v8337_v37  ;;  %v8421_v54 = vld [vmem:[%s12540_s9 + $0x408] sm:$0xf]  ;;  %v10038_v0 = vld [vmem:[%s12540_s9 + $0x410] sm:$0xf0] }
 0x37b   :  { %v11097_v30 = vpop.f32.mrf.mxu2  ;;  %v11099_v22 = vpop.f32.mrf.mxu3  ;;  %3858 = vmatpush.bf16.msra.mxu0 %v8362_v19  ;;  %v11146_v19 = vor.u32 %v9898_v55, %v7867_v24  ;;  %v10002_v55 = vld [vmem:[%s12540_s9 + $0x2f0] sm:$0xf0]  ;;  %v8422_v17 = vor.u32 %v10038_v0, %v8421_v54 }
 0x37c   :  { %3789 = vmatmul.bf16.vlgmr.msra.gmra.mxu2 %v11132_v15  ;;  %v8278_v39 = vor.u32 %v10002_v55, %v8277_v41  ;;  %v9999_v41 = vld [vmem:[%s12540_s9 + $0x2d8] sm:$0xf0] }
 0x37d   :  { %3878 = vmatpush.bf16.msra.mxu1 %v8446_v49  ;;  %3808 = vmatmul.bf16.vlgmr.msra.gmra.mxu3 %v11146_v19  ;;  %v10014_v49 = vld [vmem:[%s12540_s9 + $0x350] sm:$0xf0]  ;;  %v10011_v55 = vld [vmem:[%s12540_s9 + $0x338] sm:$0xf0] }
 0x37e   :  { %v11128_v38 = vpop.f32.mrf.mxu0  ;;  %v11130_v62 = vpop.f32.mrf.mxu1  ;;  %v8326_v37 = vor.u32 %v10014_v49, %v8325_v34  ;;  %3838 = vmatpush.bf16.msrb.mxu3 %v8278_v39 }
 0x37f   :  { %3859 = vmatpush.bf16.msra.mxu0 %v8350_v29  ;;  %v9978_v29 = vld [vmem:[%s12540_s9 + $0x230] sm:$0xf0] }
 0x380   :  { %v8182_v42 = vor.u32 %v9978_v29, %v8181_v28 }
 0x381   :  { %3879 = vmatpush.bf16.msra.mxu1 %v8434_v6  ;;  %v2559_v6 = vadd.f32 %v10991_v48, %v11126_v43 }
 0x382   :  { %3819 = vmatpush.bf16.msrb.mxu2 %v8182_v42  ;;  %v8313_v42 = vld [vmem:[%s12540_s9 + $0x330] sm:$0xf] }
 0x383   :  { %v2614_v21 = vpop.f32.mrf.mxu2  ;;  %v2643_v53 = vpop.f32.mrf.mxu3  ;;  %3860 = vmatpush.bf16.msra.mxu0 %v8338_v33  ;;  %v2414_v33 = vadd.f32 %v10902_v40, %v2385_v12  ;;  %v8265_v40 = vld [vmem:[%s12540_s9 + $0x2d0] sm:$0xf]  ;;  %v8314_v39 = vor.u32 %v10011_v55, %v8313_v42 }
 0x384   :  { %v2615_v24 = vadd.f32 %v2614_v21, %v2586_v14  ;;  %v8169_v21 = vld [vmem:[%s12540_s9 + $0x210] sm:$0xf]  ;;  %v9975_v14 = vld [vmem:[%s12540_s9 + $0x218] sm:$0xf0]  ;;  %v8266_v49 = vor.u32 %v9999_v41, %v8265_v40  ;;  %v10008_v41 = vld [vmem:[%s12540_s9 + $0x320] sm:$0xf0] }
 0x385   :  { %v2443_v12 = vadd.f32 %v10911_v47, %v2414_v33  ;;  %3880 = vmatpush.bf16.msra.mxu1 %v8422_v17  ;;  %v8170_v48 = vor.u32 %v9975_v14, %v8169_v21  ;;  %v8409_v47 = vld [vmem:[%s12540_s9 + $0x3f0] sm:$0xf]  ;;  %v2588_v17 = vadd.f32 %v10993_v46, %v2559_v6  ;;  %v8253_v14 = vld [vmem:[%s12540_s9 + $0x2b8] sm:$0xf]  ;;  %v9996_v46 = vld [vmem:[%s12540_s9 + $0x2c0] sm:$0xf0] }
 0x386   :  { %v11166_v13 = vpop.f32.mrf.mxu0  ;;  %v11168_v16 = vpop.f32.mrf.mxu1  ;;  %v2644_v34 = vadd.f32 %v2643_v53, %v2615_v24  ;;  %3839 = vmatpush.bf16.msrb.mxu3 %v8266_v49  ;;  %v8157_v53 = vld [vmem:[%s12540_s9 + $0x1f8] sm:$0xf]  ;;  %v9972_v24 = vld [vmem:[%s12540_s9 + $0x200] sm:$0xf0] }
 0x387   :  { %3861 = vmatpush.bf16.msra.mxu0 %v8326_v37  ;;  %v10035_v37 = vld [vmem:[%s12540_s9 + $0x3f8] sm:$0xf0]  ;;  %3820 = vmatpush.bf16.msrb.mxu2 %v8170_v48  ;;  %v2472_v40 = vadd.f32 %v10913_v51, %v2443_v12  ;;  %v8158_v48 = vor.u32 %v9972_v24, %v8157_v53  ;;  %v8301_v6 = vld [vmem:[%s12540_s9 + $0x318] sm:$0xf]  ;;  %v10032_v12 = vld [vmem:[%s12540_s9 + $0x3e0] sm:$0xf0] }
 0x388   :  { %v8410_v33 = vor.u32 %v10035_v37, %v8409_v47  ;;  %v8302_v49 = vor.u32 %v10008_v41, %v8301_v6  ;;  %v8397_v51 = vld [vmem:[%s12540_s9 + $0x3d8] sm:$0xf]  ;;  %v2721_v47 = vmax.f32 %v10951_v20, 0.0  ;;  %v8289_v53 = vld [vmem:[%s12540_s9 + $0x300] sm:$0xf]  ;;  %v2390_v41 = vadd.f32 %v10915_v4, %v10887_v31 }
 0x389   :  { %v2501_v37 = vadd.f32 %v10969_v25, %v2472_v40  ;;  %v8241_v25 = vld [vmem:[%s12540_s9 + $0x2a0] sm:$0xf]  ;;  %v10029_v6 = vld [vmem:[%s12540_s9 + $0x3c8] sm:$0xf0]  ;;  %v9966_v4 = vld [vmem:[%s12540_s9 + $0x1d0] sm:$0xf0] }
 0x38a   :  { %3881 = vmatpush.bf16.msra.mxu1 %v8410_v33 }
 0x38b   :  { %v2616_v28 = vpop.f32.mrf.mxu2  ;;  %v2645_v29 = vpop.f32.mrf.mxu3  ;;  %3862 = vmatpush.bf16.msra.mxu0 %v8314_v39  ;;  %3821 = vmatpush.bf16.msrb.mxu2 %v8158_v48  ;;  %v8398_v39 = vor.u32 %v10032_v12, %v8397_v51  ;;  %v10005_v48 = vld [vmem:[%s12540_s9 + $0x308] sm:$0xf0] }
 0x38c   :  { %v2617_v42 = vadd.f32 %v2616_v28, %v2588_v17  ;;  %v2562_v28 = vadd.f32 %v11011_v8, %v11126_v43  ;;  %v8145_v17 = vld [vmem:[%s12540_s9 + $0x1e0] sm:$0xf]  ;;  %v9993_v8 = vld [vmem:[%s12540_s9 + $0x2a8] sm:$0xf0] }
 0x38d   :  { %v8242_v40 = vor.u32 %v9993_v8, %v8241_v25 }
 0x38e   :  { %v2672_v54 = vpop.f32.mrf.mxu0  ;;  %v2701_v0 = vpop.f32.mrf.mxu1  ;;  %3882 = vmatpush.bf16.msra.mxu1 %v8398_v39  ;;  %v2646_v24 = vadd.f32 %v2645_v29, %v2617_v42  ;;  %v8290_v29 = vor.u32 %v10005_v48, %v8289_v53  ;;  %v2591_v51 = vadd.f32 %v11013_v5, %v2562_v28  ;;  %v8133_v39 = vld [vmem:[%s12540_s9 + $0x1c8] sm:$0xf]  ;;  %v9990_v5 = vld [vmem:[%s12540_s9 + $0x290] sm:$0xf0] }
 0x38f   :  { %v2673_v21 = vadd.f32 %v2672_v54, %v2644_v34  ;;  %v8254_v34 = vor.u32 %v9996_v46, %v8253_v14  ;;  %3863 = vmatpush.bf16.msra.mxu0 %v8302_v49  ;;  %v8385_v46 = vld [vmem:[%s12540_s9 + $0x3c0] sm:$0xf]  ;;  %v2530_v49 = vadd.f32 %v10971_v32, %v2501_v37  ;;  %v8229_v32 = vld [vmem:[%s12540_s9 + $0x288] sm:$0xf] }
 0x390   :  { %v8386_v42 = vor.u32 %v10029_v6, %v8385_v46  ;;  %v9987_v46 = vld [vmem:[%s12540_s9 + $0x278] sm:$0xf0] }
 0x391   :  { %v2702_v55 = vadd.f32 %v2701_v0, %v2673_v21  ;;  %3840 = vmatpush.bf16.msrb.mxu3 %v8254_v34  ;;  %v9969_v21 = vld [vmem:[%s12540_s9 + $0x1e8] sm:$0xf0] }
 0x392   :  { %v8146_v20 = vor.u32 %v9969_v21, %v8145_v17  ;;  %3883 = vmatpush.bf16.msra.mxu1 %v8386_v42  ;;  %v2419_v17 = vadd.f32 %v10917_v52, %v2390_v41  ;;  %v2723_v21 = vmax.f32 %v2530_v49, 0.0  ;;  %v8217_v52 = vld [vmem:[%s12540_s9 + $0x270] sm:$0xf]  ;;  %v8205_v42 = vld [vmem:[%s12540_s9 + $0x258] sm:$0xf] }
 0x393   :  { %v2722_v54 = vmax.f32 %v2702_v55, 0.0  ;;  %v2619_v0 = vpop.f32.mrf.mxu2  ;;  %v2648_v33 = vpop.f32.mrf.mxu3  ;;  %3864 = vmatpush.bf16.msra.mxu0 %v8290_v29 }
 0x394   :  { %3822 = vmatpush.bf16.msrb.mxu2 %v8146_v20  ;;  %v2620_v37 = vadd.f32 %v2619_v0, %v2591_v51  ;;  %v2564_v20 = vadd.f32 %v11030_v18, %v11126_v43  ;;  %v9963_v0 = vld [vmem:[%s12540_s9 + $0x1b8] sm:$0xf0] }
 0x395   :  { %v2737_v14 = vpack.c.bf16 %v2722_v54, %v2721_v47  ;;  %3841 = vmatpush.bf16.msrb.mxu3 %v8242_v40  ;;  %v8134_v47 = vor.u32 %v9966_v4, %v8133_v39  ;;  %v8230_v54 = vor.u32 %v9990_v5, %v8229_v32  ;;  %v9984_v39 = vld [vmem:[%s12540_s9 + $0x260] sm:$0xf0]  ;;  %v2567_v5 = vadd.f32 %v11050_v61, %v11126_v43 }
 0x396   :  { %v2674_v55 = vpop.f32.mrf.mxu0  ;;  %v2703_v34 = vpop.f32.mrf.mxu1  ;;  %v2649_v40 = vadd.f32 %v2648_v33, %v2620_v37  ;;  %v9960_v33 = vld [vmem:[%s12540_s9 + $0x1a0] sm:$0xf0]  ;;  %v8206_v4 = vor.u32 %v9984_v39, %v8205_v42  ;;  %v9926_v39 = vld [vmem:[%s12540_s9 + $0x94] sm:$0xf] }
 0x397   :  { %2745 = vst [vmem:[#allocation3 + $0x18] sm:$0xff] %v2737_v14  ;;  %v2675_v12 = vadd.f32 %v2674_v55, %v2646_v24  ;;  %v8121_v24 = vld [vmem:[%s12540_s9 + $0x1b0] sm:$0xf]  ;;  %v2448_v14 = vadd.f32 %v10924_v60, %v2419_v17  ;;  %v8218_v55 = vor.u32 %v9987_v46, %v8217_v52  ;;  %v8109_v60 = vld [vmem:[%s12540_s9 + $0x198] sm:$0xf] }
 0x398   :  { %3823 = vmatpush.bf16.msrb.mxu2 %v8134_v47  ;;  %v8122_v48 = vor.u32 %v9963_v0, %v8121_v24  ;;  %v2725_v47 = vmax.f32 %v10989_v26, 0.0  ;;  %v8193_v26 = vld [vmem:[%s12540_s9 + $0x240] sm:$0xf] }
 0x399   :  { %v2704_v28 = vadd.f32 %v2703_v34, %v2675_v12  ;;  %3842 = vmatpush.bf16.msrb.mxu3 %v8230_v54  ;;  %v2593_v34 = vadd.f32 %v11032_v27, %v2564_v20  ;;  %v2477_v49 = vadd.f32 %v10926_v1, %v2448_v14  ;;  %v8110_v12 = vor.u32 %v9960_v33, %v8109_v60  ;;  %v8097_v1 = vld [vmem:[%s12540_s9 + $0x180] sm:$0xf]  ;;  %v9957_v54 = vld [vmem:[%s12540_s9 + $0x188] sm:$0xf0]  ;;  %v8279_v33 = vld [vmem:[%s12540_s9 + $0x2f4] sm:$0xf0] }
 0x39a   :  { %v8098_v61 = vor.u32 %v9957_v54, %v8097_v1  ;;  %v9981_v20 = vld [vmem:[%s12540_s9 + $0x248] sm:$0xf0]  ;;  %v2596_v14 = vadd.f32 %v11052_v36, %v2567_v5  ;;  %v8087_v36 = vld [vmem:[%s12540_s9 + $0x174] sm:$0xf0] }
 0x39b   :  { %v2724_v25 = vmax.f32 %v2704_v28, 0.0  ;;  %v2621_v8 = vpop.f32.mrf.mxu2  ;;  %v2650_v53 = vpop.f32.mrf.mxu3  ;;  %v2506_v32 = vadd.f32 %v11007_v63, %v2477_v49  ;;  %v8194_v0 = vor.u32 %v9981_v20, %v8193_v26  ;;  %v10001_v60 = vld [vmem:[%s12540_s9 + $0x2ec] sm:$0xf]  ;;  %v2569_v49 = vadd.f32 %v11069_v45, %v11126_v43  ;;  %v9950_v45 = vld [vmem:[%s12540_s9 + $0x154] sm:$0xf] }
 0x39c   :  { %3824 = vmatpush.bf16.msrb.mxu2 %v8122_v48  ;;  %v2622_v51 = vadd.f32 %v2621_v8, %v2593_v34  ;;  %v8267_v20 = vld [vmem:[%s12540_s9 + $0x2dc] sm:$0xf0] }
 0x39d   :  { %v2738_v18 = vpack.c.bf16 %v2724_v25, %v2723_v21  ;;  %3843 = vmatpush.bf16.msrb.mxu3 %v8218_v55  ;;  %v2395_v25 = vadd.f32 %v10928_v3, %v10887_v31  ;;  %v2535_v52 = vadd.f32 %v11009_v10, %v2506_v32  ;;  %v9953_v3 = vld [vmem:[%s12540_s9 + $0x16c] sm:$0xf] }
 0x39e   :  { %v2677_v6 = vpop.f32.mrf.mxu0  ;;  %v2706_v41 = vpop.f32.mrf.mxu1  ;;  %v2651_v63 = vadd.f32 %v2650_v53, %v2622_v51  ;;  %v9929_v53 = vld [vmem:[%s12540_s9 + $0xac] sm:$0xf]  ;;  %v8090_v34 = vor.u32 %v9953_v3, %v8087_v36  ;;  %v9971_v3 = vld [vmem:[%s12540_s9 + $0x1fc] sm:$0xf]  ;;  %v2572_v36 = vadd.f32 %v11128_v38, %v11126_v43 }
 0x39f   :  { %2746 = vst [vmem:[#allocation3 + $0x24] sm:$0xff] %v2738_v18  ;;  %v2678_v29 = vadd.f32 %v2677_v6, %v2649_v40  ;;  %v7991_v18 = vld [vmem:[%s12540_s9 + $0xb4] sm:$0xf0]  ;;  %v9977_v6 = vld [vmem:[%s12540_s9 + $0x22c] sm:$0xf]  ;;  %v2424_v55 = vadd.f32 %v10930_v58, %v2395_v25  ;;  %v2727_v42 = vmax.f32 %v2535_v52, 0.0 }
 0x3a0   :  { %3825 = vmatpush.bf16.msrb.mxu2 %v8110_v12  ;;  %v7994_v46 = vor.u32 %v9929_v53, %v7991_v18  ;;  %v8282_v12 = vor.u32 %v10001_v60, %v8279_v33  ;;  %v9923_v25 = vld [vmem:[%s12540_s9 + $0x7c] sm:$0xf] }
 0x3a1   :  { %v2707_v27 = vadd.f32 %v2706_v41, %v2678_v29  ;;  %3844 = vmatpush.bf16.msrb.mxu3 %v8206_v4  ;;  %v8183_v41 = vld [vmem:[%s12540_s9 + $0x234] sm:$0xf0]  ;;  %v2453_v58 = vadd.f32 %v10939_v7, %v2424_v55  ;;  %v7979_v4 = vld [vmem:[%s12540_s9 + $0x9c] sm:$0xf0]  ;;  %v9947_v52 = vld [vmem:[%s12540_s9 + $0x13c] sm:$0xf] }
 0x3a2   :  { %v8186_v29 = vor.u32 %v9977_v6, %v8183_v41  ;;  %3952 = vmatpush.bf16.msrb.mxu1 %v8282_v12  ;;  %v7982_v5 = vor.u32 %v9926_v39, %v7979_v4  ;;  %v8075_v7 = vld [vmem:[%s12540_s9 + $0x15c] sm:$0xf0]  ;;  %v8255_v41 = vld [vmem:[%s12540_s9 + $0x2c4] sm:$0xf0]  ;;  %v9920_v55 = vld [vmem:[%s12540_s9 + $0x64] sm:$0xf] }
 0x3a3   :  { %v2726_v37 = vmax.f32 %v2707_v27, 0.0  ;;  %v2624_v28 = vpop.f32.mrf.mxu2  ;;  %v2653_v21 = vpop.f32.mrf.mxu3  ;;  %v8078_v26 = vor.u32 %v9950_v45, %v8075_v7  ;;  %v8147_v12 = vld [vmem:[%s12540_s9 + $0x1ec] sm:$0xf0] }
 0x3a4   :  { %3826 = vmatpush.bf16.msrb.mxu2 %v8098_v61  ;;  %v2625_v48 = vadd.f32 %v2624_v28, %v2596_v14  ;;  %3933 = vmatpush.bf16.msrb.mxu0 %v8186_v29  ;;  %v8171_v28 = vld [vmem:[%s12540_s9 + $0x21c] sm:$0xf0]  ;;  %v8063_v14 = vld [vmem:[%s12540_s9 + $0x144] sm:$0xf0]  ;;  %v2729_v29 = vmax.f32 %v11028_v9, 0.0 }
 0x3a5   :  { %v2739_v17 = vpack.c.bf16 %v2726_v37, %v2725_v47  ;;  %3845 = vmatpush.bf16.msrb.mxu3 %v8194_v0  ;;  %v9974_v37 = vld [vmem:[%s12540_s9 + $0x214] sm:$0xf]  ;;  %v9968_v9 = vld [vmem:[%s12540_s9 + $0x1e4] sm:$0xf] }
 0x3a6   :  { %v2679_v8 = vpop.f32.mrf.mxu0  ;;  %v2708_v24 = vpop.f32.mrf.mxu1  ;;  %v2654_v47 = vadd.f32 %v2653_v21, %v2625_v48  ;;  %v2598_v21 = vadd.f32 %v11071_v59, %v2569_v49  ;;  %v7967_v59 = vld [vmem:[%s12540_s9 + $0x84] sm:$0xf0]  ;;  %v8051_v49 = vld [vmem:[%s12540_s9 + $0x12c] sm:$0xf0] }
 0x3a7   :  { %2747 = vst [vmem:[#allocation3 + $0x30] sm:$0xff] %v2739_v17  ;;  %v2680_v40 = vadd.f32 %v2679_v8, %v2651_v63  ;;  %v8174_v63 = vor.u32 %v9974_v37, %v8171_v28  ;;  %v9998_v17 = vld [vmem:[%s12540_s9 + $0x2d4] sm:$0xf]  ;;  %v2482_v8 = vadd.f32 %v10941_v35, %v2453_v58  ;;  %v7970_v18 = vor.u32 %v9923_v25, %v7967_v59  ;;  %v8159_v48 = vld [vmem:[%s12540_s9 + $0x204] sm:$0xf0] }
 0x3a8   :  { %3895 = vmatpush.bf16.msra.mxu2 %v7994_v46  ;;  %v8270_v0 = vor.u32 %v9998_v17, %v8267_v20  ;;  %v8066_v35 = vor.u32 %v9947_v52, %v8063_v14  ;;  %v8162_v6 = vor.u32 %v9971_v3, %v8159_v48  ;;  %v9992_v58 = vld [vmem:[%s12540_s9 + $0x2a4] sm:$0xf]  ;;  %v2574_v59 = vadd.f32 %v11166_v13, %v11126_v43  ;;  %v7931_v48 = vld [vmem:[%s12540_s9 + $0x3c] sm:$0xf0] }
 0x3a9   :  { %v2709_v10 = vadd.f32 %v2708_v24, %v2680_v40  ;;  %3914 = vmatpush.bf16.msra.mxu3 %v8090_v34  ;;  %3934 = vmatpush.bf16.msrb.mxu0 %v8174_v63  ;;  %v2511_v46 = vadd.f32 %v11046_v23, %v2482_v8  ;;  %v7955_v34 = vld [vmem:[%s12540_s9 + $0x6c] sm:$0xf0]  ;;  %v8039_v8 = vld [vmem:[%s12540_s9 + $0x114] sm:$0xf0] }
 0x3aa   :  { %3953 = vmatpush.bf16.msrb.mxu1 %v8270_v0  ;;  %v7958_v33 = vor.u32 %v9920_v55, %v7955_v34  ;;  %v8135_v0 = vld [vmem:[%s12540_s9 + $0x1d4] sm:$0xf0]  ;;  %v8123_v55 = vld [vmem:[%s12540_s9 + $0x1bc] sm:$0xf0] }
 0x3ab   :  { %v2728_v51 = vmax.f32 %v2709_v10, 0.0  ;;  %v2626_v27 = vpop.f32.mrf.mxu2  ;;  %v2655_v24 = vpop.f32.mrf.mxu3  ;;  %v9995_v10 = vld [vmem:[%s12540_s9 + $0x2bc] sm:$0xf] }
 0x3ac   :  { %3896 = vmatpush.bf16.msra.mxu2 %v7982_v5  ;;  %v2627_v40 = vadd.f32 %v2626_v27, %v2598_v21  ;;  %v8258_v38 = vor.u32 %v9995_v10, %v8255_v41  ;;  %v9938_v10 = vld [vmem:[%s12540_s9 + $0xf4] sm:$0xf] }
 0x3ad   :  { %v2740_v32 = vpack.c.bf16 %v2728_v51, %v2727_v42  ;;  %3915 = vmatpush.bf16.msra.mxu3 %v8078_v26  ;;  %v9944_v42 = vld [vmem:[%s12540_s9 + $0x124] sm:$0xf]  ;;  %v2400_v51 = vadd.f32 %v10943_v57, %v10887_v31  ;;  %3935 = vmatpush.bf16.msrb.mxu0 %v8162_v6  ;;  %v8243_v31 = vld [vmem:[%s12540_s9 + $0x2ac] sm:$0xf0]  ;;  %v2540_v57 = vadd.f32 %v11048_v50, %v2511_v46  ;;  %v9917_v50 = vld [vmem:[%s12540_s9 + $0x4c] sm:$0xf] }
 0x3ae   :  { %v2682_v1 = vpop.f32.mrf.mxu0  ;;  %v2711_v54 = vpop.f32.mrf.mxu1  ;;  %v8054_v27 = vor.u32 %v9944_v42, %v8051_v49  ;;  %v2656_v39 = vadd.f32 %v2655_v24, %v2627_v40  ;;  %v7873_v45 = vld [vmem:[#allocation3 + $0x30] sm:$0xf]  ;;  %v9902_v28 = vld [vmem:[#allocation3 + $0x34] sm:$0xf]  ;;  %3954 = vmatpush.bf16.msrb.mxu1 %v8258_v38  ;;  %v9965_v24 = vld [vmem:[%s12540_s9 + $0x1cc] sm:$0xf]  ;;  %v2603_v49 = vadd.f32 %v11168_v16, %v2574_v59 }
 0x3af   :  { %2748 = vst [vmem:[#allocation3 + $0x3c] sm:$0xff] %v2740_v32  ;;  %v2683_v61 = vadd.f32 %v2682_v1, %v2654_v47  ;;  %v8150_v47 = vor.u32 %v9968_v9, %v8147_v12  ;;  %v2601_v32 = vadd.f32 %v11130_v62, %v2572_v36  ;;  %v2429_v21 = vadd.f32 %v10945_v11, %v2400_v51  ;;  %v7943_v62 = vld [vmem:[%s12540_s9 + $0x54] sm:$0xf0]  ;;  %v8027_v6 = vld [vmem:[%s12540_s9 + $0xfc] sm:$0xf0] }
 0x3b0   :  { %3897 = vmatpush.bf16.msra.mxu2 %v7970_v18  ;;  %v7946_v11 = vor.u32 %v9917_v50, %v7943_v62  ;;  %v8138_v40 = vor.u32 %v9965_v24, %v8135_v0  ;;  %v8231_v18 = vld [vmem:[%s12540_s9 + $0x294] sm:$0xf0]  ;;  %v2731_v43 = vmax.f32 %v2540_v57, 0.0  ;;  %v9962_v41 = vld [vmem:[%s12540_s9 + $0x1b4] sm:$0xf]  ;;  %v2733_v62 = vmax.f32 %v11067_v44, 0.0 }
 0x3b1   :  { %v2712_v53 = vadd.f32 %v2711_v54, %v2683_v61  ;;  %3916 = vmatpush.bf16.msra.mxu3 %v8066_v35  ;;  %v8246_v54 = vor.u32 %v9992_v58, %v8243_v31  ;;  %3936 = vmatpush.bf16.msrb.mxu0 %v8150_v47  ;;  %v9941_v61 = vld [vmem:[%s12540_s9 + $0x10c] sm:$0xf]  ;;  %v9914_v35 = vld [vmem:[%s12540_s9 + $0x34] sm:$0xf]  ;;  %v2458_v46 = vadd.f32 %v10953_v2, %v2429_v21  ;;  %v9911_v42 = vld [vmem:[%s12540_s9 + $0x1c] sm:$0xf] }
 0x3b2   :  { %v8042_v14 = vor.u32 %v9941_v61, %v8039_v8  ;;  %v7934_v36 = vor.u32 %v9914_v35, %v7931_v48  ;;  %v8126_v2 = vor.u32 %v9962_v41, %v8123_v55  ;;  %v9986_v38 = vld [vmem:[%s12540_s9 + $0x274] sm:$0xf]  ;;  %v7919_v9 = vld [vmem:[%s12540_s9 + $0x24] sm:$0xf0]  ;;  %v9959_v31 = vld [vmem:[%s12540_s9 + $0x19c] sm:$0xf] }
 0x3b3   :  { %v2730_v23 = vmax.f32 %v2712_v53, 0.0  ;;  %v2629_v60 = vpop.f32.mrf.mxu2  ;;  %v2658_v52 = vpop.f32.mrf.mxu3  ;;  %v9989_v53 = vld [vmem:[%s12540_s9 + $0x28c] sm:$0xf]  ;;  %3955 = vmatpush.bf16.msrb.mxu1 %v8246_v54  ;;  %v8015_v16 = vld [vmem:[%s12540_s9 + $0xe4] sm:$0xf0] }
 0x3b4   :  { %3898 = vmatpush.bf16.msra.mxu2 %v7958_v33  ;;  %v2630_v20 = vadd.f32 %v2629_v60, %v2601_v32  ;;  %v8234_v3 = vor.u32 %v9989_v53, %v8231_v18  ;;  %v8030_v60 = vor.u32 %v9938_v10, %v8027_v6  ;;  %v8219_v33 = vld [vmem:[%s12540_s9 + $0x27c] sm:$0xf0]  ;;  %v8111_v57 = vld [vmem:[%s12540_s9 + $0x1a4] sm:$0xf0]  ;;  %v9983_v32 = vld [vmem:[%s12540_s9 + $0x25c] sm:$0xf] }
 0x3b5   :  { %v2741_v4 = vpack.c.bf16 %v2730_v23, %v2729_v29  ;;  %3917 = vmatpush.bf16.msra.mxu3 %v8054_v27  ;;  %3937 = vmatpush.bf16.msrb.mxu0 %v8138_v40  ;;  %v8222_v58 = vor.u32 %v9986_v38, %v8219_v33  ;;  %v8003_v21 = vld [vmem:[%s12540_s9 + $0xcc] sm:$0xf0]  ;;  %v9956_v50 = vld [vmem:[%s12540_s9 + $0x184] sm:$0xf]  ;;  %v7883_v24 = vld [vmem:[#allocation3 + $0x24] sm:$0xf0] }
 0x3b6   :  { %v2684_v5 = vpop.f32.mrf.mxu0  ;;  %v2713_v7 = vpop.f32.mrf.mxu1  ;;  %v9903_v37 = vld [vmem:[#allocation3 + $0x38] sm:$0xf0]  ;;  %v7875_v1 = vld [vmem:[#allocation3 + $0x3c] sm:$0xf0]  ;;  %v2659_v34 = vadd.f32 %v2658_v52, %v2630_v20  ;;  %v9901_v20 = vld [vmem:[#allocation3 + $0x20] sm:$0xf0] }
 0x3b7   :  { %2749 = vst [vmem:[#allocation3 + $0x48] sm:$0xff] %v2741_v4  ;;  %v2685_v26 = vadd.f32 %v2684_v5, %v2656_v39  ;;  %v11453_v63 = vor.u32 %v9903_v37, %v7873_v45  ;;  %v11455_v17 = vor.u32 %v9902_v28, %v7875_v1  ;;  %3956 = vmatpush.bf16.msrb.mxu1 %v8234_v3  ;;  %v9935_v4 = vld [vmem:[%s12540_s9 + $0xdc] sm:$0xf]  ;;  %v9908_v28 = vld [vmem:[%s12540_s9 + $0x4] sm:$0xf] }
 0x3b8   :  { %3899 = vmatpush.bf16.msra.mxu2 %v7946_v11  ;;  %v7922_v39 = vor.u32 %v9911_v42, %v7919_v9  ;;  %v2487_v45 = vadd.f32 %v10955_v56, %v2458_v46  ;;  %v8018_v47 = vor.u32 %v9935_v4, %v8015_v16  ;;  %v8114_v37 = vor.u32 %v9959_v31, %v8111_v57  ;;  %v8207_v56 = vld [vmem:[%s12540_s9 + $0x264] sm:$0xf0]  ;;  %v7907_v1 = vld [vmem:[%s12540_s9 + $0xc] sm:$0xf0]  ;;  %v9980_v44 = vld [vmem:[%s12540_s9 + $0x244] sm:$0xf] }
 0x3b9   :  { %v2714_v25 = vadd.f32 %v2713_v7, %v2685_v26  ;;  %3794 = vmatmul.bf16.gmra.mxu2 %v11453_v63  ;;  %3813 = vmatmul.bf16.gmra.mxu3 %v11455_v17  ;;  %v9932_v26 = vld [vmem:[%s12540_s9 + $0xc4] sm:$0xf]  ;;  %v8099_v11 = vld [vmem:[%s12540_s9 + $0x18c] sm:$0xf0]  ;;  %v7881_v53 = vld [vmem:[#allocation3 + $0x18] sm:$0xf] }
 0x3ba   :  { %3865 = vmatmul.bf16.vlgmr.msra.gmra.mxu0 %v11453_v63  ;;  %3884 = vmatmul.bf16.vlgmr.msra.gmra.mxu1 %v11455_v17  ;;  %v2516_v54 = vadd.f32 %v11097_v30, %v2487_v45  ;;  %v7910_v30 = vor.u32 %v9908_v28, %v7907_v1  ;;  %v8006_v0 = vor.u32 %v9932_v26, %v8003_v21  ;;  %v8195_v52 = vld [vmem:[%s12540_s9 + $0x24c] sm:$0xf0]  ;;  %v9900_v3 = vld [vmem:[#allocation3 + $0x1c] sm:$0xf]  ;;  %v9955_v33 = vld [vmem:[%s12540_s9 + $0x178] sm:$0xf0] }
 0x3bb   :  { %v2732_v13 = vmax.f32 %v2714_v25, 0.0  ;;  %3918 = vmatpush.bf16.msra.mxu3 %v8042_v14  ;;  %v2631_v23 = vpop.f32.mrf.mxu2  ;;  %3938 = vmatpush.bf16.msrb.mxu0 %v8126_v2  ;;  %v8210_v25 = vor.u32 %v9983_v32, %v8207_v56  ;;  %v2660_v8 = vpop.f32.mrf.mxu3  ;;  %v8102_v59 = vor.u32 %v9956_v50, %v8099_v11  ;;  %v11568_v10 = vor.u32 %v9900_v3, %v7883_v24  ;;  %v10049_v6 = vld [vmem:[%s12540_s9 + $0x46c] sm:$0xf]  ;;  %v8093_v38 = vld [vmem:[%s12540_s9 + $0x170] sm:$0xf] }
 0x3bc   :  { %3900 = vmatpush.bf16.msra.mxu2 %v7934_v36  ;;  %v2632_v5 = vadd.f32 %v2631_v23, %v2603_v49  ;;  %3957 = vmatpush.bf16.msrb.mxu1 %v8222_v58  ;;  %v2545_v18 = vadd.f32 %v11099_v22, %v2516_v54  ;;  %v8198_v46 = vor.u32 %v9980_v44, %v8195_v52  ;;  %v10025_v36 = vld [vmem:[%s12540_s9 + $0x3ac] sm:$0xf]  ;;  %v8375_v22 = vld [vmem:[%s12540_s9 + $0x3b4] sm:$0xf0]  ;;  %v9931_v23 = vld [vmem:[%s12540_s9 + $0xb8] sm:$0xf0] }
 0x3bd   :  { %v2742_v29 = vpack.c.bf16 %v2732_v13, %v2731_v43  ;;  %v11566_v13 = vor.u32 %v9901_v20, %v7881_v53  ;;  %v8378_v55 = vor.u32 %v10025_v36, %v8375_v22  ;;  %v10022_v42 = vld [vmem:[%s12540_s9 + $0x394] sm:$0xf]  ;;  %v8363_v9 = vld [vmem:[%s12540_s9 + $0x39c] sm:$0xf0]  ;;  %v7985_v4 = vld [vmem:[%s12540_s9 + $0x98] sm:$0xf] }
 0x3be   :  { %v2687_v51 = vpop.f32.mrf.mxu0  ;;  %v2716_v27 = vpop.f32.mrf.mxu1  ;;  %v2661_v14 = vadd.f32 %v2660_v8, %v2632_v5  ;;  %v2735_v49 = vmax.f32 %v2545_v18, 0.0  ;;  %v8366_v58 = vor.u32 %v10022_v42, %v8363_v9  ;;  %v9928_v16 = vld [vmem:[%s12540_s9 + $0xa0] sm:$0xf0]  ;;  %v8081_v57 = vld [vmem:[%s12540_s9 + $0x158] sm:$0xf] }
 0x3bf   :  { %2750 = vst [vmem:[#allocation3 + $0x54] sm:$0xff] %v2742_v29  ;;  %v2688_v12 = vadd.f32 %v2687_v51, %v2659_v34  ;;  %3919 = vmatpush.bf16.msra.mxu3 %v8030_v60  ;;  %3939 = vmatpush.bf16.msrb.mxu0 %v8114_v37  ;;  %v8471_v34 = vld [vmem:[%s12540_s9 + $0x474] sm:$0xf0]  ;;  %v7997_v29 = vld [vmem:[%s12540_s9 + $0xb0] sm:$0xf]  ;;  %v7986_v31 = vor.u32 %v9928_v16, %v7985_v4 }
 0x3c0   :  { %3901 = vmatpush.bf16.msra.mxu2 %v7922_v39  ;;  %3958 = vmatpush.bf16.msrb.mxu1 %v8210_v25  ;;  %v8474_v60 = vor.u32 %v10049_v6, %v8471_v34  ;;  %v7998_v2 = vor.u32 %v9931_v23, %v7997_v29  ;;  %v8459_v39 = vld [vmem:[%s12540_s9 + $0x45c] sm:$0xf0]  ;;  %v9952_v32 = vld [vmem:[%s12540_s9 + $0x160] sm:$0xf0]  ;;  %v10019_v5 = vld [vmem:[%s12540_s9 + $0x37c] sm:$0xf] }
 0x3c1   :  { %v2717_v7 = vadd.f32 %v2716_v27, %v2688_v12  ;;  %v8094_v27 = vor.u32 %v9955_v33, %v8093_v38  ;;  %v10046_v12 = vld [vmem:[%s12540_s9 + $0x454] sm:$0xf]  ;;  %v8351_v37 = vld [vmem:[%s12540_s9 + $0x384] sm:$0xf0]  ;;  %v10043_v28 = vld [vmem:[%s12540_s9 + $0x43c] sm:$0xf] }
 0x3c2   :  { %v8354_v56 = vor.u32 %v10019_v5, %v8351_v37  ;;  %v8447_v1 = vld [vmem:[%s12540_s9 + $0x444] sm:$0xf0]  ;;  %v7973_v26 = vld [vmem:[%s12540_s9 + $0x80] sm:$0xf]  ;;  %v9925_v21 = vld [vmem:[%s12540_s9 + $0x88] sm:$0xf0] }
 0x3c3   :  { %v2734_v61 = vmax.f32 %v2717_v7, 0.0  ;;  %3920 = vmatpush.bf16.msra.mxu3 %v8018_v47  ;;  %3940 = vmatpush.bf16.msrb.mxu0 %v8102_v59  ;;  %v8462_v47 = vor.u32 %v10046_v12, %v8459_v39  ;;  %v8082_v7 = vor.u32 %v9952_v32, %v8081_v57  ;;  %v8450_v54 = vor.u32 %v10043_v28, %v8447_v1  ;;  %v8069_v50 = vld [vmem:[%s12540_s9 + $0x140] sm:$0xf]  ;;  %v10016_v20 = vld [vmem:[%s12540_s9 + $0x364] sm:$0xf] }
 0x3c4   :  { %3902 = vmatpush.bf16.msra.mxu2 %v7910_v30  ;;  %3959 = vmatpush.bf16.msrb.mxu1 %v8198_v46  ;;  %v8339_v25 = vld [vmem:[%s12540_s9 + $0x36c] sm:$0xf0]  ;;  %v10040_v11 = vld [vmem:[%s12540_s9 + $0x424] sm:$0xf]  ;;  %v7961_v24 = vld [vmem:[%s12540_s9 + $0x68] sm:$0xf] }
 0x3c5   :  { %v2743_v40 = vpack.c.bf16 %v2734_v61, %v2733_v62  ;;  %v7974_v62 = vor.u32 %v9925_v21, %v7973_v26  ;;  %v9949_v61 = vld [vmem:[%s12540_s9 + $0x148] sm:$0xf0]  ;;  %v8435_v8 = vld [vmem:[%s12540_s9 + $0x42c] sm:$0xf0]  ;;  %v8342_v59 = vor.u32 %v10016_v20, %v8339_v25  ;;  %v9922_v44 = vld [vmem:[%s12540_s9 + $0x70] sm:$0xf0] }
 0x3c6   :  { %v2689_v35 = vpop.f32.mrf.mxu0  ;;  %v2718_v43 = vpop.f32.mrf.mxu1  ;;  %v8070_v30 = vor.u32 %v9949_v61, %v8069_v50  ;;  %v7891_v52 = vld [vmem:[#allocation3 + $0x54] sm:$0xf0]  ;;  %v9946_v18 = vld [vmem:[%s12540_s9 + $0x130] sm:$0xf0]  ;;  %v10013_v29 = vld [vmem:[%s12540_s9 + $0x34c] sm:$0xf] }
 0x3c7   :  { %2751 = vst [vmem:[#allocation3 + $0x60] sm:$0xff] %v2743_v40  ;;  %v2690_v48 = vadd.f32 %v2689_v35, %v2661_v14  ;;  %3921 = vmatpush.bf16.msra.mxu3 %v8006_v0  ;;  %4009 = vmatpush.bf16.msra.mxu0 %v7998_v2  ;;  %v9905_v0 = vld [vmem:[#allocation3 + $0x50] sm:$0xf0]  ;;  %v8438_v14 = vor.u32 %v10040_v11, %v8435_v8  ;;  %v8057_v53 = vld [vmem:[%s12540_s9 + $0x128] sm:$0xf] }
 0x3c8   :  { %4028 = vmatpush.bf16.msra.mxu1 %v8094_v27  ;;  %v7962_v40 = vor.u32 %v9922_v44, %v7961_v24  ;;  %v7889_v35 = vld [vmem:[#allocation3 + $0x48] sm:$0xf]  ;;  %v8058_v34 = vor.u32 %v9946_v18, %v8057_v53  ;;  %v7949_v33 = vld [vmem:[%s12540_s9 + $0x50] sm:$0xf]  ;;  %v9919_v42 = vld [vmem:[%s12540_s9 + $0x58] sm:$0xf0] }
 0x3c9   :  { %v2719_v41 = vadd.f32 %v2718_v43, %v2690_v48  ;;  %3827 = vmatmul.bf16.vlgmr.msrb.gmra.mxu2 %v11566_v13  ;;  %3846 = vmatmul.bf16.vlgmr.msrb.gmra.mxu3 %v11568_v10  ;;  %v9904_v43 = vld [vmem:[#allocation3 + $0x4c] sm:$0xf]  ;;  %v11668_v48 = vor.u32 %v9905_v0, %v7889_v35  ;;  %v8327_v23 = vld [vmem:[%s12540_s9 + $0x354] sm:$0xf0]  ;;  %v8045_v27 = vld [vmem:[%s12540_s9 + $0x110] sm:$0xf] }
 0x3ca   :  { %3971 = vmatpush.bf16.msrb.mxu2 %v8378_v55  ;;  %v11670_v6 = vor.u32 %v9904_v43, %v7891_v52  ;;  %v8330_v2 = vor.u32 %v10013_v29, %v8327_v23  ;;  %v8423_v38 = vld [vmem:[%s12540_s9 + $0x414] sm:$0xf0]  ;;  %v9943_v9 = vld [vmem:[%s12540_s9 + $0x118] sm:$0xf0]  ;;  %v10010_v12 = vld [vmem:[%s12540_s9 + $0x334] sm:$0xf] }
 0x3cb   :  { %v2736_v51 = vmax.f32 %v2719_v41, 0.0  ;;  %3990 = vmatpush.bf16.msrb.mxu3 %v8474_v60  ;;  %4010 = vmatpush.bf16.msra.mxu0 %v7986_v31  ;;  %v10037_v60 = vld [vmem:[%s12540_s9 + $0x40c] sm:$0xf]  ;;  %v8315_v39 = vld [vmem:[%s12540_s9 + $0x33c] sm:$0xf0] }
 0x3cc   :  { %4029 = vmatpush.bf16.msra.mxu1 %v8082_v7  ;;  %v10034_v4 = vld [vmem:[%s12540_s9 + $0x3f4] sm:$0xf]  ;;  %v8411_v16 = vld [vmem:[%s12540_s9 + $0x3fc] sm:$0xf0]  ;;  %v7937_v31 = vld [vmem:[%s12540_s9 + $0x38] sm:$0xf] }
 0x3cd   :  { %v2744_v45 = vpack.c.bf16 %v2736_v51, %v2735_v49  ;;  %v8426_v49 = vor.u32 %v10037_v60, %v8423_v38  ;;  %v7950_v51 = vor.u32 %v9919_v42, %v7949_v33  ;;  %v9916_v57 = vld [vmem:[%s12540_s9 + $0x40] sm:$0xf0]  ;;  %v8033_v32 = vld [vmem:[%s12540_s9 + $0xf8] sm:$0xf]  ;;  %v10007_v37 = vld [vmem:[%s12540_s9 + $0x31c] sm:$0xf] }
 0x3ce   :  { %3972 = vmatpush.bf16.msrb.mxu2 %v8366_v58  ;;  %v7897_v3 = vld [vmem:[#allocation3 + $0x60] sm:$0xf]  ;;  %v9906_v36 = vld [vmem:[#allocation3 + $0x64] sm:$0xf]  ;;  %v8046_v58 = vor.u32 %v9943_v9, %v8045_v27  ;;  %v7938_v5 = vor.u32 %v9916_v57, %v7937_v31  ;;  %v9940_v7 = vld [vmem:[%s12540_s9 + $0x100] sm:$0xf0] }
 0x3cf   :  { %2752 = vst [vmem:[#allocation3 + $0x6c] sm:$0xff] %v2744_v45  ;;  %3991 = vmatpush.bf16.msrb.mxu3 %v8462_v47  ;;  %4011 = vmatpush.bf16.msra.mxu0 %v7974_v62  ;;  %v8318_v45 = vor.u32 %v10010_v12, %v8315_v39  ;;  %v8414_v47 = vor.u32 %v10034_v4, %v8411_v16  ;;  %v10031_v28 = vld [vmem:[%s12540_s9 + $0x3dc] sm:$0xf]  ;;  %v8399_v1 = vld [vmem:[%s12540_s9 + $0x3e4] sm:$0xf0] }
 0x3d0   :  { %4030 = vmatpush.bf16.msra.mxu1 %v8070_v30  ;;  %v8034_v26 = vor.u32 %v9940_v7, %v8033_v32  ;;  %v9913_v50 = vld [vmem:[%s12540_s9 + $0x28] sm:$0xf0]  ;;  %v8021_v62 = vld [vmem:[%s12540_s9 + $0xe0] sm:$0xf]  ;;  %v8402_v20 = vor.u32 %v10031_v28, %v8399_v1  ;;  %v10004_v30 = vld [vmem:[%s12540_s9 + $0x304] sm:$0xf] }
 0x3d1   :  { %v9937_v61 = vld [vmem:[%s12540_s9 + $0xe8] sm:$0xf0]  ;;  %v8291_v11 = vld [vmem:[%s12540_s9 + $0x30c] sm:$0xf0]  ;;  %v10028_v8 = vld [vmem:[%s12540_s9 + $0x3c4] sm:$0xf] }
 0x3d2   :  { %3973 = vmatpush.bf16.msrb.mxu2 %v8354_v56  ;;  %v8303_v56 = vld [vmem:[%s12540_s9 + $0x324] sm:$0xf0]  ;;  %v8387_v24 = vld [vmem:[%s12540_s9 + $0x3cc] sm:$0xf0]  ;;  %v8022_v44 = vor.u32 %v9937_v61, %v8021_v62  ;;  %v8294_v52 = vor.u32 %v10004_v30, %v8291_v11  ;;  %v9934_v18 = vld [vmem:[%s12540_s9 + $0xd0] sm:$0xf0] }
 0x3d3   :  { %3992 = vmatpush.bf16.msrb.mxu3 %v8450_v54  ;;  %4012 = vmatpush.bf16.msra.mxu0 %v7962_v40  ;;  %v7925_v54 = vld [vmem:[%s12540_s9 + $0x20] sm:$0xf]  ;;  %v8306_v21 = vor.u32 %v10007_v37, %v8303_v56  ;;  %v7913_v0 = vld [vmem:[%s12540_s9 + $0x8] sm:$0xf]  ;;  %v8189_v43 = vld [vmem:[%s12540_s9 + $0x230] sm:$0xf] }
 0x3d4   :  { %4031 = vmatpush.bf16.msra.mxu1 %v8058_v34  ;;  %v7926_v25 = vor.u32 %v9913_v50, %v7925_v54  ;;  %v8009_v53 = vld [vmem:[%s12540_s9 + $0xc8] sm:$0xf]  ;;  %v8381_v34 = vld [vmem:[%s12540_s9 + $0x3b0] sm:$0xf]  ;;  %v10027_v29 = vld [vmem:[%s12540_s9 + $0x3b8] sm:$0xf0] }
 0x3d5   :  { %v8010_v35 = vor.u32 %v9934_v18, %v8009_v53  ;;  %v8382_v60 = vor.u32 %v10027_v29, %v8381_v34  ;;  %v10051_v38 = vld [vmem:[%s12540_s9 + $0x478] sm:$0xf0]  ;;  %v8177_v33 = vld [vmem:[%s12540_s9 + $0x218] sm:$0xf]  ;;  %v10000_v27 = vld [vmem:[%s12540_s9 + $0x2e0] sm:$0xf0] }
 0x3d6   :  { %v9907_v46 = vld [vmem:[#allocation3 + $0x68] sm:$0xf0]  ;;  %v7899_v22 = vld [vmem:[#allocation3 + $0x6c] sm:$0xf0]  ;;  %3974 = vmatpush.bf16.msrb.mxu2 %v8342_v59  ;;  %v9910_v59 = vld [vmem:[%s12540_s9 + $0x10] sm:$0xf0] }
 0x3d7   :  { %v11672_v41 = vor.u32 %v9907_v46, %v7897_v3  ;;  %v11674_v55 = vor.u32 %v9906_v36, %v7899_v22  ;;  %3993 = vmatpush.bf16.msrb.mxu3 %v8438_v14  ;;  %4013 = vmatpush.bf16.msra.mxu0 %v7950_v51  ;;  %v8390_v14 = vor.u32 %v10028_v8, %v8387_v24  ;;  %v9979_v3 = vld [vmem:[%s12540_s9 + $0x238] sm:$0xf0]  ;;  %v8285_v46 = vld [vmem:[%s12540_s9 + $0x2f0] sm:$0xf]  ;;  %v8273_v51 = vld [vmem:[%s12540_s9 + $0x2d8] sm:$0xf] }
 0x3d8   :  { %4032 = vmatpush.bf16.msra.mxu1 %v8046_v58  ;;  %v7914_v40 = vor.u32 %v9910_v59, %v7913_v0  ;;  %v8190_v36 = vor.u32 %v9979_v3, %v8189_v43  ;;  %v10003_v22 = vld [vmem:[%s12540_s9 + $0x2f8] sm:$0xf0]  ;;  %v8274_v12 = vor.u32 %v10000_v27, %v8273_v51  ;;  %v8369_v58 = vld [vmem:[%s12540_s9 + $0x398] sm:$0xf]  ;;  %v10024_v39 = vld [vmem:[%s12540_s9 + $0x3a0] sm:$0xf0] }
 0x3d9   :  { %3832 = vmatmul.bf16.gmra.mxu2 %v11668_v48  ;;  %3851 = vmatmul.bf16.gmra.mxu3 %v11670_v6  ;;  %v8286_v23 = vor.u32 %v10003_v22, %v8285_v46  ;;  %v8465_v4 = vld [vmem:[%s12540_s9 + $0x458] sm:$0xf]  ;;  %v8370_v16 = vor.u32 %v10024_v39, %v8369_v58  ;;  %v9973_v31 = vld [vmem:[%s12540_s9 + $0x208] sm:$0xf0]  ;;  %v8261_v32 = vld [vmem:[%s12540_s9 + $0x2c0] sm:$0xf] }
 0x3da   :  { %3870 = vmatmul.bf16.gmra.mxu0 %v11672_v41  ;;  %3889 = vmatmul.bf16.gmra.mxu1 %v11674_v55  ;;  %v8357_v7 = vld [vmem:[%s12540_s9 + $0x380] sm:$0xf]  ;;  %v10021_v56 = vld [vmem:[%s12540_s9 + $0x388] sm:$0xf0]  ;;  %v9970_v50 = vld [vmem:[%s12540_s9 + $0x1f0] sm:$0xf0] }
 0x3db   :  { %3975 = vmatpush.bf16.msrb.mxu2 %v8330_v2  ;;  %3994 = vmatpush.bf16.msrb.mxu3 %v8426_v49  ;;  %v8477_v2 = vld [vmem:[%s12540_s9 + $0x470] sm:$0xf]  ;;  %v9976_v49 = vld [vmem:[%s12540_s9 + $0x220] sm:$0xf0]  ;;  %v8453_v28 = vld [vmem:[%s12540_s9 + $0x440] sm:$0xf] }
 0x3dc   :  { %4014 = vmatpush.bf16.msra.mxu0 %v7938_v5  ;;  %4033 = vmatpush.bf16.msra.mxu1 %v8034_v26  ;;  %v8478_v42 = vor.u32 %v10051_v38, %v8477_v2  ;;  %v8178_v9 = vor.u32 %v9976_v49, %v8177_v33  ;;  %v9997_v5 = vld [vmem:[%s12540_s9 + $0x2c8] sm:$0xf0]  ;;  %v8358_v26 = vor.u32 %v10021_v56, %v8357_v7  ;;  %v8249_v62 = vld [vmem:[%s12540_s9 + $0x2a8] sm:$0xf]  ;;  %v10018_v30 = vld [vmem:[%s12540_s9 + $0x370] sm:$0xf0] }
 0x3dd   :  { %v10045_v1 = vld [vmem:[%s12540_s9 + $0x448] sm:$0xf0]  ;;  %v8262_v54 = vor.u32 %v9997_v5, %v8261_v32  ;;  %v8441_v0 = vld [vmem:[%s12540_s9 + $0x428] sm:$0xf]  ;;  %v10042_v59 = vld [vmem:[%s12540_s9 + $0x430] sm:$0xf0] }
 0x3de   :  { %v8454_v61 = vor.u32 %v10045_v1, %v8453_v28  ;;  %v9991_v18 = vld [vmem:[%s12540_s9 + $0x298] sm:$0xf0]  ;;  %v8129_v34 = vld [vmem:[%s12540_s9 + $0x1b8] sm:$0xf]  ;;  %v9988_v2 = vld [vmem:[%s12540_s9 + $0x280] sm:$0xf0] }
 0x3df   :  { %3976 = vmatpush.bf16.msrb.mxu2 %v8318_v45  ;;  %3995 = vmatpush.bf16.msrb.mxu3 %v8414_v47  ;;  %v10048_v45 = vld [vmem:[%s12540_s9 + $0x460] sm:$0xf0]  ;;  %v8165_v47 = vld [vmem:[%s12540_s9 + $0x200] sm:$0xf]  ;;  %v10015_v43 = vld [vmem:[%s12540_s9 + $0x358] sm:$0xf0] }
 0x3e0   :  { %4015 = vmatpush.bf16.msra.mxu0 %v7926_v25  ;;  %4034 = vmatpush.bf16.msra.mxu1 %v8022_v44  ;;  %v8466_v57 = vor.u32 %v10048_v45, %v8465_v4  ;;  %v8166_v37 = vor.u32 %v9973_v31, %v8165_v47  ;;  %v8345_v25 = vld [vmem:[%s12540_s9 + $0x368] sm:$0xf]  ;;  %v8442_v44 = vor.u32 %v10042_v59, %v8441_v0  ;;  %v10039_v22 = vld [vmem:[%s12540_s9 + $0x418] sm:$0xf0]  ;;  %v10012_v49 = vld [vmem:[%s12540_s9 + $0x340] sm:$0xf0] }
 0x3e1   :  { %v8346_v24 = vor.u32 %v10018_v30, %v8345_v25  ;;  %v8417_v51 = vld [vmem:[%s12540_s9 + $0x3f8] sm:$0xf]  ;;  %v9961_v58 = vld [vmem:[%s12540_s9 + $0x1a8] sm:$0xf0]  ;;  %v8213_v39 = vld [vmem:[%s12540_s9 + $0x260] sm:$0xf] }
 0x3e2   :  { %v9985_v4 = vld [vmem:[%s12540_s9 + $0x268] sm:$0xf0]  ;;  %v8105_v56 = vld [vmem:[%s12540_s9 + $0x188] sm:$0xf]  ;;  %v9958_v28 = vld [vmem:[%s12540_s9 + $0x190] sm:$0xf0] }
 0x3e3   :  { %3977 = vmatpush.bf16.msrb.mxu2 %v8306_v21  ;;  %3996 = vmatpush.bf16.msrb.mxu3 %v8402_v20  ;;  %v8153_v21 = vld [vmem:[%s12540_s9 + $0x1e8] sm:$0xf]  ;;  %v9994_v20 = vld [vmem:[%s12540_s9 + $0x2b0] sm:$0xf0]  ;;  %v10009_v31 = vld [vmem:[%s12540_s9 + $0x328] sm:$0xf0]  ;;  %v8214_v5 = vor.u32 %v9985_v4, %v8213_v39 }
 0x3e4   :  { %4016 = vmatpush.bf16.msra.mxu0 %v7914_v40  ;;  %4035 = vmatpush.bf16.msra.mxu1 %v8010_v35  ;;  %v8154_v11 = vor.u32 %v9970_v50, %v8153_v21  ;;  %v8250_v8 = vor.u32 %v9994_v20, %v8249_v62  ;;  %v8237_v40 = vld [vmem:[%s12540_s9 + $0x290] sm:$0xf]  ;;  %v10033_v32 = vld [vmem:[%s12540_s9 + $0x3e8] sm:$0xf0]  ;;  %v8201_v1 = vld [vmem:[%s12540_s9 + $0x248] sm:$0xf] }
 0x3e5   :  { %v8333_v35 = vld [vmem:[%s12540_s9 + $0x350] sm:$0xf]  ;;  %v8238_v3 = vor.u32 %v9991_v18, %v8237_v40  ;;  %v10006_v21 = vld [vmem:[%s12540_s9 + $0x310] sm:$0xf0]  ;;  %v8393_v30 = vld [vmem:[%s12540_s9 + $0x3c8] sm:$0xf] }
 0x3e6   :  { %v8334_v46 = vor.u32 %v10015_v43, %v8333_v35  ;;  %v8613_v43 = vld [vmem:[#allocation12 + $0xa8] sm:$0xf] }
 0x3e7   :  { %3978 = vmatpush.bf16.msrb.mxu2 %v8294_v52  ;;  %3997 = vmatpush.bf16.msrb.mxu3 %v8390_v14  ;;  %v8141_v52 = vld [vmem:[%s12540_s9 + $0x1d0] sm:$0xf]  ;;  %v9967_v14 = vld [vmem:[%s12540_s9 + $0x1d8] sm:$0xf0] }
 0x3e8   :  { %v8142_v53 = vor.u32 %v9967_v14, %v8141_v52 }
 0x3e9   :  { %3903 = vmatmul.bf16.vlgmr.msra.gmra.mxu2 %v11132_v15  ;;  %3922 = vmatmul.bf16.vlgmr.msra.gmra.mxu3 %v11146_v19 }
 0x3ea   :  { %3941 = vmatmul.bf16.vlgmr.msrb.gmra.mxu0 %v11566_v13  ;;  %3960 = vmatmul.bf16.vlgmr.msrb.gmra.mxu1 %v11568_v10 }
 0x3eb   :  { %4047 = vmatpush.bf16.msra.mxu2 %v8190_v36  ;;  %4066 = vmatpush.bf16.msra.mxu3 %v8286_v23  ;;  %v8429_v36 = vld [vmem:[%s12540_s9 + $0x410] sm:$0xf]  ;;  %v9964_v23 = vld [vmem:[%s12540_s9 + $0x1c0] sm:$0xf0] }
 0x3ec   :  { %4085 = vmatpush.bf16.msrb.mxu0 %v8382_v60  ;;  %4104 = vmatpush.bf16.msrb.mxu1 %v8478_v42  ;;  %v8430_v29 = vor.u32 %v10039_v22, %v8429_v36  ;;  %v8225_v60 = vld [vmem:[%s12540_s9 + $0x278] sm:$0xf]  ;;  %v8130_v38 = vor.u32 %v9964_v23, %v8129_v34 }
 0x3ed   :  { %v8226_v33 = vor.u32 %v9988_v2, %v8225_v60  ;;  %v8321_v42 = vld [vmem:[%s12540_s9 + $0x338] sm:$0xf]  ;;  %v8601_v60 = vld [vmem:[#allocation12 + $0x90] sm:$0xf]  ;;  %v10083_v2 = vld [vmem:[#allocation12 + $0x98] sm:$0xf0] }
 0x3ee   :  { %v8322_v27 = vor.u32 %v10012_v49, %v8321_v42  ;;  %v10107_v42 = vld [vmem:[#allocation12 + $0x158] sm:$0xf0] }
 0x3ef   :  { %4048 = vmatpush.bf16.msra.mxu2 %v8178_v9  ;;  %4067 = vmatpush.bf16.msra.mxu3 %v8274_v12  ;;  %v10036_v9 = vld [vmem:[%s12540_s9 + $0x400] sm:$0xf0]  ;;  %v8117_v12 = vld [vmem:[%s12540_s9 + $0x1a0] sm:$0xf] }
 0x3f0   :  { %4086 = vmatpush.bf16.msrb.mxu0 %v8370_v16  ;;  %4105 = vmatpush.bf16.msrb.mxu1 %v8466_v57  ;;  %v8309_v16 = vld [vmem:[%s12540_s9 + $0x320] sm:$0xf]  ;;  %v8418_v45 = vor.u32 %v10036_v9, %v8417_v51  ;;  %v8118_v47 = vor.u32 %v9961_v58, %v8117_v12  ;;  %v8589_v9 = vld [vmem:[#allocation12 + $0x78] sm:$0xf]  ;;  %v10080_v12 = vld [vmem:[#allocation12 + $0x80] sm:$0xf0] }
 0x3f1   :  { %v8405_v57 = vld [vmem:[%s12540_s9 + $0x3e0] sm:$0xf]  ;;  %v8310_v7 = vor.u32 %v10009_v31, %v8309_v16  ;;  %v8685_v58 = vld [vmem:[#allocation12 + $0x138] sm:$0xf]  ;;  %v8590_v16 = vor.u32 %v10080_v12, %v8589_v9  ;;  %v10128_v12 = vld [vmem:[#allocation12 + $0x200] sm:$0xf0] }
 0x3f2   :  { %v8406_v50 = vor.u32 %v10033_v32, %v8405_v57  ;;  %v8577_v31 = vld [vmem:[#allocation12 + $0x60] sm:$0xf]  ;;  %v10077_v57 = vld [vmem:[#allocation12 + $0x68] sm:$0xf0]  ;;  %v8781_v9 = vld [vmem:[#allocation12 + $0x1f8] sm:$0xf] }
 0x3f3   :  { %4049 = vmatpush.bf16.msra.mxu2 %v8166_v37  ;;  %4068 = vmatpush.bf16.msra.mxu3 %v8262_v54  ;;  %v11955_v37 = vld [vmem:[%s12541_s10] sm:$0x7]  ;;  %v9982_v54 = vld [vmem:[%s12540_s9 + $0x250] sm:$0xf0]  ;;  %s10530_s10 = smov 111  }
 0x3f4   :  { %4087 = vmatpush.bf16.msrb.mxu0 %v8358_v26  ;;  %4106 = vmatpush.bf16.msrb.mxu1 %v8454_v61  ;;  %v8297_v26 = vld [vmem:[%s12540_s9 + $0x308] sm:$0xf]  ;;  %v11976_v62 = vperm.slane %v11955_v37, 0  ;;  %v8106_v61 = vor.u32 %v9958_v28, %v8105_v56  ;;  %v8202_v20 = vor.u32 %v9982_v54, %v8201_v1  ;;  %v8673_v32 = vld [vmem:[#allocation12 + $0x120] sm:$0xf] }
 0x3f5   :  { %v8298_v25 = vor.u32 %v10006_v21, %v8297_v26  ;;  %v8805_v54 = vld [vmem:[#allocation12 + $0x228] sm:$0xf]  ;;  %v10134_v26 = vld [vmem:[#allocation12 + $0x230] sm:$0xf0] }
 0x3f6   :  { %v8806_v21 = vor.u32 %v10134_v26, %v8805_v54 }
 0x3f7   :  { %4050 = vmatpush.bf16.msra.mxu2 %v8154_v11  ;;  %4069 = vmatpush.bf16.msra.mxu3 %v8250_v8  ;;  %v10030_v11 = vld [vmem:[%s12540_s9 + $0x3d0] sm:$0xf0] }
 0x3f8   :  { %4088 = vmatpush.bf16.msrb.mxu0 %v8346_v24  ;;  %4107 = vmatpush.bf16.msrb.mxu1 %v8442_v44  ;;  %v8394_v0 = vor.u32 %v10030_v11, %v8393_v30 }
 0x3f9   :  { %3908 = vmatmul.bf16.gmra.mxu2 %v11453_v63  ;;  %3927 = vmatmul.bf16.gmra.mxu3 %v11455_v17 }
 0x3fa   :  { %3946 = vmatmul.bf16.gmra.mxu0 %v11668_v48  ;;  %3965 = vmatmul.bf16.gmra.mxu1 %v11670_v6 }
 0x3fb   :  { %4051 = vmatpush.bf16.msra.mxu2 %v8142_v53  ;;  %4070 = vmatpush.bf16.msra.mxu3 %v8238_v3  ;;  %v10086_v3 = vld [vmem:[#allocation12 + $0xb0] sm:$0xf0] }
 0x3fc   :  { %4089 = vmatpush.bf16.msrb.mxu0 %v8334_v46  ;;  %4108 = vmatpush.bf16.msrb.mxu1 %v8430_v29  ;;  %v8709_v46 = vld [vmem:[#allocation12 + $0x168] sm:$0xf]  ;;  %v8614_v34 = vor.u32 %v10086_v3, %v8613_v43  ;;  %v10110_v29 = vld [vmem:[#allocation12 + $0x170] sm:$0xf0]  ;;  %v8553_v3 = vld [vmem:[#allocation12 + $0x30] sm:$0xf] }
 0x3fd   :  { %v8710_v23 = vor.u32 %v10110_v29, %v8709_v46  ;;  %v10071_v46 = vld [vmem:[#allocation12 + $0x38] sm:$0xf0] }
 0x3fe   :  { %v8554_v29 = vor.u32 %v10071_v46, %v8553_v3  ;;  %v8757_v46 = vld [vmem:[#allocation12 + $0x1c8] sm:$0xf] }
 0x3ff   :  { %4052 = vmatpush.bf16.msra.mxu2 %v8130_v38  ;;  %4071 = vmatpush.bf16.msra.mxu3 %v8226_v33  ;;  %v3790_v8 = vpop.f32.mrf.mxu2  ;;  %v8697_v38 = vld [vmem:[#allocation12 + $0x150] sm:$0xf]  ;;  %v8602_v33 = vor.u32 %v10083_v2, %v8601_v60  ;;  %v10155_v2 = vld [vmem:[#allocation12 + $0x2d8] sm:$0xf0] }
 0x400   :  { %4090 = vmatpush.bf16.msrb.mxu0 %v8322_v27  ;;  %4109 = vmatpush.bf16.msrb.mxu1 %v8418_v45  ;;  %v3791_v24 = vadd.f32 %v3790_v8, %v11976_v62  ;;  %v3809_v59 = vpop.f32.mrf.mxu3  ;;  %v8698_v27 = vor.u32 %v10107_v42, %v8697_v38  ;;  %v10104_v45 = vld [vmem:[#allocation12 + $0x140] sm:$0xf0]  ;;  %v10098_v8 = vld [vmem:[#allocation12 + $0x110] sm:$0xf0]  ;;  %v8889_v60 = vld [vmem:[#allocation12 + $0x2d0] sm:$0xf] }
 0x402   :  { %v11987_v44 = vadd.f32 %v3809_v59, %v3791_v24  ;;  %v8901_v24 = vld [vmem:[#allocation12 + $0x2e8] sm:$0xf] }
 0x403   :  { %4053 = vmatpush.bf16.msra.mxu2 %v8118_v47  ;;  %4072 = vmatpush.bf16.msra.mxu3 %v8214_v5  ;;  %v8686_v47 = vor.u32 %v10104_v45, %v8685_v58  ;;  %v8578_v5 = vor.u32 %v10077_v57, %v8577_v31  ;;  %v8782_v58 = vor.u32 %v10128_v12, %v8781_v9  ;;  %v10068_v45 = vld [vmem:[#allocation12 + $0x20] sm:$0xf0]  ;;  %v8853_v9 = vld [vmem:[#allocation12 + $0x288] sm:$0xf]  ;;  %v10146_v12 = vld [vmem:[#allocation12 + $0x290] sm:$0xf0] }
 0x404   :  { %4091 = vmatpush.bf16.msrb.mxu0 %v8310_v7  ;;  %4110 = vmatpush.bf16.msrb.mxu1 %v8406_v50  ;;  %v10101_v7 = vld [vmem:[#allocation12 + $0x128] sm:$0xf0]  ;;  %v8565_v50 = vld [vmem:[#allocation12 + $0x48] sm:$0xf] }
 0x405   :  { %v8674_v1 = vor.u32 %v10101_v7, %v8673_v32  ;;  %v8877_v7 = vld [vmem:[#allocation12 + $0x2b8] sm:$0xf] }
 0x407   :  { %4054 = vmatpush.bf16.msra.mxu2 %v8106_v61  ;;  %4073 = vmatpush.bf16.msra.mxu3 %v8202_v20  ;;  %v10074_v61 = vld [vmem:[#allocation12 + $0x50] sm:$0xf0]  ;;  %v8661_v20 = vld [vmem:[#allocation12 + $0x108] sm:$0xf] }
 0x408   :  { %4092 = vmatpush.bf16.msrb.mxu0 %v8298_v25  ;;  %4111 = vmatpush.bf16.msrb.mxu1 %v8394_v0  ;;  %v8566_v11 = vor.u32 %v10074_v61, %v8565_v50  ;;  %v10158_v0 = vld [vmem:[#allocation12 + $0x2f0] sm:$0xf0]  ;;  %v8662_v59 = vor.u32 %v10098_v8, %v8661_v20  ;;  %v10125_v50 = vld [vmem:[#allocation12 + $0x1e8] sm:$0xf0]  ;;  %v8529_v20 = vld [vmem:[#allocation12] sm:$0xf] }
 0x409   :  { %3979 = vmatmul.bf16.vlgmr.msrb.gmra.mxu2 %v11453_v63  ;;  %3998 = vmatmul.bf16.vlgmr.msrb.gmra.mxu3 %v11455_v17  ;;  %v8625_v8 = vld [vmem:[#allocation12 + $0xc0] sm:$0xf] }
 0x40a   :  { %4017 = vmatmul.bf16.vlgmr.msra.gmra.mxu0 %v11132_v15  ;;  %4036 = vmatmul.bf16.vlgmr.msra.gmra.mxu1 %v11146_v19  ;;  %v11999_v15 = vpop.f32.mrf.mxu2  ;;  %v12001_v19 = vpop.f32.mrf.mxu3 }
 0x40b   :  { %5684 = vmatpush.bf16.msrb.mxu2 %v8614_v34  ;;  %5703 = vmatpush.bf16.msrb.mxu3 %v8710_v23  ;;  %v8649_v34 = vld [vmem:[#allocation12 + $0xf0] sm:$0xf]  ;;  %v10095_v23 = vld [vmem:[#allocation12 + $0xf8] sm:$0xf0] }
 0x40c   :  { %5722 = vmatpush.bf16.msra.mxu0 %v8806_v21  ;;  %v8650_v42 = vor.u32 %v10095_v23, %v8649_v34  ;;  %v8769_v21 = vld [vmem:[#allocation12 + $0x1e0] sm:$0xf]  ;;  %v10122_v34 = vld [vmem:[#allocation12 + $0x1d0] sm:$0xf0] }
 0x40d   :  { %v8770_v61 = vor.u32 %v10125_v50, %v8769_v21  ;;  %v8481_v23 = vld [vmem:[#allocation2] sm:$0xf]  ;;  %v8841_v21 = vld [vmem:[#allocation12 + $0x270] sm:$0xf]  ;;  %v10143_v50 = vld [vmem:[#allocation12 + $0x278] sm:$0xf0] }
 0x40f   :  { %5685 = vmatpush.bf16.msrb.mxu2 %v8602_v33  ;;  %5704 = vmatpush.bf16.msrb.mxu3 %v8698_v27  ;;  %v8890_v27 = vor.u32 %v10155_v2, %v8889_v60  ;;  %v10053_v60 = vld [vmem:[#allocation2 + $0x8] sm:$0xf0]  ;;  %v10052_v2 = vld [vmem:[#allocation2 + $0x4] sm:$0xf] }
 0x413   :  { %5686 = vmatpush.bf16.msrb.mxu2 %v8590_v16  ;;  %5705 = vmatpush.bf16.msrb.mxu3 %v8686_v47  ;;  %v8541_v16 = vld [vmem:[#allocation12 + $0x18] sm:$0xf] }
 0x414   :  { %v8637_v47 = vld [vmem:[#allocation12 + $0xd8] sm:$0xf]  ;;  %v8542_v32 = vor.u32 %v10068_v45, %v8541_v16 }
 0x417   :  { %5687 = vmatpush.bf16.msrb.mxu2 %v8578_v5  ;;  %5706 = vmatpush.bf16.msrb.mxu3 %v8674_v1  ;;  %v10092_v5 = vld [vmem:[#allocation12 + $0xe0] sm:$0xf0] }
 0x418   :  { %v10152_v1 = vld [vmem:[#allocation12 + $0x2c0] sm:$0xf0]  ;;  %v8638_v54 = vor.u32 %v10092_v5, %v8637_v47  ;;  %v8854_v47 = vor.u32 %v10146_v12, %v8853_v9  ;;  %v10182_v5 = vld [vmem:[#allocation12 + $0x3b0] sm:$0xf0] }
 0x419   :  { %3984 = vmatmul.bf16.gmra.mxu2 %v11672_v41  ;;  %4003 = vmatmul.bf16.gmra.mxu3 %v11674_v55  ;;  %v8878_v26 = vor.u32 %v10152_v1, %v8877_v7  ;;  %v8745_v1 = vld [vmem:[#allocation12 + $0x1b0] sm:$0xf]  ;;  %v10176_v9 = vld [vmem:[#allocation12 + $0x380] sm:$0xf0] }
 0x41a   :  { %4022 = vmatmul.bf16.gmra.mxu0 %v11453_v63  ;;  %4041 = vmatmul.bf16.gmra.mxu1 %v11455_v17 }
 0x41b   :  { %5688 = vmatpush.bf16.msrb.mxu2 %v8566_v11  ;;  %5707 = vmatpush.bf16.msrb.mxu3 %v8662_v59  ;;  %v10065_v11 = vld [vmem:[#allocation12 + $0x8] sm:$0xf0]  ;;  %v8865_v59 = vld [vmem:[#allocation12 + $0x2a0] sm:$0xf] }
 0x41f   :  { %5689 = vmatpush.bf16.msrb.mxu2 %v8554_v29  ;;  %5708 = vmatpush.bf16.msrb.mxu3 %v8650_v42  ;;  %v8758_v29 = vor.u32 %v10122_v34, %v8757_v46  ;;  %v12062_v42 = vor.u32 %v10053_v60, %v8481_v23  ;;  %v8829_v46 = vld [vmem:[#allocation12 + $0x258] sm:$0xf]  ;;  %v10140_v34 = vld [vmem:[#allocation12 + $0x260] sm:$0xf0] }
 0x423   :  { %5690 = vmatpush.bf16.msrb.mxu2 %v8542_v32  ;;  %5709 = vmatpush.bf16.msrb.mxu3 %v8638_v54  ;;  %v8997_v32 = vld [vmem:[#allocation12 + $0x3a8] sm:$0xf]  ;;  %v10119_v54 = vld [vmem:[#allocation12 + $0x1b8] sm:$0xf0] }
 0x424   :  { %v8998_v7 = vor.u32 %v10182_v5, %v8997_v32  ;;  %v10113_v32 = vld [vmem:[#allocation12 + $0x188] sm:$0xf0] }
 0x429   :  { %4055 = vmatmul.bf16.vlgmr.msra.gmra.mxu2 %v11566_v13  ;;  %4074 = vmatmul.bf16.vlgmr.msra.gmra.mxu3 %v11568_v10 }
 0x42a   :  { %4093 = vmatmul.bf16.vlgmr.msrb.gmra.mxu0 %v11453_v63  ;;  %4112 = vmatmul.bf16.vlgmr.msrb.gmra.mxu1 %v11455_v17 }
 0x437   :  { %v12014_v40 = vpop.f32.mrf.mxu0  ;;  %v12016_v53 = vpop.f32.mrf.mxu1 }
 0x439   :  { %4060 = vmatmul.bf16.gmra.mxu2 %v11668_v48  ;;  %4079 = vmatmul.bf16.gmra.mxu3 %v11670_v6 }
 0x43a   :  { %4098 = vmatmul.bf16.gmra.mxu0 %v11672_v41  ;;  %4117 = vmatmul.bf16.gmra.mxu1 %v11674_v55 }
 0x43c   :  { %v3795_v52 = vpop.f32.mrf.mxu2  ;;  %v3814_v13 = vpop.f32.mrf.mxu3 }
 0x43d   :  { %v3796_v10 = vadd.f32 %v3795_v52, %v11976_v62  ;;  %v8902_v52 = vor.u32 %v10158_v0, %v8901_v24  ;;  %v8530_v24 = vor.u32 %v10065_v11, %v8529_v20  ;;  %v10089_v0 = vld [vmem:[#allocation12 + $0xc8] sm:$0xf0]  ;;  %v12073_v20 = vperm.slane %v11955_v37, 1 }
 0x43e   :  { %v8842_v11 = vor.u32 %v10143_v50, %v8841_v21 }
 0x43f   :  { %v12008_v14 = vadd.f32 %v3814_v13, %v3796_v10  ;;  %v12022_v41 = vpop.f32.mrf.mxu0  ;;  %v12024_v55 = vpop.f32.mrf.mxu1  ;;  %v8793_v13 = vld [vmem:[#allocation12 + $0x210] sm:$0xf]  ;;  %v10131_v10 = vld [vmem:[#allocation12 + $0x218] sm:$0xf0]  ;;  %5741 = vmatpush.bf16.msra.mxu1 %v8902_v52  ;;  %v10149_v52 = vld [vmem:[#allocation12 + $0x2a8] sm:$0xf0]  ;;  %5691 = vmatpush.bf16.msrb.mxu2 %v8530_v24 }
 0x440   :  { %v8794_v43 = vor.u32 %v10131_v10, %v8793_v13  ;;  %v8866_v3 = vor.u32 %v10149_v52, %v8865_v59  ;;  %v8733_v52 = vld [vmem:[#allocation12 + $0x198] sm:$0xf] }
 0x442   :  { %5723 = vmatpush.bf16.msra.mxu0 %v8794_v43  ;;  %v8626_v43 = vor.u32 %v10089_v0, %v8625_v8  ;;  %v10179_v8 = vld [vmem:[#allocation12 + $0x398] sm:$0xf0] }
 0x443   :  { %5742 = vmatpush.bf16.msra.mxu1 %v8890_v27  ;;  %v8483_v27 = vld [vmem:[#allocation2 + $0xc] sm:$0xf0]  ;;  %5760 = vmatpush.bf16.msra.mxu2 %v8998_v7 }
 0x444   :  { %v12010_v63 = vpop.f32.mrf.mxu2  ;;  %v12012_v17 = vpop.f32.mrf.mxu3  ;;  %5710 = vmatpush.bf16.msrb.mxu3 %v8626_v43  ;;  %v12068_v45 = vor.u32 %v10052_v2, %v8483_v27  ;;  %v10116_v43 = vld [vmem:[#allocation12 + $0x1a0] sm:$0xf0]  ;;  %v8830_v27 = vor.u32 %v10140_v34, %v8829_v46  ;;  %v9285_v46 = vld [vmem:[#allocation12 + $0x5e8] sm:$0xf] }
 0x446   :  { %5724 = vmatpush.bf16.msra.mxu0 %v8782_v58 }
 0x447   :  { %5743 = vmatpush.bf16.msra.mxu1 %v8878_v26  ;;  %v8746_v26 = vor.u32 %v10119_v54, %v8745_v1  ;;  %v8817_v1 = vld [vmem:[#allocation12 + $0x240] sm:$0xf]  ;;  %v10137_v54 = vld [vmem:[#allocation12 + $0x248] sm:$0xf0] }
 0x448   :  { %v8818_v50 = vor.u32 %v10137_v54, %v8817_v1  ;;  %v10206_v54 = vld [vmem:[#allocation12 + $0x470] sm:$0xf0] }
 0x449   :  { %5692 = vmatmul.bf16.vlgmr.msrb.gmra.mxu2 %v12062_v42  ;;  %5711 = vmatmul.bf16.vlgmr.msrb.gmra.mxu3 %v12068_v45 }
 0x44a   :  { %5725 = vmatpush.bf16.msra.mxu0 %v8770_v61  ;;  %v8985_v61 = vld [vmem:[#allocation12 + $0x390] sm:$0xf] }
 0x44b   :  { %5744 = vmatpush.bf16.msra.mxu1 %v8866_v3  ;;  %v8986_v59 = vor.u32 %v10179_v8, %v8985_v61  ;;  %v8734_v3 = vor.u32 %v10116_v43, %v8733_v52  ;;  %v10173_v61 = vld [vmem:[#allocation12 + $0x368] sm:$0xf0]  ;;  %v10054_v8 = vld [vmem:[#allocation2 + $0x10] sm:$0xf0] }
 0x44c   :  { %v12018_v48 = vpop.f32.mrf.mxu2  ;;  %v12020_v6 = vpop.f32.mrf.mxu3 }
 0x44d   :  { %5761 = vmatpush.bf16.msra.mxu2 %v8986_v59  ;;  %v3829_v5 = vadd.f32 %v12018_v48, %v11987_v44 }
 0x44e   :  { %5726 = vmatpush.bf16.msra.mxu0 %v8758_v29  ;;  %v8973_v29 = vld [vmem:[#allocation12 + $0x378] sm:$0xf] }
 0x44f   :  { %5745 = vmatpush.bf16.msra.mxu1 %v8854_v47  ;;  %v8974_v12 = vor.u32 %v10176_v9, %v8973_v29  ;;  %v8721_v47 = vld [vmem:[#allocation12 + $0x180] sm:$0xf]  ;;  %v3848_v43 = vadd.f32 %v12020_v6, %v3829_v5  ;;  %v10254_v6 = vld [vmem:[#allocation12 + $0x5f0] sm:$0xf0]  ;;  %v9093_v5 = vld [vmem:[#allocation12 + $0x468] sm:$0xf] }
 0x450   :  { %v8722_v7 = vor.u32 %v10113_v32, %v8721_v47 }
 0x451   :  { %5762 = vmatpush.bf16.msra.mxu2 %v8974_v12  ;;  %v9286_v12 = vor.u32 %v10254_v6, %v9285_v46  ;;  %v3867_v47 = vadd.f32 %v12014_v40, %v3848_v43  ;;  %v10164_v43 = vld [vmem:[#allocation12 + $0x320] sm:$0xf0] }
 0x452   :  { %5727 = vmatpush.bf16.msra.mxu0 %v8746_v26  ;;  %v8961_v26 = vld [vmem:[#allocation12 + $0x360] sm:$0xf] }
 0x453   :  { %5746 = vmatpush.bf16.msra.mxu1 %v8842_v11  ;;  %v8489_v11 = vld [vmem:[#allocation2 + $0x8] sm:$0xf]  ;;  %v8962_v44 = vor.u32 %v10173_v61, %v8961_v26  ;;  %v9273_v26 = vld [vmem:[#allocation12 + $0x5d0] sm:$0xf]  ;;  %v9094_v61 = vor.u32 %v10206_v54, %v9093_v5  ;;  %v3886_v40 = vadd.f32 %v12016_v53, %v3867_v47  ;;  %v9069_v5 = vld [vmem:[#allocation12 + $0x438] sm:$0xf] }
 0x454   :  { %v12026_v18 = vpop.f32.mrf.mxu2  ;;  %v12028_v35 = vpop.f32.mrf.mxu3  ;;  %v12094_v48 = vor.u32 %v10054_v8, %v8489_v11  ;;  %v10200_v54 = vld [vmem:[#allocation12 + $0x440] sm:$0xf0] }
 0x455   :  { %5763 = vmatpush.bf16.msra.mxu2 %v8962_v44  ;;  %5779 = vmatpush.bf16.msra.mxu3 %v9094_v61  ;;  %v8925_v44 = vld [vmem:[#allocation12 + $0x318] sm:$0xf]  ;;  %v4123_v47 = vmax.f32 %v3886_v40, 0.0  ;;  %v9237_v40 = vld [vmem:[#allocation12 + $0x588] sm:$0xf] }
 0x456   :  { %5728 = vmatpush.bf16.msra.mxu0 %v8734_v3  ;;  %v8949_v3 = vld [vmem:[#allocation12 + $0x348] sm:$0xf]  ;;  %v8926_v53 = vor.u32 %v10164_v43, %v8925_v44 }
 0x457   :  { %v12030_v36 = vpop.f32.mrf.mxu0  ;;  %v12032_v22 = vpop.f32.mrf.mxu1  ;;  %5747 = vmatpush.bf16.msra.mxu1 %v8830_v27 }
 0x45a   :  { %5729 = vmatpush.bf16.msra.mxu0 %v8722_v7 }
 0x45b   :  { %5748 = vmatpush.bf16.msra.mxu1 %v8818_v50 }
 0x45c   :  { %v12034_v49 = vpop.f32.mrf.mxu2  ;;  %v12036_v51 = vpop.f32.mrf.mxu3 }
 0x45d   :  { %5730 = vmatmul.bf16.vlgmr.msra.gmra.mxu0 %v12094_v48 }
 0x45f   :  { %v12038_v39 = vpop.f32.mrf.mxu0  ;;  %v12040_v4 = vpop.f32.mrf.mxu1  ;;  %5817 = vmatpush.bf16.msrb.mxu1 %v9286_v12 }
 0x464   :  { %v12042_v56 = vpop.f32.mrf.mxu2  ;;  %v12044_v28 = vpop.f32.mrf.mxu3 }
 0x467   :  { %v12046_v25 = vpop.f32.mrf.mxu0  ;;  %v12048_v30 = vpop.f32.mrf.mxu1 }
 0x46c   :  { %v12050_v38 = vpop.f32.mrf.mxu2  ;;  %v12052_v33 = vpop.f32.mrf.mxu3 }
 0x46d   :  { %v3905_v23 = vadd.f32 %v12050_v38, %v12073_v20  ;;  %v3793_v38 = vadd.f32 %v11999_v15, %v11976_v62  ;;  %v10170_v15 = vld [vmem:[#allocation12 + $0x350] sm:$0xf0] }
 0x46e   :  { %v8950_v9 = vor.u32 %v10170_v15, %v8949_v3 }
 0x46f   :  { %v12054_v31 = vpop.f32.mrf.mxu0  ;;  %v12056_v57 = vpop.f32.mrf.mxu1  ;;  %v3924_v21 = vadd.f32 %v12052_v33, %v3905_v23  ;;  %v3812_v33 = vadd.f32 %v12001_v19, %v3793_v38  ;;  %v8937_v19 = vld [vmem:[#allocation12 + $0x330] sm:$0xf]  ;;  %v10251_v38 = vld [vmem:[#allocation12 + $0x5d8] sm:$0xf0] }
 0x470   :  { %5764 = vmatpush.bf16.msra.mxu2 %v8950_v9  ;;  %v9274_v11 = vor.u32 %v10251_v38, %v9273_v26  ;;  %v9249_v26 = vld [vmem:[#allocation12 + $0x5a0] sm:$0xf] }
 0x471   :  { %v3943_v34 = vadd.f32 %v12046_v25, %v3924_v21  ;;  %v3831_v32 = vadd.f32 %v12026_v18, %v3812_v33  ;;  %v10167_v25 = vld [vmem:[#allocation12 + $0x338] sm:$0xf0] }
 0x472   :  { %v8938_v1 = vor.u32 %v10167_v25, %v8937_v19  ;;  %5818 = vmatpush.bf16.msrb.mxu1 %v9274_v11  ;;  %v8913_v19 = vld [vmem:[#allocation12 + $0x300] sm:$0xf]  ;;  %v10161_v25 = vld [vmem:[#allocation12 + $0x308] sm:$0xf0] }
 0x473   :  { %v3962_v7 = vadd.f32 %v12048_v30, %v3943_v34  ;;  %v3850_v18 = vadd.f32 %v12028_v35, %v3831_v32  ;;  %v10203_v34 = vld [vmem:[#allocation12 + $0x458] sm:$0xf0]  ;;  %v9261_v35 = vld [vmem:[#allocation12 + $0x5b8] sm:$0xf]  ;;  %v10197_v11 = vld [vmem:[#allocation12 + $0x428] sm:$0xf0] }
 0x474   :  { %v12058_v13 = vpop.f32.mrf.mxu2  ;;  %v12060_v10 = vpop.f32.mrf.mxu3  ;;  %5765 = vmatpush.bf16.msra.mxu2 %v8938_v1 }
 0x475   :  { %v3907_v29 = vadd.f32 %v12058_v13, %v12073_v20  ;;  %v3869_v12 = vadd.f32 %v12022_v41, %v3850_v18  ;;  %v8914_v41 = vor.u32 %v10161_v25, %v8913_v19  ;;  %v9381_v19 = vld [vmem:[#allocation12 + $0x6a8] sm:$0xf] }
 0x477   :  { %v12064_v58 = vpop.f32.mrf.mxu0  ;;  %v12066_v16 = vpop.f32.mrf.mxu1  ;;  %v3926_v13 = vadd.f32 %v12060_v10, %v3907_v29  ;;  %v9081_v10 = vld [vmem:[#allocation12 + $0x450] sm:$0xf]  ;;  %v10248_v29 = vld [vmem:[#allocation12 + $0x5c0] sm:$0xf0] }
 0x478   :  { %v9082_v9 = vor.u32 %v10203_v34, %v9081_v10  ;;  %v9262_v6 = vor.u32 %v10248_v29, %v9261_v35  ;;  %5766 = vmatpush.bf16.msra.mxu2 %v8926_v53  ;;  %v10242_v10 = vld [vmem:[#allocation12 + $0x590] sm:$0xf0]  ;;  %v9045_v35 = vld [vmem:[#allocation12 + $0x408] sm:$0xf] }
 0x479   :  { %v3945_v30 = vadd.f32 %v12054_v31, %v3926_v13  ;;  %v3834_v31 = vadd.f32 %v12034_v49, %v12008_v14  ;;  %v10245_v14 = vld [vmem:[#allocation12 + $0x5a8] sm:$0xf0]  ;;  %v10230_v34 = vld [vmem:[#allocation12 + $0x530] sm:$0xf0] }
 0x47a   :  { %5780 = vmatpush.bf16.msra.mxu3 %v9082_v9  ;;  %5819 = vmatpush.bf16.msrb.mxu1 %v9262_v6  ;;  %v10194_v6 = vld [vmem:[#allocation12 + $0x410] sm:$0xf0] }
 0x47b   :  { %v3964_v1 = vadd.f32 %v12056_v57, %v3945_v30  ;;  %v9057_v57 = vld [vmem:[#allocation12 + $0x420] sm:$0xf]  ;;  %v9238_v30 = vor.u32 %v10242_v10, %v9237_v40 }
 0x47c   :  { %v12075_v24 = vpop.f32.mrf.mxu2  ;;  %v12077_v0 = vpop.f32.mrf.mxu3  ;;  %5767 = vmatpush.bf16.msra.mxu2 %v8914_v41 }
 0x47d   :  { %v3910_v3 = vadd.f32 %v12075_v24, %v12073_v20  ;;  %v3798_v24 = vadd.f32 %v12010_v63, %v11976_v62  ;;  %v3888_v62 = vadd.f32 %v12024_v55, %v3869_v12  ;;  %v3853_v63 = vadd.f32 %v12036_v51, %v3834_v31  ;;  %v9225_v12 = vld [vmem:[#allocation12 + $0x570] sm:$0xf]  ;;  %v10239_v31 = vld [vmem:[#allocation12 + $0x578] sm:$0xf0] }
 0x47e   :  { %v9058_v51 = vor.u32 %v10197_v11, %v9057_v57 }
 0x47f   :  { %v12081_v60 = vpop.f32.mrf.mxu0  ;;  %v12083_v2 = vpop.f32.mrf.mxu1  ;;  %v3929_v13 = vadd.f32 %v12077_v0, %v3910_v3  ;;  %v3817_v0 = vadd.f32 %v12012_v17, %v3798_v24  ;;  %v3872_v3 = vadd.f32 %v12030_v36, %v3853_v63  ;;  %v9226_v24 = vor.u32 %v10239_v31, %v9225_v12  ;;  %v10275_v63 = vld [vmem:[#allocation12 + $0x698] sm:$0xf0]  ;;  %v10272_v12 = vld [vmem:[#allocation12 + $0x680] sm:$0xf0] }
 0x481   :  { %v3948_v18 = vadd.f32 %v12064_v58, %v3929_v13  ;;  %v3836_v17 = vadd.f32 %v12042_v56, %v3817_v0  ;;  %v9189_v58 = vld [vmem:[#allocation12 + $0x528] sm:$0xf]  ;;  %v3891_v25 = vadd.f32 %v12032_v22, %v3872_v3  ;;  %v9177_v13 = vld [vmem:[#allocation12 + $0x510] sm:$0xf]  ;;  %v10233_v3 = vld [vmem:[#allocation12 + $0x548] sm:$0xf0] }
 0x482   :  { %v9190_v9 = vor.u32 %v10230_v34, %v9189_v58 }
 0x483   :  { %v3967_v29 = vadd.f32 %v12066_v16, %v3948_v18  ;;  %v3855_v56 = vadd.f32 %v12044_v28, %v3836_v17  ;;  %v4129_v0 = vmax.f32 %v3891_v25, 0.0  ;;  %v9345_v25 = vld [vmem:[#allocation12 + $0x660] sm:$0xf] }
 0x484   :  { %v12090_v59 = vpop.f32.mrf.mxu2  ;;  %v12092_v52 = vpop.f32.mrf.mxu3  ;;  %5798 = vmatpush.bf16.msrb.mxu0 %v9190_v9 }
 0x485   :  { %v3874_v22 = vadd.f32 %v12038_v39, %v3855_v56  ;;  %v9021_v39 = vld [vmem:[#allocation12 + $0x3d8] sm:$0xf]  ;;  %v9153_v56 = vld [vmem:[#allocation12 + $0x4e0] sm:$0xf] }
 0x487   :  { %v12101_v23 = vpop.f32.mrf.mxu0  ;;  %v12103_v27 = vpop.f32.mrf.mxu1 }
 0x48c   :  { %v3980_v21 = vpop.f32.mrf.mxu2  ;;  %v3999_v50 = vpop.f32.mrf.mxu3 }
 0x48d   :  { %v3981_v8 = vadd.f32 %v3980_v21, %v3962_v7  ;;  %v9070_v21 = vor.u32 %v10200_v54, %v9069_v5 }
 0x48f   :  { %v4000_v15 = vadd.f32 %v3999_v50, %v3981_v8  ;;  %v12115_v46 = vpop.f32.mrf.mxu0  ;;  %v12117_v33 = vpop.f32.mrf.mxu1  ;;  %v9250_v50 = vor.u32 %v10245_v14, %v9249_v26  ;;  %5781 = vmatpush.bf16.msra.mxu3 %v9070_v21  ;;  %v3912_v8 = vadd.f32 %v12090_v59, %v12073_v20  ;;  %v10191_v14 = vld [vmem:[#allocation12 + $0x3f8] sm:$0xf0] }
 0x491   :  { %v4124_v32 = vmax.f32 %v4000_v15, 0.0  ;;  %5820 = vmatpush.bf16.msrb.mxu1 %v9250_v50  ;;  %v4126_v15 = vmax.f32 %v3888_v62, 0.0  ;;  %v3931_v20 = vadd.f32 %v12092_v52, %v3912_v8  ;;  %v10278_v52 = vld [vmem:[#allocation12 + $0x6b0] sm:$0xf0]  ;;  %v9369_v62 = vld [vmem:[#allocation12 + $0x690] sm:$0xf] }
 0x492   :  { %v9382_v16 = vor.u32 %v10278_v52, %v9381_v19  ;;  %v9370_v11 = vor.u32 %v10275_v63, %v9369_v62  ;;  %v9165_v8 = vld [vmem:[#allocation12 + $0x4f8] sm:$0xf]  ;;  %v10185_v19 = vld [vmem:[#allocation12 + $0x3c8] sm:$0xf0]  ;;  %v10266_v62 = vld [vmem:[#allocation12 + $0x650] sm:$0xf0] }
 0x493   :  { %v4135_v7 = vpack.c.bf16 %v4124_v32, %v4123_v47  ;;  %5782 = vmatpush.bf16.msra.mxu3 %v9058_v51  ;;  %v9046_v32 = vor.u32 %v10194_v6, %v9045_v35  ;;  %v3950_v41 = vadd.f32 %v12081_v60, %v3931_v20  ;;  %v10085_v63 = vld [vmem:[#allocation12 + $0xac] sm:$0xf] }
 0x494   :  { %v3982_v49 = vpop.f32.mrf.mxu2  ;;  %v4001_v38 = vpop.f32.mrf.mxu3  ;;  %5836 = vmatpush.bf16.msrb.mxu2 %v9382_v16 }
 0x495   :  { %4143 = vst [vmem:[#allocation2 + $0x18] sm:$0xff] %v4135_v7  ;;  %v3983_v61 = vadd.f32 %v3982_v49, %v3964_v1  ;;  %5821 = vmatpush.bf16.msrb.mxu1 %v9238_v30  ;;  %v10227_v7 = vld [vmem:[#allocation12 + $0x518] sm:$0xf0]  ;;  %v9033_v1 = vld [vmem:[#allocation12 + $0x3f0] sm:$0xf]  ;;  %v3969_v10 = vadd.f32 %v12083_v2, %v3950_v41 }
 0x496   :  { %v9178_v26 = vor.u32 %v10227_v7, %v9177_v13  ;;  %v9213_v49 = vld [vmem:[#allocation12 + $0x558] sm:$0xf]  ;;  %v9034_v21 = vor.u32 %v10191_v14, %v9033_v1  ;;  %v10188_v30 = vld [vmem:[#allocation12 + $0x3e0] sm:$0xf0]  ;;  %v10133_v13 = vld [vmem:[#allocation12 + $0x22c] sm:$0xf] }
 0x497   :  { %v4002_v44 = vadd.f32 %v4001_v38, %v3983_v61  ;;  %v12132_v43 = vpop.f32.mrf.mxu0  ;;  %v12134_v55 = vpop.f32.mrf.mxu1  ;;  %5783 = vmatpush.bf16.msra.mxu3 %v9046_v32  ;;  %v10236_v38 = vld [vmem:[#allocation12 + $0x560] sm:$0xf0]  ;;  %v12147_v61 = vperm.slane %v11955_v37, 2  ;;  %v9201_v37 = vld [vmem:[#allocation12 + $0x540] sm:$0xf]  ;;  %v9022_v20 = vor.u32 %v10188_v30, %v9021_v39 }
 0x498   :  { %v9214_v50 = vor.u32 %v10236_v38, %v9213_v49  ;;  %5799 = vmatpush.bf16.msrb.mxu0 %v9178_v26  ;;  %5837 = vmatpush.bf16.msrb.mxu2 %v9370_v11  ;;  %v8807_v7 = vld [vmem:[#allocation12 + $0x234] sm:$0xf0]  ;;  %v9141_v26 = vld [vmem:[#allocation12 + $0x4c8] sm:$0xf]  ;;  %v10218_v14 = vld [vmem:[#allocation12 + $0x4d0] sm:$0xf0] }
 0x499   :  { %v4127_v53 = vmax.f32 %v4002_v44, 0.0  ;;  %5822 = vmatpush.bf16.msrb.mxu1 %v9226_v24  ;;  %v10224_v44 = vld [vmem:[#allocation12 + $0x500] sm:$0xf0]  ;;  %v9333_v49 = vld [vmem:[#allocation12 + $0x648] sm:$0xf]  ;;  %v4021_v30 = vadd.f32 %v12115_v46, %v12147_v61 }
 0x49a   :  { %v9166_v17 = vor.u32 %v10224_v44, %v9165_v8  ;;  %v10130_v8 = vld [vmem:[#allocation12 + $0x214] sm:$0xf]  ;;  %v8795_v39 = vld [vmem:[#allocation12 + $0x21c] sm:$0xf0]  ;;  %v10260_v46 = vld [vmem:[#allocation12 + $0x620] sm:$0xf0] }
 0x49b   :  { %v4137_v59 = vpack.c.bf16 %v4127_v53, %v4126_v15  ;;  %5784 = vmatpush.bf16.msra.mxu3 %v9034_v21  ;;  %v3893_v15 = vadd.f32 %v12040_v4, %v3874_v22  ;;  %v10221_v4 = vld [vmem:[#allocation12 + $0x4e8] sm:$0xf0] }
 0x49c   :  { %v3985_v47 = vpop.f32.mrf.mxu2  ;;  %v4004_v36 = vpop.f32.mrf.mxu3  ;;  %v8493_v40 = vld [vmem:[#allocation2 + $0x18] sm:$0xf]  ;;  %v10055_v18 = vld [vmem:[#allocation2 + $0x1c] sm:$0xf]  ;;  %5800 = vmatpush.bf16.msrb.mxu0 %v9166_v17  ;;  %v9154_v24 = vor.u32 %v10221_v4, %v9153_v56  ;;  %v9321_v17 = vld [vmem:[#allocation12 + $0x630] sm:$0xf] }
 0x49d   :  { %4145 = vst [vmem:[#allocation2 + $0x24] sm:$0xff] %v4137_v59  ;;  %v3986_v5 = vadd.f32 %v3985_v47, %v3967_v29  ;;  %5823 = vmatpush.bf16.msrb.mxu1 %v9214_v50  ;;  %v9202_v59 = vor.u32 %v10233_v3, %v9201_v37  ;;  %v9357_v29 = vld [vmem:[#allocation12 + $0x678] sm:$0xf]  ;;  %v9009_v47 = vld [vmem:[#allocation12 + $0x3c0] sm:$0xf]  ;;  %v4132_v1 = vmax.f32 %v3893_v15, 0.0  ;;  %v9142_v50 = vor.u32 %v10218_v14, %v9141_v26 }
 0x49e   :  { %v9358_v31 = vor.u32 %v10272_v12, %v9357_v29  ;;  %v9010_v52 = vor.u32 %v10185_v19, %v9009_v47  ;;  %v10263_v15 = vld [vmem:[#allocation12 + $0x638] sm:$0xf0]  ;;  %v9117_v12 = vld [vmem:[#allocation12 + $0x498] sm:$0xf] }
 0x49f   :  { %v4005_v54 = vadd.f32 %v4004_v36, %v3986_v5  ;;  %v12143_v28 = vpop.f32.mrf.mxu0  ;;  %v12149_v57 = vpop.f32.mrf.mxu1  ;;  %5785 = vmatpush.bf16.msra.mxu3 %v9022_v20  ;;  %v4019_v36 = vadd.f32 %v12101_v23, %v12147_v61  ;;  %v10269_v5 = vld [vmem:[#allocation12 + $0x668] sm:$0xf0]  ;;  %v8810_v23 = vor.u32 %v10133_v13, %v8807_v7  ;;  %v10127_v20 = vld [vmem:[#allocation12 + $0x1fc] sm:$0xf]  ;;  %v9309_v56 = vld [vmem:[#allocation12 + $0x618] sm:$0xf] }
 0x4a0   :  { %5838 = vmatpush.bf16.msrb.mxu2 %v9358_v31  ;;  %v9346_v16 = vor.u32 %v10269_v5, %v9345_v25  ;;  %5801 = vmatpush.bf16.msrb.mxu0 %v9154_v24  ;;  %v10212_v31 = vld [vmem:[#allocation12 + $0x4a0] sm:$0xf0]  ;;  %v10079_v47 = vld [vmem:[#allocation12 + $0x7c] sm:$0xf] }
 0x4a1   :  { %v4130_v60 = vmax.f32 %v4005_v54, 0.0  ;;  %5824 = vmatpush.bf16.msrb.mxu1 %v9202_v59  ;;  %v4038_v38 = vadd.f32 %v12103_v27, %v4019_v36  ;;  %v9129_v27 = vld [vmem:[#allocation12 + $0x4b0] sm:$0xf]  ;;  %v8783_v59 = vld [vmem:[#allocation12 + $0x204] sm:$0xf0]  ;;  %v9118_v4 = vor.u32 %v10212_v31, %v9117_v12 }
 0x4a2   :  { %v8591_v36 = vld [vmem:[#allocation12 + $0x84] sm:$0xf0]  ;;  %v10124_v5 = vld [vmem:[#allocation12 + $0x1e4] sm:$0xf] }
 0x4a3   :  { %v4139_v51 = vpack.c.bf16 %v4130_v60, %v4129_v0  ;;  %5786 = vmatpush.bf16.msra.mxu3 %v9010_v52  ;;  %v8615_v0 = vld [vmem:[#allocation12 + $0xb4] sm:$0xf0]  ;;  %v8594_v25 = vor.u32 %v10079_v47, %v8591_v36  ;;  %v8771_v52 = vld [vmem:[#allocation12 + $0x1ec] sm:$0xf0]  ;;  %v8555_v36 = vld [vmem:[#allocation12 + $0x3c] sm:$0xf0] }
 0x4a4   :  { %v3987_v53 = vpop.f32.mrf.mxu2  ;;  %v4006_v58 = vpop.f32.mrf.mxu3  ;;  %v10056_v34 = vld [vmem:[#allocation2 + $0x20] sm:$0xf0]  ;;  %v8495_v35 = vld [vmem:[#allocation2 + $0x24] sm:$0xf0]  ;;  %5839 = vmatpush.bf16.msrb.mxu2 %v9346_v16  ;;  %5802 = vmatpush.bf16.msrb.mxu0 %v9142_v50  ;;  %v9105_v16 = vld [vmem:[#allocation12 + $0x480] sm:$0xf] }
 0x4a5   :  { %4147 = vst [vmem:[#allocation2 + $0x30] sm:$0xff] %v4139_v51  ;;  %v3988_v9 = vadd.f32 %v3987_v53, %v3969_v10  ;;  %v12153_v6 = vor.u32 %v10056_v34, %v8493_v40  ;;  %v12155_v2 = vor.u32 %v10055_v18, %v8495_v35  ;;  %v9334_v40 = vor.u32 %v10266_v62, %v9333_v49  ;;  %v10215_v10 = vld [vmem:[#allocation12 + $0x4b8] sm:$0xf0]  ;;  %v10082_v53 = vld [vmem:[#allocation12 + $0x94] sm:$0xf] }
 0x4a6   :  { %v8618_v18 = vor.u32 %v10085_v63, %v8615_v0  ;;  %v8798_v51 = vor.u32 %v10130_v8, %v8795_v39  ;;  %v9130_v3 = vor.u32 %v10215_v10, %v9129_v27  ;;  %v9322_v34 = vor.u32 %v10263_v15, %v9321_v17  ;;  %v10257_v50 = vld [vmem:[#allocation12 + $0x608] sm:$0xf0]  ;;  %v10076_v62 = vld [vmem:[#allocation12 + $0x64] sm:$0xf]  ;;  %v10118_v15 = vld [vmem:[#allocation12 + $0x1b4] sm:$0xf] }
 0x4a7   :  { %v4007_v32 = vadd.f32 %v4006_v58, %v3988_v9  ;;  %5697 = vmatmul.bf16.gmra.mxu2 %v12153_v6  ;;  %5716 = vmatmul.bf16.gmra.mxu3 %v12155_v2  ;;  %v4094_v54 = vpop.f32.mrf.mxu0  ;;  %v4113_v21 = vpop.f32.mrf.mxu1  ;;  %v8603_v58 = vld [vmem:[#allocation12 + $0x9c] sm:$0xf0]  ;;  %v8786_v9 = vor.u32 %v10127_v20, %v8783_v59  ;;  %v4024_v63 = vadd.f32 %v12132_v43, %v12147_v61  ;;  %v10109_v27 = vld [vmem:[#allocation12 + $0x16c] sm:$0xf]  ;;  %v8711_v43 = vld [vmem:[#allocation12 + $0x174] sm:$0xf0] }
 0x4a8   :  { %5749 = vmatmul.bf16.vlgmr.msra.gmra.mxu1 %v12153_v6  ;;  %5855 = vmatpush.bf16.msrb.mxu3 %v8618_v18  ;;  %v8606_v35 = vor.u32 %v10082_v53, %v8603_v58  ;;  %v8759_v18 = vld [vmem:[#allocation12 + $0x1d4] sm:$0xf0]  ;;  %v10073_v10 = vld [vmem:[#allocation12 + $0x4c] sm:$0xf]  ;;  %v8747_v53 = vld [vmem:[#allocation12 + $0x1bc] sm:$0xf0] }
 0x4a9   :  { %v4133_v41 = vmax.f32 %v4007_v32, 0.0  ;;  %5893 = vmatpush.bf16.msra.mxu1 %v8810_v23  ;;  %5840 = vmatpush.bf16.msrb.mxu2 %v9334_v40  ;;  %v4040_v32 = vadd.f32 %v12117_v33, %v4021_v30  ;;  %v10209_v23 = vld [vmem:[#allocation12 + $0x488] sm:$0xf0]  ;;  %v8774_v33 = vor.u32 %v10124_v5, %v8771_v52  ;;  %v4043_v17 = vadd.f32 %v12134_v55, %v4024_v63  ;;  %v8903_v59 = vld [vmem:[#allocation12 + $0x2f4] sm:$0xf0] }
 0x4aa   :  { %5803 = vmatpush.bf16.msrb.mxu0 %v9130_v3  ;;  %v10121_v40 = vld [vmem:[#allocation12 + $0x1cc] sm:$0xf]  ;;  %v8567_v3 = vld [vmem:[#allocation12 + $0x54] sm:$0xf0]  ;;  %v8750_v31 = vor.u32 %v10118_v15, %v8747_v53  ;;  %v10070_v55 = vld [vmem:[#allocation12 + $0x34] sm:$0xf] }
 0x4ab   :  { %v4141_v22 = vpack.c.bf16 %v4133_v41, %v4132_v1  ;;  %v10157_v20 = vld [vmem:[#allocation12 + $0x2ec] sm:$0xf]  ;;  %v8558_v52 = vor.u32 %v10070_v55, %v8555_v36  ;;  %v8867_v53 = vld [vmem:[#allocation12 + $0x2ac] sm:$0xf0]  ;;  %v8663_v55 = vld [vmem:[#allocation12 + $0x114] sm:$0xf0] }
 0x4ac   :  { %v4056_v60 = vpop.f32.mrf.mxu2  ;;  %v4075_v11 = vpop.f32.mrf.mxu3  ;;  %5856 = vmatpush.bf16.msrb.mxu3 %v8606_v35  ;;  %v8505_v1 = vld [vmem:[#allocation2 + $0x30] sm:$0xf]  ;;  %v8570_v35 = vor.u32 %v10073_v10, %v8567_v3 }
 0x4ad   :  { %4149 = vst [vmem:[#allocation2 + $0x3c] sm:$0xff] %v4141_v22  ;;  %v4057_v44 = vadd.f32 %v4056_v60, %v4038_v38  ;;  %5894 = vmatpush.bf16.msra.mxu1 %v8798_v51  ;;  %5841 = vmatpush.bf16.msrb.mxu2 %v9322_v34  ;;  %v9106_v22 = vor.u32 %v10209_v23, %v9105_v16  ;;  %v10154_v16 = vld [vmem:[#allocation12 + $0x2d4] sm:$0xf]  ;;  %v8687_v23 = vld [vmem:[#allocation12 + $0x144] sm:$0xf0] }
 0x4ae   :  { %5804 = vmatpush.bf16.msrb.mxu0 %v9118_v4  ;;  %v8762_v51 = vor.u32 %v10121_v40, %v8759_v18  ;;  %v8699_v4 = vld [vmem:[#allocation12 + $0x15c] sm:$0xf0]  ;;  %v8675_v40 = vld [vmem:[#allocation12 + $0x12c] sm:$0xf0] }
 0x4af   :  { %v4076_v37 = vadd.f32 %v4075_v11, %v4057_v44  ;;  %v4096_v19 = vpop.f32.mrf.mxu0  ;;  %v4115_v38 = vpop.f32.mrf.mxu1  ;;  %v8579_v11 = vld [vmem:[#allocation12 + $0x6c] sm:$0xf0] }
 0x4b0   :  { %5857 = vmatpush.bf16.msrb.mxu3 %v8594_v25  ;;  %v8582_v44 = vor.u32 %v10076_v62, %v8579_v11  ;;  %v8879_v62 = vld [vmem:[#allocation12 + $0x2c4] sm:$0xf0]  ;;  %v10100_v11 = vld [vmem:[#allocation12 + $0x124] sm:$0xf] }
 0x4b1   :  { %v4095_v29 = vadd.f32 %v4094_v54, %v4076_v37  ;;  %5895 = vmatpush.bf16.msra.mxu1 %v8786_v9  ;;  %v9310_v54 = vor.u32 %v10260_v46, %v9309_v56  ;;  %v8714_v37 = vor.u32 %v10109_v27, %v8711_v43  ;;  %v8906_v56 = vor.u32 %v10157_v20, %v8903_v59 }
 0x4b2   :  { %5805 = vmatpush.bf16.msrb.mxu0 %v9106_v22  ;;  %v8543_v22 = vld [vmem:[#allocation12 + $0x24] sm:$0xf0]  ;;  %v8678_v43 = vor.u32 %v10100_v11, %v8675_v40  ;;  %v10139_v11 = vld [vmem:[#allocation12 + $0x25c] sm:$0xf] }
 0x4b3   :  { %v4114_v24 = vadd.f32 %v4113_v21, %v4095_v29  ;;  %v9297_v21 = vld [vmem:[#allocation12 + $0x600] sm:$0xf]  ;;  %5842 = vmatpush.bf16.msrb.mxu2 %v9310_v54  ;;  %v10106_v29 = vld [vmem:[#allocation12 + $0x154] sm:$0xf] }
 0x4b4   :  { %v4058_v13 = vpop.f32.mrf.mxu2  ;;  %v4077_v7 = vpop.f32.mrf.mxu3  ;;  %v10059_v41 = vld [vmem:[#allocation2 + $0x38] sm:$0xf0]  ;;  %v9298_v8 = vor.u32 %v10257_v50, %v9297_v21  ;;  %5858 = vmatpush.bf16.msrb.mxu3 %v8582_v44  ;;  %v8702_v47 = vor.u32 %v10106_v29, %v8699_v4  ;;  %v8723_v21 = vld [vmem:[#allocation12 + $0x18c] sm:$0xf0]  ;;  %v10097_v4 = vld [vmem:[#allocation12 + $0x10c] sm:$0xf] }
 0x4b5   :  { %v4125_v26 = vmax.f32 %v4114_v24, 0.0  ;;  %v4059_v14 = vadd.f32 %v4058_v13, %v4040_v32  ;;  %v12166_v49 = vor.u32 %v10059_v41, %v8505_v1  ;;  %5896 = vmatpush.bf16.msra.mxu1 %v8774_v33  ;;  %v10115_v32 = vld [vmem:[#allocation12 + $0x19c] sm:$0xf]  ;;  %v8735_v24 = vld [vmem:[#allocation12 + $0x1a4] sm:$0xf0]  ;;  %v8666_v36 = vor.u32 %v10097_v4, %v8663_v55 }
 0x4b6   :  { %5874 = vmatpush.bf16.msra.mxu0 %v8714_v37  ;;  %v8891_v13 = vld [vmem:[#allocation12 + $0x2dc] sm:$0xf0]  ;;  %v8738_v33 = vor.u32 %v10115_v32, %v8735_v24  ;;  %v10151_v50 = vld [vmem:[#allocation12 + $0x2bc] sm:$0xf]  ;;  %v8855_v32 = vld [vmem:[#allocation12 + $0x294] sm:$0xf0] }
 0x4b7   :  { %v4136_v0 = vpack.c.bf16 %v4125_v26, %v4125_v26  ;;  %v4078_v60 = vadd.f32 %v4077_v7, %v4059_v14  ;;  %5768 = vmatmul.bf16.vlgmr.msra.gmra.mxu2 %v12155_v2  ;;  %v4099_v46 = vpop.f32.mrf.mxu0  ;;  %v10103_v7 = vld [vmem:[#allocation12 + $0x13c] sm:$0xf]  ;;  %v4118_v1 = vpop.f32.mrf.mxu1  ;;  %v8507_v41 = vld [vmem:[#allocation2 + $0x3c] sm:$0xf0]  ;;  %v8894_v54 = vor.u32 %v10154_v16, %v8891_v13  ;;  %v8882_v44 = vor.u32 %v10151_v50, %v8879_v62  ;;  %v10181_v24 = vld [vmem:[#allocation12 + $0x3ac] sm:$0xf] }
 0x4b8   :  { %5754 = vmatmul.bf16.gmra.mxu1 %v12166_v49  ;;  %5843 = vmatpush.bf16.msrb.mxu2 %v9298_v8  ;;  %v10067_v26 = vld [vmem:[#allocation12 + $0x1c] sm:$0xf]  ;;  %v9179_v16 = vld [vmem:[#allocation12 + $0x51c] sm:$0xf0]  ;;  %v10094_v13 = vld [vmem:[#allocation12 + $0xf4] sm:$0xf] }
 0x4b9   :  { %4144 = vst [vmem:[#allocation2 + $0x20] sm:$0xf] %v4136_v0  ;;  %v4097_v39 = vadd.f32 %v4096_v19, %v4078_v60  ;;  %5897 = vmatpush.bf16.msra.mxu1 %v8762_v51  ;;  %5859 = vmatpush.bf16.msrb.mxu3 %v8570_v35  ;;  %v4026_v19 = vadd.f32 %v12143_v28, %v12147_v61  ;;  %v10112_v28 = vld [vmem:[#allocation12 + $0x184] sm:$0xf]  ;;  %v10058_v60 = vld [vmem:[#allocation2 + $0x34] sm:$0xf] }
 0x4ba   :  { %5875 = vmatpush.bf16.msra.mxu0 %v8702_v47  ;;  %v8546_v61 = vor.u32 %v10067_v26, %v8543_v22  ;;  %v12176_v8 = vor.u32 %v10058_v60, %v8507_v41  ;;  %v8726_v27 = vor.u32 %v10112_v28, %v8723_v21  ;;  %v8651_v41 = vld [vmem:[#allocation12 + $0xfc] sm:$0xf0]  ;;  %v10061_v22 = vld [vmem:[#allocation2 + $0x4c] sm:$0xf]  ;;  %v9167_v21 = vld [vmem:[#allocation12 + $0x504] sm:$0xf0] }
 0x4bb   :  { %v4116_v30 = vadd.f32 %v4115_v38, %v4097_v39  ;;  %v8690_v38 = vor.u32 %v10103_v7, %v8687_v23  ;;  %v4045_v63 = vadd.f32 %v12149_v57, %v4026_v19  ;;  %v10148_v57 = vld [vmem:[#allocation12 + $0x2a4] sm:$0xf]  ;;  %v8999_v19 = vld [vmem:[#allocation12 + $0x3b4] sm:$0xf0]  ;;  %v8654_v23 = vor.u32 %v10094_v13, %v8651_v41  ;;  %v8843_v26 = vld [vmem:[#allocation12 + $0x27c] sm:$0xf0] }
 0x4bc   :  { %v4061_v58 = vpop.f32.mrf.mxu2  ;;  %v4080_v34 = vpop.f32.mrf.mxu3  ;;  %5912 = vmatpush.bf16.msra.mxu2 %v8906_v56  ;;  %v8870_v29 = vor.u32 %v10148_v57, %v8867_v53  ;;  %v10091_v50 = vld [vmem:[#allocation12 + $0xdc] sm:$0xf]  ;;  %v8519_v62 = vld [vmem:[#allocation2 + $0x54] sm:$0xf0]  ;;  %v8639_v60 = vld [vmem:[#allocation12 + $0xe4] sm:$0xf0] }
 0x4bd   :  { %v4128_v9 = vmax.f32 %v4116_v30, 0.0  ;;  %v4062_v12 = vadd.f32 %v4061_v58, %v4043_v17  ;;  %5898 = vmatpush.bf16.msra.mxu1 %v8750_v31  ;;  %5860 = vmatpush.bf16.msrb.mxu3 %v8558_v52  ;;  %v10064_v17 = vld [vmem:[#allocation12 + $0x4] sm:$0xf]  ;;  %v8531_v30 = vld [vmem:[#allocation12 + $0xc] sm:$0xf0]  ;;  %v8642_v40 = vor.u32 %v10091_v50, %v8639_v60  ;;  %v12184_v57 = vor.u32 %v10061_v22, %v8519_v62 }
 0x4be   :  { %5876 = vmatpush.bf16.msra.mxu0 %v8690_v38  ;;  %v8534_v15 = vor.u32 %v10064_v17, %v8531_v30  ;;  %v10229_v58 = vld [vmem:[#allocation12 + $0x52c] sm:$0xf]  ;;  %v10226_v52 = vld [vmem:[#allocation12 + $0x514] sm:$0xf]  ;;  %v10088_v17 = vld [vmem:[#allocation12 + $0xc4] sm:$0xf] }
 0x4bf   :  { %v4138_v25 = vpack.c.bf16 %v4128_v9, %v4128_v9  ;;  %v4081_v5 = vadd.f32 %v4080_v34, %v4062_v12  ;;  %v9191_v34 = vld [vmem:[#allocation12 + $0x534] sm:$0xf0]  ;;  %v4101_v35 = vpop.f32.mrf.mxu0  ;;  %v4120_v56 = vpop.f32.mrf.mxu1  ;;  %v8627_v30 = vld [vmem:[#allocation12 + $0xcc] sm:$0xf0]  ;;  %v10205_v55 = vld [vmem:[#allocation12 + $0x46c] sm:$0xf] }
 0x4c0   :  { %5913 = vmatpush.bf16.msra.mxu2 %v8894_v54  ;;  %v8501_v20 = vld [vmem:[#allocation2 + $0x20] sm:$0xf]  ;;  %v9194_v9 = vor.u32 %v10229_v58, %v9191_v34  ;;  %v10142_v54 = vld [vmem:[#allocation12 + $0x274] sm:$0xf]  ;;  %v8819_v53 = vld [vmem:[#allocation12 + $0x24c] sm:$0xf0] }
 0x4c1   :  { %4146 = vst [vmem:[#allocation2 + $0x2c] sm:$0xf] %v4138_v25  ;;  %v4100_v14 = vadd.f32 %v4099_v46, %v4081_v5  ;;  %5899 = vmatpush.bf16.msra.mxu1 %v8738_v33  ;;  %5861 = vmatpush.bf16.msrb.mxu3 %v8546_v61  ;;  %v10145_v46 = vld [vmem:[#allocation12 + $0x28c] sm:$0xf]  ;;  %v9002_v5 = vor.u32 %v10181_v24, %v8999_v19  ;;  %v8987_v33 = vld [vmem:[#allocation12 + $0x39c] sm:$0xf0] }
 0x4c2   :  { %5877 = vmatpush.bf16.msra.mxu0 %v8678_v43  ;;  %v8858_v25 = vor.u32 %v10145_v46, %v8855_v32  ;;  %v10223_v61 = vld [vmem:[#allocation12 + $0x4fc] sm:$0xf]  ;;  %v10172_v58 = vld [vmem:[#allocation12 + $0x364] sm:$0xf]  ;;  %v8963_v34 = vld [vmem:[#allocation12 + $0x36c] sm:$0xf0] }
 0x4c3   :  { %v4119_v0 = vadd.f32 %v4118_v1, %v4100_v14  ;;  %v9182_v1 = vor.u32 %v10226_v52, %v9179_v16  ;;  %v10178_v14 = vld [vmem:[#allocation12 + $0x394] sm:$0xf]  ;;  %v9095_v46 = vld [vmem:[#allocation12 + $0x474] sm:$0xf0]  ;;  %v9131_v19 = vld [vmem:[#allocation12 + $0x4bc] sm:$0xf0] }
 0x4c4   :  { %v4063_v18 = vpop.f32.mrf.mxu2  ;;  %v4082_v10 = vpop.f32.mrf.mxu3  ;;  %5914 = vmatpush.bf16.msra.mxu2 %v8882_v44  ;;  %v8990_v28 = vor.u32 %v10178_v14, %v8987_v33  ;;  %v10175_v44 = vld [vmem:[#allocation12 + $0x37c] sm:$0xf]  ;;  %v8951_v32 = vld [vmem:[#allocation12 + $0x354] sm:$0xf0]  ;;  %v10214_v24 = vld [vmem:[#allocation12 + $0x4b4] sm:$0xf] }
 0x4c5   :  { %v4131_v39 = vmax.f32 %v4119_v0, 0.0  ;;  %v4064_v51 = vadd.f32 %v4063_v18, %v4045_v63  ;;  %5900 = vmatpush.bf16.msra.mxu1 %v8726_v27  ;;  %5862 = vmatpush.bf16.msrb.mxu3 %v8534_v15  ;;  %v8846_v63 = vor.u32 %v10142_v54, %v8843_v26  ;;  %v9170_v0 = vor.u32 %v10223_v61, %v9167_v21  ;;  %v8831_v18 = vld [vmem:[#allocation12 + $0x264] sm:$0xf0]  ;;  %v9155_v27 = vld [vmem:[#allocation12 + $0x4ec] sm:$0xf0] }
 0x4c6   :  { %5878 = vmatpush.bf16.msra.mxu0 %v8666_v36  ;;  %v10136_v15 = vld [vmem:[#allocation12 + $0x244] sm:$0xf]  ;;  %v9098_v36 = vor.u32 %v10205_v55, %v9095_v46  ;;  %v10253_v52 = vld [vmem:[#allocation12 + $0x5ec] sm:$0xf]  ;;  %v9287_v16 = vld [vmem:[#allocation12 + $0x5f4] sm:$0xf0] }
 0x4c7   :  { %v4140_v37 = vpack.c.bf16 %v4131_v39, %v4131_v39  ;;  %v4083_v3 = vadd.f32 %v4082_v10, %v4064_v51  ;;  %5773 = vmatmul.bf16.gmra.mxu2 %v12176_v8  ;;  %v8975_v39 = vld [vmem:[#allocation12 + $0x384] sm:$0xf0]  ;;  %v10220_v51 = vld [vmem:[#allocation12 + $0x4e4] sm:$0xf]  ;;  %v8822_v4 = vor.u32 %v10136_v15, %v8819_v53  ;;  %v10202_v13 = vld [vmem:[#allocation12 + $0x454] sm:$0xf] }
 0x4c8   :  { %5825 = vmatmul.bf16.vlgmr.msrb.gmra.mxu1 %v12176_v8  ;;  %v10057_v59 = vld [vmem:[#allocation2 + $0x28] sm:$0xf0]  ;;  %5915 = vmatpush.bf16.msra.mxu2 %v8870_v29  ;;  %v8978_v43 = vor.u32 %v10175_v44, %v8975_v39  ;;  %v9158_v10 = vor.u32 %v10220_v51, %v9155_v27  ;;  %v10166_v41 = vld [vmem:[#allocation12 + $0x334] sm:$0xf]  ;;  %v8939_v54 = vld [vmem:[#allocation12 + $0x33c] sm:$0xf0] }
 0x4c9   :  { %4148 = vst [vmem:[#allocation2 + $0x38] sm:$0xf] %v4140_v37  ;;  %v4102_v12 = vadd.f32 %v4101_v35, %v4083_v3  ;;  %v12180_v31 = vor.u32 %v10057_v59, %v8501_v20  ;;  %5969 = vmatpush.bf16.msrb.mxu1 %v9194_v9  ;;  %v8834_v37 = vor.u32 %v10139_v11, %v8831_v18  ;;  %v10217_v35 = vld [vmem:[#allocation12 + $0x4cc] sm:$0xf]  ;;  %v9143_v20 = vld [vmem:[#allocation12 + $0x4d4] sm:$0xf0] }
 0x4ca   :  { %5879 = vmatpush.bf16.msra.mxu0 %v8654_v23  ;;  %v8630_v3 = vor.u32 %v10088_v17, %v8627_v30  ;;  %v8966_v9 = vor.u32 %v10172_v58, %v8963_v34  ;;  %v8942_v26 = vor.u32 %v10166_v41, %v8939_v54  ;;  %v10211_v14 = vld [vmem:[#allocation12 + $0x49c] sm:$0xf]  ;;  %v9119_v33 = vld [vmem:[#allocation12 + $0x4a4] sm:$0xf0]  ;;  %v9275_v22 = vld [vmem:[#allocation12 + $0x5dc] sm:$0xf0] }
 0x4cb   :  { %v4121_v47 = vadd.f32 %v4120_v56, %v4102_v12  ;;  %5735 = vmatmul.bf16.gmra.mxu0 %v12180_v31  ;;  %5787 = vmatmul.bf16.vlgmr.msra.gmra.mxu3 %v12180_v31  ;;  %v9146_v12 = vor.u32 %v10217_v35, %v9143_v20  ;;  %v9071_v61 = vld [vmem:[#allocation12 + $0x444] sm:$0xf0]  ;;  %v9122_v21 = vor.u32 %v10211_v14, %v9119_v33  ;;  %v10163_v62 = vld [vmem:[#allocation12 + $0x31c] sm:$0xf]  ;;  %v10208_v60 = vld [vmem:[#allocation12 + $0x484] sm:$0xf] }
 0x4cc   :  { %5931 = vmatpush.bf16.msra.mxu3 %v9002_v5  ;;  %5916 = vmatpush.bf16.msra.mxu2 %v8858_v25  ;;  %v9134_v5 = vor.u32 %v10214_v24, %v9131_v19  ;;  %v10247_v11 = vld [vmem:[#allocation12 + $0x5bc] sm:$0xf]  ;;  %v9107_v44 = vld [vmem:[#allocation12 + $0x48c] sm:$0xf0]  ;;  %v10196_v39 = vld [vmem:[#allocation12 + $0x424] sm:$0xf] }
 0x4cd   :  { %v4134_v7 = vmax.f32 %v4121_v47, 0.0  ;;  %5970 = vmatpush.bf16.msrb.mxu1 %v9182_v1  ;;  %v10169_v47 = vld [vmem:[#allocation12 + $0x34c] sm:$0xf]  ;;  %v9083_v1 = vld [vmem:[#allocation12 + $0x45c] sm:$0xf0] }
 0x4ce   :  { %5880 = vmatpush.bf16.msra.mxu0 %v8642_v40  ;;  %v8954_v25 = vor.u32 %v10169_v47, %v8951_v32  ;;  %v9086_v23 = vor.u32 %v10202_v13, %v9083_v1  ;;  %v9263_v40 = vld [vmem:[#allocation12 + $0x5c4] sm:$0xf0]  ;;  %v9059_v51 = vld [vmem:[#allocation12 + $0x42c] sm:$0xf0]  ;;  %v10063_v30 = vld [vmem:[#allocation2 + $0x58] sm:$0xf0] }
 0x4cf   :  { %v4142_v38 = vpack.c.bf16 %v4134_v7, %v4134_v7  ;;  %v9290_v7 = vor.u32 %v10253_v52, %v9287_v16  ;;  %v9266_v27 = vor.u32 %v10247_v11, %v9263_v40  ;;  %v8525_v17 = vld [vmem:[#allocation2 + $0x50] sm:$0xf]  ;;  %v10160_v15 = vld [vmem:[#allocation12 + $0x304] sm:$0xf]  ;;  %v10193_v55 = vld [vmem:[#allocation12 + $0x40c] sm:$0xf] }
 0x4d0   :  { %5932 = vmatpush.bf16.msra.mxu3 %v8990_v28  ;;  %5917 = vmatpush.bf16.msra.mxu2 %v8846_v63  ;;  %v8513_v59 = vld [vmem:[#allocation2 + $0x38] sm:$0xf]  ;;  %v10199_v28 = vld [vmem:[#allocation12 + $0x43c] sm:$0xf]  ;;  %v8927_v63 = vld [vmem:[#allocation12 + $0x324] sm:$0xf0] }
 0x4d1   :  { %4150 = vst [vmem:[#allocation2 + $0x44] sm:$0xf] %v4142_v38  ;;  %5971 = vmatpush.bf16.msrb.mxu1 %v9170_v0  ;;  %v10250_v38 = vld [vmem:[#allocation12 + $0x5d4] sm:$0xf]  ;;  %v9074_v0 = vor.u32 %v10199_v28, %v9071_v61  ;;  %v8930_v18 = vor.u32 %v10163_v62, %v8927_v63  ;;  %v8915_v53 = vld [vmem:[#allocation12 + $0x30c] sm:$0xf0] }
 0x4d2   :  { %5881 = vmatpush.bf16.msra.mxu0 %v8630_v3  ;;  %v9278_v50 = vor.u32 %v10250_v38, %v9275_v22  ;;  %v9062_v3 = vor.u32 %v10196_v39, %v9059_v51  ;;  %v10244_v58 = vld [vmem:[#allocation12 + $0x5a4] sm:$0xf]  ;;  %v8918_v35 = vor.u32 %v10160_v15, %v8915_v53  ;;  %v9251_v20 = vld [vmem:[#allocation12 + $0x5ac] sm:$0xf0]  ;;  %v9047_v46 = vld [vmem:[#allocation12 + $0x414] sm:$0xf0] }
 0x4d3   :  { %v10241_v47 = vld [vmem:[#allocation12 + $0x58c] sm:$0xf]  ;;  %v9239_v32 = vld [vmem:[#allocation12 + $0x594] sm:$0xf0]  ;;  %v10108_v52 = vld [vmem:[#allocation12 + $0x160] sm:$0xf0] }
 0x4d4   :  { %5933 = vmatpush.bf16.msra.mxu3 %v8978_v43  ;;  %5918 = vmatpush.bf16.msra.mxu2 %v8834_v37  ;;  %v8517_v43 = vld [vmem:[#allocation2 + $0x48] sm:$0xf]  ;;  %v9110_v37 = vor.u32 %v10208_v60, %v9107_v44  ;;  %v10277_v24 = vld [vmem:[#allocation12 + $0x6ac] sm:$0xf]  ;;  %v9383_v19 = vld [vmem:[#allocation12 + $0x6b4] sm:$0xf0]  ;;  %v9242_v13 = vor.u32 %v10241_v47, %v9239_v32 }
 0x4d5   :  { %5972 = vmatpush.bf16.msrb.mxu1 %v9158_v10  ;;  %v10062_v10 = vld [vmem:[#allocation2 + $0x50] sm:$0xf0]  ;;  %v9035_v1 = vld [vmem:[#allocation12 + $0x3fc] sm:$0xf0]  ;;  %v10105_v22 = vld [vmem:[#allocation12 + $0x148] sm:$0xf0] }
 0x4d6   :  { %v12192_v34 = vor.u32 %v10062_v10, %v8517_v43  ;;  %v10190_v16 = vld [vmem:[#allocation12 + $0x3f4] sm:$0xf]  ;;  %v9227_v54 = vld [vmem:[#allocation12 + $0x57c] sm:$0xf0]  ;;  %v10187_v28 = vld [vmem:[#allocation12 + $0x3dc] sm:$0xf] }
 0x4d7   :  { %v10238_v41 = vld [vmem:[#allocation12 + $0x574] sm:$0xf]  ;;  %v9371_v14 = vld [vmem:[#allocation12 + $0x69c] sm:$0xf0]  ;;  %v9023_v61 = vld [vmem:[#allocation12 + $0x3e4] sm:$0xf0] }
 0x4d8   :  { %5830 = vmatmul.bf16.gmra.mxu1 %v12184_v57  ;;  %v10060_v29 = vld [vmem:[#allocation2 + $0x40] sm:$0xf0]  ;;  %5934 = vmatpush.bf16.msra.mxu3 %v8966_v9  ;;  %v12195_v9 = vor.u32 %v10063_v30, %v8525_v17  ;;  %v8693_v33 = vld [vmem:[#allocation12 + $0x140] sm:$0xf]  ;;  %v10271_v62 = vld [vmem:[#allocation12 + $0x67c] sm:$0xf]  ;;  %v9230_v63 = vor.u32 %v10238_v41, %v9227_v54 }
 0x4d9   :  { %v12187_v56 = vor.u32 %v10060_v29, %v8513_v59  ;;  %5973 = vmatpush.bf16.msrb.mxu1 %v9146_v12  ;;  %5919 = vmatpush.bf16.msra.mxu2 %v8822_v4  ;;  %v8717_v59 = vld [vmem:[#allocation12 + $0x170] sm:$0xf]  ;;  %v10111_v29 = vld [vmem:[#allocation12 + $0x178] sm:$0xf0]  ;;  %v9254_v4 = vor.u32 %v10244_v58, %v9251_v20  ;;  %v9359_v60 = vld [vmem:[#allocation12 + $0x684] sm:$0xf0] }
 0x4da   :  { %v8718_v12 = vor.u32 %v10111_v29, %v8717_v59  ;;  %v8681_v11 = vld [vmem:[#allocation12 + $0x128] sm:$0xf]  ;;  %v10102_v40 = vld [vmem:[#allocation12 + $0x130] sm:$0xf0]  ;;  %v9362_v44 = vor.u32 %v10271_v62, %v9359_v60  ;;  %v10184_v39 = vld [vmem:[#allocation12 + $0x3c4] sm:$0xf] }
 0x4db   :  { %5792 = vmatmul.bf16.gmra.mxu3 %v12187_v56  ;;  %5806 = vmatmul.bf16.vlgmr.msrb.gmra.mxu0 %v12166_v49  ;;  %v9011_v51 = vld [vmem:[#allocation12 + $0x3cc] sm:$0xf0]  ;;  %v10232_v17 = vld [vmem:[#allocation12 + $0x544] sm:$0xf]  ;;  %v10099_v53 = vld [vmem:[#allocation12 + $0x118] sm:$0xf0] }
 0x4dc   :  { %5844 = vmatmul.bf16.vlgmr.msrb.gmra.mxu2 %v12187_v56  ;;  %5950 = vmatpush.bf16.msrb.mxu0 %v9098_v36  ;;  %v9050_v36 = vor.u32 %v10193_v55, %v9047_v46  ;;  %v9014_v10 = vor.u32 %v10184_v39, %v9011_v51  ;;  %v9203_v30 = vld [vmem:[#allocation12 + $0x54c] sm:$0xf0]  ;;  %v12204_v20 = vld [vmem:[%s12543_s12] sm:$0x7]  ;;  %v10265_v55 = vld [vmem:[#allocation12 + $0x64c] sm:$0xf]  ;;  %v5693_v46 = vpop.f32.mrf.mxu2 }
 0x4dd   :  { %5935 = vmatpush.bf16.msra.mxu3 %v8954_v25  ;;  %5988 = vmatpush.bf16.msrb.mxu2 %v9290_v7  ;;  %v9386_v25 = vor.u32 %v10277_v24, %v9383_v19  ;;  %v8669_v15 = vld [vmem:[#allocation12 + $0x110] sm:$0xf]  ;;  %v9206_v59 = vor.u32 %v10232_v17, %v9203_v30  ;;  %v12207_v29 = vperm.slane %v12204_v20, 0  ;;  %v8657_v32 = vld [vmem:[#allocation12 + $0xf8] sm:$0xf] }
 0x4de   :  { %5974 = vmatpush.bf16.msrb.mxu1 %v9134_v5  ;;  %v8705_v5 = vld [vmem:[#allocation12 + $0x158] sm:$0xf]  ;;  %v10096_v24 = vld [vmem:[#allocation12 + $0x100] sm:$0xf0]  ;;  %v10262_v54 = vld [vmem:[#allocation12 + $0x634] sm:$0xf] }
 0x4df   :  { %v8706_v7 = vor.u32 %v10108_v52, %v8705_v5  ;;  %v5694_v19 = vadd.f32 %v5693_v46, %v12207_v29  ;;  %v8658_v5 = vor.u32 %v10096_v24, %v8657_v32  ;;  %v8813_v52 = vld [vmem:[#allocation12 + $0x230] sm:$0xf]  ;;  %v10084_v41 = vld [vmem:[#allocation12 + $0xa0] sm:$0xf0]  ;;  %v10259_v60 = vld [vmem:[#allocation12 + $0x61c] sm:$0xf] }
 0x4e0   :  { %5951 = vmatpush.bf16.msrb.mxu0 %v9086_v23  ;;  %v9038_v23 = vor.u32 %v10190_v16, %v9035_v1  ;;  %v10135_v16 = vld [vmem:[#allocation12 + $0x238] sm:$0xf0]  ;;  %v8789_v39 = vld [vmem:[#allocation12 + $0x200] sm:$0xf]  ;;  %v10129_v51 = vld [vmem:[#allocation12 + $0x208] sm:$0xf0] }
 0x4e1   :  { %5936 = vmatpush.bf16.msra.mxu3 %v8942_v26  ;;  %5989 = vmatpush.bf16.msrb.mxu2 %v9278_v50  ;;  %v10274_v26 = vld [vmem:[#allocation12 + $0x694] sm:$0xf]  ;;  %v10235_v50 = vld [vmem:[#allocation12 + $0x55c] sm:$0xf]  ;;  %v8814_v1 = vor.u32 %v10135_v16, %v8813_v52  ;;  %v8585_v30 = vld [vmem:[#allocation12 + $0x68] sm:$0xf] }
 0x4e2   :  { %5975 = vmatpush.bf16.msrb.mxu1 %v9122_v21  ;;  %v9374_v38 = vor.u32 %v10274_v26, %v9371_v14  ;;  %v8694_v21 = vor.u32 %v10105_v22, %v8693_v33  ;;  %v10093_v22 = vld [vmem:[#allocation12 + $0xe8] sm:$0xf0]  ;;  %v8765_v32 = vld [vmem:[#allocation12 + $0x1d0] sm:$0xf]  ;;  %v9089_v16 = vld [vmem:[#allocation12 + $0x458] sm:$0xf] }
 0x4e4   :  { %5952 = vmatpush.bf16.msrb.mxu0 %v9074_v0  ;;  %v9026_v0 = vor.u32 %v10187_v28, %v9023_v61  ;;  %v8801_v28 = vld [vmem:[#allocation12 + $0x218] sm:$0xf]  ;;  %v10132_v61 = vld [vmem:[#allocation12 + $0x220] sm:$0xf0] }
 0x4e5   :  { %5937 = vmatpush.bf16.msra.mxu3 %v8930_v18  ;;  %5990 = vmatpush.bf16.msrb.mxu2 %v9266_v27  ;;  %v9215_v18 = vld [vmem:[#allocation12 + $0x564] sm:$0xf0]  ;;  %v8682_v27 = vor.u32 %v10102_v40, %v8681_v11 }
 0x4e6   :  { %5976 = vmatpush.bf16.msrb.mxu1 %v9110_v37  ;;  %v9218_v43 = vor.u32 %v10235_v50, %v9215_v18  ;;  %v10268_v37 = vld [vmem:[#allocation12 + $0x664] sm:$0xf]  ;;  %v10081_v50 = vld [vmem:[#allocation12 + $0x88] sm:$0xf0]  ;;  %v9311_v11 = vld [vmem:[#allocation12 + $0x624] sm:$0xf0] }
 0x4e7   :  { %v8633_v40 = vld [vmem:[#allocation12 + $0xc8] sm:$0xf]  ;;  %v9314_v18 = vor.u32 %v10259_v60, %v9311_v11  ;;  %v10117_v11 = vld [vmem:[#allocation12 + $0x1a8] sm:$0xf0] }
 0x4e8   :  { %5901 = vmatmul.bf16.vlgmr.msra.gmra.mxu1 %v12094_v48  ;;  %5953 = vmatpush.bf16.msrb.mxu0 %v9062_v3  ;;  %v9347_v3 = vld [vmem:[#allocation12 + $0x66c] sm:$0xf0] }
 0x4e9   :  { %5938 = vmatpush.bf16.msra.mxu3 %v8918_v35  ;;  %5991 = vmatpush.bf16.msrb.mxu2 %v9254_v4  ;;  %v9350_v58 = vor.u32 %v10268_v37, %v9347_v3  ;;  %v8670_v35 = vor.u32 %v10099_v53, %v8669_v15  ;;  %v10087_v4 = vld [vmem:[#allocation12 + $0xb8] sm:$0xf0]  ;;  %v10078_v37 = vld [vmem:[#allocation12 + $0x70] sm:$0xf0]  ;;  %v10256_v3 = vld [vmem:[#allocation12 + $0x604] sm:$0xf] }
 0x4ea   :  { %6045 = vmatpush.bf16.msra.mxu1 %v8718_v12  ;;  %v8621_v12 = vld [vmem:[#allocation12 + $0xb0] sm:$0xf]  ;;  %v8586_v15 = vor.u32 %v10078_v37, %v8585_v30  ;;  %v10066_v30 = vld [vmem:[#allocation12 + $0x10] sm:$0xf0] }
 0x4eb   :  { %5811 = vmatmul.bf16.gmra.mxu0 %v12192_v34  ;;  %5863 = vmatmul.bf16.vlgmr.msrb.gmra.mxu3 %v12062_v42  ;;  %v8622_v47 = vor.u32 %v10087_v4, %v8621_v12  ;;  %v9299_v53 = vld [vmem:[#allocation12 + $0x60c] sm:$0xf0]  ;;  %v10207_v4 = vld [vmem:[#allocation12 + $0x478] sm:$0xf0] }
 0x4ec   :  { %5849 = vmatmul.bf16.gmra.mxu2 %v12195_v9  ;;  %5954 = vmatpush.bf16.msrb.mxu0 %v9050_v36  ;;  %v9335_v36 = vld [vmem:[#allocation12 + $0x654] sm:$0xf0]  ;;  %v9101_v12 = vld [vmem:[#allocation12 + $0x470] sm:$0xf] }
 0x4ed   :  { %6007 = vmatpush.bf16.msrb.mxu3 %v9386_v25  ;;  %5992 = vmatpush.bf16.msrb.mxu2 %v9242_v13  ;;  %v9338_v25 = vor.u32 %v10265_v55, %v9335_v36  ;;  %v8609_v13 = vld [vmem:[#allocation12 + $0x98] sm:$0xf]  ;;  %v9102_v46 = vor.u32 %v10207_v4, %v9101_v12  ;;  %v10075_v36 = vld [vmem:[#allocation12 + $0x58] sm:$0xf0] }
 0x4ee   :  { %6046 = vmatpush.bf16.msra.mxu1 %v8706_v7  ;;  %v5712_v7 = vpop.f32.mrf.mxu3  ;;  %v8610_v14 = vor.u32 %v10084_v41, %v8609_v13  ;;  %v10204_v13 = vld [vmem:[#allocation12 + $0x460] sm:$0xf0]  ;;  %v8561_v41 = vld [vmem:[#allocation12 + $0x38] sm:$0xf] }
 0x4ef   :  { %v5713_v26 = vadd.f32 %v5712_v7, %v5694_v19  ;;  %v10123_v19 = vld [vmem:[#allocation12 + $0x1d8] sm:$0xf0] }
 0x4f0   :  { %5955 = vmatpush.bf16.msrb.mxu0 %v9038_v23  ;;  %v9323_v23 = vld [vmem:[#allocation12 + $0x63c] sm:$0xf0]  ;;  %v8766_v7 = vor.u32 %v10123_v19, %v8765_v32  ;;  %v9041_v19 = vld [vmem:[#allocation12 + $0x3f8] sm:$0xf] }
 0x4f1   :  { %6008 = vmatpush.bf16.msrb.mxu3 %v9374_v38  ;;  %5993 = vmatpush.bf16.msrb.mxu2 %v9230_v63  ;;  %v9326_v33 = vor.u32 %v10262_v54, %v9323_v23  ;;  %v8645_v38 = vld [vmem:[#allocation12 + $0xe0] sm:$0xf]  ;;  %v8802_v63 = vor.u32 %v10132_v61, %v8801_v28  ;;  %v10072_v54 = vld [vmem:[#allocation12 + $0x40] sm:$0xf0]  ;;  %v8753_v23 = vld [vmem:[#allocation12 + $0x1b8] sm:$0xf] }
 0x4f2   :  { %6047 = vmatpush.bf16.msra.mxu1 %v8694_v21  ;;  %v8597_v21 = vld [vmem:[#allocation12 + $0x80] sm:$0xf]  ;;  %v8646_v62 = vor.u32 %v10093_v22, %v8645_v38  ;;  %v10156_v38 = vld [vmem:[#allocation12 + $0x2e0] sm:$0xf0]  ;;  %v10201_v61 = vld [vmem:[#allocation12 + $0x448] sm:$0xf0] }
 0x4f3   :  { %v9077_v28 = vld [vmem:[#allocation12 + $0x440] sm:$0xf] }
 0x4f4   :  { %5956 = vmatpush.bf16.msrb.mxu0 %v9026_v0  ;;  %v8598_v0 = vor.u32 %v10081_v50, %v8597_v21  ;;  %v9078_v50 = vor.u32 %v10201_v61, %v9077_v28  ;;  %v10228_v28 = vld [vmem:[#allocation12 + $0x520] sm:$0xf0]  ;;  %v12223_v61 = vpop.f32.mrf.mxu2 }
 0x4f5   :  { %6009 = vmatpush.bf16.msrb.mxu3 %v9362_v44  ;;  %5994 = vmatpush.bf16.msrb.mxu2 %v9218_v43  ;;  %v10090_v44 = vld [vmem:[#allocation12 + $0xd0] sm:$0xf0]  ;;  %v8790_v43 = vor.u32 %v10129_v51, %v8789_v39  ;;  %v9065_v39 = vld [vmem:[#allocation12 + $0x428] sm:$0xf] }
 0x4f6   :  { %6048 = vmatpush.bf16.msra.mxu1 %v8682_v27  ;;  %v5731_v27 = vpop.f32.mrf.mxu0  ;;  %v8634_v17 = vor.u32 %v10090_v44, %v8633_v40  ;;  %v8885_v40 = vld [vmem:[#allocation12 + $0x2c0] sm:$0xf]  ;;  %v10198_v51 = vld [vmem:[#allocation12 + $0x430] sm:$0xf0] }
 0x4f8   :  { %5906 = vmatmul.bf16.gmra.mxu1 %v12180_v31  ;;  %5957 = vmatpush.bf16.msrb.mxu0 %v9014_v10  ;;  %v12213_v10 = vadd.f32 %v5731_v27, %v5713_v26  ;;  %v8562_v26 = vor.u32 %v10072_v54, %v8561_v41  ;;  %v10180_v41 = vld [vmem:[#allocation12 + $0x3a0] sm:$0xf0]  ;;  %v8849_v54 = vld [vmem:[#allocation12 + $0x278] sm:$0xf] }
 0x4f9   :  { %6010 = vmatpush.bf16.msrb.mxu3 %v9350_v58  ;;  %5995 = vmatpush.bf16.msrb.mxu2 %v9206_v59  ;;  %v8777_v58 = vld [vmem:[#allocation12 + $0x1e8] sm:$0xf]  ;;  %v9302_v59 = vor.u32 %v10256_v3, %v9299_v53 }
 0x4fa   :  { %6049 = vmatpush.bf16.msra.mxu1 %v8670_v35  ;;  %v10126_v35 = vld [vmem:[#allocation12 + $0x1f0] sm:$0xf0]  ;;  %v8729_v3 = vld [vmem:[#allocation12 + $0x188] sm:$0xf] }
 0x4fb   :  { %5868 = vmatmul.bf16.gmra.mxu3 %v12153_v6  ;;  %5882 = vmatmul.bf16.vlgmr.msra.gmra.mxu0 %v12068_v45  ;;  %v8778_v55 = vor.u32 %v10126_v35, %v8777_v58  ;;  %v8873_v53 = vld [vmem:[#allocation12 + $0x2a8] sm:$0xf]  ;;  %v10150_v58 = vld [vmem:[#allocation12 + $0x2b0] sm:$0xf0]  ;;  %v9053_v35 = vld [vmem:[#allocation12 + $0x410] sm:$0xf] }
 0x4fc   :  { %5920 = vmatmul.bf16.vlgmr.msra.gmra.mxu2 %v12153_v6  ;;  %6026 = vmatpush.bf16.msra.mxu0 %v8622_v47  ;;  %v8573_v47 = vld [vmem:[#allocation12 + $0x50] sm:$0xf]  ;;  %v8874_v12 = vor.u32 %v10150_v58, %v8873_v53  ;;  %v8825_v58 = vld [vmem:[#allocation12 + $0x248] sm:$0xf] }
 0x4fd   :  { %6011 = vmatpush.bf16.msrb.mxu3 %v9338_v25  ;;  %6064 = vmatpush.bf16.msra.mxu2 %v8814_v1  ;;  %v8574_v24 = vor.u32 %v10075_v36, %v8573_v47  ;;  %v8909_v25 = vld [vmem:[#allocation12 + $0x2f0] sm:$0xf]  ;;  %v9090_v1 = vor.u32 %v10204_v13, %v9089_v16  ;;  %v10183_v47 = vld [vmem:[#allocation12 + $0x3b8] sm:$0xf0] }
 0x4fe   :  { %6050 = vmatpush.bf16.msra.mxu1 %v8658_v5  ;;  %v10159_v5 = vld [vmem:[#allocation12 + $0x2f8] sm:$0xf0]  ;;  %v8861_v36 = vld [vmem:[#allocation12 + $0x290] sm:$0xf] }
 0x4ff   :  { %v8910_v52 = vor.u32 %v10159_v5, %v8909_v25  ;;  %v10192_v25 = vld [vmem:[#allocation12 + $0x400] sm:$0xf0]  ;;  %v10231_v16 = vld [vmem:[#allocation12 + $0x538] sm:$0xf0] }
 0x500   :  { %6027 = vmatpush.bf16.msra.mxu0 %v8610_v14  ;;  %v10120_v14 = vld [vmem:[#allocation12 + $0x1c0] sm:$0xf0]  ;;  %v9042_v13 = vor.u32 %v10192_v25, %v9041_v19  ;;  %v10219_v19 = vld [vmem:[#allocation12 + $0x4d8] sm:$0xf0]  ;;  %v9293_v25 = vld [vmem:[#allocation12 + $0x5f0] sm:$0xf] }
 0x501   :  { %6012 = vmatpush.bf16.msrb.mxu3 %v9326_v33  ;;  %6065 = vmatpush.bf16.msra.mxu2 %v8802_v63  ;;  %v8897_v33 = vld [vmem:[#allocation12 + $0x2d8] sm:$0xf]  ;;  %v8754_v21 = vor.u32 %v10120_v14, %v8753_v23  ;;  %v10069_v63 = vld [vmem:[#allocation12 + $0x28] sm:$0xf0]  ;;  %v9029_v14 = vld [vmem:[#allocation12 + $0x3e0] sm:$0xf] }
 0x502   :  { %6051 = vmatpush.bf16.msra.mxu1 %v8646_v62  ;;  %v8898_v22 = vor.u32 %v10156_v38, %v8897_v33  ;;  %v8549_v62 = vld [vmem:[#allocation12 + $0x20] sm:$0xf]  ;;  %v10189_v33 = vld [vmem:[#allocation12 + $0x3e8] sm:$0xf0] }
 0x503   :  { %v8550_v60 = vor.u32 %v10069_v63, %v8549_v62  ;;  %v12225_v62 = vpop.f32.mrf.mxu3  ;;  %v8981_v63 = vld [vmem:[#allocation12 + $0x380] sm:$0xf] }
 0x504   :  { %6028 = vmatpush.bf16.msra.mxu0 %v8598_v0  ;;  %v8741_v0 = vld [vmem:[#allocation12 + $0x1a0] sm:$0xf] }
 0x505   :  { %6013 = vmatpush.bf16.msrb.mxu3 %v9314_v18  ;;  %6066 = vmatpush.bf16.msra.mxu2 %v8790_v43  ;;  %v10153_v18 = vld [vmem:[#allocation12 + $0x2c8] sm:$0xf0]  ;;  %v8742_v27 = vor.u32 %v10117_v11, %v8741_v0  ;;  %v9066_v43 = vor.u32 %v10198_v51, %v9065_v39  ;;  %v9173_v51 = vld [vmem:[#allocation12 + $0x500] sm:$0xf] }
 0x506   :  { %6052 = vmatpush.bf16.msra.mxu1 %v8634_v17  ;;  %v8886_v44 = vor.u32 %v10153_v18, %v8885_v40  ;;  %v8537_v17 = vld [vmem:[#allocation12 + $0x8] sm:$0xf]  ;;  %v10177_v0 = vld [vmem:[#allocation12 + $0x388] sm:$0xf0] }
 0x507   :  { %v8538_v37 = vor.u32 %v10066_v30, %v8537_v17  ;;  %v8982_v11 = vor.u32 %v10177_v0, %v8981_v63  ;;  %v10141_v40 = vld [vmem:[#allocation12 + $0x268] sm:$0xf0]  ;;  %v9017_v18 = vld [vmem:[#allocation12 + $0x3c8] sm:$0xf]  ;;  %v9125_v63 = vld [vmem:[#allocation12 + $0x4a0] sm:$0xf] }
 0x508   :  { %5977 = vmatmul.bf16.vlgmr.msrb.gmra.mxu1 %v12166_v49  ;;  %6029 = vmatpush.bf16.msra.mxu0 %v8586_v15  ;;  %v10114_v15 = vld [vmem:[#allocation12 + $0x190] sm:$0xf0] }
 0x509   :  { %6014 = vmatpush.bf16.msrb.mxu3 %v9302_v59  ;;  %6067 = vmatpush.bf16.msra.mxu2 %v8778_v55  ;;  %v10195_v59 = vld [vmem:[#allocation12 + $0x418] sm:$0xf0]  ;;  %v8730_v4 = vor.u32 %v10114_v15, %v8729_v3  ;;  %v10174_v3 = vld [vmem:[#allocation12 + $0x370] sm:$0xf0] }
 0x50a   :  { %6121 = vmatpush.bf16.msrb.mxu1 %v9102_v46  ;;  %v9054_v55 = vor.u32 %v10195_v59, %v9053_v35  ;;  %v9005_v46 = vld [vmem:[#allocation12 + $0x3b0] sm:$0xf]  ;;  %v10138_v35 = vld [vmem:[#allocation12 + $0x250] sm:$0xf0]  ;;  %v9161_v59 = vld [vmem:[#allocation12 + $0x4e8] sm:$0xf] }
 0x50b   :  { %5887 = vmatmul.bf16.gmra.mxu0 %v12155_v2  ;;  %5939 = vmatmul.bf16.vlgmr.msra.gmra.mxu3 %v12155_v2  ;;  %v9006_v32 = vor.u32 %v10183_v47, %v9005_v46  ;;  %v8957_v47 = vld [vmem:[#allocation12 + $0x350] sm:$0xf] }
 0x50c   :  { %5925 = vmatmul.bf16.gmra.mxu2 %v12166_v49  ;;  %6030 = vmatpush.bf16.msra.mxu0 %v8574_v24  ;;  %v10147_v24 = vld [vmem:[#allocation12 + $0x298] sm:$0xf0] }
 0x50d   :  { %6083 = vmatpush.bf16.msra.mxu3 %v8910_v52  ;;  %6068 = vmatpush.bf16.msra.mxu2 %v8766_v7  ;;  %v8862_v5 = vor.u32 %v10147_v24, %v8861_v36  ;;  %v9197_v52 = vld [vmem:[#allocation12 + $0x530] sm:$0xf]  ;;  %v10171_v36 = vld [vmem:[#allocation12 + $0x358] sm:$0xf0] }
 0x50e   :  { %6122 = vmatpush.bf16.msrb.mxu1 %v9090_v1  ;;  %v9198_v7 = vor.u32 %v10231_v16, %v9197_v52  ;;  %v8993_v1 = vld [vmem:[#allocation12 + $0x398] sm:$0xf]  ;;  %v8958_v24 = vor.u32 %v10171_v36, %v8957_v47  ;;  %v10243_v47 = vld [vmem:[#allocation12 + $0x598] sm:$0xf0] }
 0x50f   :  { %v8994_v23 = vor.u32 %v10180_v41, %v8993_v1  ;;  %v8945_v1 = vld [vmem:[#allocation12 + $0x338] sm:$0xf]  ;;  %v10168_v41 = vld [vmem:[#allocation12 + $0x340] sm:$0xf0] }
 0x510   :  { %6031 = vmatpush.bf16.msra.mxu0 %v8562_v26  ;;  %v10144_v26 = vld [vmem:[#allocation12 + $0x280] sm:$0xf0] }
 0x511   :  { %6084 = vmatpush.bf16.msra.mxu3 %v8898_v22  ;;  %6069 = vmatpush.bf16.msra.mxu2 %v8754_v21  ;;  %v8850_v38 = vor.u32 %v10144_v26, %v8849_v54  ;;  %v9185_v22 = vld [vmem:[#allocation12 + $0x518] sm:$0xf]  ;;  %v10216_v26 = vld [vmem:[#allocation12 + $0x4c0] sm:$0xf0] }
 0x512   :  { %6123 = vmatpush.bf16.msrb.mxu1 %v9078_v50  ;;  %v9186_v21 = vor.u32 %v10228_v28, %v9185_v22  ;;  %v9030_v50 = vor.u32 %v10189_v33, %v9029_v14  ;;  %v9137_v54 = vld [vmem:[#allocation12 + $0x4b8] sm:$0xf]  ;;  %v10252_v33 = vld [vmem:[#allocation12 + $0x5e0] sm:$0xf0] }
 0x513   :  { %v9281_v14 = vld [vmem:[#allocation12 + $0x5d8] sm:$0xf]  ;;  %v9138_v22 = vor.u32 %v10216_v26, %v9137_v54  ;;  %v9353_v26 = vld [vmem:[#allocation12 + $0x668] sm:$0xf] }
 0x514   :  { %6032 = vmatpush.bf16.msra.mxu0 %v8550_v60  ;;  %v8837_v60 = vld [vmem:[#allocation12 + $0x260] sm:$0xf] }
 0x515   :  { %6085 = vmatpush.bf16.msra.mxu3 %v8886_v44  ;;  %6070 = vmatpush.bf16.msra.mxu2 %v8742_v27  ;;  %v10186_v44 = vld [vmem:[#allocation12 + $0x3d0] sm:$0xf0]  ;;  %v8838_v39 = vor.u32 %v10141_v40, %v8837_v60  ;;  %v10225_v27 = vld [vmem:[#allocation12 + $0x508] sm:$0xf0] }
 0x516   :  { %6124 = vmatpush.bf16.msrb.mxu1 %v9066_v43  ;;  %v9018_v17 = vor.u32 %v10186_v44, %v9017_v18  ;;  %v9174_v30 = vor.u32 %v10225_v27, %v9173_v51  ;;  %v10213_v60 = vld [vmem:[#allocation12 + $0x4a8] sm:$0xf0]  ;;  %v10162_v51 = vld [vmem:[#allocation12 + $0x310] sm:$0xf0]  ;;  %v9113_v27 = vld [vmem:[#allocation12 + $0x488] sm:$0xf] }
 0x517   :  { %v10249_v40 = vld [vmem:[#allocation12 + $0x5c8] sm:$0xf0]  ;;  %v9126_v44 = vor.u32 %v10213_v60, %v9125_v63  ;;  %v10267_v60 = vld [vmem:[#allocation12 + $0x658] sm:$0xf0] }
 0x518   :  { %5982 = vmatmul.bf16.gmra.mxu1 %v12192_v34  ;;  %6033 = vmatpush.bf16.msra.mxu0 %v8538_v37  ;;  %v8969_v37 = vld [vmem:[#allocation12 + $0x368] sm:$0xf] }
 0x519   :  { %6086 = vmatpush.bf16.msra.mxu3 %v8874_v12  ;;  %6071 = vmatpush.bf16.msra.mxu2 %v8730_v4  ;;  %v8970_v53 = vor.u32 %v10174_v3, %v8969_v37  ;;  %v8826_v12 = vor.u32 %v10138_v35, %v8825_v58  ;;  %v10222_v4 = vld [vmem:[#allocation12 + $0x4f0] sm:$0xf0]  ;;  %v9257_v37 = vld [vmem:[#allocation12 + $0x5a8] sm:$0xf] }
 0x51a   :  { %6125 = vmatpush.bf16.msrb.mxu1 %v9054_v55  ;;  %v9162_v55 = vor.u32 %v10222_v4, %v9161_v59  ;;  %v10246_v3 = vld [vmem:[#allocation12 + $0x5b0] sm:$0xf0]  ;;  %v9389_v59 = vld [vmem:[#allocation12 + $0x6b0] sm:$0xf] }
 0x51b   :  { %5944 = vmatmul.bf16.gmra.mxu3 %v12176_v8  ;;  %5958 = vmatmul.bf16.vlgmr.msrb.gmra.mxu0 %v12180_v31  ;;  %v9245_v4 = vld [vmem:[#allocation12 + $0x590] sm:$0xf] }
 0x51c   :  { %5996 = vmatmul.bf16.vlgmr.msrb.gmra.mxu2 %v12176_v8  ;;  %6102 = vmatpush.bf16.msrb.mxu0 %v9006_v32  ;;  %v9246_v36 = vor.u32 %v10243_v47, %v9245_v4  ;;  %v9305_v4 = vld [vmem:[#allocation12 + $0x608] sm:$0xf] }
 0x51d   :  { %6087 = vmatpush.bf16.msra.mxu3 %v8862_v5  ;;  %6140 = vmatpush.bf16.msrb.mxu2 %v9198_v7  ;;  %v10255_v5 = vld [vmem:[#allocation12 + $0x5f8] sm:$0xf0] }
 0x51e   :  { %6126 = vmatpush.bf16.msrb.mxu1 %v9042_v13 }
 0x520   :  { %6103 = vmatpush.bf16.msrb.mxu0 %v8994_v23  ;;  %v8946_v23 = vor.u32 %v10168_v41, %v8945_v1  ;;  %v10237_v41 = vld [vmem:[#allocation12 + $0x568] sm:$0xf0] }
 0x521   :  { %6088 = vmatpush.bf16.msra.mxu3 %v8850_v38  ;;  %6141 = vmatpush.bf16.msrb.mxu2 %v9186_v21  ;;  %v9282_v38 = vor.u32 %v10252_v33, %v9281_v14  ;;  %v8933_v21 = vld [vmem:[#allocation12 + $0x320] sm:$0xf]  ;;  %v10270_v14 = vld [vmem:[#allocation12 + $0x670] sm:$0xf0]  ;;  %v9209_v33 = vld [vmem:[#allocation12 + $0x548] sm:$0xf] }
 0x522   :  { %6127 = vmatpush.bf16.msrb.mxu1 %v9030_v50  ;;  %v10165_v50 = vld [vmem:[#allocation12 + $0x328] sm:$0xf0] }
 0x523   :  { %v8934_v0 = vor.u32 %v10165_v50, %v8933_v21 }
 0x524   :  { %6104 = vmatpush.bf16.msrb.mxu0 %v8982_v11  ;;  %v9269_v11 = vld [vmem:[#allocation12 + $0x5c0] sm:$0xf] }
 0x525   :  { %v5750_v43 = vpop.f32.mrf.mxu1  ;;  %6089 = vmatpush.bf16.msra.mxu3 %v8838_v39  ;;  %6142 = vmatpush.bf16.msrb.mxu2 %v9174_v30  ;;  %v9270_v18 = vor.u32 %v10249_v40, %v9269_v11  ;;  %v8921_v39 = vld [vmem:[#allocation12 + $0x308] sm:$0xf]  ;;  %v10210_v30 = vld [vmem:[#allocation12 + $0x490] sm:$0xf0] }
 0x526   :  { %v12228_v15 = vadd.f32 %v5750_v43, %v12213_v10  ;;  %6128 = vmatpush.bf16.msrb.mxu1 %v9018_v17  ;;  %v9149_v10 = vld [vmem:[#allocation12 + $0x4d0] sm:$0xf]  ;;  %v8922_v17 = vor.u32 %v10162_v51, %v8921_v39  ;;  %v9114_v58 = vor.u32 %v10210_v30, %v9113_v27  ;;  %v9329_v27 = vld [vmem:[#allocation12 + $0x638] sm:$0xf] }
 0x527   :  { %v9150_v7 = vor.u32 %v10219_v19, %v9149_v10  ;;  %v9377_v10 = vld [vmem:[#allocation12 + $0x698] sm:$0xf] }
 0x528   :  { %6053 = vmatmul.bf16.vlgmr.msra.gmra.mxu1 %v12068_v45  ;;  %6105 = vmatpush.bf16.msrb.mxu0 %v8970_v53  ;;  %v9294_v45 = vor.u32 %v10255_v5, %v9293_v25  ;;  %v9258_v53 = vor.u32 %v10246_v3, %v9257_v37  ;;  %v10240_v25 = vld [vmem:[#allocation12 + $0x580] sm:$0xf0]  ;;  %v5733_v5 = vpop.f32.mrf.mxu0 }
 0x529   :  { %6090 = vmatpush.bf16.msra.mxu3 %v8826_v12  ;;  %6143 = vmatpush.bf16.msrb.mxu2 %v9162_v55  ;;  %v10279_v12 = vld [vmem:[#allocation12 + $0x6b8] sm:$0xf0] }
 0x52a   :  { %v5698_v46 = vpop.f32.mrf.mxu2  ;;  %v5717_v52 = vpop.f32.mrf.mxu3 }
 0x52b   :  { %v5699_v32 = vadd.f32 %v5698_v46, %v12207_v29  ;;  %5963 = vmatmul.bf16.gmra.mxu0 %v12187_v56  ;;  %6015 = vmatmul.bf16.vlgmr.msrb.gmra.mxu3 %v12187_v56  ;;  %v9390_v46 = vor.u32 %v10279_v12, %v9389_v59 }
 0x52c   :  { %6001 = vmatmul.bf16.gmra.mxu2 %v12184_v57  ;;  %6106 = vmatpush.bf16.msrb.mxu0 %v8958_v24  ;;  %v9233_v24 = vld [vmem:[#allocation12 + $0x578] sm:$0xf] }
 0x52d   :  { %v12235_v16 = vadd.f32 %v5717_v52, %v5699_v32  ;;  %v12237_v13 = vpop.f32.mrf.mxu1  ;;  %6159 = vmatpush.bf16.msrb.mxu3 %v9294_v45  ;;  %6144 = vmatpush.bf16.msrb.mxu2 %v9150_v7  ;;  %v10276_v32 = vld [vmem:[#allocation12 + $0x6a0] sm:$0xf0]  ;;  %v9234_v52 = vor.u32 %v10240_v25, %v9233_v24  ;;  %v10273_v7 = vld [vmem:[#allocation12 + $0x688] sm:$0xf0] }
 0x52e   :  { %v9378_v19 = vor.u32 %v10276_v32, %v9377_v10 }
 0x530   :  { %6107 = vmatpush.bf16.msrb.mxu0 %v8946_v23 }
 0x531   :  { %6160 = vmatpush.bf16.msrb.mxu3 %v9282_v38  ;;  %6145 = vmatpush.bf16.msrb.mxu2 %v9138_v22  ;;  %v9354_v38 = vor.u32 %v10270_v14, %v9353_v26  ;;  %v10234_v22 = vld [vmem:[#allocation12 + $0x550] sm:$0xf0] }
 0x532   :  { %v12239_v28 = vpop.f32.mrf.mxu2  ;;  %v5719_v23 = vpop.f32.mrf.mxu3  ;;  %v9210_v50 = vor.u32 %v10234_v22, %v9209_v33 }
 0x533   :  { %v5701_v11 = vadd.f32 %v12239_v28, %v12207_v29  ;;  %v5696_v28 = vadd.f32 %v12223_v61, %v12207_v29 }
 0x534   :  { %6108 = vmatpush.bf16.msrb.mxu0 %v8934_v0  ;;  %v9341_v0 = vld [vmem:[#allocation12 + $0x650] sm:$0xf] }
 0x535   :  { %6161 = vmatpush.bf16.msrb.mxu3 %v9270_v18  ;;  %v5755_v43 = vpop.f32.mrf.mxu1  ;;  %6146 = vmatpush.bf16.msrb.mxu2 %v9126_v44  ;;  %v9342_v44 = vor.u32 %v10267_v60, %v9341_v0  ;;  %v5720_v30 = vadd.f32 %v5719_v23, %v5701_v11  ;;  %v5715_v59 = vadd.f32 %v12225_v62, %v5696_v28 }
 0x538   :  { %6058 = vmatmul.bf16.gmra.mxu1 %v12155_v2  ;;  %6109 = vmatpush.bf16.msrb.mxu0 %v8922_v17  ;;  %v10264_v17 = vld [vmem:[#allocation12 + $0x640] sm:$0xf0] }
 0x539   :  { %6162 = vmatpush.bf16.msrb.mxu3 %v9258_v53  ;;  %6147 = vmatpush.bf16.msrb.mxu2 %v9114_v58  ;;  %v9330_v3 = vor.u32 %v10264_v17, %v9329_v27  ;;  %v9317_v58 = vld [vmem:[#allocation12 + $0x620] sm:$0xf]  ;;  %v10293_v17 = vld [vmem:[%s12544_s13 + $0x38] sm:$0xff] }
 0x53a   :  { %v5769_v35 = vpop.f32.mrf.mxu2 }
 0x53b   :  { %v5770_v55 = vadd.f32 %v5769_v35, %v12228_v15  ;;  %6020 = vmatmul.bf16.gmra.mxu3 %v12195_v9  ;;  %6034 = vmatmul.bf16.vlgmr.msra.gmra.mxu0 %v12062_v42  ;;  %v9365_v42 = vld [vmem:[#allocation12 + $0x680] sm:$0xf] }
 0x53c   :  { %6072 = vmatmul.bf16.vlgmr.msra.gmra.mxu2 %v12094_v48  ;;  %6178 = vmatpush.bf16.msra.mxu0 %v9390_v46  ;;  %v9221_v48 = vld [vmem:[#allocation12 + $0x560] sm:$0xf]  ;;  %v9366_v1 = vor.u32 %v10273_v7, %v9365_v42  ;;  %v10258_v46 = vld [vmem:[#allocation12 + $0x610] sm:$0xf0] }
 0x53d   :  { %6163 = vmatpush.bf16.msrb.mxu3 %v9246_v36  ;;  %v12246_v15 = vpop.f32.mrf.mxu1  ;;  %v9222_v54 = vor.u32 %v10237_v41, %v9221_v48  ;;  %v9306_v36 = vor.u32 %v10258_v46, %v9305_v4  ;;  %v10325_v4 = vld [vmem:[%s12544_s13 + $0x138] sm:$0xff] }
 0x53e   :  { %v10289_v46 = vld [vmem:[%s12544_s13 + $0x18] sm:$0xff]  ;;  %6505 = vmatpush.bf16.msra.mxu2 %v10325_v4 }
 0x540   :  { %6179 = vmatpush.bf16.msra.mxu0 %v9378_v19 }
 0x541   :  { %6164 = vmatpush.bf16.msrb.mxu3 %v9234_v52 }
 0x542   :  { %v12248_v45 = vpop.f32.mrf.mxu2 }
 0x544   :  { %6180 = vmatpush.bf16.msra.mxu0 %v9366_v1 }
 0x545   :  { %6165 = vmatpush.bf16.msrb.mxu3 %v9222_v54  ;;  %v5826_v40 = vpop.f32.mrf.mxu1 }
 0x548   :  { %6129 = vmatmul.bf16.vlgmr.msrb.gmra.mxu1 %v12180_v31  ;;  %v5736_v21 = vpop.f32.mrf.mxu0  ;;  %6181 = vmatpush.bf16.msra.mxu0 %v9354_v38 }
 0x549   :  { %v5737_v63 = vadd.f32 %v5736_v21, %v12235_v16  ;;  %6166 = vmatpush.bf16.msrb.mxu3 %v9210_v50 }
 0x54a   :  { %v5774_v39 = vpop.f32.mrf.mxu2 }
 0x54b   :  { %v5756_v18 = vadd.f32 %v5755_v43, %v5737_v63  ;;  %6039 = vmatmul.bf16.gmra.mxu0 %v12153_v6  ;;  %6091 = vmatmul.bf16.vlgmr.msra.gmra.mxu3 %v12153_v6  ;;  %v10261_v6 = vld [vmem:[#allocation12 + $0x628] sm:$0xf0] }
 0x54c   :  { %6077 = vmatmul.bf16.gmra.mxu2 %v12180_v31  ;;  %6182 = vmatpush.bf16.msra.mxu0 %v9342_v44  ;;  %v9318_v35 = vor.u32 %v10261_v6, %v9317_v58  ;;  %v10315_v58 = vld [vmem:[%s12544_s13 + $0xe8] sm:$0xff]  ;;  %v10290_v6 = vld [vmem:[%s12544_s13 + $0x20] sm:$0xff] }
 0x54d   :  { %v5775_v51 = vadd.f32 %v5774_v39, %v5756_v18  ;;  %v5828_v31 = vpop.f32.mrf.mxu1 }
 0x54e   :  { %v5788_v16 = vpop.f32.mrf.mxu3 }
 0x54f   :  { %v5789_v37 = vadd.f32 %v5788_v16, %v5770_v55  ;;  %v5734_v55 = vadd.f32 %v5733_v5, %v5715_v59 }
 0x550   :  { %v5738_v43 = vpop.f32.mrf.mxu0  ;;  %6183 = vmatpush.bf16.msra.mxu0 %v9330_v3  ;;  %v10316_v3 = vld [vmem:[%s12544_s13 + $0xf0] sm:$0xff] }
 0x551   :  { %v5739_v53 = vadd.f32 %v5738_v43, %v5720_v30  ;;  %v5753_v62 = vadd.f32 %v12237_v13, %v5734_v55  ;;  %v10291_v43 = vld [vmem:[%s12544_s13 + $0x28] sm:$0xff] }
 0x552   :  { %v5776_v47 = vpop.f32.mrf.mxu2 }
 0x553   :  { %v5772_v32 = vadd.f32 %v12248_v45, %v5753_v62  ;;  %v5758_v48 = vadd.f32 %v12246_v15, %v5739_v53 }
 0x554   :  { %6184 = vmatpush.bf16.msra.mxu0 %v9318_v35  ;;  %v12323_v35 = vperm.slane %v12204_v20, 1 }
 0x555   :  { %v5831_v19 = vpop.f32.mrf.mxu1  ;;  %v5777_v41 = vadd.f32 %v5776_v47, %v5758_v48 }
 0x556   :  { %v5790_v12 = vpop.f32.mrf.mxu3 }
 0x557   :  { %v5791_v52 = vadd.f32 %v5790_v12, %v5772_v32  ;;  %v10312_v32 = vld [vmem:[%s12544_s13 + $0xd0] sm:$0xff] }
 0x558   :  { %6134 = vmatmul.bf16.gmra.mxu1 %v12187_v56  ;;  %v5807_v10 = vpop.f32.mrf.mxu0  ;;  %6185 = vmatpush.bf16.msra.mxu0 %v9306_v36  ;;  %v10313_v36 = vld [vmem:[%s12544_s13 + $0xd8] sm:$0xff] }
 0x559   :  { %v5808_v29 = vadd.f32 %v5807_v10, %v5789_v37  ;;  %v10324_v10 = vld [vmem:[%s12544_s13 + $0x130] sm:$0xff] }
 0x55a   :  { %6506 = vmatpush.bf16.msra.mxu2 %v10324_v10 }
 0x55b   :  { %6096 = vmatmul.bf16.gmra.mxu3 %v12166_v49  ;;  %6110 = vmatmul.bf16.vlgmr.msrb.gmra.mxu0 %v12155_v2  ;;  %v5827_v61 = vadd.f32 %v5826_v40, %v5808_v29  ;;  %v10288_v29 = vld [vmem:[%s12544_s13 + $0x10] sm:$0xff] }
 0x55c   :  { %6148 = vmatmul.bf16.vlgmr.msrb.gmra.mxu2 %v12166_v49  ;;  %6693 = vmatpush.bf16.msrb.mxu0 %v10293_v17 }
 0x55d   :  { %v5833_v45 = vpop.f32.mrf.mxu1 }
 0x55e   :  { %v5793_v24 = vpop.f32.mrf.mxu3 }
 0x55f   :  { %v5794_v25 = vadd.f32 %v5793_v24, %v5775_v51  ;;  %v5845_v5 = vpop.f32.mrf.mxu2 }
 0x560   :  { %v12266_v42 = vadd.f32 %v5845_v5, %v5827_v61  ;;  %v5809_v7 = vpop.f32.mrf.mxu0 }
 0x561   :  { %v5810_v1 = vadd.f32 %v5809_v7, %v5791_v52  ;;  %v10311_v7 = vld [vmem:[%s12544_s13 + $0xc8] sm:$0xff] }
 0x563   :  { %v5829_v54 = vadd.f32 %v5828_v31, %v5810_v1  ;;  %v10314_v31 = vld [vmem:[%s12544_s13 + $0xe0] sm:$0xff] }
 0x565   :  { %v5902_v63 = vpop.f32.mrf.mxu1 }
 0x566   :  { %v5795_v2 = vpop.f32.mrf.mxu3 }
 0x567   :  { %v5796_v23 = vadd.f32 %v5795_v2, %v5777_v41  ;;  %v5847_v13 = vpop.f32.mrf.mxu2  ;;  %v10322_v41 = vld [vmem:[%s12544_s13 + $0x120] sm:$0xff] }
 0x568   :  { %v12269_v26 = vadd.f32 %v5847_v13, %v5829_v54  ;;  %v5812_v49 = vpop.f32.mrf.mxu0  ;;  %v10286_v2 = vld [vmem:[%s12544_s13] sm:$0xff] }
 0x569   :  { %v5813_v14 = vadd.f32 %v5812_v49, %v5794_v25  ;;  %v10287_v25 = vld [vmem:[%s12544_s13 + $0x8] sm:$0xff] }
 0x56b   :  { %6115 = vmatmul.bf16.gmra.mxu0 %v12176_v8  ;;  %6167 = vmatmul.bf16.vlgmr.msrb.gmra.mxu3 %v12176_v8  ;;  %v5832_v33 = vadd.f32 %v5831_v19, %v5813_v14  ;;  %v10323_v19 = vld [vmem:[%s12544_s13 + $0x128] sm:$0xff] }
 0x56c   :  { %6153 = vmatmul.bf16.gmra.mxu2 %v12192_v34 }
 0x56d   :  { %v12282_v8 = vpop.f32.mrf.mxu1  ;;  %6507 = vmatpush.bf16.msra.mxu2 %v10323_v19 }
 0x56e   :  { %v5864_v38 = vpop.f32.mrf.mxu3 }
 0x56f   :  { %v5850_v15 = vpop.f32.mrf.mxu2  ;;  %v5865_v20 = vadd.f32 %v5864_v38, %v12323_v35  ;;  %v10321_v38 = vld [vmem:[%s12544_s13 + $0x118] sm:$0xff] }
 0x570   :  { %v12274_v22 = vadd.f32 %v5850_v15, %v5832_v33  ;;  %v5814_v21 = vpop.f32.mrf.mxu0  ;;  %v10301_v15 = vld [vmem:[%s12544_s13 + $0x78] sm:$0xff] }
 0x571   :  { %v5815_v50 = vadd.f32 %v5814_v21, %v5796_v23  ;;  %6508 = vmatpush.bf16.msra.mxu2 %v10322_v41 }
 0x573   :  { %v5834_v0 = vadd.f32 %v5833_v45, %v5815_v50  ;;  %v10310_v45 = vld [vmem:[%s12544_s13 + $0xc0] sm:$0xff] }
 0x575   :  { %v12288_v16 = vpop.f32.mrf.mxu1  ;;  %6509 = vmatpush.bf16.msra.mxu2 %v10321_v38 }
 0x576   :  { %v12276_v60 = vpop.f32.mrf.mxu3 }
 0x577   :  { %v5852_v11 = vpop.f32.mrf.mxu2  ;;  %v5867_v48 = vadd.f32 %v12276_v60, %v12323_v35 }
 0x578   :  { %v12278_v40 = vadd.f32 %v5852_v11, %v5834_v0  ;;  %v5883_v18 = vpop.f32.mrf.mxu0  ;;  %v10320_v11 = vld [vmem:[%s12544_s13 + $0x110] sm:$0xff] }
 0x579   :  { %v5884_v61 = vadd.f32 %v5883_v18, %v5865_v20  ;;  %v10300_v18 = vld [vmem:[%s12544_s13 + $0x70] sm:$0xff]  ;;  %6510 = vmatpush.bf16.msra.mxu2 %v10320_v11 }
 0x57b   :  { %6172 = vmatmul.bf16.gmra.mxu3 %v12184_v57  ;;  %6186 = vmatmul.bf16.vlgmr.msra.gmra.mxu0 %v12187_v56  ;;  %v10317_v57 = vld [vmem:[%s12544_s13 + $0xf8] sm:$0xff]  ;;  %v10292_v56 = vld [vmem:[%s12544_s13 + $0x30] sm:$0xff]  ;;  %v5903_v52 = vadd.f32 %v5902_v63, %v5884_v61 }
 0x57c   :  { %6491 = vmatpush.bf16.msra.mxu1 %v10317_v57  ;;  %6694 = vmatpush.bf16.msrb.mxu0 %v10292_v56 }
 0x57e   :  { %v12284_v34 = vpop.f32.mrf.mxu3 }
 0x57f   :  { %v5921_v44 = vpop.f32.mrf.mxu2  ;;  %v5870_v63 = vadd.f32 %v12284_v34, %v12323_v35 }
 0x580   :  { %v5885_v39 = vpop.f32.mrf.mxu0  ;;  %6492 = vmatpush.bf16.msra.mxu1 %v10316_v3  ;;  %6695 = vmatpush.bf16.msrb.mxu0 %v10291_v43  ;;  %v5922_v1 = vadd.f32 %v5921_v44, %v5903_v52 }
 0x581   :  { %v5886_v54 = vadd.f32 %v5885_v39, %v5867_v48 }
 0x583   :  { %v5905_v50 = vadd.f32 %v12282_v8, %v5886_v54  ;;  %v10294_v54 = vld [vmem:[%s12544_s13 + $0x40] sm:$0xff] }
 0x584   :  { %6493 = vmatpush.bf16.msra.mxu1 %v10315_v58  ;;  %6696 = vmatpush.bf16.msrb.mxu0 %v10290_v6 }
 0x586   :  { %v12286_v51 = vpop.f32.mrf.mxu3 }
 0x587   :  { %v12290_v27 = vpop.f32.mrf.mxu2 }
 0x588   :  { %v12295_v30 = vpop.f32.mrf.mxu0  ;;  %6494 = vmatpush.bf16.msra.mxu1 %v10314_v31  ;;  %6697 = vmatpush.bf16.msrb.mxu0 %v10289_v46  ;;  %v5924_v0 = vadd.f32 %v12290_v27, %v5905_v50  ;;  %v10319_v27 = vld [vmem:[%s12544_s13 + $0x108] sm:$0xff] }
 0x589   :  { %v5889_v44 = vadd.f32 %v12295_v30, %v5870_v63  ;;  %v6197_v30 = vmax.f32 %v12266_v42, 0.0  ;;  %6511 = vmatpush.bf16.msra.mxu2 %v10319_v27  ;;  %v10298_v42 = vld [vmem:[%s12544_s13 + $0x60] sm:$0xff]  ;;  %v6206_v63 = vmax.f32 %v12278_v40, 0.0 }
 0x58b   :  { %6191 = vmatmul.bf16.gmra.mxu0 %v12195_v9  ;;  %v12314_v9 = vpop.f32.mrf.mxu1  ;;  %v5908_v58 = vadd.f32 %v12288_v16, %v5889_v44 }
 0x58c   :  { %6495 = vmatpush.bf16.msra.mxu1 %v10313_v36  ;;  %6698 = vmatpush.bf16.msrb.mxu0 %v10288_v29  ;;  %v6200_v29 = vmax.f32 %v12269_v26, 0.0 }
 0x58e   :  { %v5940_v37 = vpop.f32.mrf.mxu3 }
 0x58f   :  { %v12307_v28 = vpop.f32.mrf.mxu2  ;;  %v5941_v13 = vadd.f32 %v5940_v37, %v5922_v1  ;;  %v10299_v37 = vld [vmem:[%s12544_s13 + $0x68] sm:$0xff] }
 0x590   :  { %v12312_v53 = vpop.f32.mrf.mxu0  ;;  %6496 = vmatpush.bf16.msra.mxu1 %v10312_v32  ;;  %6699 = vmatpush.bf16.msrb.mxu0 %v10287_v25  ;;  %v5927_v31 = vadd.f32 %v12307_v28, %v5908_v58 }
 0x593   :  { %v5978_v55 = vpop.f32.mrf.mxu1 }
 0x594   :  { %6497 = vmatpush.bf16.msra.mxu1 %v10311_v7  ;;  %6700 = vmatpush.bf16.msrb.mxu0 %v10286_v2 }
 0x596   :  { %v5942_v59 = vpop.f32.mrf.mxu3 }
 0x597   :  { %v12328_v12 = vpop.f32.mrf.mxu2  ;;  %v5943_v39 = vadd.f32 %v5942_v59, %v5924_v0  ;;  %v5872_v59 = vadd.f32 %v12286_v51, %v12323_v35 }
 0x598   :  { %v5959_v47 = vpop.f32.mrf.mxu0  ;;  %6498 = vmatpush.bf16.msra.mxu1 %v10310_v45 }
 0x599   :  { %v5960_v14 = vadd.f32 %v5959_v47, %v5941_v13  ;;  %v10318_v47 = vld [vmem:[%s12544_s13 + $0x100] sm:$0xff]  ;;  %v5891_v16 = vadd.f32 %v12312_v53, %v5872_v59 }
 0x59a   :  { %6512 = vmatpush.bf16.msra.mxu2 %v10318_v47  ;;  %v10306_v59 = vld [vmem:[%s12544_s13 + $0xa0] sm:$0xff] }
 0x59b   :  { %v5980_v23 = vpop.f32.mrf.mxu1  ;;  %v5979_v60 = vadd.f32 %v5978_v55, %v5960_v14  ;;  %v10297_v55 = vld [vmem:[%s12544_s13 + $0x58] sm:$0xff]  ;;  %v5910_v61 = vadd.f32 %v12314_v9, %v5891_v16  ;;  %v10295_v9 = vld [vmem:[%s12544_s13 + $0x48] sm:$0xff] }
 0x59c   :  { %6707 = vmatpush.bf16.msrb.mxu1 %v10301_v15  ;;  %v10333_v16 = vld [vmem:[%s12544_s13 + $0x178] sm:$0xff] }
 0x59d   :  { %6519 = vmatpush.bf16.msra.mxu3 %v10333_v16 }
 0x59e   :  { %v5945_v62 = vpop.f32.mrf.mxu3 }
 0x59f   :  { %v5997_v24 = vpop.f32.mrf.mxu2  ;;  %v5946_v20 = vadd.f32 %v5945_v62, %v5927_v31 }
 0x5a0   :  { %v5961_v5 = vpop.f32.mrf.mxu0  ;;  %v5998_v8 = vadd.f32 %v5997_v24, %v5979_v60  ;;  %6708 = vmatpush.bf16.msrb.mxu1 %v10300_v18  ;;  %v5929_v24 = vadd.f32 %v12328_v12, %v5910_v61  ;;  %v6203_v12 = vmax.f32 %v12274_v22, 0.0  ;;  %v10304_v61 = vld [vmem:[%s12544_s13 + $0x90] sm:$0xff] }
 0x5a1   :  { %v5962_v34 = vadd.f32 %v5961_v5, %v5943_v39  ;;  %v10296_v5 = vld [vmem:[%s12544_s13 + $0x50] sm:$0xff] }
 0x5a3   :  { %v5983_v57 = vpop.f32.mrf.mxu1  ;;  %v5981_v4 = vadd.f32 %v5980_v23, %v5962_v34 }
 0x5a4   :  { %6709 = vmatpush.bf16.msrb.mxu1 %v10299_v37  ;;  %v10308_v37 = vld [vmem:[%s12544_s13 + $0xb0] sm:$0xff] }
 0x5a6   :  { %v5947_v49 = vpop.f32.mrf.mxu3 }
 0x5a7   :  { %v5999_v33 = vpop.f32.mrf.mxu2  ;;  %v5948_v52 = vadd.f32 %v5947_v49, %v5929_v24  ;;  %v10303_v24 = vld [vmem:[%s12544_s13 + $0x88] sm:$0xff] }
 0x5a8   :  { %v5964_v21 = vpop.f32.mrf.mxu0  ;;  %v6000_v36 = vadd.f32 %v5999_v33, %v5981_v4  ;;  %6710 = vmatpush.bf16.msrb.mxu1 %v10298_v42 }
 0x5a9   :  { %v5965_v35 = vadd.f32 %v5964_v21, %v5946_v20  ;;  %v10305_v20 = vld [vmem:[%s12544_s13 + $0x98] sm:$0xff] }
 0x5ab   :  { %v5985_v32 = vpop.f32.mrf.mxu1  ;;  %v5984_v19 = vadd.f32 %v5983_v57, %v5965_v35 }
 0x5ac   :  { %6711 = vmatpush.bf16.msrb.mxu1 %v10297_v55 }
 0x5ae   :  { %v6016_v17 = vpop.f32.mrf.mxu3 }
 0x5af   :  { %v6017_v56 = vadd.f32 %v6016_v17, %v5998_v8  ;;  %v6002_v3 = vpop.f32.mrf.mxu2  ;;  %v10309_v8 = vld [vmem:[%s12544_s13 + $0xb8] sm:$0xff] }
 0x5b0   :  { %v5966_v43 = vpop.f32.mrf.mxu0  ;;  %v6003_v7 = vadd.f32 %v6002_v3, %v5984_v19  ;;  %6712 = vmatpush.bf16.msrb.mxu1 %v10296_v5  ;;  %6721 = vmatpush.bf16.msrb.mxu2 %v10309_v8  ;;  %v10326_v8 = vld [vmem:[%s12544_s13 + $0x140] sm:$0xff] }
 0x5b1   :  { %v6198_v6 = vmax.f32 %v6017_v56, 0.0  ;;  %v5967_v26 = vadd.f32 %v5966_v43, %v5948_v52 }
 0x5b3   :  { %v6209_v46 = vpack.c.bf16 %v6198_v6, %v6197_v30  ;;  %v12424_v23 = vpop.f32.mrf.mxu1  ;;  %v5986_v13 = vadd.f32 %v5985_v32, %v5967_v26  ;;  %v10307_v6 = vld [vmem:[%s12544_s13 + $0xa8] sm:$0xff]  ;;  %v10302_v26 = vld [vmem:[%s12544_s13 + $0x80] sm:$0xff] }
 0x5b4   :  { %6713 = vmatpush.bf16.msrb.mxu1 %v10295_v9  ;;  %6722 = vmatpush.bf16.msrb.mxu2 %v10308_v37 }
 0x5b5   :  { %6217 = vst [vmem:[#allocation3 + $0x18] sm:$0xff] %v6209_v46  ;;  %v10363_v46 = vld [vmem:[%s12543_s12] sm:$0x7]  ;;  %s10533_s12 = smov 26  }
 0x5b6   :  { %v6018_v51 = vpop.f32.mrf.mxu3  ;;  %v4528_v47 = vperm.slane %v10363_v46, 2 }
 0x5b7   :  { %v6019_v28 = vadd.f32 %v6018_v51, %v6000_v36  ;;  %v6004_v62 = vpop.f32.mrf.mxu2 }
 0x5b8   :  { %v12407_v10 = vpop.f32.mrf.mxu0  ;;  %v6005_v38 = vadd.f32 %v6004_v62, %v5986_v13  ;;  %6714 = vmatpush.bf16.msrb.mxu1 %v10294_v54  ;;  %6723 = vmatpush.bf16.msrb.mxu2 %v10307_v6 }
 0x5b9   :  { %v6201_v53 = vmax.f32 %v6019_v28, 0.0  ;;  %v6036_v28 = vadd.f32 %v12407_v10, %v4528_v47  ;;  %v10331_v10 = vld [vmem:[%s12544_s13 + $0x168] sm:$0xff] }
 0x5bb   :  { %v6211_v25 = vpack.c.bf16 %v6201_v53, %v6200_v29  ;;  %v12431_v11 = vpop.f32.mrf.mxu1  ;;  %v10332_v29 = vld [vmem:[%s12544_s13 + $0x170] sm:$0xff]  ;;  %v6055_v62 = vadd.f32 %v12424_v23, %v6036_v28 }
 0x5bc   :  { %v9549_v14 = vld [vmem:[#allocation3 + $0x18] sm:$0xf]  ;;  %6724 = vmatpush.bf16.msrb.mxu2 %v10306_v59  ;;  %v10280_v35 = vld [vmem:[#allocation3 + $0x1c] sm:$0xf]  ;;  %6520 = vmatpush.bf16.msra.mxu3 %v10332_v29 }
 0x5bd   :  { %6219 = vst [vmem:[#allocation3 + $0x24] sm:$0xff] %v6211_v25 }
 0x5be   :  { %v6021_v48 = vpop.f32.mrf.mxu3 }
 0x5bf   :  { %v6022_v1 = vadd.f32 %v6021_v48, %v6003_v7  ;;  %v12426_v45 = vpop.f32.mrf.mxu2  ;;  %v10330_v48 = vld [vmem:[%s12544_s13 + $0x160] sm:$0xff] }
 0x5c0   :  { %v12418_v41 = vpop.f32.mrf.mxu0  ;;  %6725 = vmatpush.bf16.msrb.mxu2 %v10305_v20  ;;  %v6074_v19 = vadd.f32 %v12426_v45, %v6055_v62  ;;  %6521 = vmatpush.bf16.msra.mxu3 %v10331_v10 }
 0x5c1   :  { %v6204_v2 = vmax.f32 %v6022_v1, 0.0  ;;  %v6038_v52 = vadd.f32 %v12418_v41, %v4528_v47  ;;  %v10329_v41 = vld [vmem:[%s12544_s13 + $0x158] sm:$0xff] }
 0x5c3   :  { %v6213_v49 = vpack.c.bf16 %v6204_v2, %v6203_v12  ;;  %v12443_v43 = vpop.f32.mrf.mxu1  ;;  %v6057_v2 = vadd.f32 %v12431_v11, %v6038_v52 }
 0x5c4   :  { %v10281_v33 = vld [vmem:[#allocation3 + $0x20] sm:$0xf0]  ;;  %v9551_v51 = vld [vmem:[#allocation3 + $0x24] sm:$0xf0]  ;;  %6726 = vmatpush.bf16.msrb.mxu2 %v10304_v61  ;;  %6522 = vmatpush.bf16.msra.mxu3 %v10330_v48 }
 0x5c5   :  { %6221 = vst [vmem:[#allocation3 + $0x30] sm:$0xff] %v6213_v49  ;;  %v9550_v15 = vor.u32 %v10281_v33, %v9549_v14  ;;  %v9554_v55 = vor.u32 %v10280_v35, %v9551_v51  ;;  %v10328_v33 = vld [vmem:[%s12544_s13 + $0x150] sm:$0xff] }
 0x5c6   :  { %v6023_v21 = vpop.f32.mrf.mxu3 }
 0x5c7   :  { %v6024_v22 = vadd.f32 %v6023_v21, %v6005_v38  ;;  %6701 = vmatmul.bf16.vlgmr.msrb.gmra.mxu0 %v9550_v15  ;;  %v12433_v18 = vpop.f32.mrf.mxu2 }
 0x5c8   :  { %v12428_v50 = vpop.f32.mrf.mxu0  ;;  %6727 = vmatpush.bf16.msrb.mxu2 %v10303_v24  ;;  %v6076_v54 = vadd.f32 %v12433_v18, %v6057_v2  ;;  %6523 = vmatpush.bf16.msra.mxu3 %v10329_v41 }
 0x5c9   :  { %v6207_v0 = vmax.f32 %v6024_v22, 0.0  ;;  %v6041_v13 = vadd.f32 %v12428_v50, %v4528_v47  ;;  %v10327_v22 = vld [vmem:[%s12544_s13 + $0x148] sm:$0xff] }
 0x5cb   :  { %v6215_v60 = vpack.c.bf16 %v6207_v0, %v6206_v63  ;;  %v12458_v42 = vpop.f32.mrf.mxu1 }
 0x5cc   :  { %v9441_v17 = vld [vmem:[#allocation3 + $0x30] sm:$0xf]  ;;  %v10283_v34 = vld [vmem:[#allocation3 + $0x34] sm:$0xf]  ;;  %6728 = vmatpush.bf16.msrb.mxu2 %v10302_v26  ;;  %6524 = vmatpush.bf16.msra.mxu3 %v10328_v33 }
 0x5cd   :  { %6223 = vst [vmem:[#allocation3 + $0x3c] sm:$0xff] %v6215_v60  ;;  %v6060_v60 = vadd.f32 %v12443_v43, %v6041_v13 }
 0x5ce   :  { %v6092_v44 = vpop.f32.mrf.mxu3 }
 0x5cf   :  { %v12445_v30 = vpop.f32.mrf.mxu2  ;;  %v6093_v7 = vadd.f32 %v6092_v44, %v6074_v19 }
 0x5d0   :  { %v12435_v39 = vpop.f32.mrf.mxu0  ;;  %v6079_v11 = vadd.f32 %v12445_v30, %v6060_v60  ;;  %6525 = vmatpush.bf16.msra.mxu3 %v10327_v22 }
 0x5d3   :  { %v6130_v25 = vpop.f32.mrf.mxu1 }
 0x5d4   :  { %v10284_v57 = vld [vmem:[#allocation3 + $0x38] sm:$0xf0]  ;;  %v9443_v56 = vld [vmem:[#allocation3 + $0x3c] sm:$0xf0]  ;;  %6526 = vmatpush.bf16.msra.mxu3 %v10326_v8 }
 0x5d5   :  { %v9442_v40 = vor.u32 %v10284_v57, %v9441_v17  ;;  %v9446_v27 = vor.u32 %v10283_v34, %v9443_v56  ;;  %v6043_v17 = vadd.f32 %v12435_v39, %v4528_v47  ;;  %v6736_v8 = vld [vmem:[%s12545_s14 + $0x8] sm:$0xff] }
 0x5d6   :  { %v6094_v3 = vpop.f32.mrf.mxu3 }
 0x5d7   :  { %6499 = vmatmul.bf16.vlgmr.msra.gmra.mxu1 %v9442_v40  ;;  %6513 = vmatmul.bf16.vlgmr.msra.gmra.mxu2 %v9446_v27  ;;  %v12466_v36 = vpop.f32.mrf.mxu2  ;;  %v6095_v45 = vadd.f32 %v6094_v3, %v6076_v54  ;;  %v6062_v30 = vadd.f32 %v12458_v42, %v6043_v17 }
 0x5d8   :  { %v6111_v58 = vpop.f32.mrf.mxu0 }
 0x5d9   :  { %v6112_v9 = vadd.f32 %v6111_v58, %v6093_v7  ;;  %v6081_v59 = vadd.f32 %v12466_v36, %v6062_v30  ;;  %v6789_v30 = vlaneseq }
 0x5db   :  { %v6131_v23 = vadd.f32 %v6130_v25, %v6112_v9  ;;  %v6132_v49 = vpop.f32.mrf.mxu1 }
 0x5de   :  { %v12453_v31 = vpop.f32.mrf.mxu3 }
 0x5df   :  { %v6149_v5 = vpop.f32.mrf.mxu2  ;;  %v6098_v57 = vadd.f32 %v12453_v31, %v6079_v11 }
 0x5e0   :  { %v6113_v4 = vpop.f32.mrf.mxu0  ;;  %v6150_v14 = vadd.f32 %v6149_v5, %v6131_v23 }
 0x5e1   :  { %v6114_v15 = vadd.f32 %v6113_v4, %v6095_v45 }
 0x5e3   :  { %v6133_v18 = vadd.f32 %v6132_v49, %v6114_v15  ;;  %v6135_v40 = vpop.f32.mrf.mxu1 }
 0x5e6   :  { %v12475_v32 = vpop.f32.mrf.mxu3 }
 0x5e7   :  { %6715 = vmatmul.bf16.vlgmr.msrb.gmra.mxu1 %v9554_v55  ;;  %v6151_v38 = vpop.f32.mrf.mxu2  ;;  %v6100_v39 = vadd.f32 %v12475_v32, %v6081_v59  ;;  %v6790_v59 = vshrl.u32 %v6789_v30, 7 }
 0x5e8   :  { %v6116_v53 = vpop.f32.mrf.mxu0  ;;  %v6152_v34 = vadd.f32 %v6151_v38, %v6133_v18  ;;  %v6735_v38 = vld [vmem:[%s12545_s14] sm:$0xff] }
 0x5e9   :  { %v6117_v27 = vadd.f32 %v6116_v53, %v6098_v57  ;;  %vm6792_vm0 = vcmp.lt.s32.totalorder %v6790_v59, 7  ;;  %vm6798_vm1 = vcmp.ge.s32.totalorder %v6790_v59, 7 }
 0x5eb   :  { %v6136_v4 = vadd.f32 %v6135_v40, %v6117_v27  ;;  %v6137_v28 = vpop.f32.mrf.mxu1 }
 0x5ee   :  { %v6168_v1 = vpop.f32.mrf.mxu3 }
 0x5ef   :  { %v6169_v21 = vadd.f32 %v6168_v1, %v6150_v14  ;;  %v6154_v3 = vpop.f32.mrf.mxu2 }
 0x5f0   :  { %v6118_v12 = vpop.f32.mrf.mxu0  ;;  %v6155_v31 = vadd.f32 %v6154_v3, %v6136_v4 }
 0x5f1   :  { %v6119_v16 = vadd.f32 %v6118_v12, %v6100_v39 }
 0x5f3   :  { %v6138_v29 = vadd.f32 %v6137_v28, %v6119_v16 }
 0x5f6   :  { %v6170_v63 = vpop.f32.mrf.mxu3 }
 0x5f7   :  { %v6171_v37 = vadd.f32 %v6170_v63, %v6152_v34  ;;  %v6156_v55 = vpop.f32.mrf.mxu2 }
 0x5f8   :  { %v6187_v0 = vpop.f32.mrf.mxu0  ;;  %v6157_v53 = vadd.f32 %v6156_v55, %v6138_v29  ;;  %v10534_v29 = vmov 0.0  }
 0x5f9   :  { %v6188_v50 = vadd.f32 %v6187_v0, %v6169_v21 }
 0x5fb   :  { %v6199_v44 = vmax.f32 %v6188_v50, 0.0 }
 0x5fd   :  { %v6210_v56 = vpack.c.bf16 %v6199_v44, %v6199_v44 }
 0x5fe   :  { %v6173_v6 = vpop.f32.mrf.mxu3 }
 0x5ff   :  { %6218 = vst [vmem:[#allocation3 + $0x20] sm:$0xf] %v6210_v56  ;;  %v6174_v20 = vadd.f32 %v6173_v6, %v6155_v31 }
 0x600   :  { %v6189_v43 = vpop.f32.mrf.mxu0 }
 0x601   :  { %v6190_v58 = vadd.f32 %v6189_v43, %v6171_v37 }
 0x603   :  { %v6202_v46 = vmax.f32 %v6190_v58, 0.0 }
 0x605   :  { %v6212_v47 = vpack.c.bf16 %v6202_v46, %v6202_v46 }
 0x606   :  { %v6175_v42 = vpop.f32.mrf.mxu3  ;;  %v9557_v10 = vld [vmem:[#allocation3 + $0x20] sm:$0xf] }
 0x607   :  { %6220 = vst [vmem:[#allocation3 + $0x2c] sm:$0xf] %v6212_v47  ;;  %v6176_v24 = vadd.f32 %v6175_v42, %v6157_v53  ;;  %v9656_v42 = vsel %vm6798_vm1, 1.0, %v10534_v29 }
 0x608   :  { %v6192_v51 = vpop.f32.mrf.mxu0 }
 0x609   :  { %v6193_v35 = vadd.f32 %v6192_v51, %v6174_v20  ;;  %v6791_v20 = vadd.s32 8, %v6790_v59 }
 0x60b   :  { %v6205_v61 = vmax.f32 %v6193_v35, 0.0  ;;  %vm6801_vm2 = vcmp.lt.s32.totalorder %v6791_v20, 14 }
 0x60d   :  { %v6214_v62 = vpack.c.bf16 %v6205_v61, %v6205_v61  ;;  %v9655_v61 = vsel %vm6792_vm0, 1.0, %v10534_v29 }
 0x60e   :  { %v10282_v36 = vld [vmem:[#allocation3 + $0x28] sm:$0xf0] }
 0x60f   :  { %6222 = vst [vmem:[#allocation3 + $0x38] sm:$0xf] %v6214_v62  ;;  %v9558_v19 = vor.u32 %v10282_v36, %v9557_v10 }
 0x610   :  { %v6194_v32 = vpop.f32.mrf.mxu0 }
 0x611   :  { %v6195_v25 = vadd.f32 %v6194_v32, %v6176_v24  ;;  %6729 = vmatmul.bf16.vlgmr.msrb.gmra.mxu2 %v9558_v19  ;;  %v9657_v24 = vsel %vm6801_vm2, 1.0, %v10534_v29 }
 0x613   :  { %v6208_v5 = vmax.f32 %v6195_v25, 0.0 }
 0x615   :  { %v6216_v52 = vpack.c.bf16 %v6208_v5, %v6208_v5 }
 0x616   :  { %v9449_v7 = vld [vmem:[#allocation3 + $0x38] sm:$0xf] }
 0x617   :  { %6224 = vst [vmem:[#allocation3 + $0x44] sm:$0xf] %v6216_v52 }
 0x61e   :  { %v10285_v48 = vld [vmem:[#allocation3 + $0x40] sm:$0xf0] }
 0x61f   :  { %v9450_v26 = vor.u32 %v10285_v48, %v9449_v7 }
 0x621   :  { %6527 = vmatmul.bf16.vlgmr.msra.gmra.mxu3 %v9450_v26 }
 0x644   :  { %v6702_v54 = vpop.f32.mrf.mxu0 }
 0x64c   :  { %v6704_v60 = vpop.f32.mrf.mxu0 }
 0x654   :  { %v6500_v1 = vpop.f32.mrf.mxu1 }
 0x65a   :  { %v6514_v9 = vpop.f32.mrf.mxu2 }
 0x65b   :  { %v6515_v41 = vadd.f32 %v6514_v9, %v6500_v1 }
 0x65c   :  { %v6502_v12 = vpop.f32.mrf.mxu1 }
 0x662   :  { %v6516_v2 = vpop.f32.mrf.mxu2 }
 0x663   :  { %v6517_v15 = vadd.f32 %v6516_v2, %v6502_v12 }
 0x664   :  { %v6716_v49 = vpop.f32.mrf.mxu1 }
 0x66c   :  { %v6718_v11 = vpop.f32.mrf.mxu1 }
 0x694   :  { %v6730_v14 = vpop.f32.mrf.mxu2 }
 0x69c   :  { %v6732_v44 = vpop.f32.mrf.mxu2 }
 0x6a4   :  { %v6528_v23 = vpop.f32.mrf.mxu3 }
 0x6a5   :  { %v6529_v13 = vadd.f32 %v6528_v23, %v6515_v41 }
 0x6a7   :  { %v6703_v45 = vadd.f32 %v6702_v54, %v6529_v13 }
 0x6a9   :  { %v6717_v33 = vadd.f32 %v6716_v49, %v6703_v45 }
 0x6ab   :  { %v6731_v21 = vadd.f32 %v6730_v14, %v6717_v33 }
 0x6ac   :  { %v6530_v22 = vpop.f32.mrf.mxu3 }
 0x6ad   :  { %v6737_v63 = vmul.f32 %v6735_v38, %v6731_v21  ;;  %v6531_v0 = vadd.f32 %v6530_v22, %v6517_v15  ;;  %v10357_v15 = vld [vmem:[%s12546_s15] ss:$0 sm:$0xff]  ;;  %s10536_s15 = smov [#allocation13]  }
 0x6ae   :  { %s6889_s9 = sshll.u32 %s10536_s15, 4  ;;  %s6890_s9 = int_to_ptr.vmem [resolvable:$true] %s6889_s9 }
 0x6af   :  { %v6705_v50 = vadd.f32 %v6704_v60, %v6531_v0  ;;  %6757 = vrot.lane.b32.xlu2 %v6737_v63, %s10528_s16  ;;  %6749 = vrot.lane.b32.xlu1 %v6737_v63, %s10529_s4 }
 0x6b0   :  { %6741 = vrot.lane.b32.xlu0 %v6737_v63, %s10530_s10 }
 0x6b1   :  { %v6719_v18 = vadd.f32 %v6718_v11, %v6705_v50  ;;  %v10535_v50 = vmov 34.0  }
 0x6b2   :  { %10358 = vrcp.f32 %v10535_v50 }
 0x6b3   :  { %v6733_v17 = vadd.f32 %v6732_v44, %v6719_v18 }
 0x6b5   :  { %v6738_v57 = vmul.f32 %v6736_v8, %v6733_v17 }
 0x6b7   :  { %6773 = vrot.lane.b32.xlu2 %v6737_v63, %s10531_s30  ;;  %6751 = vrot.lane.b32.xlu1 %v6738_v57, %s10529_s4 }
 0x6b8   :  { %6765 = vrot.lane.b32.xlu0 %v6737_v63, %s10532_s8  ;;  %v10359_v11 = vpop.eup %10358 }
 0x6b9   :  { %v6851_v18 = vmul.f32 34.0, %v10359_v11  ;;  %vm6855_vm7 = vweird.f32 %v10359_v11 }
 0x6bb   :  { %v6852_v44 = vsub.f32 1.0, %v6851_v18 }
 0x6bf   :  { %6759 = vrot.lane.b32.xlu2 %v6738_v57, %s10528_s16  ;;  %6767 = vrot.lane.b32.xlu1 %v6738_v57, %s10532_s8 }
 0x6c0   :  { %6743 = vrot.lane.b32.xlu0 %v6738_v57, %s10530_s10 }
 0x6c7   :  { %6783 = vrot.lane.b32.xlu2 %v6738_v57, %s10533_s12  ;;  %6781 = vrot.lane.b32.xlu1 %v6737_v63, %s10533_s12 }
 0x6c8   :  { %6775 = vrot.lane.b32.xlu0 %v6738_v57, %s10531_s30 }
 0x709   :  { %v6758_v34 = vpop.permute.xlu2 %6757 }
 0x711   :  { %v6774_v27 = vpop.permute.xlu2 %6773 }
 0x719   :  { %v6760_v4 = vpop.permute.xlu2 %6759 }
 0x721   :  { %v6750_v56 = vpop.permute.xlu1 %6749  ;;  %v6784_v36 = vpop.permute.xlu2 %6783 }
 0x722   :  { %v6742_v40 = vpop.permute.xlu0 %6741 }
 0x723   :  { %v6747_v3 = vadd.f32 %v6742_v40, %v6737_v63 }
 0x725   :  { %v6755_v58 = vadd.f32 %v6750_v56, %v6747_v3 }
 0x727   :  { %v6763_v46 = vadd.f32 %v6758_v34, %v6755_v58  ;;  %v6853_v34 = vmul.f32 %v10359_v11, %v6852_v44 }
 0x729   :  { %v6752_v37 = vpop.permute.xlu1 %6751 }
 0x72a   :  { %v6766_v43 = vpop.permute.xlu0 %6765 }
 0x72b   :  { %v6771_v47 = vadd.f32 %v6766_v43, %v6763_v46 }
 0x72d   :  { %v6779_v35 = vadd.f32 %v6774_v27, %v6771_v47  ;;  %v6854_v27 = vadd.f32 %v10359_v11, %v6853_v34 }
 0x72f   :  { %v6856_v43 = vsel %vm6855_vm7, %v10359_v11, %v6854_v27 }
 0x731   :  { %v6768_v6 = vpop.permute.xlu1 %6767 }
 0x732   :  { %v6744_v39 = vpop.permute.xlu0 %6743 }
 0x733   :  { %v6748_v31 = vadd.f32 %v6744_v39, %v6738_v57 }
 0x735   :  { %v6756_v16 = vadd.f32 %v6752_v37, %v6748_v31 }
 0x737   :  { %v6764_v51 = vadd.f32 %v6760_v4, %v6756_v16 }
 0x739   :  { %v6782_v28 = vpop.permute.xlu1 %6781  ;;  %v6772_v55 = vadd.f32 %v6768_v6, %v6764_v51 }
 0x73a   :  { %v6787_v53 = vadd.f32 %v6782_v28, %v6779_v35  ;;  %v6776_v62 = vpop.permute.xlu0 %6775 }
 0x73b   :  { %v6780_v10 = vadd.f32 %v6776_v62, %v6772_v55 }
 0x73c   :  { %v6808_v19 = vmul.f32 %v9655_v61, %v6787_v53  ;;  %v6820_v32 = vmul.f32 %v9656_v42, %v6787_v53 }
 0x73d   :  { %v6788_v25 = vadd.f32 %v6784_v36, %v6780_v10 }
 0x73e   :  { %v6811_v7 = vsel %vm6810_vm3, %v6808_v19, 0.0  ;;  %v6822_v48 = vsel %vm6810_vm3, %v6820_v32, 0.0 }
 0x73f   :  { %v6809_v5 = vmul.f32 0.0, %v6788_v25  ;;  %v6821_v52 = vmul.f32 %v9657_v24, %v6788_v25 }
 0x741   :  { %v6812_v26 = vsel %vm6810_vm3, %v6809_v5, 0.0  ;;  %v6823_v1 = vsel %vm6810_vm3, %v6821_v52, 0.0 }
 0x742   :  { %v6813_v9 = vadd.f32 %v6812_v26, %v6811_v7  ;;  %v6824_v12 = vadd.f32 %v6823_v1, %v6822_v48 }
 0x744   :  { %v6814_v2 = vrot.slane %v6813_v9, 4  ;;  %v6825_v41 = vrot.slane %v6824_v12, 4 }
 0x746   :  { %v6815_v54 = vadd.f32 %v6814_v2, %v6813_v9  ;;  %v6826_v23 = vadd.f32 %v6825_v41, %v6824_v12 }
 0x748   :  { %v6816_v13 = vrot.slane %v6815_v54, 2  ;;  %v6827_v49 = vrot.slane %v6826_v23, 2 }
 0x74a   :  { %v6817_v45 = vadd.f32 %v6816_v13, %v6815_v54  ;;  %v6828_v14 = vadd.f32 %v6827_v49, %v6826_v23 }
 0x74c   :  { %v6818_v33 = vrot.slane %v6817_v45, 1  ;;  %v6829_v38 = vrot.slane %v6828_v14, 1 }
 0x74e   :  { %v6819_v21 = vadd.f32 %v6818_v33, %v6817_v45  ;;  %v6830_v22 = vadd.f32 %v6829_v38, %v6828_v14 }
 0x750   :  { %v6832_v63 = vsel %vm6831_vm4, %v6819_v21, %v6830_v22 }
 0x751   :  { %v6837_v0 = vadd.f32 %v10357_v15, %v6832_v63 }
 0x753   :  { %v6839_v60 = vsel %vm6838_vm5, %v6837_v0, 0.0 }
 0x754   :  { %6840 = vadd.xlane.f32.xlu0 %v6839_v60 }
 0x7c7   :  { %v6841_v8 = vpop.xlane.xlu0 %6840 }
 0x7c8   :  { %v6843_v17 = vsel %vm6842_vm6, %v6841_v8, 0.0 }
 0x7c9   :  { %v6844_v57 = vrot.slane %v6843_v17, 4 }
 0x7cb   :  { %v6845_v56 = vadd.f32 %v6844_v57, %v6843_v17 }
 0x7cd   :  { %v6846_v40 = vrot.slane %v6845_v56, 2 }
 0x7cf   :  { %v6847_v37 = vadd.f32 %v6846_v40, %v6845_v56 }
 0x7d1   :  { %v6848_v3 = vrot.slane %v6847_v37, 1 }
 0x7d3   :  { %v6849_v30 = vadd.f32 %v6848_v3, %v6847_v37 }
 0x7d5   :  { %v6857_v58 = vmul.f32 %v6856_v43, %v6849_v30 }
 0x7d7   :  { %v6858_v6 = vsub.f32 %v6837_v0, %v6857_v58 }
 0x7d9   :  { %v6859_v59 = vmul.f32 %v6858_v6, %v6858_v6 }
 0x7db   :  { %v6860_v4 = vsel %vm6838_vm5, %v6859_v59, 0.0 }
 0x7dc   :  { %6861 = vadd.xlane.f32.xlu1 %v6860_v4 }
 0x84f   :  { %v6862_v46 = vpop.xlane.xlu1 %6861 }
 0x850   :  { %v6863_v39 = vsel %vm6842_vm6, %v6862_v46, 0.0 }
 0x851   :  { %v6864_v31 = vrot.slane %v6863_v39, 4 }
 0x853   :  { %v6865_v47 = vadd.f32 %v6864_v31, %v6863_v39 }
 0x855   :  { %v6866_v16 = vrot.slane %v6865_v47, 2 }
 0x857   :  { %v6867_v20 = vadd.f32 %v6866_v16, %v6865_v47 }
 0x859   :  { %v6868_v51 = vrot.slane %v6867_v20, 1 }
 0x85b   :  { %v6869_v35 = vadd.f32 %v6868_v51, %v6867_v20 }
 0x85d   :  { %v6870_v28 = vmul.f32 %v6869_v35, %v6856_v43 }
 0x85f   :  { %v6871_v55 = vadd.f32 1e-05, %v6870_v28 }
 0x861   :  { %10360 = vrsqrt.f32 %v6871_v55  ;;  %vm6878_vm9 = vweird.f32 %v6871_v55 }
 0x867   :  { %v10361_v29 = vpop.eup %10360 }
 0x868   :  { %v6873_v61 = vmul.f32 %v10361_v29, %v6871_v55  ;;  %vm6879_vm8 = vweird.f32 %v10361_v29 }
 0x869   :  { %vm6880_vm10 = vmor %vm6878_vm9, %vm6879_vm8 }
 0x86a   :  { %v6874_v42 = vmul.f32 %v10361_v29, %v6873_v61 }
 0x86c   :  { %v6875_v53 = vmul.f32 0.5, %v6874_v42 }
 0x86e   :  { %v6876_v62 = vsub.f32 1.5, %v6875_v53 }
 0x870   :  { %v6877_v10 = vmul.f32 %v10361_v29, %v6876_v62 }
 0x872   :  { %v6881_v36 = vsel %vm6880_vm10, %v10361_v29, %v6877_v10 }
 0x873   :  { %v6882_v24 = vmul.f32 %v6881_v36, %v6858_v6 }
 0x875   :  { %6883 = vst.msk [vmem:[#allocation13] sm:$0x3] %vm6838_vm5, %v6882_v24 }
 0x876   :  { %6894 = dma.vmem_to_hbm [thread:$0]  %s6890_s9, 32, %s6892_s26, [#allocation6]  }
 0x877   :  { %10514 = dma.done.wait [#allocation6], 32  }
 0x878   :  { %10515 = vsyncadd [#allocation6], 4294967264 }
 0x879   :  { %6899 = vsyncpa [#allocation5], 1 }
 0x87a   :  { %6900 = vsyncpa [#allocation8], 1 }
 0x87b   :  { %6901 = vsyncpa [#allocation11], 1 }
 0x87c   :  { %6902 = vsyncpa [#allocation6], 1 }

</bundles_post_ra>
